<compile_context>
chip_gen: v7x
topology: tpu7x:2x2x1
jax: 0.10.0
libtpu: 0.0.40
codegen_flags: <defaults>
</compile_context>

<pallas_src>
import functools

import jax
import jax.numpy as jnp
from jax.experimental import pallas as pl
from jax.experimental.pallas import tpu as pltpu

FEAT_C = 2048   # resnet50 pre-pool channels
HIDDEN = 512    # self.liner width
FEAT_H = 7      # resnet50 pre-pool spatial for 224x224 input
FEAT_W = 7


def _siamese_head_kernel(feat_ref, sel_ref, w1_ref, b1_ref, w2_ref, b2_ref,
                         emb_ref, score_ref, *, inv_hw):
    """One batch tile (tb rows) per grid step.

    feat_ref : (tb*HW, C)  bf16  flattened pre-pool feature rows (channels on lanes)
    sel_ref  : (tb, tb*HW) bf16  exact-0/1 pooling selector (row r picks batch row r's HW rows)
    w1_ref   : (C, HIDDEN) bf16  self.liner weight, x @ W layout
    b1_ref   : (1, HIDDEN) f32
    w2_ref   : (1, HIDDEN) f32   self.out weight as a row
    b2_ref   : (1,)        f32   self.out bias (SMEM scalar)
    emb_ref  : (tb, C)           forward_sister_network output (pool + flatten)
    score_ref: (tb, 1)     f32   self.out(self.liner(emb))
    """
    # AdaptiveAvgPool2d((1,1)) + flatten on the MXU: selector @ feat, f32 accumulate,
    # scale by 1/HW in f32 afterwards (selector entries are exact 0/1 in bf16).
    pooled = jnp.dot(sel_ref[...], feat_ref[...],
                     preferred_element_type=jnp.float32) * inv_hw       # (tb, C) f32
    emb_ref[...] = pooled.astype(emb_ref.dtype)

    # self.liner: Linear(2048,512) + Sigmoid. bf16 operands on the MXU, f32 accumulate;
    # sigmoid stays in f32 (EUP; v5e has no bf16 VPU/EUP).
    h = jnp.dot(pooled.astype(jnp.bfloat16), w1_ref[...],
                preferred_element_type=jnp.float32) + b1_ref[...]       # (tb, HIDDEN)
    h = jax.nn.sigmoid(h)

    # self.out: Linear(512,1) as VPU multiply + lane reduction (avoid an N=1 MXU matmul).
    s = jnp.sum(h * w2_ref[...], axis=-1, keepdims=True) + b2_ref[0]    # (tb, 1)
    score_ref[...] = s.astype(score_ref.dtype)


def siamese_head(feat, w1, b1, w2_row, b2, *, tb=32, emb_dtype=jnp.float32,
                 vmem_limit_bytes=48 * 1024 * 1024):
    """feat: [B, H*W, C] conv-trunk feature map (NHWC, spatial flattened).

    Returns (embedding [B, C] emb_dtype, score [B, 1] f32).

    tb guidance: 32 is safe everywhere; <=64 on v7x (64 MiB VMEM); up to 128 on v6e/v5e
    (raise vmem_limit_bytes to ~80 MiB in that case). Keep >=2 grid steps so the
    "parallel" axis can feed both v7x TensorCores.
    """
    B, HW, C = feat.shape
    assert C == FEAT_C and w1.shape == (FEAT_C, HIDDEN)
    assert tb % 8 == 0, "tb must be a multiple of 8 (sublane alignment)"

    feat = feat.astype(jnp.bfloat16)
    w1 = w1.astype(jnp.bfloat16)
    b1_2d = b1.reshape(1, HIDDEN).astype(jnp.float32)
    w2_2d = w2_row.reshape(1, HIDDEN).astype(jnp.float32)
    b2_1d = b2.reshape(1).astype(jnp.float32)

    # Pad batch to a multiple of the batch tile (padded rows are sliced off below).
    pad = (-B) % tb
    if pad:
        feat = jnp.pad(feat, ((0, pad), (0, 0), (0, 0)))
    bp = B + pad
    n_tiles = bp // tb

    # Flattened 2-D feat stream: [bp*HW, C].  A (tb*HW, C) block keeps channels lane-dense
    # and dodges the 49->64 bf16 sublane padding a (tb, HW, C) block would pay.
    feat2d = feat.reshape(bp * HW, C)

    # Exact 0/1 pooling selector (tb, tb*HW): S[r, r*HW + j] = 1 for j in [0, HW).
    sel = (jnp.arange(tb * HW, dtype=jnp.int32)[None, :] // HW ==
           jnp.arange(tb, dtype=jnp.int32)[:, None]).astype(jnp.bfloat16)

    kernel = functools.partial(_siamese_head_kernel, inv_hw=float(1.0 / HW))

    grid_spec = pltpu.PrefetchScalarGridSpec(
        num_scalar_prefetch=0,
        grid=(n_tiles,),
        in_specs=[
            pl.BlockSpec((tb * HW, C), lambda i: (i, 0)),            # feat tile (streamed)
            pl.BlockSpec((tb, tb * HW), lambda i: (0, 0)),           # pooling selector (resident)
            pl.BlockSpec((C, HIDDEN), lambda i: (0, 0)),             # w1 (resident)
            pl.BlockSpec((1, HIDDEN), lambda i: (0, 0)),             # b1
            pl.BlockSpec((1, HIDDEN), lambda i: (0, 0)),             # w2 row
            pl.BlockSpec(memory_space=pltpu.MemorySpace.SMEM),       # b2 scalar
        ],
        out_specs=[
            pl.BlockSpec((tb, C), lambda i: (i, 0)),
            pl.BlockSpec((tb, 1), lambda i: (i, 0)),
        ],
    )

    emb, score = pl.pallas_call(
        kernel,
        out_shape=(
            jax.ShapeDtypeStruct((bp, C), emb_dtype),
            jax.ShapeDtypeStruct((bp, 1), jnp.float32),
        ),
        grid_spec=grid_spec,
        compiler_params=pltpu.CompilerParams(
            dimension_semantics=("parallel",),
            vmem_limit_bytes=vmem_limit_bytes,
        ),
    )(feat2d, sel, w1, b1_2d, w2_2d, b2_1d)

    return emb[:B], score[:B]


def _reference(feat_bf16, w1_bf16, b1, w2_row, b2):
    """Pure-JAX reference on the same bf16 inputs, f32 math."""
    f = feat_bf16.astype(jnp.float32)
    emb = jnp.mean(f, axis=1)                                       # [B, C]
    pooled_q = emb.astype(jnp.bfloat16).astype(jnp.float32)         # kernel feeds bf16 MXU
    h = jax.nn.sigmoid(pooled_q @ w1_bf16.astype(jnp.float32) + b1.reshape(1, -1))
    s = jnp.sum(h * w2_row.reshape(1, -1), axis=-1, keepdims=True) + b2.reshape(1, 1)
    return emb, s


if __name__ == "__main__":
    key = jax.random.PRNGKey(0)
    k_x1, k_x2, k_w1, k_b1, k_w2, k_b2 = jax.random.split(key, 6)

    B = 32                     # per siamese branch -> 2B = 64 rows -> 2 parallel grid steps
    HW = FEAT_H * FEAT_W       # 49

    # Pre-pool resnet50 feature maps for the two branches (refs / probes), already emitted
    # in [B, HW, C] layout by the trunk -> no extra transpose pass over HBM.
    x1 = jax.random.normal(k_x1, (B, HW, FEAT_C), dtype=jnp.float32).astype(jnp.bfloat16)
    x2 = jax.random.normal(k_x2, (B, HW, FEAT_C), dtype=jnp.float32).astype(jnp.bfloat16)

    # nn.Linear(2048,512) / nn.Linear(512,1) parameters, stored so the kernel does x @ W.
    w1 = (jax.random.normal(k_w1, (FEAT_C, HIDDEN), dtype=jnp.float32) * 0.02
          ).astype(jnp.bfloat16)
    b1 = jax.random.normal(k_b1, (HIDDEN,), dtype=jnp.float32) * 0.02
    w2 = jax.random.normal(k_w2, (1, HIDDEN), dtype=jnp.float32) * 0.02
    b2 = jax.random.normal(k_b2, (1,), dtype=jnp.float32) * 0.02

    # Both siamese branches in ONE pallas_call (weights + selector DMA'd once, one pipeline
    # ramp); 2B=64 rows with tb=32 -> 2 parallel grid steps (feeds both v7x TensorCores).
    feats = jnp.concatenate([x1, x2], axis=0)                       # [2B, HW, C]
    emb, score = siamese_head(feats, w1, b1, w2, b2, tb=32)
    emb1, emb2 = emb[:B], emb[B:]
    score1, score2 = score[:B], score[B:]
    jax.block_until_ready((emb1, score1, emb2, score2))

    # Sanity check against the pure-JAX reference.
    ref_emb1, ref_s1 = _reference(x1, w1, b1, w2, b2)
    ref_emb2, ref_s2 = _reference(x2, w1, b1, w2, b2)
    assert jnp.allclose(emb1, ref_emb1, atol=1e-4, rtol=1e-4)
    assert jnp.allclose(emb2, ref_emb2, atol=1e-4, rtol=1e-4)
    assert jnp.allclose(score1, ref_s1, atol=1e-2, rtol=1e-2)
    assert jnp.allclose(score2, ref_s2, atol=1e-2, rtol=1e-2)

    print("KERNEL_OK")
</pallas_src>

<mosaic_0001>
module attributes {stable_mosaic.version = 11 : i64} {
  func.func @_siamese_head_kernel(%arg0: i32, %arg1: memref<1568x2048xbf16, #tpu.memory_space<vmem>>, %arg2: memref<32x1568xbf16, #tpu.memory_space<vmem>>, %arg3: memref<2048x512xbf16, #tpu.memory_space<vmem>>, %arg4: memref<1x512xf32, #tpu.memory_space<vmem>>, %arg5: memref<1x512xf32, #tpu.memory_space<vmem>>, %arg6: memref<1xf32, #tpu.memory_space<smem>>, %arg7: memref<32x2048xf32, #tpu.memory_space<vmem>>, %arg8: memref<32x1xf32, #tpu.memory_space<vmem>>) attributes {dimension_semantics = [#tpu.dimension_semantics<parallel>], iteration_bounds = array<i64: 2>, scalar_prefetch = 0 : i64, scratch_operands = 0 : i64, tpu.core_type = #tpu.core_type<tc>, window_params = [{transform_indices = @transform_0, window_bounds = array<i64: 1568, 2048>}, {pipeline_mode = #tpu.pipeline_mode<synchronous>, transform_indices = @transform_1, window_bounds = array<i64: 32, 1568>}, {pipeline_mode = #tpu.pipeline_mode<synchronous>, transform_indices = @transform_2, window_bounds = array<i64: 2048, 512>}, {pipeline_mode = #tpu.pipeline_mode<synchronous>, transform_indices = @transform_3, window_bounds = array<i64: 1, 512>}, {pipeline_mode = #tpu.pipeline_mode<synchronous>, transform_indices = @transform_4, window_bounds = array<i64: 1, 512>}, {transform_indices = @transform_5, window_bounds = array<i64: 1>}, {transform_indices = @transform_6, window_bounds = array<i64: 32, 2048>}, {transform_indices = @transform_7, window_bounds = array<i64: 32, 1>}]} {
    %c0 = arith.constant 0 : index
    %c0_0 = arith.constant 0 : index
    %0 = vector.load %arg2[%c0, %c0_0] : memref<32x1568xbf16, #tpu.memory_space<vmem>>, vector<32x1568xbf16>
    %c0_1 = arith.constant 0 : index
    %c0_2 = arith.constant 0 : index
    %1 = vector.load %arg1[%c0_1, %c0_2] : memref<1568x2048xbf16, #tpu.memory_space<vmem>>, vector<1568x2048xbf16>
    %cst = arith.constant dense<0.000000e+00> : vector<32x2048xf32>
    %2 = tpu.matmul %0, %1, %cst {dimension_numbers = #tpu.dot_dimension_numbers<[1], [0], [0], [1], [0, 0, 1, 1], [], []>} : vector<32x1568xbf16>, vector<1568x2048xbf16>, vector<32x2048xf32> -> vector<32x2048xf32>
    %cst_3 = arith.constant 0.0204081628 : f32
    %3 = vector.broadcast %cst_3 : f32 to vector<32x2048xf32>
    %4 = arith.mulf %2, %3 : vector<32x2048xf32>
    %c0_4 = arith.constant 0 : index
    %c0_5 = arith.constant 0 : index
    %5 = vector.load %arg7[%c0_4, %c0_5] : memref<32x2048xf32, #tpu.memory_space<vmem>>, vector<32x2048xf32>
    tpu.vector_store %arg7[%c0_4, %c0_5], %4 {strides = array<i32>} : memref<32x2048xf32, #tpu.memory_space<vmem>>, vector<32x2048xf32>,
    %6 = arith.truncf %4 : vector<32x2048xf32> to vector<32x2048xbf16>
    %c0_6 = arith.constant 0 : index
    %c0_7 = arith.constant 0 : index
    %7 = vector.load %arg3[%c0_6, %c0_7] : memref<2048x512xbf16, #tpu.memory_space<vmem>>, vector<2048x512xbf16>
    %cst_8 = arith.constant dense<0.000000e+00> : vector<32x512xf32>
    %8 = tpu.matmul %6, %7, %cst_8 {dimension_numbers = #tpu.dot_dimension_numbers<[1], [0], [0], [1], [0, 0, 1, 1], [], []>} : vector<32x2048xbf16>, vector<2048x512xbf16>, vector<32x512xf32> -> vector<32x512xf32>
    %c0_9 = arith.constant 0 : index
    %c0_10 = arith.constant 0 : index
    %9 = vector.load %arg4[%c0_9, %c0_10] : memref<1x512xf32, #tpu.memory_space<vmem>>, vector<1x512xf32>
    %10 = vector.broadcast %9 : vector<1x512xf32> to vector<32x512xf32>
    %11 = arith.addf %8, %10 : vector<32x512xf32>
    %12 = arith.negf %11 : vector<32x512xf32>
    %13 = math.exp %12 : vector<32x512xf32>
    %cst_11 = arith.constant 1.000000e+00 : f32
    %14 = vector.broadcast %cst_11 : f32 to vector<32x512xf32>
    %15 = arith.addf %14, %13 : vector<32x512xf32>
    %16 = arith.divf %14, %15 : vector<32x512xf32>
    %c0_12 = arith.constant 0 : index
    %c0_13 = arith.constant 0 : index
    %17 = vector.load %arg5[%c0_12, %c0_13] : memref<1x512xf32, #tpu.memory_space<vmem>>, vector<1x512xf32>
    %18 = vector.broadcast %17 : vector<1x512xf32> to vector<32x512xf32>
    %19 = arith.mulf %16, %18 : vector<32x512xf32>
    %cst_14 = arith.constant dense<0.000000e+00> : vector<32xf32>
    %20 = vector.multi_reduction <add>, %19, %cst_14 [1] : vector<32x512xf32> to vector<32xf32>
    %21 = vector.shape_cast %20 : vector<32xf32> to vector<32x1xf32>
    %c0_15 = arith.constant 0 : index
    %22 = memref.load %arg6[%c0_15] : memref<1xf32, #tpu.memory_space<smem>>
    %23 = vector.broadcast %22 : f32 to vector<32x1xf32>
    %24 = arith.addf %21, %23 : vector<32x1xf32>
    %c0_16 = arith.constant 0 : index
    %c0_17 = arith.constant 0 : index
    %25 = vector.load %arg8[%c0_16, %c0_17] : memref<32x1xf32, #tpu.memory_space<vmem>>, vector<32x1xf32>
    tpu.vector_store %arg8[%c0_16, %c0_17], %24 {strides = array<i32>} : memref<32x1xf32, #tpu.memory_space<vmem>>, vector<32x1xf32>,
    return
  }
  func.func @transform_0(%arg0: i32) -> (i32, i32) {
    %c0_i32 = arith.constant 0 : i32
    %c0_i32_0 = arith.constant 0 : i32
    return %arg0, %c0_i32 : i32, i32
  }
  func.func @transform_1(%arg0: i32) -> (i32, i32) {
    %c0_i32 = arith.constant 0 : i32
    %c0_i32_0 = arith.constant 0 : i32
    %c0_i32_1 = arith.constant 0 : i32
    return %c0_i32, %c0_i32_0 : i32, i32
  }
  func.func @transform_2(%arg0: i32) -> (i32, i32) {
    %c0_i32 = arith.constant 0 : i32
    %c0_i32_0 = arith.constant 0 : i32
    %c0_i32_1 = arith.constant 0 : i32
    return %c0_i32, %c0_i32_0 : i32, i32
  }
  func.func @transform_3(%arg0: i32) -> (i32, i32) {
    %c0_i32 = arith.constant 0 : i32
    %c0_i32_0 = arith.constant 0 : i32
    %c0_i32_1 = arith.constant 0 : i32
    return %c0_i32, %c0_i32_0 : i32, i32
  }
  func.func @transform_4(%arg0: i32) -> (i32, i32) {
    %c0_i32 = arith.constant 0 : i32
    %c0_i32_0 = arith.constant 0 : i32
    %c0_i32_1 = arith.constant 0 : i32
    return %c0_i32, %c0_i32_0 : i32, i32
  }
  func.func @transform_5(%arg0: i32) -> i32 {
    %c0_i32 = arith.constant 0 : i32
    %c0_i32_0 = arith.constant 0 : i32
    return %c0_i32 : i32
  }
  func.func @transform_6(%arg0: i32) -> (i32, i32) {
    %c0_i32 = arith.constant 0 : i32
    %c0_i32_0 = arith.constant 0 : i32
    return %arg0, %c0_i32 : i32, i32
  }
  func.func @transform_7(%arg0: i32) -> (i32, i32) {
    %c0_i32 = arith.constant 0 : i32
    %c0_i32_0 = arith.constant 0 : i32
    return %arg0, %c0_i32 : i32, i32
  }
}

</mosaic_0001>

<bundles_post_ra>
// kernel: tpu_custom_call.1
= control target key start
LH: loop header
LB: loop body
LE: loop exit
PB: predicated region body
PF: predicated region fallthrough
CT: control target
= control target key end

     0   :  { %s23513_s0 = inlined_call_operand.hbm [shape: bf16[3136,2048], index: 0, kind: input, shape index: {}]   ;;  %s23514_s1 = inlined_call_operand.hbm [shape: bf16[32,1568], index: 1, kind: input, shape index: {}]   ;;  %s23515_s2 = inlined_call_operand.hbm [shape: bf16[2048,512], index: 2, kind: input, shape index: {}]   ;;  %s23516_s3 = inlined_call_operand.hbm [shape: f32[1,512], index: 3, kind: input, shape index: {}]   ;;  %s23517_s4 = inlined_call_operand.hbm [shape: f32[1,512], index: 4, kind: input, shape index: {}]   ;;  %s23518_s5 = inlined_call_operand.<no memory space> [shape: f32[1], index: 5, kind: input, shape index: {}]   ;;  %s23519_s6 = inlined_call_operand.hbm [shape: f32[64,2048], index: 6, kind: output, shape index: {0}]   ;;  %s23520_s7 = inlined_call_operand.vmem [shape: f32[64,1], index: 7, kind: output, shape index: {1}]  }
   0x1   :  { %13 = sst [smem:[#allocation2]] %s23518_s5 }
   0x2   :  { %14 = vsyncpa [#allocation4], 0 }
   0x3   :  { %16 = vsyncpa [#allocation4 + $0x1], 0 }
   0x4   :  { %17 = vsyncpa [#allocation7], 0 }
   0x5   :  { %18 = vsyncpa [#allocation10], 0 }
   0x6   :  { %19 = vsyncpa [#allocation5], 0 }
   0x7   :  { %21 = vsyncpa [#allocation5 + $0x1], 0  ;;  %s21338_s26 = smov 0   ;;  %s21340_s27 = smov 0  }
   0x8   :  { %s21342_s28 = smov 0   ;;  %s21344_s29 = smov 0  }
   0x9 LB: > { %s21359_s5 = sadd.s32 4294967295, %s21278_s29   ;;  %s17338_s30 = sadd.s32 4294967294, %s21278_s29   ;;  %s21278_s29 = sphi %s21344_s29, %s23543_s29   ;;  %s21274_s28 = sphi %s21342_s28, %s23542_s28   ;;  %s21270_s27 = sphi %s21340_s27, %s23541_s27   ;;  %s21266_s26 = sphi %s21338_s26, %s23540_s26  }
   0xa   : > { %p47_p0 = scmp.ne.s32.totalorder %s21270_s27, %s21266_s26  ;;  %p23521_p1 = scmp.eq.s32.totalorder %s21359_s5, 0 }
   0xb   : > { %p182_p3 = scmp.eq.s32.totalorder %s17338_s30, 1  ;;  %p17339_p5 = scmp.ge.s32.totalorder %s21278_s29, 1 }
   0xc   : > { %p21368_p4 = por %p23521_p1, %p47_p0  ;;  %p215_p7 = scmp.lt.s32.totalorder %s21278_s29, 3 }
   0xd   : > { %p21373_p6 = por %p182_p3, %p47_p0  ;;  %s21280_s11 = smov [#allocation6]  }
   0xe   : > { %s23524_s8 = scalar_select %p21368_p4, 1, 0 }
   0xf   : > { %s23525_s9 = scalar_select %p21373_p6, 1, 0 }
  0x10   : > { %p21378_p8 = pnand %p17339_p5, %p215_p7  ;;  %s227_s12 = sshll.u32 %s21280_s11, 4  ;;  %s21382_s12 = int_to_ptr.vmem [resolvable:$true] %s227_s12 }
  0x11   : > { %s21281_s14 = smov [#allocation9]   ;;  %s21282_s16 = smov [#allocation8]  }
  0x12   : > { %s23526_s10 = scalar_select %p21378_p8, 1, 0 }
  0x13   : > { %p20038_p9 = pneg %p21378_p8  ;;  %s254_s15 = sshll.u32 %s21281_s14, 4  ;;  %s21393_s15 = int_to_ptr.vmem [resolvable:$true] %s254_s15 }
  0x14   : > { %s21395_s17 = sshll.u32 %s21282_s16, 4  ;;  %s21062_s20 = scalar_lea.hbm %s23514_s1, 3328  ;;  %s241_s17 = int_to_ptr.vmem [resolvable:$true] %s21395_s17 }
  0x15   : > { %p21389_p11 = pnand %p20038_p9, %p23521_p1  ;;  %p21063_p12 = scmp.ne.s32.totalorder %s23514_s1, %s21062_s20 }
  0x16   : > { %p21069_p5 = scmp.lt.u32.totalorder %s21062_s20, %s23514_s1 }
  0x17   : > { %p21405_p13 = pneg %p21389_p11 }
  0x19   : > { %p21065_p0 = pnand %p21405_p13, %p21063_p12 }
  0x1b   : > { %p21066_p3 = pneg %p21065_p0 }
  0x1d   : > { %p21071_p7 = pnand %p21069_p5, %p21066_p3 }
  0x1f   : > { %21074 = shalt.err (!%p21071_p7)
}
  0x20   : > { %s21075_s30 = scalar_lea.vmem %s21382_s12, 3328  ;;  %p21083_p2 = scmp.lt.s32.totalorder %s21382_s12, %s21382_s12 }
  0x21   : > { %p21076_p9 = scmp.ne.s32.totalorder %s21382_s12, %s21075_s30  ;;  %p21084_p6 = scmp.lt.s32.totalorder %s21075_s30, %s21075_s30 }
  0x23   : > { %p21078_p10 = pnand %p21076_p9, %p21405_p13  ;;  %p21085_p12 = por %p21084_p6, %p21083_p2 }
  0x25   : > { %p21079_p1 = pneg %p21078_p10 }
  0x27   : > { %p21086_p0 = pnand %p21085_p12, %p21079_p1 }
  0x29   : > { %21089 = shalt.err (!%p21086_p0)
}
  0x2a   : > { %s21283_s11 = smov 832   ;;  %s21284_s14 = smov 52  }
  0x2b   : > { %20041 = dma.hbm_to_vmem [thread:$0]  (!%p21389_p11), %s23514_s1, 3328, %s21382_s12, [#allocation7], %s21283_s11, %s21283_s11, %s21284_s14  }
  0x2c   : > { %s21090_s21 = scalar_lea.hbm %s23516_s3, 64 }
  0x2d   : > { %p21091_p2 = scmp.ne.s32.totalorder %s23516_s3, %s21090_s21  ;;  %p21097_p10 = scmp.lt.u32.totalorder %s21090_s21, %s23516_s3 }
  0x2f   : > { %p21093_p1 = pnand %p21091_p2, %p21405_p13 }
  0x31   : > { %p21094_p6 = pneg %p21093_p1 }
  0x33   : > { %p21099_p3 = pnand %p21097_p10, %p21094_p6 }
  0x35   : > { %21102 = shalt.err (!%p21099_p3)
}
  0x36   : > { %s21103_s12 = scalar_lea.vmem %s21393_s15, 64  ;;  %p21111_p12 = scmp.lt.s32.totalorder %s21393_s15, %s21393_s15 }
  0x37   : > { %p21104_p5 = scmp.ne.s32.totalorder %s21393_s15, %s21103_s12  ;;  %p21112_p0 = scmp.lt.s32.totalorder %s21103_s12, %s21103_s12 }
  0x39   : > { %p21106_p7 = pnand %p21104_p5, %p21405_p13  ;;  %p21113_p2 = por %p21112_p0, %p21111_p12 }
  0x3b   : > { %p21107_p9 = pneg %p21106_p7 }
  0x3d   : > { %p21114_p1 = pnand %p21113_p2, %p21107_p9 }
  0x3f   : > { %21117 = shalt.err (!%p21114_p1)
}
  0x40   : > { %20047 = dma.hbm_to_vmem [thread:$0]  (!%p21389_p11), %s23516_s3, 64, %s21393_s15, [#allocation10]  }
  0x41   : > { %s21118_s19 = scalar_lea.hbm %s23515_s2, 65536 }
  0x42   : > { %p21119_p6 = scmp.ne.s32.totalorder %s23515_s2, %s21118_s19  ;;  %p21125_p5 = scmp.lt.u32.totalorder %s21118_s19, %s23515_s2 }
  0x44   : > { %p21121_p10 = pnand %p21119_p6, %p21405_p13 }
  0x46   : > { %p21122_p3 = pneg %p21121_p10 }
  0x48   : > { %p21127_p7 = pnand %p21125_p5, %p21122_p3 }
  0x4a   : > { %21130 = shalt.err (!%p21127_p7)
}
  0x4b   : > { %s21131_s25 = scalar_lea.vmem %s241_s17, 65536  ;;  %p21139_p2 = scmp.lt.s32.totalorder %s241_s17, %s241_s17 }
  0x4c   : > { %p21132_p9 = scmp.ne.s32.totalorder %s241_s17, %s21131_s25  ;;  %p21140_p1 = scmp.lt.s32.totalorder %s21131_s25, %s21131_s25 }
  0x4e   : > { %p21134_p12 = pnand %p21132_p9, %p21405_p13  ;;  %p21141_p4 = por %p21140_p1, %p21139_p2 }
  0x50   : > { %p21135_p0 = pneg %p21134_p12 }
  0x52   : > { %p21142_p8 = pnand %p21141_p4, %p21135_p0 }
  0x54   : > { %21145 = shalt.err (!%p21142_p8)
}
  0x55   : > { %s21285_s15 = smov 256   ;;  %s21286_s30 = smov 16  }
  0x56   : > { %20044 = dma.hbm_to_vmem [thread:$0]  (!%p21389_p11), %s23515_s2, 65536, %s241_s17, [#allocation7], %s21285_s15, %s21285_s15, %s21286_s30  }
  0x57   : > { %s21287_s14 = smov [#allocation11]   ;;  %s21146_s20 = scalar_lea.hbm %s23517_s4, 64 }
  0x58   : > { %s265_s16 = sshll.u32 %s21287_s14, 4  ;;  %p21147_p4 = scmp.ne.s32.totalorder %s23517_s4, %s21146_s20  ;;  %s266_s16 = int_to_ptr.vmem [resolvable:$true] %s265_s16 }
  0x59   : > { %p21153_p10 = scmp.lt.u32.totalorder %s21146_s20, %s23517_s4 }
  0x5a   : > { %p21149_p8 = pnand %p21147_p4, %p21405_p13 }
  0x5c   : > { %p21150_p6 = pneg %p21149_p8 }
  0x5e   : > { %p21155_p3 = pnand %p21153_p10, %p21150_p6 }
  0x60   : > { %21158 = shalt.err (!%p21155_p3)
}
  0x61   : > { %s21159_s17 = scalar_lea.vmem %s266_s16, 64  ;;  %p21167_p12 = scmp.lt.s32.totalorder %s266_s16, %s266_s16 }
  0x62   : > { %p21160_p5 = scmp.ne.s32.totalorder %s266_s16, %s21159_s17  ;;  %p21168_p0 = scmp.lt.s32.totalorder %s21159_s17, %s21159_s17 }
  0x64   : > { %p21162_p7 = pnand %p21160_p5, %p21405_p13  ;;  %p21169_p2 = por %p21168_p0, %p21167_p12 }
  0x66   : > { %p21163_p9 = pneg %p21162_p7 }
  0x68   : > { %p21170_p1 = pnand %p21169_p2, %p21163_p9 }
  0x6a   : > { %21173 = shalt.err (!%p21170_p1)
}
  0x6b   : > { %20050 = dma.hbm_to_vmem [thread:$0]  (!%p21389_p11), %s23517_s4, 64, %s266_s16, [#allocation10]  }
  0x6c   : > { %s21487_s23 = sadd.s32 1, %s21278_s29   ;;  %s34_s12 = sadd.s32 1, %s21274_s28 }
  0x6d   : > { %s31_s13 = ssub.s32 %s21278_s29, %s21487_s23  ;;  %p41_p13 = scmp.ne.s32.totalorder %s21274_s28, %s21270_s27 }
  0x6e   : > { %p32_p4 = scmp.eq.s32.totalorder %s31_s13, 0  ;;  %p42_p8 = scmp.eq.s32.totalorder %s21278_s29, 0 }
  0x6f   : > { %p23529_p6 = scmp.eq.s32.totalorder %s21359_s5, 1  ;;  %p20063_p3 = scmp.lt.s32.totalorder %s21278_s29, 2 }
  0x70   : > { %s21503_s14 = scalar_select %p32_p4, %s21274_s28, %s34_s12  }
  0x71   : > { %p21497_p10 = por %p23529_p6, %p41_p13  ;;  %p43_p5 = por %p42_p8, %p41_p13 }
  0x72   : > { %s279_s18 = sand.u32 1, %s21274_s28   ;;  %s19503_s16 = smul.u32 200704, %s21278_s29 }
  0x73   : > { %s20016_s19 = smul.u32 12544, %s279_s18  ;;  %p21507_p11 = pnand %p20063_p3, %p43_p5 }
  0x74   : > { %s21514_s24 = scalar_lea.hbm %s23513_s0, %s19503_s16  ;;  %s21518_s15 = scalar_lea.sflag [#allocation4], %s279_s18 }
  0x75   : > { %s283_s25 = scalar_lea.vmem [#allocation3], %s20016_s19  ;;  %s21174_s30 = scalar_lea.hbm %s21514_s24, 200704 }
  0x76   : > { %s291_s17 = sshll.u32 %s283_s25, 4  ;;  %p21175_p7 = scmp.ne.s32.totalorder %s21514_s24, %s21174_s30  ;;  %s21516_s17 = int_to_ptr.vmem [resolvable:$true] %s291_s17 }
  0x77   : > { %p21176_p9 = pneg %p21507_p11  ;;  %s21179_s16 = scalar_lea.hbm %s23513_s0, 401408 }
  0x78   : > { %p21180_p2 = scmp.lt.u32.totalorder %s21514_s24, %s23513_s0  ;;  %p21181_p1 = scmp.lt.u32.totalorder %s21179_s16, %s21174_s30 }
  0x79   : > { %p21177_p12 = pnand %p21176_p9, %p21175_p7  ;;  %p21183_p4 = scmp.lt.u32.totalorder %s21174_s30, %s21514_s24 }
  0x7a   : > { %p21182_p13 = por %p21181_p1, %p21180_p2 }
  0x7b   : > { %p21178_p0 = pneg %p21177_p12 }
  0x7c   : > { %p21184_p8 = por %p21183_p4, %p21182_p13 }
  0x7e   : > { %p21185_p6 = pnand %p21184_p8, %p21178_p0 }
  0x80   : > { %21188 = shalt.err (!%p21185_p6)
}
  0x81   : > { %s21189_s18 = scalar_lea.vmem %s21516_s17, 200704  ;;  %s21288_s19 = smov [#allocation3]  }
  0x82   : > { %p21190_p3 = scmp.ne.s32.totalorder %s21516_s17, %s21189_s18  ;;  %s21194_s25 = sshll.u32 %s21288_s19, 4  ;;  %s21195_s25 = int_to_ptr.vmem [resolvable:$false] %s21194_s25 }
  0x83   : > { %s21196_s12 = scalar_lea.vmem %s21195_s25, 401408  ;;  %p21197_p12 = scmp.lt.s32.totalorder %s21516_s17, %s21195_s25 }
  0x84   : > { %p21192_p5 = pnand %p21190_p3, %p21176_p9  ;;  %p21198_p2 = scmp.lt.s32.totalorder %s21196_s12, %s21189_s18 }
  0x86   : > { %p21193_p7 = pneg %p21192_p5  ;;  %p21199_p1 = por %p21198_p2, %p21197_p12 }
  0x88   : > { %p21200_p13 = pnand %p21199_p1, %p21193_p7 }
  0x8a   : > { %21203 = shalt.err (!%p21200_p13)
}
  0x8b   : > { %s21289_s30 = smov 1024   ;;  %s21290_s13 = smov 64  }
  0x8c   : > { %20054 = dma.hbm_to_vmem [thread:$0]  (!%p21507_p11), %s21514_s24, 200704, %s21516_s17, %s21518_s15, %s21289_s30, %s21289_s30, %s21290_s13  }
  0x8d   : > { %p23532_p9 = scmp.ne.s32.totalorder %s23526_s10, 0 }
  0x8e   : > { %s21549_s16 = sand.u32 (!%p23532_p9), 1, %s21270_s27   ;;  %p23533_p0 = scmp.ne.s32.totalorder (!%p23532_p9), %s23524_s8, 0 }
  0x8f   : > { %303 = sbr.rel (%p23532_p9) target bundleno = 2699 (0xa8b), region = 44  ;;  %s306_s22 = scalar_lea.sflag (!%p23532_p9), [#allocation4], %s21549_s16 }
  0x90   : > { %s20017_s21 = smul.u32 (!%p23532_p9), 12544, %s21549_s16 }
  0x92   : > { %s21553_s18 = scalar_lea.vmem (!%p23532_p9), [#allocation3], %s20017_s21 }
  0x96   : > { %21249 = dma.done.wait (%p23533_p0), %s306_s22, 200704  }
  0x97   : > { %21251 = vsyncadd (%p23533_p0), %s306_s22, 4294766592  ;;  %p23534_p11 = scmp.eq.s32.totalorder %s21359_s5, 0 }
  0x99   : > { %21253 = dma.done.wait (%p23534_p11), [#allocation7], 68864   ;;  %p23535_p4 = pmov %p23534_p11 }
  0x9b   : > { %21255 = vsyncadd (%p23535_p4), [#allocation7], 4294898432  ;;  %p23536_p8 = pmov %p23535_p4 }
  0x9c   : > { %p23537_p6 = pmov %p23535_p4 }
  0x9d   : > { %21257 = dma.done.wait (%p23536_p8), [#allocation10], 128  }
  0x9e   : > { %21259 = vsyncadd (%p23537_p6), [#allocation10], 4294967168  ;;  %v398_v0 = vld [vmem:[%s21553_s18] sm:$0xff]  ;;  %v399_v2 = vld [vmem:[%s21553_s18 + $0x8] sm:$0xff]  ;;  %vm9936_vm0 = vcmask 261120   ;;  %s17352_s8 = sshll.u32 %s21549_s16, 9 }
  0x9f   : > { %v406_v1 = vld [vmem:[%s21553_s18 + $0x40] sm:$0xff]  ;;  %v407_v4 = vld [vmem:[%s21553_s18 + $0x48] sm:$0xff]  ;;  %s22201_s10 = scalar_lea.vmem [#allocation12], %s17352_s8  ;;  %s19502_s20 = sshll.u32 %s21359_s5, 13 }
  0xa0   : > { %v17382_v3 = vcombine.high %v398_v0, %v406_v1  ;;  %v17381_v5 = vcombine.low %v398_v0, %v406_v1  ;;  %v414_v6 = vld [vmem:[%s21553_s18 + $0x80] sm:$0xff]  ;;  %v17384_v8 = vcombine.high %v399_v2, %v407_v4  ;;  %v17383_v9 = vcombine.low %v399_v2, %v407_v4  ;;  %v415_v11 = vld [vmem:[%s21553_s18 + $0x88] sm:$0xff]  ;;  %s23462_s15 = scalar_lea.hbm %s23519_s6, %s19502_s20  ;;  %s17198_s19 = sshll.u32 %s22201_s10, 4  ;;  %s23465_s19 = int_to_ptr.vmem [resolvable:$true] %s17198_s19 }
  0xa1   : > { %v422_v7 = vld [vmem:[%s21553_s18 + $0xc0] sm:$0xff]  ;;  %v423_v12 = vld [vmem:[%s21553_s18 + $0xc8] sm:$0xff]  ;;  %s17179_s25 = scalar_lea.sflag [#allocation5], %s21549_s16  ;;  %s21204_s12 = scalar_lea.vmem %s23465_s19, 8192 }
  0xa2   : > { %v17398_v10 = vcombine.high %v414_v6, %v422_v7  ;;  %v430_v13 = vld [vmem:[%s21553_s18 + $0x100] sm:$0xff]  ;;  %9943 = vmatprep.subr.bf16.mxu0 %v17382_v3  ;;  %v17400_v14 = vcombine.high %v415_v11, %v423_v12  ;;  %v431_v16 = vld [vmem:[%s21553_s18 + $0x108] sm:$0xff]  ;;  %10314 = vmatprep.subr.bf16.mxu1 %v17384_v8  ;;  %v17397_v18 = vcombine.low %v414_v6, %v422_v7  ;;  %p21205_p3 = scmp.ne.s32.totalorder %s23465_s19, %s21204_s12  ;;  %s21292_s30 = smov [#allocation12]  }
  0xa3   : > { %v438_v15 = vld [vmem:[%s21553_s18 + $0x140] sm:$0xff]  ;;  %v439_v17 = vld [vmem:[%s21553_s18 + $0x148] sm:$0xff]  ;;  %9944 = vmatpush1.bf16.msra.mxu0 %v17381_v5  ;;  %10315 = vmatpush1.bf16.msra.mxu1 %v17383_v9  ;;  %v17399_v19 = vcombine.low %v415_v11, %v423_v12  ;;  %s21208_s13 = sshll.u32 %s21292_s30, 4  ;;  %s21209_s13 = int_to_ptr.vmem [resolvable:$false] %s21208_s13 }
  0xa4   : > { %9945 = vmatprep.subr.bf16.mxu0 %v17398_v10  ;;  %v17414_v20 = vcombine.high %v430_v13, %v438_v15  ;;  %10316 = vmatprep.subr.bf16.mxu1 %v17400_v14  ;;  %v17416_v21 = vcombine.high %v431_v16, %v439_v17  ;;  %v446_v22 = vld [vmem:[%s21553_s18 + $0x180] sm:$0xff]  ;;  %v447_v24 = vld [vmem:[%s21553_s18 + $0x188] sm:$0xff]  ;;  %v17413_v26 = vcombine.low %v430_v13, %v438_v15  ;;  %p21206_p5 = pnand %p21205_p3, %p21497_p10  ;;  %s21210_s21 = scalar_lea.vmem %s21209_s13, 16384 }
  0xa5   : > { %v454_v23 = vld [vmem:[%s21553_s18 + $0x1c0] sm:$0xff]  ;;  %v455_v25 = vld [vmem:[%s21553_s18 + $0x1c8] sm:$0xff]  ;;  %v17415_v27 = vcombine.low %v431_v16, %v439_v17  ;;  %p21211_p12 = scmp.lt.s32.totalorder %s23465_s19, %s21209_s13  ;;  %p21212_p2 = scmp.lt.s32.totalorder %s21210_s21, %s21204_s12 }
  0xa6   : > { %v17430_v28 = vcombine.high %v446_v22, %v454_v23  ;;  %v17432_v29 = vcombine.high %v447_v24, %v455_v25  ;;  %v462_v30 = vld [vmem:[%s21553_s18 + $0x200] sm:$0xff]  ;;  %v463_v32 = vld [vmem:[%s21553_s18 + $0x208] sm:$0xff]  ;;  %v17429_v34 = vcombine.low %v446_v22, %v454_v23  ;;  %v17431_v35 = vcombine.low %v447_v24, %v455_v25  ;;  %p21207_p7 = pneg %p21206_p5 }
  0xa7   : > { %9946 = vmatpush1.bf16.msra.mxu0 %v17397_v18  ;;  %10317 = vmatpush1.bf16.msra.mxu1 %v17399_v19  ;;  %v470_v31 = vld [vmem:[%s21553_s18 + $0x240] sm:$0xff]  ;;  %v471_v33 = vld [vmem:[%s21553_s18 + $0x248] sm:$0xff]  ;;  %p21213_p1 = por %p21212_p2, %p21211_p12 }
  0xa8   : > { %9947 = vmatprep.subr.bf16.mxu0 %v17414_v20  ;;  %10318 = vmatprep.subr.bf16.mxu1 %v17416_v21  ;;  %v17446_v36 = vcombine.high %v462_v30, %v470_v31  ;;  %v17448_v37 = vcombine.high %v463_v32, %v471_v33  ;;  %v478_v38 = vld [vmem:[%s21553_s18 + $0x280] sm:$0xff]  ;;  %v479_v40 = vld [vmem:[%s21553_s18 + $0x288] sm:$0xff]  ;;  %v17445_v42 = vcombine.low %v462_v30, %v470_v31 }
  0xa9   : > { %v486_v39 = vld [vmem:[%s21553_s18 + $0x2c0] sm:$0xff]  ;;  %v487_v41 = vld [vmem:[%s21553_s18 + $0x2c8] sm:$0xff]  ;;  %v17447_v43 = vcombine.low %v463_v32, %v471_v33  ;;  %p21214_p13 = pnand %p21213_p1, %p21207_p7 }
  0xaa   : > { %v17462_v44 = vcombine.high %v478_v38, %v486_v39  ;;  %v17464_v45 = vcombine.high %v479_v40, %v487_v41  ;;  %v494_v46 = vld [vmem:[%s21553_s18 + $0x300] sm:$0xff]  ;;  %v495_v48 = vld [vmem:[%s21553_s18 + $0x308] sm:$0xff]  ;;  %v17461_v50 = vcombine.low %v478_v38, %v486_v39  ;;  %v17463_v51 = vcombine.low %v479_v40, %v487_v41 }
  0xab   : > { %9948 = vmatpush1.bf16.msra.mxu0 %v17413_v26  ;;  %10319 = vmatpush1.bf16.msra.mxu1 %v17415_v27  ;;  %v502_v47 = vld [vmem:[%s21553_s18 + $0x340] sm:$0xff]  ;;  %v503_v49 = vld [vmem:[%s21553_s18 + $0x348] sm:$0xff] }
  0xac   : > { %9949 = vmatprep.subr.bf16.mxu0 %v17430_v28  ;;  %10320 = vmatprep.subr.bf16.mxu1 %v17432_v29  ;;  %v17478_v52 = vcombine.high %v494_v46, %v502_v47  ;;  %v17480_v53 = vcombine.high %v495_v48, %v503_v49  ;;  %v510_v54 = vld [vmem:[%s21553_s18 + $0x380] sm:$0xff]  ;;  %v511_v57 = vld [vmem:[%s21553_s18 + $0x388] sm:$0xff]  ;;  %v17477_v59 = vcombine.low %v494_v46, %v502_v47 }
  0xad   : > { %v518_v55 = vld [vmem:[%s21553_s18 + $0x3c0] sm:$0xff]  ;;  %v519_v58 = vld [vmem:[%s21553_s18 + $0x3c8] sm:$0xff]  ;;  %v17479_v60 = vcombine.low %v495_v48, %v503_v49 }
  0xae   : > { %v20114_v56 = vld [vmem:[#allocation6 + $0x4] ss:$52 sps:$4 sm:$0xff]   ;;  %v17494_v61 = vcombine.high %v510_v54, %v518_v55  ;;  %v17496_v62 = vcombine.high %v511_v57, %v519_v58  ;;  %v527_v1 = vld [vmem:[%s21553_s18 + $0x408] sm:$0xff]  ;;  %v17493_v3 = vcombine.low %v510_v54, %v518_v55  ;;  %v17495_v4 = vcombine.low %v511_v57, %v519_v58 }
  0xaf   : > { %9950 = vmatpush1.bf16.msra.mxu0 %v17429_v34  ;;  %10321 = vmatpush1.bf16.msra.mxu1 %v17431_v35  ;;  %v526_v63 = vld [vmem:[%s21553_s18 + $0x400] sm:$0xff]  ;;  %v535_v2 = vld [vmem:[%s21553_s18 + $0x448] sm:$0xff] }
  0xb0   : > { %9951 = vmatprep.subr.bf16.mxu0 %v17446_v36  ;;  %10322 = vmatprep.subr.bf16.mxu1 %v17448_v37  ;;  %v534_v0 = vld [vmem:[%s21553_s18 + $0x440] sm:$0xff]  ;;  %v17512_v6 = vcombine.high %v527_v1, %v535_v2  ;;  %v543_v9 = vld [vmem:[%s21553_s18 + $0x488] sm:$0xff]  ;;  %v17511_v12 = vcombine.low %v527_v1, %v535_v2 }
  0xb1   : > { %9975 = vmatprep.mubr.bf16.mxu0 %v20114_v56  ;;  %10346 = vmatprep.mubr.bf16.mxu1 %v20114_v56  ;;  %v17510_v5 = vcombine.high %v526_v63, %v534_v0  ;;  %v542_v7 = vld [vmem:[%s21553_s18 + $0x480] sm:$0xff]  ;;  %v551_v10 = vld [vmem:[%s21553_s18 + $0x4c8] sm:$0xff]  ;;  %v17509_v11 = vcombine.low %v526_v63, %v534_v0 }
  0xb2   : > { %v550_v8 = vld [vmem:[%s21553_s18 + $0x4c0] sm:$0xff]  ;;  %v17528_v14 = vcombine.high %v543_v9, %v551_v10  ;;  %v559_v17 = vld [vmem:[%s21553_s18 + $0x508] sm:$0xff]  ;;  %v17527_v20 = vcombine.low %v543_v9, %v551_v10 }
  0xb3   : > { %9952 = vmatpush1.bf16.msra.mxu0 %v17445_v42  ;;  %10323 = vmatpush1.bf16.msra.mxu1 %v17447_v43  ;;  %v17526_v13 = vcombine.high %v542_v7, %v550_v8  ;;  %v558_v15 = vld [vmem:[%s21553_s18 + $0x500] sm:$0xff]  ;;  %v567_v18 = vld [vmem:[%s21553_s18 + $0x548] sm:$0xff]  ;;  %v17525_v19 = vcombine.low %v542_v7, %v550_v8 }
  0xb4   : > { %9953 = vmatprep.subr.bf16.mxu0 %v17462_v44  ;;  %10324 = vmatprep.subr.bf16.mxu1 %v17464_v45  ;;  %v566_v16 = vld [vmem:[%s21553_s18 + $0x540] sm:$0xff]  ;;  %v17544_v22 = vcombine.high %v559_v17, %v567_v18  ;;  %v575_v25 = vld [vmem:[%s21553_s18 + $0x588] sm:$0xff]  ;;  %v17543_v28 = vcombine.low %v559_v17, %v567_v18 }
  0xb5   : > { %v17542_v21 = vcombine.high %v558_v15, %v566_v16  ;;  %v574_v23 = vld [vmem:[%s21553_s18 + $0x580] sm:$0xff]  ;;  %v583_v26 = vld [vmem:[%s21553_s18 + $0x5c8] sm:$0xff]  ;;  %v17541_v27 = vcombine.low %v558_v15, %v566_v16 }
  0xb6   : > { %v582_v24 = vld [vmem:[%s21553_s18 + $0x5c0] sm:$0xff]  ;;  %v17560_v30 = vcombine.high %v575_v25, %v583_v26  ;;  %v591_v33 = vld [vmem:[%s21553_s18 + $0x608] sm:$0xff]  ;;  %v17559_v36 = vcombine.low %v575_v25, %v583_v26 }
  0xb7   : > { %9954 = vmatpush1.bf16.msra.mxu0 %v17461_v50  ;;  %10325 = vmatpush1.bf16.msra.mxu1 %v17463_v51  ;;  %v17558_v29 = vcombine.high %v574_v23, %v582_v24  ;;  %v590_v31 = vld [vmem:[%s21553_s18 + $0x600] sm:$0xff]  ;;  %v599_v34 = vld [vmem:[%s21553_s18 + $0x648] sm:$0xff]  ;;  %v17557_v35 = vcombine.low %v574_v23, %v582_v24 }
  0xb8   : > { %9955 = vmatprep.subr.bf16.mxu0 %v17478_v52  ;;  %10326 = vmatprep.subr.bf16.mxu1 %v17480_v53  ;;  %v598_v32 = vld [vmem:[%s21553_s18 + $0x640] sm:$0xff]  ;;  %v17576_v38 = vcombine.high %v591_v33, %v599_v34  ;;  %v607_v41 = vld [vmem:[%s21553_s18 + $0x688] sm:$0xff]  ;;  %v17575_v44 = vcombine.low %v591_v33, %v599_v34 }
  0xb9   : > { %v17574_v37 = vcombine.high %v590_v31, %v598_v32  ;;  %v606_v39 = vld [vmem:[%s21553_s18 + $0x680] sm:$0xff]  ;;  %v615_v42 = vld [vmem:[%s21553_s18 + $0x6c8] sm:$0xff]  ;;  %v17573_v43 = vcombine.low %v590_v31, %v598_v32 }
  0xba   : > { %v614_v40 = vld [vmem:[%s21553_s18 + $0x6c0] sm:$0xff]  ;;  %v17592_v46 = vcombine.high %v607_v41, %v615_v42  ;;  %v623_v49 = vld [vmem:[%s21553_s18 + $0x708] sm:$0xff]  ;;  %v17591_v52 = vcombine.low %v607_v41, %v615_v42 }
  0xbb   : > { %9956 = vmatpush1.bf16.msra.mxu0 %v17477_v59  ;;  %10327 = vmatpush1.bf16.msra.mxu1 %v17479_v60  ;;  %v17590_v45 = vcombine.high %v606_v39, %v614_v40  ;;  %v622_v47 = vld [vmem:[%s21553_s18 + $0x700] sm:$0xff]  ;;  %v631_v50 = vld [vmem:[%s21553_s18 + $0x748] sm:$0xff]  ;;  %v17589_v51 = vcombine.low %v606_v39, %v614_v40 }
  0xbc   : > { %9957 = vmatprep.subr.bf16.mxu0 %v17494_v61  ;;  %10328 = vmatprep.subr.bf16.mxu1 %v17496_v62  ;;  %v630_v48 = vld [vmem:[%s21553_s18 + $0x740] sm:$0xff]  ;;  %v17608_v54 = vcombine.high %v623_v49, %v631_v50  ;;  %v639_v57 = vld [vmem:[%s21553_s18 + $0x788] sm:$0xff]  ;;  %v17607_v60 = vcombine.low %v623_v49, %v631_v50 }
  0xbd   : > { %v17606_v53 = vcombine.high %v622_v47, %v630_v48  ;;  %v638_v55 = vld [vmem:[%s21553_s18 + $0x780] sm:$0xff]  ;;  %v647_v58 = vld [vmem:[%s21553_s18 + $0x7c8] sm:$0xff]  ;;  %v17605_v59 = vcombine.low %v622_v47, %v630_v48 }
  0xbe   : > { %v646_v56 = vld [vmem:[%s21553_s18 + $0x7c0] sm:$0xff]  ;;  %v17624_v62 = vcombine.high %v639_v57, %v647_v58  ;;  %v655_v1 = vld [vmem:[%s21553_s18 + $0x808] sm:$0xff] }
  0xbf   : > { %9958 = vmatpush1.bf16.msra.mxu0 %v17493_v3  ;;  %10329 = vmatpush1.bf16.msra.mxu1 %v17495_v4  ;;  %v17622_v61 = vcombine.high %v638_v55, %v646_v56  ;;  %v654_v63 = vld [vmem:[%s21553_s18 + $0x800] sm:$0xff]  ;;  %v663_v2 = vld [vmem:[%s21553_s18 + $0x848] sm:$0xff]  ;;  %v17621_v3 = vcombine.low %v638_v55, %v646_v56  ;;  %v17623_v4 = vcombine.low %v639_v57, %v647_v58 }
  0xc0   : > { %9959 = vmatprep.subr.bf16.mxu0 %v17510_v5  ;;  %10330 = vmatprep.subr.bf16.mxu1 %v17512_v6  ;;  %v662_v0 = vld [vmem:[%s21553_s18 + $0x840] sm:$0xff]  ;;  %v17640_v6 = vcombine.high %v655_v1, %v663_v2  ;;  %v671_v10 = vld [vmem:[%s21553_s18 + $0x888] sm:$0xff] }
  0xc1   : > { %v17638_v5 = vcombine.high %v654_v63, %v662_v0  ;;  %v670_v7 = vld [vmem:[%s21553_s18 + $0x880] sm:$0xff] }
  0xc2   : > { %v678_v8 = vld [vmem:[%s21553_s18 + $0x8c0] sm:$0xff] }
  0xc3   : > { %9960 = vmatpush1.bf16.msra.mxu0 %v17509_v11  ;;  %10331 = vmatpush1.bf16.msra.mxu1 %v17511_v12  ;;  %v20116_v9 = vld [vmem:[#allocation6] ss:$52 sps:$4 sm:$0xff]   ;;  %v679_v11 = vld [vmem:[%s21553_s18 + $0x8c8] sm:$0xff]  ;;  %v17637_v12 = vcombine.low %v654_v63, %v662_v0 }
  0xc4   : > { %9961 = vmatprep.subr.bf16.mxu0 %v17526_v13  ;;  %10332 = vmatprep.subr.bf16.mxu1 %v17528_v14  ;;  %v17639_v13 = vcombine.low %v655_v1, %v663_v2  ;;  %v17654_v14 = vcombine.high %v670_v7, %v678_v8  ;;  %v17656_v15 = vcombine.high %v671_v10, %v679_v11  ;;  %v686_v16 = vld [vmem:[%s21553_s18 + $0x900] sm:$0xff] }
  0xc5   : > { %v694_v17 = vld [vmem:[%s21553_s18 + $0x940] sm:$0xff] }
  0xc6   : > { %v20117_v18 = vld [vmem:[#allocation6 + $0x6c] ss:$52 sps:$4 sm:$0xff]   ;;  %v17670_v23 = vcombine.high %v686_v16, %v694_v17 }
  0xc7   : > { %9962 = vmatpush1.bf16.msra.mxu0 %v17525_v19  ;;  %10333 = vmatpush1.bf16.msra.mxu1 %v17527_v20  ;;  %v687_v19 = vld [vmem:[%s21553_s18 + $0x908] sm:$0xff]  ;;  %v702_v25 = vld [vmem:[%s21553_s18 + $0x980] sm:$0xff] }
  0xc8   : > { %9963 = vmatprep.subr.bf16.mxu0 %v17542_v21  ;;  %10334 = vmatprep.subr.bf16.mxu1 %v17544_v22  ;;  %v695_v20 = vld [vmem:[%s21553_s18 + $0x948] sm:$0xff]  ;;  %v17653_v21 = vcombine.low %v670_v7, %v678_v8  ;;  %v17655_v22 = vcombine.low %v671_v10, %v679_v11  ;;  %v710_v26 = vld [vmem:[%s21553_s18 + $0x9c0] sm:$0xff] }
  0xc9   : > { %v17672_v24 = vcombine.high %v687_v19, %v695_v20  ;;  %v17671_v31 = vcombine.low %v687_v19, %v695_v20  ;;  %v17686_v32 = vcombine.high %v702_v25, %v710_v26  ;;  %v718_v33 = vld [vmem:[%s21553_s18 + $0xa00] sm:$0xff]  ;;  %v17685_v39 = vcombine.low %v702_v25, %v710_v26  ;;  %v815_v20 = vld [vmem:[%s21553_s18 + $0xd08] sm:$0xff] }
  0xca   : > { %v726_v34 = vld [vmem:[%s21553_s18 + $0xa40] sm:$0xff] }
  0xcb   : > { %9964 = vmatpush1.bf16.msra.mxu0 %v17541_v27  ;;  %10335 = vmatpush1.bf16.msra.mxu1 %v17543_v28  ;;  %v703_v27 = vld [vmem:[%s21553_s18 + $0x988] sm:$0xff]  ;;  %v17702_v41 = vcombine.high %v718_v33, %v726_v34  ;;  %v734_v42 = vld [vmem:[%s21553_s18 + $0xa80] sm:$0xff]  ;;  %v17701_v47 = vcombine.low %v718_v33, %v726_v34 }
  0xcc   : > { %9965 = vmatprep.subr.bf16.mxu0 %v17558_v29  ;;  %10336 = vmatprep.subr.bf16.mxu1 %v17560_v30  ;;  %v711_v28 = vld [vmem:[%s21553_s18 + $0x9c8] sm:$0xff]  ;;  %v17669_v30 = vcombine.low %v686_v16, %v694_v17  ;;  %v750_v50 = vld [vmem:[%s21553_s18 + $0xb00] sm:$0xff] }
  0xcd   : > { %v20119_v29 = vld [vmem:[#allocation6 + $0x68] ss:$52 sps:$4 sm:$0xff]   ;;  %v17687_v40 = vcombine.low %v703_v27, %v711_v28  ;;  %v766_v58 = vld [vmem:[%s21553_s18 + $0xb80] sm:$0xff] }
  0xce   : > { %v782_v2 = vld [vmem:[%s21553_s18 + $0xc00] sm:$0xff] }
  0xcf   : > { %9966 = vmatpush1.bf16.msra.mxu0 %v17557_v35  ;;  %10337 = vmatpush1.bf16.msra.mxu1 %v17559_v36  ;;  %v719_v35 = vld [vmem:[%s21553_s18 + $0xa08] sm:$0xff]  ;;  %v17688_v36 = vcombine.high %v703_v27, %v711_v28  ;;  %v798_v10 = vld [vmem:[%s21553_s18 + $0xc80] sm:$0xff] }
  0xd0   : > { %9967 = vmatprep.subr.bf16.mxu0 %v17574_v37  ;;  %10338 = vmatprep.subr.bf16.mxu1 %v17576_v38  ;;  %v727_v37 = vld [vmem:[%s21553_s18 + $0xa48] sm:$0xff]  ;;  %v806_v11 = vld [vmem:[%s21553_s18 + $0xcc0] sm:$0xff] }
  0xd1   : > { %v20120_v38 = vld [vmem:[#allocation6 + $0xc] ss:$52 sps:$4 sm:$0xff]   ;;  %v17703_v48 = vcombine.low %v719_v35, %v727_v37  ;;  %v17782_v17 = vcombine.high %v798_v10, %v806_v11 }
  0xd2   : > { %v822_v19 = vld [vmem:[%s21553_s18 + $0xd40] sm:$0xff]  ;;  %v831_v28 = vld [vmem:[%s21553_s18 + $0xd88] sm:$0xff] }
  0xd3   : > { %9968 = vmatpush1.bf16.msra.mxu0 %v17573_v43  ;;  %10339 = vmatpush1.bf16.msra.mxu1 %v17575_v44  ;;  %v742_v43 = vld [vmem:[%s21553_s18 + $0xac0] sm:$0xff]  ;;  %v735_v44 = vld [vmem:[%s21553_s18 + $0xa88] sm:$0xff] }
  0xd4   : > { %9969 = vmatprep.subr.bf16.mxu0 %v17590_v45  ;;  %10340 = vmatprep.subr.bf16.mxu1 %v17592_v46  ;;  %v17704_v45 = vcombine.high %v719_v35, %v727_v37  ;;  %v743_v46 = vld [vmem:[%s21553_s18 + $0xac8] sm:$0xff]  ;;  %v17718_v49 = vcombine.high %v734_v42, %v742_v43  ;;  %v17717_v55 = vcombine.low %v734_v42, %v742_v43  ;;  %v830_v26 = vld [vmem:[%s21553_s18 + $0xd80] sm:$0xff] }
  0xd5   : > { %v17719_v56 = vcombine.low %v735_v44, %v743_v46  ;;  %v838_v27 = vld [vmem:[%s21553_s18 + $0xdc0] sm:$0xff] }
  0xd6   : > { %v17814_v33 = vcombine.high %v830_v26, %v838_v27  ;;  %v846_v34 = vld [vmem:[%s21553_s18 + $0xe00] sm:$0xff] }
  0xd7   : > { %9970 = vmatpush1.bf16.msra.mxu0 %v17589_v51  ;;  %10341 = vmatpush1.bf16.msra.mxu1 %v17591_v52  ;;  %v758_v51 = vld [vmem:[%s21553_s18 + $0xb40] sm:$0xff]  ;;  %v751_v52 = vld [vmem:[%s21553_s18 + $0xb08] sm:$0xff] }
  0xd8   : > { %9971 = vmatprep.subr.bf16.mxu0 %v17606_v53  ;;  %10342 = vmatprep.subr.bf16.mxu1 %v17608_v54  ;;  %v17720_v53 = vcombine.high %v735_v44, %v743_v46  ;;  %v759_v54 = vld [vmem:[%s21553_s18 + $0xb48] sm:$0xff]  ;;  %v17734_v57 = vcombine.high %v750_v50, %v758_v51  ;;  %v17733_v63 = vcombine.low %v750_v50, %v758_v51  ;;  %v854_v35 = vld [vmem:[%s21553_s18 + $0xe40] sm:$0xff] }
  0xd9   : > { %v17735_v0 = vcombine.low %v751_v52, %v759_v54  ;;  %v862_v42 = vld [vmem:[%s21553_s18 + $0xe80] sm:$0xff]  ;;  %v863_v44 = vld [vmem:[%s21553_s18 + $0xe88] sm:$0xff] }
  0xda   : > { %v870_v43 = vld [vmem:[%s21553_s18 + $0xec0] sm:$0xff]  ;;  %v871_v46 = vld [vmem:[%s21553_s18 + $0xec8] sm:$0xff] }
  0xdb   : > { %9972 = vmatpush1.bf16.msra.mxu0 %v17605_v59  ;;  %10343 = vmatpush1.bf16.msra.mxu1 %v17607_v60  ;;  %v774_v59 = vld [vmem:[%s21553_s18 + $0xbc0] sm:$0xff]  ;;  %v767_v60 = vld [vmem:[%s21553_s18 + $0xb88] sm:$0xff] }
  0xdc   : > { %9973 = vmatprep.subr.bf16.mxu0 %v17622_v61  ;;  %10344 = vmatprep.subr.bf16.mxu1 %v17624_v62  ;;  %v17736_v61 = vcombine.high %v751_v52, %v759_v54  ;;  %v775_v62 = vld [vmem:[%s21553_s18 + $0xbc8] sm:$0xff]  ;;  %v17750_v1 = vcombine.high %v766_v58, %v774_v59  ;;  %v17749_v7 = vcombine.low %v766_v58, %v774_v59  ;;  %v878_v50 = vld [vmem:[%s21553_s18 + $0xf00] sm:$0xff] }
  0xdd   : > { %v17751_v8 = vcombine.low %v767_v60, %v775_v62  ;;  %v886_v51 = vld [vmem:[%s21553_s18 + $0xf40] sm:$0xff]  ;;  %v879_v52 = vld [vmem:[%s21553_s18 + $0xf08] sm:$0xff] }
  0xde   : > { %v887_v54 = vld [vmem:[%s21553_s18 + $0xf48] sm:$0xff]  ;;  %v894_v58 = vld [vmem:[%s21553_s18 + $0xf80] sm:$0xff] }
  0xdf   : > { %9974 = vmatpush1.bf16.msra.mxu0 %v17621_v3  ;;  %10345 = vmatpush1.bf16.msra.mxu1 %v17623_v4  ;;  %v790_v3 = vld [vmem:[%s21553_s18 + $0xc40] sm:$0xff]  ;;  %v783_v4 = vld [vmem:[%s21553_s18 + $0xc08] sm:$0xff] }
  0xe0   : > { %9996 = vmatprep.subr.bf16.mxu0 %v17638_v5  ;;  %10367 = vmatprep.subr.bf16.mxu1 %v17640_v6  ;;  %v17752_v5 = vcombine.high %v767_v60, %v775_v62  ;;  %v791_v6 = vld [vmem:[%s21553_s18 + $0xc48] sm:$0xff]  ;;  %v902_v59 = vld [vmem:[%s21553_s18 + $0xfc0] sm:$0xff] }
  0xe1   : > { %v17767_v16 = vcombine.low %v783_v4, %v791_v6  ;;  %v895_v60 = vld [vmem:[%s21553_s18 + $0xf88] sm:$0xff] }
  0xe2   : > { %9976 = vmatmul.mubr.bf16.vlgmr.msra.gmra.mrb[0].mxu0 %v20116_v9  ;;  %10347 = vmatmul.mubr.bf16.vlgmr.msra.gmra.mrb[0].mxu1 %v20116_v9  ;;  %v17766_v9 = vcombine.high %v782_v2, %v790_v3  ;;  %v903_v62 = vld [vmem:[%s21553_s18 + $0xfc8] sm:$0xff] }
  0xe3   : > { %9997 = vmatpush1.bf16.msra.mxu0 %v17637_v12  ;;  %10368 = vmatpush1.bf16.msra.mxu1 %v17639_v13  ;;  %v799_v12 = vld [vmem:[%s21553_s18 + $0xc88] sm:$0xff]  ;;  %v17768_v13 = vcombine.high %v783_v4, %v791_v6  ;;  %v918_v4 = vld [vmem:[%s21553_s18 + $0x1040] sm:$0xff] }
  0xe4   : > { %9998 = vmatprep.subr.bf16.mxu0 %v17654_v14  ;;  %10369 = vmatprep.subr.bf16.mxu1 %v17656_v15  ;;  %v807_v14 = vld [vmem:[%s21553_s18 + $0xcc8] sm:$0xff]  ;;  %v17765_v15 = vcombine.low %v782_v2, %v790_v3  ;;  %v910_v2 = vld [vmem:[%s21553_s18 + $0x1000] sm:$0xff]  ;;  %v17880_v3 = vcombine.high %v895_v60, %v903_v62 }
  0xe5   : > { %9985 = vmatprep.mubr.bf16.mxu0 %v20117_v18  ;;  %10356 = vmatprep.mubr.bf16.mxu1 %v20117_v18  ;;  %v814_v18 = vld [vmem:[%s21553_s18 + $0xd00] sm:$0xff]  ;;  %v919_v6 = vld [vmem:[%s21553_s18 + $0x1048] sm:$0xff] }
  0xe6   : > { %v17798_v25 = vcombine.high %v814_v18, %v822_v19 }
  0xe7   : > { %9999 = vmatpush1.bf16.msra.mxu0 %v17653_v21  ;;  %10370 = vmatpush1.bf16.msra.mxu1 %v17655_v22  ;;  %v17784_v21 = vcombine.high %v799_v12, %v807_v14  ;;  %v823_v22 = vld [vmem:[%s21553_s18 + $0xd48] sm:$0xff] }
  0xe8   : > { %10000 = vmatprep.subr.bf16.mxu0 %v17670_v23  ;;  %10371 = vmatprep.subr.bf16.mxu1 %v17672_v24  ;;  %v17781_v23 = vcombine.low %v798_v10, %v806_v11  ;;  %v17783_v24 = vcombine.low %v799_v12, %v807_v14  ;;  %v20122_v10 = vld [vmem:[#allocation6 + $0x8] ss:$52 sps:$4 sm:$0xff]   ;;  %v926_v11 = vld [vmem:[%s21553_s18 + $0x1080] sm:$0xff] }
  0xe9   : > { %v934_v12 = vld [vmem:[%s21553_s18 + $0x10c0] sm:$0xff] }
  0xea   : > { %9986 = vmatmul.mubr.bf16.gmra.mrb[4].mxu0 %v20119_v29  ;;  %10357 = vmatmul.mubr.bf16.gmra.mrb[4].mxu1 %v20119_v29  ;;  %v17800_v29 = vcombine.high %v815_v20, %v823_v22 }
  0xeb   : > { %10001 = vmatpush1.bf16.msra.mxu0 %v17669_v30  ;;  %10372 = vmatpush1.bf16.msra.mxu1 %v17671_v31  ;;  %v839_v30 = vld [vmem:[%s21553_s18 + $0xdc8] sm:$0xff]  ;;  %v17797_v31 = vcombine.low %v814_v18, %v822_v19  ;;  %v17910_v18 = vcombine.high %v926_v11, %v934_v12  ;;  %v942_v19 = vld [vmem:[%s21553_s18 + $0x1100] sm:$0xff] }
  0xec   : > { %10002 = vmatprep.subr.bf16.mxu0 %v17686_v32  ;;  %10373 = vmatprep.subr.bf16.mxu1 %v17688_v36  ;;  %v17799_v32 = vcombine.low %v815_v20, %v823_v22  ;;  %v847_v36 = vld [vmem:[%s21553_s18 + $0xe08] sm:$0xff]  ;;  %v17816_v37 = vcombine.high %v831_v28, %v839_v30  ;;  %v950_v20 = vld [vmem:[%s21553_s18 + $0x1140] sm:$0xff] }
  0xed   : > { %10028 = vmatprep.mubr.bf16.mxu0 %v20120_v38  ;;  %10399 = vmatprep.mubr.bf16.mxu1 %v20120_v38  ;;  %v855_v38 = vld [vmem:[%s21553_s18 + $0xe48] sm:$0xff] }
  0xee   : > { %v943_v22 = vld [vmem:[%s21553_s18 + $0x1108] sm:$0xff] }
  0xef   : > { %10003 = vmatpush1.bf16.msra.mxu0 %v17685_v39  ;;  %10374 = vmatpush1.bf16.msra.mxu1 %v17687_v40  ;;  %v17813_v39 = vcombine.low %v830_v26, %v838_v27  ;;  %v17815_v40 = vcombine.low %v831_v28, %v839_v30  ;;  %v958_v26 = vld [vmem:[%s21553_s18 + $0x1180] sm:$0xff]  ;;  %v17926_v28 = vcombine.high %v942_v19, %v950_v20  ;;  %v959_v30 = vld [vmem:[%s21553_s18 + $0x1188] sm:$0xff] }
  0xf0   : > { %10004 = vmatprep.subr.bf16.mxu0 %v17702_v41  ;;  %10375 = vmatprep.subr.bf16.mxu1 %v17704_v45  ;;  %v17830_v41 = vcombine.high %v846_v34, %v854_v35  ;;  %v17832_v45 = vcombine.high %v847_v36, %v855_v38 }
  0xf3   : > { %10005 = vmatpush1.bf16.msra.mxu0 %v17701_v47  ;;  %10376 = vmatpush1.bf16.msra.mxu1 %v17703_v48  ;;  %v17829_v47 = vcombine.low %v846_v34, %v854_v35  ;;  %v17831_v48 = vcombine.low %v847_v36, %v855_v38  ;;  %v17925_v34 = vcombine.low %v942_v19, %v950_v20  ;;  %v974_v35 = vld [vmem:[%s21553_s18 + $0x1200] sm:$0xff] }
  0xf4   : > { %10006 = vmatprep.subr.bf16.mxu0 %v17718_v49  ;;  %10377 = vmatprep.subr.bf16.mxu1 %v17720_v53  ;;  %v17846_v49 = vcombine.high %v862_v42, %v870_v43  ;;  %v17848_v53 = vcombine.high %v863_v44, %v871_v46  ;;  %v982_v38 = vld [vmem:[%s21553_s18 + $0x1240] sm:$0xff] }
  0xf7   : > { %10007 = vmatpush1.bf16.msra.mxu0 %v17717_v55  ;;  %10378 = vmatpush1.bf16.msra.mxu1 %v17719_v56  ;;  %v17845_v55 = vcombine.low %v862_v42, %v870_v43  ;;  %v17847_v56 = vcombine.low %v863_v44, %v871_v46  ;;  %v20126_v42 = vld [vmem:[#allocation6 + $0x14] ss:$52 sps:$4 sm:$0xff]   ;;  %v990_v46 = vld [vmem:[%s21553_s18 + $0x1280] sm:$0xff] }
  0xf8   : > { %10008 = vmatprep.subr.bf16.mxu0 %v17734_v57  ;;  %10379 = vmatprep.subr.bf16.mxu1 %v17736_v61  ;;  %v17862_v57 = vcombine.high %v878_v50, %v886_v51  ;;  %v17864_v61 = vcombine.high %v879_v52, %v887_v54 }
  0xfb   : > { %10009 = vmatpush1.bf16.msra.mxu0 %v17733_v63  ;;  %10380 = vmatpush1.bf16.msra.mxu1 %v17735_v0  ;;  %v17861_v63 = vcombine.low %v878_v50, %v886_v51  ;;  %v17863_v0 = vcombine.low %v879_v52, %v887_v54  ;;  %v999_v50 = vld [vmem:[%s21553_s18 + $0x12c8] sm:$0xff]  ;;  %v17957_v51 = vcombine.low %v974_v35, %v982_v38  ;;  %v1006_v54 = vld [vmem:[%s21553_s18 + $0x1300] sm:$0xff] }
  0xfc   : > { %10010 = vmatprep.subr.bf16.mxu0 %v17750_v1  ;;  %10381 = vmatprep.subr.bf16.mxu1 %v17752_v5  ;;  %v17878_v1 = vcombine.high %v894_v58, %v902_v59  ;;  %v911_v5 = vld [vmem:[%s21553_s18 + $0x1008] sm:$0xff] }
  0xfd   : > { %v17896_v14 = vcombine.high %v911_v5, %v919_v6 }
  0xff   : > { %10011 = vmatpush1.bf16.msra.mxu0 %v17749_v7  ;;  %10382 = vmatpush1.bf16.msra.mxu1 %v17751_v8  ;;  %v17877_v7 = vcombine.low %v894_v58, %v902_v59  ;;  %v17879_v8 = vcombine.low %v895_v60, %v903_v62  ;;  %v1015_v58 = vld [vmem:[%s21553_s18 + $0x1348] sm:$0xff]  ;;  %v1022_v62 = vld [vmem:[%s21553_s18 + $0x1380] sm:$0xff] }
 0x100   : > { %10012 = vmatprep.subr.bf16.mxu0 %v17766_v9  ;;  %10383 = vmatprep.subr.bf16.mxu1 %v17768_v13  ;;  %v17894_v9 = vcombine.high %v910_v2, %v918_v4  ;;  %v927_v13 = vld [vmem:[%s21553_s18 + $0x1088] sm:$0xff] }
 0x103   : > { %10013 = vmatpush1.bf16.msra.mxu0 %v17765_v15  ;;  %10384 = vmatpush1.bf16.msra.mxu1 %v17767_v16  ;;  %v935_v15 = vld [vmem:[%s21553_s18 + $0x10c8] sm:$0xff]  ;;  %v17893_v16 = vcombine.low %v910_v2, %v918_v4 }
 0x104   : > { %10014 = vmatprep.subr.bf16.mxu0 %v17782_v17  ;;  %10385 = vmatprep.subr.bf16.mxu1 %v17784_v21  ;;  %v17895_v17 = vcombine.low %v911_v5, %v919_v6  ;;  %v17912_v21 = vcombine.high %v927_v13, %v935_v15  ;;  %v17911_v27 = vcombine.low %v927_v13, %v935_v15  ;;  %v1031_v2 = vld [vmem:[%s21553_s18 + $0x13c8] sm:$0xff]  ;;  %v1038_v6 = vld [vmem:[%s21553_s18 + $0x1400] sm:$0xff] }
 0x105   : > { %v1062_v15 = vld [vmem:[%s21553_s18 + $0x14c0] sm:$0xff] }
 0x107   : > { %10015 = vmatpush1.bf16.msra.mxu0 %v17781_v23  ;;  %10386 = vmatpush1.bf16.msra.mxu1 %v17783_v24  ;;  %v951_v23 = vld [vmem:[%s21553_s18 + $0x1148] sm:$0xff] }
 0x108   : > { %10016 = vmatprep.subr.bf16.mxu0 %v17798_v25  ;;  %10387 = vmatprep.subr.bf16.mxu1 %v17800_v29  ;;  %v20123_v24 = vld [vmem:[#allocation6 + $0x74] ss:$52 sps:$4 sm:$0xff]   ;;  %v17909_v25 = vcombine.low %v926_v11, %v934_v12  ;;  %v966_v29 = vld [vmem:[%s21553_s18 + $0x11c0] sm:$0xff]  ;;  %v17927_v36 = vcombine.low %v943_v22, %v951_v23 }
 0x109   : > { %v17941_v43 = vcombine.low %v958_v26, %v966_v29 }
 0x10b   : > { %10017 = vmatpush1.bf16.msra.mxu0 %v17797_v31  ;;  %10388 = vmatpush1.bf16.msra.mxu1 %v17799_v32  ;;  %v967_v31 = vld [vmem:[%s21553_s18 + $0x11c8] sm:$0xff]  ;;  %v17928_v32 = vcombine.high %v943_v22, %v951_v23  ;;  %v1070_v22 = vld [vmem:[%s21553_s18 + $0x1500] sm:$0xff] }
 0x10c   : > { %10018 = vmatprep.subr.bf16.mxu0 %v17814_v33  ;;  %10389 = vmatprep.subr.bf16.mxu1 %v17816_v37  ;;  %v20125_v33 = vld [vmem:[#allocation6 + $0x70] ss:$52 sps:$4 sm:$0xff]   ;;  %v17942_v37 = vcombine.high %v958_v26, %v966_v29  ;;  %v17943_v44 = vcombine.low %v959_v30, %v967_v31  ;;  %v1079_v26 = vld [vmem:[%s21553_s18 + $0x1548] sm:$0xff] }
 0x10d   : > { %v1078_v23 = vld [vmem:[%s21553_s18 + $0x1540] sm:$0xff] }
 0x10e   : > { %v18054_v29 = vcombine.high %v1070_v22, %v1078_v23 }
 0x10f   : > { %10019 = vmatpush1.bf16.msra.mxu0 %v17813_v39  ;;  %10390 = vmatpush1.bf16.msra.mxu1 %v17815_v40  ;;  %v975_v39 = vld [vmem:[%s21553_s18 + $0x1208] sm:$0xff] }
 0x110   : > { %10020 = vmatprep.subr.bf16.mxu0 %v17830_v41  ;;  %10391 = vmatprep.subr.bf16.mxu1 %v17832_v45  ;;  %v983_v40 = vld [vmem:[%s21553_s18 + $0x1248] sm:$0xff]  ;;  %v17944_v41 = vcombine.high %v959_v30, %v967_v31  ;;  %v17958_v45 = vcombine.high %v974_v35, %v982_v38  ;;  %v1086_v30 = vld [vmem:[%s21553_s18 + $0x1580] sm:$0xff]  ;;  %v18053_v35 = vcombine.low %v1070_v22, %v1078_v23 }
 0x111   : > { %v17959_v52 = vcombine.low %v975_v39, %v983_v40  ;;  %v1094_v31 = vld [vmem:[%s21553_s18 + $0x15c0] sm:$0xff] }
 0x112   : > { %v1102_v38 = vld [vmem:[%s21553_s18 + $0x1600] sm:$0xff] }
 0x113   : > { %10021 = vmatpush1.bf16.msra.mxu0 %v17829_v47  ;;  %10392 = vmatpush1.bf16.msra.mxu1 %v17831_v48  ;;  %v998_v47 = vld [vmem:[%s21553_s18 + $0x12c0] sm:$0xff]  ;;  %v991_v48 = vld [vmem:[%s21553_s18 + $0x1288] sm:$0xff] }
 0x114   : > { %10022 = vmatprep.subr.bf16.mxu0 %v17846_v49  ;;  %10393 = vmatprep.subr.bf16.mxu1 %v17848_v53  ;;  %v17960_v49 = vcombine.high %v975_v39, %v983_v40  ;;  %v17974_v53 = vcombine.high %v990_v46, %v998_v47  ;;  %v17973_v59 = vcombine.low %v990_v46, %v998_v47  ;;  %v1110_v39 = vld [vmem:[%s21553_s18 + $0x1640] sm:$0xff]  ;;  %v1103_v40 = vld [vmem:[%s21553_s18 + $0x1608] sm:$0xff] }
 0x115   : > { %v17975_v60 = vcombine.low %v991_v48, %v999_v50  ;;  %v1118_v46 = vld [vmem:[%s21553_s18 + $0x1680] sm:$0xff] }
 0x116   : > { %v1126_v47 = vld [vmem:[%s21553_s18 + $0x16c0] sm:$0xff] }
 0x117   : > { %10023 = vmatpush1.bf16.msra.mxu0 %v17845_v55  ;;  %10394 = vmatpush1.bf16.msra.mxu1 %v17847_v56  ;;  %v1014_v55 = vld [vmem:[%s21553_s18 + $0x1340] sm:$0xff]  ;;  %v1007_v56 = vld [vmem:[%s21553_s18 + $0x1308] sm:$0xff] }
 0x118   : > { %10024 = vmatprep.subr.bf16.mxu0 %v17862_v57  ;;  %10395 = vmatprep.subr.bf16.mxu1 %v17864_v61  ;;  %v17976_v57 = vcombine.high %v991_v48, %v999_v50  ;;  %v17990_v61 = vcombine.high %v1006_v54, %v1014_v55  ;;  %v17991_v4 = vcombine.low %v1007_v56, %v1015_v58  ;;  %v1119_v48 = vld [vmem:[%s21553_s18 + $0x1688] sm:$0xff]  ;;  %v1198_v23 = vld [vmem:[%s21553_s18 + $0x1900] sm:$0xff] }
 0x119   : > { %v1127_v50 = vld [vmem:[%s21553_s18 + $0x16c8] sm:$0xff] }
 0x11b   : > { %10025 = vmatpush1.bf16.msra.mxu0 %v17861_v63  ;;  %10396 = vmatpush1.bf16.msra.mxu1 %v17863_v0  ;;  %v1030_v63 = vld [vmem:[%s21553_s18 + $0x13c0] sm:$0xff]  ;;  %v1023_v0 = vld [vmem:[%s21553_s18 + $0x1388] sm:$0xff] }
 0x11c   : > { %10026 = vmatprep.subr.bf16.mxu0 %v17878_v1  ;;  %10397 = vmatprep.subr.bf16.mxu1 %v17880_v3  ;;  %v17992_v1 = vcombine.high %v1007_v56, %v1015_v58  ;;  %v17989_v3 = vcombine.low %v1006_v54, %v1014_v55  ;;  %v18006_v5 = vcombine.high %v1022_v62, %v1030_v63  ;;  %v1134_v54 = vld [vmem:[%s21553_s18 + $0x1700] sm:$0xff]  ;;  %v1135_v56 = vld [vmem:[%s21553_s18 + $0x1708] sm:$0xff] }
 0x11d   : > { %v18005_v11 = vcombine.low %v1022_v62, %v1030_v63  ;;  %v18007_v12 = vcombine.low %v1023_v0, %v1031_v2  ;;  %v1142_v55 = vld [vmem:[%s21553_s18 + $0x1740] sm:$0xff]  ;;  %v1143_v58 = vld [vmem:[%s21553_s18 + $0x1748] sm:$0xff] }
 0x11e   : > { %v1150_v62 = vld [vmem:[%s21553_s18 + $0x1780] sm:$0xff] }
 0x11f   : > { %10027 = vmatpush1.bf16.msra.mxu0 %v17877_v7  ;;  %10398 = vmatpush1.bf16.msra.mxu1 %v17879_v8  ;;  %v1046_v7 = vld [vmem:[%s21553_s18 + $0x1440] sm:$0xff]  ;;  %v1039_v8 = vld [vmem:[%s21553_s18 + $0x1408] sm:$0xff] }
 0x120   : > { %10049 = vmatprep.subr.bf16.mxu0 %v17894_v9  ;;  %10420 = vmatprep.subr.bf16.mxu1 %v17896_v14  ;;  %v18008_v9 = vcombine.high %v1023_v0, %v1031_v2  ;;  %v18022_v13 = vcombine.high %v1038_v6, %v1046_v7  ;;  %v1054_v14 = vld [vmem:[%s21553_s18 + $0x1480] sm:$0xff]  ;;  %v18021_v19 = vcombine.low %v1038_v6, %v1046_v7  ;;  %v1151_v0 = vld [vmem:[%s21553_s18 + $0x1788] sm:$0xff] }
 0x121   : > { %v1158_v63 = vld [vmem:[%s21553_s18 + $0x17c0] sm:$0xff]  ;;  %v1159_v2 = vld [vmem:[%s21553_s18 + $0x17c8] sm:$0xff] }
 0x122   : > { %10029 = vmatmul.mubr.bf16.vlgmr.msra.gmra.mrb[0].mxu0 %v20122_v10  ;;  %10400 = vmatmul.mubr.bf16.vlgmr.msra.gmra.mrb[0].mxu1 %v20122_v10  ;;  %v1047_v10 = vld [vmem:[%s21553_s18 + $0x1448] sm:$0xff]  ;;  %v1166_v6 = vld [vmem:[%s21553_s18 + $0x1800] sm:$0xff]  ;;  %v18136_v7 = vcombine.high %v1151_v0, %v1159_v2 }
 0x123   : > { %10050 = vmatpush1.bf16.msra.mxu0 %v17893_v16  ;;  %10421 = vmatpush1.bf16.msra.mxu1 %v17895_v17  ;;  %v1055_v16 = vld [vmem:[%s21553_s18 + $0x1488] sm:$0xff]  ;;  %v18024_v17 = vcombine.high %v1039_v8, %v1047_v10  ;;  %v18023_v20 = vcombine.low %v1039_v8, %v1047_v10  ;;  %v1174_v8 = vld [vmem:[%s21553_s18 + $0x1840] sm:$0xff] }
 0x124   : > { %10051 = vmatprep.subr.bf16.mxu0 %v17910_v18  ;;  %10422 = vmatprep.subr.bf16.mxu1 %v17912_v21  ;;  %v1063_v18 = vld [vmem:[%s21553_s18 + $0x14c8] sm:$0xff]  ;;  %v18038_v21 = vcombine.high %v1054_v14, %v1062_v15 }
 0x125   : > { %10038 = vmatprep.mubr.bf16.mxu0 %v20123_v24  ;;  %10409 = vmatprep.mubr.bf16.mxu1 %v20123_v24  ;;  %v1071_v24 = vld [vmem:[%s21553_s18 + $0x1508] sm:$0xff] }
 0x126   : > { %v1175_v10 = vld [vmem:[%s21553_s18 + $0x1848] sm:$0xff] }
 0x127   : > { %10052 = vmatpush1.bf16.msra.mxu0 %v17909_v25  ;;  %10423 = vmatpush1.bf16.msra.mxu1 %v17911_v27  ;;  %v18040_v25 = vcombine.high %v1055_v16, %v1063_v18  ;;  %v18037_v27 = vcombine.low %v1054_v14, %v1062_v15  ;;  %v20128_v14 = vld [vmem:[#allocation6 + $0x10] ss:$52 sps:$4 sm:$0xff]  }
 0x128   : > { %10053 = vmatprep.subr.bf16.mxu0 %v17926_v28  ;;  %10424 = vmatprep.subr.bf16.mxu1 %v17928_v32  ;;  %v18039_v28 = vcombine.low %v1055_v16, %v1063_v18  ;;  %v1087_v32 = vld [vmem:[%s21553_s18 + $0x1588] sm:$0xff]  ;;  %v1182_v15 = vld [vmem:[%s21553_s18 + $0x1880] sm:$0xff] }
 0x129   : > { %v1190_v16 = vld [vmem:[%s21553_s18 + $0x18c0] sm:$0xff] }
 0x12a   : > { %10039 = vmatmul.mubr.bf16.gmra.mrb[4].mxu0 %v20125_v33  ;;  %10410 = vmatmul.mubr.bf16.gmra.mrb[4].mxu1 %v20125_v33  ;;  %v18056_v33 = vcombine.high %v1071_v24, %v1079_v26  ;;  %v18166_v22 = vcombine.high %v1182_v15, %v1190_v16 }
 0x12b   : > { %10054 = vmatpush1.bf16.msra.mxu0 %v17925_v34  ;;  %10425 = vmatpush1.bf16.msra.mxu1 %v17927_v36  ;;  %v1095_v34 = vld [vmem:[%s21553_s18 + $0x15c8] sm:$0xff]  ;;  %v18055_v36 = vcombine.low %v1071_v24, %v1079_v26  ;;  %v1206_v24 = vld [vmem:[%s21553_s18 + $0x1940] sm:$0xff] }
 0x12c   : > { %10055 = vmatprep.subr.bf16.mxu0 %v17942_v37  ;;  %10426 = vmatprep.subr.bf16.mxu1 %v17944_v41  ;;  %v18070_v37 = vcombine.high %v1086_v30, %v1094_v31  ;;  %v18072_v41 = vcombine.high %v1087_v32, %v1095_v34  ;;  %v1199_v26 = vld [vmem:[%s21553_s18 + $0x1908] sm:$0xff] }
 0x12d   : > { %10081 = vmatprep.mubr.bf16.mxu0 %v20126_v42  ;;  %10452 = vmatprep.mubr.bf16.mxu1 %v20126_v42  ;;  %v1111_v42 = vld [vmem:[%s21553_s18 + $0x1648] sm:$0xff] }
 0x12f   : > { %10056 = vmatpush1.bf16.msra.mxu0 %v17941_v43  ;;  %10427 = vmatpush1.bf16.msra.mxu1 %v17943_v44  ;;  %v18069_v43 = vcombine.low %v1086_v30, %v1094_v31  ;;  %v18071_v44 = vcombine.low %v1087_v32, %v1095_v34  ;;  %v1214_v30 = vld [vmem:[%s21553_s18 + $0x1980] sm:$0xff]  ;;  %v18182_v32 = vcombine.high %v1198_v23, %v1206_v24  ;;  %v1215_v34 = vld [vmem:[%s21553_s18 + $0x1988] sm:$0xff] }
 0x130   : > { %10057 = vmatprep.subr.bf16.mxu0 %v17958_v45  ;;  %10428 = vmatprep.subr.bf16.mxu1 %v17960_v49  ;;  %v18086_v45 = vcombine.high %v1102_v38, %v1110_v39  ;;  %v18088_v49 = vcombine.high %v1103_v40, %v1111_v42 }
 0x133   : > { %10058 = vmatpush1.bf16.msra.mxu0 %v17957_v51  ;;  %10429 = vmatpush1.bf16.msra.mxu1 %v17959_v52  ;;  %v18085_v51 = vcombine.low %v1102_v38, %v1110_v39  ;;  %v18087_v52 = vcombine.low %v1103_v40, %v1111_v42  ;;  %v18181_v38 = vcombine.low %v1198_v23, %v1206_v24  ;;  %v1230_v39 = vld [vmem:[%s21553_s18 + $0x1a00] sm:$0xff] }
 0x134   : > { %10059 = vmatprep.subr.bf16.mxu0 %v17974_v53  ;;  %10430 = vmatprep.subr.bf16.mxu1 %v17976_v57  ;;  %v18102_v53 = vcombine.high %v1118_v46, %v1126_v47  ;;  %v18104_v57 = vcombine.high %v1119_v48, %v1127_v50  ;;  %v1238_v42 = vld [vmem:[%s21553_s18 + $0x1a40] sm:$0xff] }
 0x137   : > { %10060 = vmatpush1.bf16.msra.mxu0 %v17973_v59  ;;  %10431 = vmatpush1.bf16.msra.mxu1 %v17975_v60  ;;  %v18101_v59 = vcombine.low %v1118_v46, %v1126_v47  ;;  %v18103_v60 = vcombine.low %v1119_v48, %v1127_v50  ;;  %v20132_v46 = vld [vmem:[#allocation6 + $0x1c] ss:$52 sps:$4 sm:$0xff]   ;;  %v1246_v50 = vld [vmem:[%s21553_s18 + $0x1a80] sm:$0xff] }
 0x138   : > { %10061 = vmatprep.subr.bf16.mxu0 %v17990_v61  ;;  %10432 = vmatprep.subr.bf16.mxu1 %v17992_v1  ;;  %v18118_v61 = vcombine.high %v1134_v54, %v1142_v55  ;;  %v18120_v1 = vcombine.high %v1135_v56, %v1143_v58 }
 0x13b   : > { %10062 = vmatpush1.bf16.msra.mxu0 %v17989_v3  ;;  %10433 = vmatpush1.bf16.msra.mxu1 %v17991_v4  ;;  %v18117_v3 = vcombine.low %v1134_v54, %v1142_v55  ;;  %v18119_v4 = vcombine.low %v1135_v56, %v1143_v58  ;;  %v1255_v54 = vld [vmem:[%s21553_s18 + $0x1ac8] sm:$0xff]  ;;  %v18213_v55 = vcombine.low %v1230_v39, %v1238_v42  ;;  %v1262_v58 = vld [vmem:[%s21553_s18 + $0x1b00] sm:$0xff] }
 0x13c   : > { %10063 = vmatprep.subr.bf16.mxu0 %v18006_v5  ;;  %10434 = vmatprep.subr.bf16.mxu1 %v18008_v9  ;;  %v18134_v5 = vcombine.high %v1150_v62, %v1158_v63  ;;  %v1167_v9 = vld [vmem:[%s21553_s18 + $0x1808] sm:$0xff] }
 0x13d   : > { %v18152_v18 = vcombine.high %v1167_v9, %v1175_v10 }
 0x13f   : > { %10064 = vmatpush1.bf16.msra.mxu0 %v18005_v11  ;;  %10435 = vmatpush1.bf16.msra.mxu1 %v18007_v12  ;;  %v18133_v11 = vcombine.low %v1150_v62, %v1158_v63  ;;  %v18135_v12 = vcombine.low %v1151_v0, %v1159_v2  ;;  %v1271_v62 = vld [vmem:[%s21553_s18 + $0x1b48] sm:$0xff]  ;;  %v1278_v2 = vld [vmem:[%s21553_s18 + $0x1b80] sm:$0xff] }
 0x140   : > { %10065 = vmatprep.subr.bf16.mxu0 %v18022_v13  ;;  %10436 = vmatprep.subr.bf16.mxu1 %v18024_v17  ;;  %v18150_v13 = vcombine.high %v1166_v6, %v1174_v8  ;;  %v1183_v17 = vld [vmem:[%s21553_s18 + $0x1888] sm:$0xff] }
 0x143   : > { %10066 = vmatpush1.bf16.msra.mxu0 %v18021_v19  ;;  %10437 = vmatpush1.bf16.msra.mxu1 %v18023_v20  ;;  %v1191_v19 = vld [vmem:[%s21553_s18 + $0x18c8] sm:$0xff]  ;;  %v18149_v20 = vcombine.low %v1166_v6, %v1174_v8 }
 0x144   : > { %10067 = vmatprep.subr.bf16.mxu0 %v18038_v21  ;;  %10438 = vmatprep.subr.bf16.mxu1 %v18040_v25  ;;  %v18151_v21 = vcombine.low %v1167_v9, %v1175_v10  ;;  %v18168_v25 = vcombine.high %v1183_v17, %v1191_v19  ;;  %v18167_v31 = vcombine.low %v1183_v17, %v1191_v19  ;;  %v1287_v6 = vld [vmem:[%s21553_s18 + $0x1bc8] sm:$0xff]  ;;  %v1294_v10 = vld [vmem:[%s21553_s18 + $0x1c00] sm:$0xff] }
 0x145   : > { %v1318_v19 = vld [vmem:[%s21553_s18 + $0x1cc0] sm:$0xff] }
 0x147   : > { %10068 = vmatpush1.bf16.msra.mxu0 %v18037_v27  ;;  %10439 = vmatpush1.bf16.msra.mxu1 %v18039_v28  ;;  %v1207_v27 = vld [vmem:[%s21553_s18 + $0x1948] sm:$0xff]  ;;  %v20129_v28 = vld [vmem:[#allocation6 + $0x7c] ss:$52 sps:$4 sm:$0xff]  }
 0x148   : > { %10069 = vmatprep.subr.bf16.mxu0 %v18054_v29  ;;  %10440 = vmatprep.subr.bf16.mxu1 %v18056_v33  ;;  %v18165_v29 = vcombine.low %v1182_v15, %v1190_v16  ;;  %v1222_v33 = vld [vmem:[%s21553_s18 + $0x19c0] sm:$0xff]  ;;  %v18183_v40 = vcombine.low %v1199_v26, %v1207_v27 }
 0x149   : > { %v18197_v47 = vcombine.low %v1214_v30, %v1222_v33 }
 0x14b   : > { %10070 = vmatpush1.bf16.msra.mxu0 %v18053_v35  ;;  %10441 = vmatpush1.bf16.msra.mxu1 %v18055_v36  ;;  %v1223_v35 = vld [vmem:[%s21553_s18 + $0x19c8] sm:$0xff]  ;;  %v18184_v36 = vcombine.high %v1199_v26, %v1207_v27  ;;  %v1326_v26 = vld [vmem:[%s21553_s18 + $0x1d00] sm:$0xff] }
 0x14c   : > { %10071 = vmatprep.subr.bf16.mxu0 %v18070_v37  ;;  %10442 = vmatprep.subr.bf16.mxu1 %v18072_v41  ;;  %v20131_v37 = vld [vmem:[#allocation6 + $0x78] ss:$52 sps:$4 sm:$0xff]   ;;  %v18198_v41 = vcombine.high %v1214_v30, %v1222_v33  ;;  %v18199_v48 = vcombine.low %v1215_v34, %v1223_v35  ;;  %v1334_v27 = vld [vmem:[%s21553_s18 + $0x1d40] sm:$0xff] }
 0x14d   : > { %v1335_v30 = vld [vmem:[%s21553_s18 + $0x1d48] sm:$0xff]  ;;  %v18310_v33 = vcombine.high %v1326_v26, %v1334_v27 }
 0x14f   : > { %10072 = vmatpush1.bf16.msra.mxu0 %v18069_v43  ;;  %10443 = vmatpush1.bf16.msra.mxu1 %v18071_v44  ;;  %v1231_v43 = vld [vmem:[%s21553_s18 + $0x1a08] sm:$0xff] }
 0x150   : > { %10073 = vmatprep.subr.bf16.mxu0 %v18086_v45  ;;  %10444 = vmatprep.subr.bf16.mxu1 %v18088_v49  ;;  %v1239_v44 = vld [vmem:[%s21553_s18 + $0x1a48] sm:$0xff]  ;;  %v18200_v45 = vcombine.high %v1215_v34, %v1223_v35  ;;  %v18214_v49 = vcombine.high %v1230_v39, %v1238_v42  ;;  %v1342_v34 = vld [vmem:[%s21553_s18 + $0x1d80] sm:$0xff]  ;;  %v18309_v39 = vcombine.low %v1326_v26, %v1334_v27 }
 0x151   : > { %v18215_v56 = vcombine.low %v1231_v43, %v1239_v44  ;;  %v1350_v35 = vld [vmem:[%s21553_s18 + $0x1dc0] sm:$0xff] }
 0x152   : > { %v1358_v42 = vld [vmem:[%s21553_s18 + $0x1e00] sm:$0xff] }
 0x153   : > { %10074 = vmatpush1.bf16.msra.mxu0 %v18085_v51  ;;  %10445 = vmatpush1.bf16.msra.mxu1 %v18087_v52  ;;  %v1254_v51 = vld [vmem:[%s21553_s18 + $0x1ac0] sm:$0xff]  ;;  %v1247_v52 = vld [vmem:[%s21553_s18 + $0x1a88] sm:$0xff] }
 0x154   : > { %10075 = vmatprep.subr.bf16.mxu0 %v18102_v53  ;;  %10446 = vmatprep.subr.bf16.mxu1 %v18104_v57  ;;  %v18216_v53 = vcombine.high %v1231_v43, %v1239_v44  ;;  %v18230_v57 = vcombine.high %v1246_v50, %v1254_v51  ;;  %v18229_v63 = vcombine.low %v1246_v50, %v1254_v51  ;;  %v1366_v43 = vld [vmem:[%s21553_s18 + $0x1e40] sm:$0xff]  ;;  %v1359_v44 = vld [vmem:[%s21553_s18 + $0x1e08] sm:$0xff] }
 0x155   : > { %v18231_v0 = vcombine.low %v1247_v52, %v1255_v54  ;;  %v1374_v50 = vld [vmem:[%s21553_s18 + $0x1e80] sm:$0xff] }
 0x156   : > { %v1382_v51 = vld [vmem:[%s21553_s18 + $0x1ec0] sm:$0xff] }
 0x157   : > { %10076 = vmatpush1.bf16.msra.mxu0 %v18101_v59  ;;  %10447 = vmatpush1.bf16.msra.mxu1 %v18103_v60  ;;  %v1270_v59 = vld [vmem:[%s21553_s18 + $0x1b40] sm:$0xff]  ;;  %v1263_v60 = vld [vmem:[%s21553_s18 + $0x1b08] sm:$0xff] }
 0x158   : > { %10077 = vmatprep.subr.bf16.mxu0 %v18118_v61  ;;  %10448 = vmatprep.subr.bf16.mxu1 %v18120_v1  ;;  %v18232_v61 = vcombine.high %v1247_v52, %v1255_v54  ;;  %v18246_v1 = vcombine.high %v1262_v58, %v1270_v59  ;;  %v18247_v8 = vcombine.low %v1263_v60, %v1271_v62  ;;  %v1375_v52 = vld [vmem:[%s21553_s18 + $0x1e88] sm:$0xff] }
 0x159   : > { %v1383_v54 = vld [vmem:[%s21553_s18 + $0x1ec8] sm:$0xff] }
 0x15b   : > { %10078 = vmatpush1.bf16.msra.mxu0 %v18117_v3  ;;  %10449 = vmatpush1.bf16.msra.mxu1 %v18119_v4  ;;  %v1286_v3 = vld [vmem:[%s21553_s18 + $0x1bc0] sm:$0xff]  ;;  %v1279_v4 = vld [vmem:[%s21553_s18 + $0x1b88] sm:$0xff] }
 0x15c   : > { %10079 = vmatprep.subr.bf16.mxu0 %v18134_v5  ;;  %10450 = vmatprep.subr.bf16.mxu1 %v18136_v7  ;;  %v18248_v5 = vcombine.high %v1263_v60, %v1271_v62  ;;  %v18245_v7 = vcombine.low %v1262_v58, %v1270_v59  ;;  %v18262_v9 = vcombine.high %v1278_v2, %v1286_v3  ;;  %v1390_v58 = vld [vmem:[%s21553_s18 + $0x1f00] sm:$0xff]  ;;  %v1391_v60 = vld [vmem:[%s21553_s18 + $0x1f08] sm:$0xff] }
 0x15d   : > { %v18261_v15 = vcombine.low %v1278_v2, %v1286_v3  ;;  %v18263_v16 = vcombine.low %v1279_v4, %v1287_v6  ;;  %v1398_v59 = vld [vmem:[%s21553_s18 + $0x1f40] sm:$0xff]  ;;  %v1399_v62 = vld [vmem:[%s21553_s18 + $0x1f48] sm:$0xff] }
 0x15e   : > { %v1406_v2 = vld [vmem:[%s21553_s18 + $0x1f80] sm:$0xff] }
 0x15f   : > { %10080 = vmatpush1.bf16.msra.mxu0 %v18133_v11  ;;  %10451 = vmatpush1.bf16.msra.mxu1 %v18135_v12  ;;  %v1302_v11 = vld [vmem:[%s21553_s18 + $0x1c40] sm:$0xff]  ;;  %v1295_v12 = vld [vmem:[%s21553_s18 + $0x1c08] sm:$0xff] }
 0x160   : > { %10102 = vmatprep.subr.bf16.mxu0 %v18150_v13  ;;  %10473 = vmatprep.subr.bf16.mxu1 %v18152_v18  ;;  %v18264_v13 = vcombine.high %v1279_v4, %v1287_v6  ;;  %v18278_v17 = vcombine.high %v1294_v10, %v1302_v11  ;;  %v1310_v18 = vld [vmem:[%s21553_s18 + $0x1c80] sm:$0xff]  ;;  %v18277_v23 = vcombine.low %v1294_v10, %v1302_v11  ;;  %v1407_v4 = vld [vmem:[%s21553_s18 + $0x1f88] sm:$0xff] }
 0x161   : > { %v1414_v3 = vld [vmem:[%s21553_s18 + $0x1fc0] sm:$0xff]  ;;  %v1415_v6 = vld [vmem:[%s21553_s18 + $0x1fc8] sm:$0xff] }
 0x162   : > { %10082 = vmatmul.mubr.bf16.vlgmr.msra.gmra.mrb[0].mxu0 %v20128_v14  ;;  %10453 = vmatmul.mubr.bf16.vlgmr.msra.gmra.mrb[0].mxu1 %v20128_v14  ;;  %v1303_v14 = vld [vmem:[%s21553_s18 + $0x1c48] sm:$0xff]  ;;  %v1422_v10 = vld [vmem:[%s21553_s18 + $0x2000] sm:$0xff]  ;;  %v18392_v11 = vcombine.high %v1407_v4, %v1415_v6 }
 0x163   : > { %10103 = vmatpush1.bf16.msra.mxu0 %v18149_v20  ;;  %10474 = vmatpush1.bf16.msra.mxu1 %v18151_v21  ;;  %v1311_v20 = vld [vmem:[%s21553_s18 + $0x1c88] sm:$0xff]  ;;  %v18280_v21 = vcombine.high %v1295_v12, %v1303_v14  ;;  %v18279_v24 = vcombine.low %v1295_v12, %v1303_v14  ;;  %v1430_v12 = vld [vmem:[%s21553_s18 + $0x2040] sm:$0xff] }
 0x164   : > { %10104 = vmatprep.subr.bf16.mxu0 %v18166_v22  ;;  %10475 = vmatprep.subr.bf16.mxu1 %v18168_v25  ;;  %v1319_v22 = vld [vmem:[%s21553_s18 + $0x1cc8] sm:$0xff]  ;;  %v18294_v25 = vcombine.high %v1310_v18, %v1318_v19 }
 0x165   : > { %10091 = vmatprep.mubr.bf16.mxu0 %v20129_v28  ;;  %10462 = vmatprep.mubr.bf16.mxu1 %v20129_v28  ;;  %v1327_v28 = vld [vmem:[%s21553_s18 + $0x1d08] sm:$0xff] }
 0x166   : > { %v1431_v14 = vld [vmem:[%s21553_s18 + $0x2048] sm:$0xff] }
 0x167   : > { %10105 = vmatpush1.bf16.msra.mxu0 %v18165_v29  ;;  %10476 = vmatpush1.bf16.msra.mxu1 %v18167_v31  ;;  %v18296_v29 = vcombine.high %v1311_v20, %v1319_v22  ;;  %v18293_v31 = vcombine.low %v1310_v18, %v1318_v19  ;;  %v20134_v18 = vld [vmem:[#allocation6 + $0x18] ss:$52 sps:$4 sm:$0xff]   ;;  %v1438_v19 = vld [vmem:[%s21553_s18 + $0x2080] sm:$0xff] }
 0x168   : > { %10106 = vmatprep.subr.bf16.mxu0 %v18182_v32  ;;  %10477 = vmatprep.subr.bf16.mxu1 %v18184_v36  ;;  %v18295_v32 = vcombine.low %v1311_v20, %v1319_v22  ;;  %v1343_v36 = vld [vmem:[%s21553_s18 + $0x1d88] sm:$0xff]  ;;  %v1446_v20 = vld [vmem:[%s21553_s18 + $0x20c0] sm:$0xff] }
 0x169   : > { %v18422_v27 = vcombine.high %v1438_v19, %v1446_v20 }
 0x16a   : > { %10092 = vmatmul.mubr.bf16.gmra.mrb[4].mxu0 %v20131_v37  ;;  %10463 = vmatmul.mubr.bf16.gmra.mrb[4].mxu1 %v20131_v37  ;;  %v18312_v37 = vcombine.high %v1327_v28, %v1335_v30 }
 0x16b   : > { %10107 = vmatpush1.bf16.msra.mxu0 %v18181_v38  ;;  %10478 = vmatpush1.bf16.msra.mxu1 %v18183_v40  ;;  %v1351_v38 = vld [vmem:[%s21553_s18 + $0x1dc8] sm:$0xff]  ;;  %v18311_v40 = vcombine.low %v1327_v28, %v1335_v30  ;;  %v1462_v28 = vld [vmem:[%s21553_s18 + $0x2140] sm:$0xff] }
 0x16c   : > { %10108 = vmatprep.subr.bf16.mxu0 %v18198_v41  ;;  %10479 = vmatprep.subr.bf16.mxu1 %v18200_v45  ;;  %v18326_v41 = vcombine.high %v1342_v34, %v1350_v35  ;;  %v18328_v45 = vcombine.high %v1343_v36, %v1351_v38 }
 0x16d   : > { %10134 = vmatprep.mubr.bf16.mxu0 %v20132_v46  ;;  %10505 = vmatprep.mubr.bf16.mxu1 %v20132_v46  ;;  %v1367_v46 = vld [vmem:[%s21553_s18 + $0x1e48] sm:$0xff] }
 0x16f   : > { %10109 = vmatpush1.bf16.msra.mxu0 %v18197_v47  ;;  %10480 = vmatpush1.bf16.msra.mxu1 %v18199_v48  ;;  %v18325_v47 = vcombine.low %v1342_v34, %v1350_v35  ;;  %v18327_v48 = vcombine.low %v1343_v36, %v1351_v38  ;;  %v1470_v34 = vld [vmem:[%s21553_s18 + $0x2180] sm:$0xff]  ;;  %v1471_v38 = vld [vmem:[%s21553_s18 + $0x2188] sm:$0xff] }
 0x170   : > { %10110 = vmatprep.subr.bf16.mxu0 %v18214_v49  ;;  %10481 = vmatprep.subr.bf16.mxu1 %v18216_v53  ;;  %v18342_v49 = vcombine.high %v1358_v42, %v1366_v43  ;;  %v18344_v53 = vcombine.high %v1359_v44, %v1367_v46  ;;  %v1478_v35 = vld [vmem:[%s21553_s18 + $0x21c0] sm:$0xff] }
 0x173   : > { %10111 = vmatpush1.bf16.msra.mxu0 %v18213_v55  ;;  %10482 = vmatpush1.bf16.msra.mxu1 %v18215_v56  ;;  %v18341_v55 = vcombine.low %v1358_v42, %v1366_v43  ;;  %v18343_v56 = vcombine.low %v1359_v44, %v1367_v46  ;;  %v1486_v43 = vld [vmem:[%s21553_s18 + $0x2200] sm:$0xff] }
 0x174   : > { %10112 = vmatprep.subr.bf16.mxu0 %v18230_v57  ;;  %10483 = vmatprep.subr.bf16.mxu1 %v18232_v61  ;;  %v18358_v57 = vcombine.high %v1374_v50, %v1382_v51  ;;  %v18360_v61 = vcombine.high %v1375_v52, %v1383_v54  ;;  %v1494_v44 = vld [vmem:[%s21553_s18 + $0x2240] sm:$0xff] }
 0x177   : > { %10113 = vmatpush1.bf16.msra.mxu0 %v18229_v63  ;;  %10484 = vmatpush1.bf16.msra.mxu1 %v18231_v0  ;;  %v18357_v63 = vcombine.low %v1374_v50, %v1382_v51  ;;  %v18359_v0 = vcombine.low %v1375_v52, %v1383_v54  ;;  %v1495_v50 = vld [vmem:[%s21553_s18 + $0x2248] sm:$0xff]  ;;  %v18453_v51 = vcombine.low %v1470_v34, %v1478_v35  ;;  %v1502_v54 = vld [vmem:[%s21553_s18 + $0x2280] sm:$0xff] }
 0x178   : > { %10114 = vmatprep.subr.bf16.mxu0 %v18246_v1  ;;  %10485 = vmatprep.subr.bf16.mxu1 %v18248_v5  ;;  %v18374_v1 = vcombine.high %v1390_v58, %v1398_v59  ;;  %v18376_v5 = vcombine.high %v1391_v60, %v1399_v62 }
 0x17b   : > { %10115 = vmatpush1.bf16.msra.mxu0 %v18245_v7  ;;  %10486 = vmatpush1.bf16.msra.mxu1 %v18247_v8  ;;  %v18373_v7 = vcombine.low %v1390_v58, %v1398_v59  ;;  %v18375_v8 = vcombine.low %v1391_v60, %v1399_v62  ;;  %v1511_v58 = vld [vmem:[%s21553_s18 + $0x22c8] sm:$0xff]  ;;  %v18469_v59 = vcombine.low %v1486_v43, %v1494_v44  ;;  %v1518_v60 = vld [vmem:[%s21553_s18 + $0x2300] sm:$0xff] }
 0x17c   : > { %10116 = vmatprep.subr.bf16.mxu0 %v18262_v9  ;;  %10487 = vmatprep.subr.bf16.mxu1 %v18264_v13  ;;  %v18390_v9 = vcombine.high %v1406_v2, %v1414_v3  ;;  %v1423_v13 = vld [vmem:[%s21553_s18 + $0x2008] sm:$0xff] }
 0x17d   : > { %v18408_v22 = vcombine.high %v1423_v13, %v1431_v14  ;;  %v18407_v26 = vcombine.low %v1423_v13, %v1431_v14  ;;  %v1550_v14 = vld [vmem:[%s21553_s18 + $0x2400] sm:$0xff] }
 0x17f   : > { %10117 = vmatpush1.bf16.msra.mxu0 %v18261_v15  ;;  %10488 = vmatpush1.bf16.msra.mxu1 %v18263_v16  ;;  %v18389_v15 = vcombine.low %v1406_v2, %v1414_v3  ;;  %v18391_v16 = vcombine.low %v1407_v4, %v1415_v6  ;;  %v1534_v6 = vld [vmem:[%s21553_s18 + $0x2380] sm:$0xff] }
 0x180   : > { %10118 = vmatprep.subr.bf16.mxu0 %v18278_v17  ;;  %10489 = vmatprep.subr.bf16.mxu1 %v18280_v21  ;;  %v18406_v17 = vcombine.high %v1422_v10, %v1430_v12  ;;  %v1439_v21 = vld [vmem:[%s21553_s18 + $0x2088] sm:$0xff] }
 0x183   : > { %10119 = vmatpush1.bf16.msra.mxu0 %v18277_v23  ;;  %10490 = vmatpush1.bf16.msra.mxu1 %v18279_v24  ;;  %v1447_v23 = vld [vmem:[%s21553_s18 + $0x20c8] sm:$0xff]  ;;  %v18405_v24 = vcombine.low %v1422_v10, %v1430_v12 }
 0x184   : > { %10120 = vmatprep.subr.bf16.mxu0 %v18294_v25  ;;  %10491 = vmatprep.subr.bf16.mxu1 %v18296_v29  ;;  %v1454_v25 = vld [vmem:[%s21553_s18 + $0x2100] sm:$0xff]  ;;  %v18424_v30 = vcombine.high %v1439_v21, %v1447_v23  ;;  %v18423_v36 = vcombine.low %v1439_v21, %v1447_v23  ;;  %v1543_v10 = vld [vmem:[%s21553_s18 + $0x23c8] sm:$0xff] }
 0x185   : > { %v20135_v29 = vld [vmem:[#allocation6 + $0x84] ss:$52 sps:$4 sm:$0xff]   ;;  %v18437_v42 = vcombine.low %v1454_v25, %v1462_v28 }
 0x186   : > { %v1574_v23 = vld [vmem:[%s21553_s18 + $0x24c0] sm:$0xff] }
 0x187   : > { %10121 = vmatpush1.bf16.msra.mxu0 %v18293_v31  ;;  %10492 = vmatpush1.bf16.msra.mxu1 %v18295_v32  ;;  %v1455_v31 = vld [vmem:[%s21553_s18 + $0x2108] sm:$0xff] }
 0x188   : > { %10122 = vmatprep.subr.bf16.mxu0 %v18310_v33  ;;  %10493 = vmatprep.subr.bf16.mxu1 %v18312_v37  ;;  %v1463_v32 = vld [vmem:[%s21553_s18 + $0x2148] sm:$0xff]  ;;  %v18421_v33 = vcombine.low %v1438_v19, %v1446_v20  ;;  %v18438_v37 = vcombine.high %v1454_v25, %v1462_v28 }
 0x189   : > { %v18439_v46 = vcombine.low %v1455_v31, %v1463_v32 }
 0x18b   : > { %10123 = vmatpush1.bf16.msra.mxu0 %v18309_v39  ;;  %10494 = vmatpush1.bf16.msra.mxu1 %v18311_v40  ;;  %v1479_v39 = vld [vmem:[%s21553_s18 + $0x21c8] sm:$0xff]  ;;  %v18440_v40 = vcombine.high %v1455_v31, %v1463_v32  ;;  %v1590_v31 = vld [vmem:[%s21553_s18 + $0x2540] sm:$0xff] }
 0x18c   : > { %10124 = vmatprep.subr.bf16.mxu0 %v18326_v41  ;;  %10495 = vmatprep.subr.bf16.mxu1 %v18328_v45  ;;  %v20137_v41 = vld [vmem:[#allocation6 + $0x80] ss:$52 sps:$4 sm:$0xff]   ;;  %v20138_v45 = vld [vmem:[#allocation6 + $0x24] ss:$52 sps:$4 sm:$0xff]   ;;  %v18455_v52 = vcombine.low %v1471_v38, %v1479_v39  ;;  %v1583_v32 = vld [vmem:[%s21553_s18 + $0x2508] sm:$0xff] }
 0x18f   : > { %10125 = vmatpush1.bf16.msra.mxu0 %v18325_v47  ;;  %10496 = vmatpush1.bf16.msra.mxu1 %v18327_v48  ;;  %v18454_v47 = vcombine.high %v1470_v34, %v1478_v35  ;;  %v18456_v48 = vcombine.high %v1471_v38, %v1479_v39  ;;  %v1591_v34 = vld [vmem:[%s21553_s18 + $0x2548] sm:$0xff]  ;;  %v1598_v38 = vld [vmem:[%s21553_s18 + $0x2580] sm:$0xff] }
 0x190   : > { %10126 = vmatprep.subr.bf16.mxu0 %v18342_v49  ;;  %10497 = vmatprep.subr.bf16.mxu1 %v18344_v53  ;;  %v1487_v49 = vld [vmem:[%s21553_s18 + $0x2208] sm:$0xff]  ;;  %v18470_v53 = vcombine.high %v1486_v43, %v1494_v44  ;;  %v1606_v39 = vld [vmem:[%s21553_s18 + $0x25c0] sm:$0xff]  ;;  %v18567_v44 = vcombine.low %v1583_v32, %v1591_v34 }
 0x191   : > { %v18471_v62 = vcombine.low %v1487_v49, %v1495_v50 }
 0x193   : > { %10127 = vmatpush1.bf16.msra.mxu0 %v18341_v55  ;;  %10498 = vmatpush1.bf16.msra.mxu1 %v18343_v56  ;;  %v1510_v55 = vld [vmem:[%s21553_s18 + $0x22c0] sm:$0xff]  ;;  %v18472_v56 = vcombine.high %v1487_v49, %v1495_v50  ;;  %v1623_v50 = vld [vmem:[%s21553_s18 + $0x2648] sm:$0xff] }
 0x194   : > { %10128 = vmatprep.subr.bf16.mxu0 %v18358_v57  ;;  %10499 = vmatprep.subr.bf16.mxu1 %v18360_v61  ;;  %v1503_v57 = vld [vmem:[%s21553_s18 + $0x2288] sm:$0xff]  ;;  %v1526_v61 = vld [vmem:[%s21553_s18 + $0x2340] sm:$0xff]  ;;  %v18485_v3 = vcombine.low %v1502_v54, %v1510_v55 }
 0x195   : > { %v18488_v2 = vcombine.high %v1503_v57, %v1511_v58  ;;  %v18487_v4 = vcombine.low %v1503_v57, %v1511_v58  ;;  %v1639_v58 = vld [vmem:[%s21553_s18 + $0x26c8] sm:$0xff] }
 0x197   : > { %10129 = vmatpush1.bf16.msra.mxu0 %v18357_v63  ;;  %10500 = vmatpush1.bf16.msra.mxu1 %v18359_v0  ;;  %v18486_v63 = vcombine.high %v1502_v54, %v1510_v55  ;;  %v1519_v0 = vld [vmem:[%s21553_s18 + $0x2308] sm:$0xff]  ;;  %v1630_v54 = vld [vmem:[%s21553_s18 + $0x2680] sm:$0xff] }
 0x198   : > { %10130 = vmatprep.subr.bf16.mxu0 %v18374_v1  ;;  %10501 = vmatprep.subr.bf16.mxu1 %v18376_v5  ;;  %v1527_v1 = vld [vmem:[%s21553_s18 + $0x2348] sm:$0xff]  ;;  %v18502_v5 = vcombine.high %v1518_v60, %v1526_v61  ;;  %v1638_v55 = vld [vmem:[%s21553_s18 + $0x26c0] sm:$0xff] }
 0x199   : > { %v18503_v12 = vcombine.low %v1519_v0, %v1527_v1 }
 0x19b   : > { %10131 = vmatpush1.bf16.msra.mxu0 %v18373_v7  ;;  %10502 = vmatpush1.bf16.msra.mxu1 %v18375_v8  ;;  %v1542_v7 = vld [vmem:[%s21553_s18 + $0x23c0] sm:$0xff]  ;;  %v1535_v8 = vld [vmem:[%s21553_s18 + $0x2388] sm:$0xff] }
 0x19c   : > { %10132 = vmatprep.subr.bf16.mxu0 %v18390_v9  ;;  %10503 = vmatprep.subr.bf16.mxu1 %v18392_v11  ;;  %v18504_v9 = vcombine.high %v1519_v0, %v1527_v1  ;;  %v18501_v11 = vcombine.low %v1518_v60, %v1526_v61  ;;  %v18518_v13 = vcombine.high %v1534_v6, %v1542_v7  ;;  %v1647_v0 = vld [vmem:[%s21553_s18 + $0x2708] sm:$0xff] }
 0x19d   : > { %v18517_v19 = vcombine.low %v1534_v6, %v1542_v7  ;;  %v18519_v20 = vcombine.low %v1535_v8, %v1543_v10  ;;  %v18614_v61 = vcombine.high %v1630_v54, %v1638_v55  ;;  %v1662_v6 = vld [vmem:[%s21553_s18 + $0x2780] sm:$0xff] }
 0x19e   : > { %v1670_v7 = vld [vmem:[%s21553_s18 + $0x27c0] sm:$0xff] }
 0x19f   : > { %10133 = vmatpush1.bf16.msra.mxu0 %v18389_v15  ;;  %10504 = vmatpush1.bf16.msra.mxu1 %v18391_v16  ;;  %v1558_v15 = vld [vmem:[%s21553_s18 + $0x2440] sm:$0xff]  ;;  %v18520_v16 = vcombine.high %v1535_v8, %v1543_v10  ;;  %v1663_v8 = vld [vmem:[%s21553_s18 + $0x2788] sm:$0xff] }
 0x1a0   : > { %10155 = vmatprep.subr.bf16.mxu0 %v18406_v17  ;;  %10526 = vmatprep.subr.bf16.mxu1 %v18408_v22  ;;  %v1551_v17 = vld [vmem:[%s21553_s18 + $0x2408] sm:$0xff]  ;;  %v18534_v21 = vcombine.high %v1550_v14, %v1558_v15  ;;  %v1566_v22 = vld [vmem:[%s21553_s18 + $0x2480] sm:$0xff] }
 0x1a1   : > { %v18549_v35 = vcombine.low %v1566_v22, %v1574_v23  ;;  %v1671_v10 = vld [vmem:[%s21553_s18 + $0x27c8] sm:$0xff] }
 0x1a2   : > { %10135 = vmatmul.mubr.bf16.vlgmr.msra.gmra.mrb[0].mxu0 %v20134_v18  ;;  %10506 = vmatmul.mubr.bf16.vlgmr.msra.gmra.mrb[0].mxu1 %v20134_v18  ;;  %v1559_v18 = vld [vmem:[%s21553_s18 + $0x2448] sm:$0xff] }
 0x1a3   : > { %10156 = vmatpush1.bf16.msra.mxu0 %v18405_v24  ;;  %10527 = vmatpush1.bf16.msra.mxu1 %v18407_v26  ;;  %v1567_v24 = vld [vmem:[%s21553_s18 + $0x2488] sm:$0xff]  ;;  %v18536_v25 = vcombine.high %v1551_v17, %v1559_v18  ;;  %v18535_v28 = vcombine.low %v1551_v17, %v1559_v18  ;;  %v18648_v17 = vcombine.high %v1663_v8, %v1671_v10 }
 0x1a4   : > { %10157 = vmatprep.subr.bf16.mxu0 %v18422_v27  ;;  %10528 = vmatprep.subr.bf16.mxu1 %v18424_v30  ;;  %v1575_v26 = vld [vmem:[%s21553_s18 + $0x24c8] sm:$0xff]  ;;  %v18533_v27 = vcombine.low %v1550_v14, %v1558_v15  ;;  %v1582_v30 = vld [vmem:[%s21553_s18 + $0x2500] sm:$0xff] }
 0x1a5   : > { %10144 = vmatprep.mubr.bf16.mxu0 %v20135_v29  ;;  %10515 = vmatprep.mubr.bf16.mxu1 %v20135_v29  ;;  %v18550_v29 = vcombine.high %v1566_v22, %v1574_v23  ;;  %v18565_v43 = vcombine.low %v1582_v30, %v1590_v31  ;;  %v1678_v14 = vld [vmem:[%s21553_s18 + $0x2800] sm:$0xff]  ;;  %v1687_v18 = vld [vmem:[%s21553_s18 + $0x2848] sm:$0xff] }
 0x1a6   : > { %v1686_v15 = vld [vmem:[%s21553_s18 + $0x2840] sm:$0xff] }
 0x1a7   : > { %10158 = vmatpush1.bf16.msra.mxu0 %v18421_v33  ;;  %10529 = vmatpush1.bf16.msra.mxu1 %v18423_v36  ;;  %v18552_v33 = vcombine.high %v1567_v24, %v1575_v26  ;;  %v18551_v36 = vcombine.low %v1567_v24, %v1575_v26  ;;  %v20140_v22 = vld [vmem:[#allocation6 + $0x20] ss:$52 sps:$4 sm:$0xff]  }
 0x1a8   : > { %10159 = vmatprep.subr.bf16.mxu0 %v18438_v37  ;;  %10530 = vmatprep.subr.bf16.mxu1 %v18440_v40  ;;  %v18566_v37 = vcombine.high %v1582_v30, %v1590_v31  ;;  %v1599_v40 = vld [vmem:[%s21553_s18 + $0x2588] sm:$0xff]  ;;  %v1694_v23 = vld [vmem:[%s21553_s18 + $0x2880] sm:$0xff] }
 0x1a9   : > { %v1702_v24 = vld [vmem:[%s21553_s18 + $0x28c0] sm:$0xff] }
 0x1aa   : > { %10145 = vmatmul.mubr.bf16.gmra.mrb[4].mxu0 %v20137_v41  ;;  %10516 = vmatmul.mubr.bf16.gmra.mrb[4].mxu1 %v20137_v41  ;;  %v18568_v41 = vcombine.high %v1583_v32, %v1591_v34  ;;  %v18678_v31 = vcombine.high %v1694_v23, %v1702_v24  ;;  %v1718_v32 = vld [vmem:[%s21553_s18 + $0x2940] sm:$0xff]  ;;  %v1719_v34 = vld [vmem:[%s21553_s18 + $0x2948] sm:$0xff] }
 0x1ab   : > { %10160 = vmatpush1.bf16.msra.mxu0 %v18437_v42  ;;  %10531 = vmatpush1.bf16.msra.mxu1 %v18439_v46  ;;  %v1607_v42 = vld [vmem:[%s21553_s18 + $0x25c8] sm:$0xff]  ;;  %v1614_v46 = vld [vmem:[%s21553_s18 + $0x2600] sm:$0xff] }
 0x1ac   : > { %10161 = vmatprep.subr.bf16.mxu0 %v18454_v47  ;;  %10532 = vmatprep.subr.bf16.mxu1 %v18456_v48  ;;  %v1622_v47 = vld [vmem:[%s21553_s18 + $0x2640] sm:$0xff]  ;;  %v1615_v48 = vld [vmem:[%s21553_s18 + $0x2608] sm:$0xff]  ;;  %v18584_v49 = vcombine.high %v1599_v40, %v1607_v42 }
 0x1ad   : > { %10187 = vmatprep.mubr.bf16.mxu0 %v20138_v45  ;;  %10558 = vmatprep.mubr.bf16.mxu1 %v20138_v45  ;;  %v18582_v45 = vcombine.high %v1598_v38, %v1606_v39  ;;  %v18600_v57 = vcombine.high %v1615_v48, %v1623_v50  ;;  %v18599_v60 = vcombine.low %v1615_v48, %v1623_v50  ;;  %v1750_v50 = vld [vmem:[%s21553_s18 + $0x2a40] sm:$0xff] }
 0x1af   : > { %10162 = vmatpush1.bf16.msra.mxu0 %v18453_v51  ;;  %10533 = vmatpush1.bf16.msra.mxu1 %v18455_v52  ;;  %v18581_v51 = vcombine.low %v1598_v38, %v1606_v39  ;;  %v18583_v52 = vcombine.low %v1599_v40, %v1607_v42  ;;  %v1726_v38 = vld [vmem:[%s21553_s18 + $0x2980] sm:$0xff]  ;;  %v1727_v42 = vld [vmem:[%s21553_s18 + $0x2988] sm:$0xff] }
 0x1b0   : > { %10163 = vmatprep.subr.bf16.mxu0 %v18470_v53  ;;  %10534 = vmatprep.subr.bf16.mxu1 %v18472_v56  ;;  %v18598_v53 = vcombine.high %v1614_v46, %v1622_v47  ;;  %v1631_v56 = vld [vmem:[%s21553_s18 + $0x2688] sm:$0xff] }
 0x1b1   : > { %v18616_v1 = vcombine.high %v1631_v56, %v1639_v58 }
 0x1b3   : > { %10164 = vmatpush1.bf16.msra.mxu0 %v18469_v59  ;;  %10535 = vmatpush1.bf16.msra.mxu1 %v18471_v62  ;;  %v18597_v59 = vcombine.low %v1614_v46, %v1622_v47  ;;  %v1646_v62 = vld [vmem:[%s21553_s18 + $0x2700] sm:$0xff] }
 0x1b4   : > { %10165 = vmatprep.subr.bf16.mxu0 %v18486_v63  ;;  %10536 = vmatprep.subr.bf16.mxu1 %v18488_v2  ;;  %v1654_v63 = vld [vmem:[%s21553_s18 + $0x2740] sm:$0xff]  ;;  %v1655_v2 = vld [vmem:[%s21553_s18 + $0x2748] sm:$0xff] }
 0x1b5   : > { %v1742_v47 = vld [vmem:[%s21553_s18 + $0x2a00] sm:$0xff] }
 0x1b7   : > { %10166 = vmatpush1.bf16.msra.mxu0 %v18485_v3  ;;  %10537 = vmatpush1.bf16.msra.mxu1 %v18487_v4  ;;  %v18613_v3 = vcombine.low %v1630_v54, %v1638_v55  ;;  %v18615_v4 = vcombine.low %v1631_v56, %v1639_v58  ;;  %v20144_v54 = vld [vmem:[#allocation6 + $0x2c] ss:$52 sps:$4 sm:$0xff]  }
 0x1b8   : > { %10167 = vmatprep.subr.bf16.mxu0 %v18502_v5  ;;  %10538 = vmatprep.subr.bf16.mxu1 %v18504_v9  ;;  %v18630_v5 = vcombine.high %v1646_v62, %v1654_v63  ;;  %v18632_v9 = vcombine.high %v1647_v0, %v1655_v2  ;;  %v1758_v58 = vld [vmem:[%s21553_s18 + $0x2a80] sm:$0xff] }
 0x1bb   : > { %10168 = vmatpush1.bf16.msra.mxu0 %v18501_v11  ;;  %10539 = vmatpush1.bf16.msra.mxu1 %v18503_v12  ;;  %v18629_v11 = vcombine.low %v1646_v62, %v1654_v63  ;;  %v18631_v12 = vcombine.low %v1647_v0, %v1655_v2  ;;  %v1767_v62 = vld [vmem:[%s21553_s18 + $0x2ac8] sm:$0xff]  ;;  %v18725_v63 = vcombine.low %v1742_v47, %v1750_v50  ;;  %v1774_v2 = vld [vmem:[%s21553_s18 + $0x2b00] sm:$0xff] }
 0x1bc   : > { %10169 = vmatprep.subr.bf16.mxu0 %v18518_v13  ;;  %10540 = vmatprep.subr.bf16.mxu1 %v18520_v16  ;;  %v18646_v13 = vcombine.high %v1662_v6, %v1670_v7  ;;  %v1679_v16 = vld [vmem:[%s21553_s18 + $0x2808] sm:$0xff] }
 0x1bd   : > { %v18664_v26 = vcombine.high %v1679_v16, %v1687_v18  ;;  %v18663_v30 = vcombine.low %v1679_v16, %v1687_v18 }
 0x1bf   : > { %10170 = vmatpush1.bf16.msra.mxu0 %v18517_v19  ;;  %10541 = vmatpush1.bf16.msra.mxu1 %v18519_v20  ;;  %v18645_v19 = vcombine.low %v1662_v6, %v1670_v7  ;;  %v18647_v20 = vcombine.low %v1663_v8, %v1671_v10  ;;  %v1783_v6 = vld [vmem:[%s21553_s18 + $0x2b48] sm:$0xff]  ;;  %v1790_v10 = vld [vmem:[%s21553_s18 + $0x2b80] sm:$0xff] }
 0x1c0   : > { %10171 = vmatprep.subr.bf16.mxu0 %v18534_v21  ;;  %10542 = vmatprep.subr.bf16.mxu1 %v18536_v25  ;;  %v18662_v21 = vcombine.high %v1678_v14, %v1686_v15  ;;  %v1695_v25 = vld [vmem:[%s21553_s18 + $0x2888] sm:$0xff] }
 0x1c3   : > { %10172 = vmatpush1.bf16.msra.mxu0 %v18533_v27  ;;  %10543 = vmatpush1.bf16.msra.mxu1 %v18535_v28  ;;  %v1703_v27 = vld [vmem:[%s21553_s18 + $0x28c8] sm:$0xff]  ;;  %v18661_v28 = vcombine.low %v1678_v14, %v1686_v15 }
 0x1c4   : > { %10173 = vmatprep.subr.bf16.mxu0 %v18550_v29  ;;  %10544 = vmatprep.subr.bf16.mxu1 %v18552_v33  ;;  %v1710_v29 = vld [vmem:[%s21553_s18 + $0x2900] sm:$0xff]  ;;  %v1711_v33 = vld [vmem:[%s21553_s18 + $0x2908] sm:$0xff]  ;;  %v18679_v39 = vcombine.low %v1695_v25, %v1703_v27 }
 0x1c5   : > { %v18694_v40 = vcombine.high %v1710_v29, %v1718_v32  ;;  %v18693_v46 = vcombine.low %v1710_v29, %v1718_v32  ;;  %v18695_v48 = vcombine.low %v1711_v33, %v1719_v34  ;;  %v1799_v14 = vld [vmem:[%s21553_s18 + $0x2bc8] sm:$0xff] }
 0x1c6   : > { %v1823_v29 = vld [vmem:[%s21553_s18 + $0x2c88] sm:$0xff] }
 0x1c7   : > { %10174 = vmatpush1.bf16.msra.mxu0 %v18549_v35  ;;  %10545 = vmatpush1.bf16.msra.mxu1 %v18551_v36  ;;  %v18680_v35 = vcombine.high %v1695_v25, %v1703_v27  ;;  %v20141_v36 = vld [vmem:[#allocation6 + $0x8c] ss:$52 sps:$4 sm:$0xff]  }
 0x1c8   : > { %10175 = vmatprep.subr.bf16.mxu0 %v18566_v37  ;;  %10546 = vmatprep.subr.bf16.mxu1 %v18568_v41  ;;  %v18677_v37 = vcombine.low %v1694_v23, %v1702_v24  ;;  %v1734_v41 = vld [vmem:[%s21553_s18 + $0x29c0] sm:$0xff] }
 0x1c9   : > { %v18709_v55 = vcombine.low %v1726_v38, %v1734_v41  ;;  %v1822_v27 = vld [vmem:[%s21553_s18 + $0x2c80] sm:$0xff] }
 0x1cb   : > { %10176 = vmatpush1.bf16.msra.mxu0 %v18565_v43  ;;  %10547 = vmatpush1.bf16.msra.mxu1 %v18567_v44  ;;  %v1735_v43 = vld [vmem:[%s21553_s18 + $0x29c8] sm:$0xff]  ;;  %v18696_v44 = vcombine.high %v1711_v33, %v1719_v34 }
 0x1cc   : > { %10177 = vmatprep.subr.bf16.mxu0 %v18582_v45  ;;  %10548 = vmatprep.subr.bf16.mxu1 %v18584_v49  ;;  %v20143_v45 = vld [vmem:[#allocation6 + $0x88] ss:$52 sps:$4 sm:$0xff]   ;;  %v18710_v49 = vcombine.high %v1726_v38, %v1734_v41  ;;  %v18711_v56 = vcombine.low %v1727_v42, %v1735_v43 }
 0x1cd   : > { %v1847_v38 = vld [vmem:[%s21553_s18 + $0x2d48] sm:$0xff] }
 0x1cf   : > { %10178 = vmatpush1.bf16.msra.mxu0 %v18581_v51  ;;  %10549 = vmatpush1.bf16.msra.mxu1 %v18583_v52  ;;  %v1743_v51 = vld [vmem:[%s21553_s18 + $0x2a08] sm:$0xff] }
 0x1d0   : > { %10179 = vmatprep.subr.bf16.mxu0 %v18598_v53  ;;  %10550 = vmatprep.subr.bf16.mxu1 %v18600_v57  ;;  %v1751_v52 = vld [vmem:[%s21553_s18 + $0x2a48] sm:$0xff]  ;;  %v18712_v53 = vcombine.high %v1727_v42, %v1735_v43  ;;  %v18726_v57 = vcombine.high %v1742_v47, %v1750_v50  ;;  %v1854_v43 = vld [vmem:[%s21553_s18 + $0x2d80] sm:$0xff] }
 0x1d1   : > { %v18727_v0 = vcombine.low %v1743_v51, %v1751_v52 }
 0x1d3   : > { %10180 = vmatpush1.bf16.msra.mxu0 %v18597_v59  ;;  %10551 = vmatpush1.bf16.msra.mxu1 %v18599_v60  ;;  %v1766_v59 = vld [vmem:[%s21553_s18 + $0x2ac0] sm:$0xff]  ;;  %v1759_v60 = vld [vmem:[%s21553_s18 + $0x2a88] sm:$0xff] }
 0x1d4   : > { %10181 = vmatprep.subr.bf16.mxu0 %v18614_v61  ;;  %10552 = vmatprep.subr.bf16.mxu1 %v18616_v1  ;;  %v18728_v61 = vcombine.high %v1743_v51, %v1751_v52  ;;  %v18742_v1 = vcombine.high %v1758_v58, %v1766_v59  ;;  %v18741_v7 = vcombine.low %v1758_v58, %v1766_v59  ;;  %v1870_v51 = vld [vmem:[%s21553_s18 + $0x2e00] sm:$0xff] }
 0x1d5   : > { %v18743_v8 = vcombine.low %v1759_v60, %v1767_v62  ;;  %v1878_v52 = vld [vmem:[%s21553_s18 + $0x2e40] sm:$0xff] }
 0x1d6   : > { %v1886_v59 = vld [vmem:[%s21553_s18 + $0x2e80] sm:$0xff] }
 0x1d7   : > { %10182 = vmatpush1.bf16.msra.mxu0 %v18613_v3  ;;  %10553 = vmatpush1.bf16.msra.mxu1 %v18615_v4  ;;  %v1782_v3 = vld [vmem:[%s21553_s18 + $0x2b40] sm:$0xff]  ;;  %v1775_v4 = vld [vmem:[%s21553_s18 + $0x2b08] sm:$0xff] }
 0x1d8   : > { %10183 = vmatprep.subr.bf16.mxu0 %v18630_v5  ;;  %10554 = vmatprep.subr.bf16.mxu1 %v18632_v9  ;;  %v18744_v5 = vcombine.high %v1759_v60, %v1767_v62  ;;  %v18758_v9 = vcombine.high %v1774_v2, %v1782_v3  ;;  %v18757_v15 = vcombine.low %v1774_v2, %v1782_v3  ;;  %v1894_v60 = vld [vmem:[%s21553_s18 + $0x2ec0] sm:$0xff]  ;;  %v1895_v62 = vld [vmem:[%s21553_s18 + $0x2ec8] sm:$0xff] }
 0x1d9   : > { %v18759_v16 = vcombine.low %v1775_v4, %v1783_v6  ;;  %v1902_v3 = vld [vmem:[%s21553_s18 + $0x2f00] sm:$0xff] }
 0x1db   : > { %10184 = vmatpush1.bf16.msra.mxu0 %v18629_v11  ;;  %10555 = vmatpush1.bf16.msra.mxu1 %v18631_v12  ;;  %v18760_v11 = vcombine.high %v1775_v4, %v1783_v6  ;;  %v1798_v12 = vld [vmem:[%s21553_s18 + $0x2bc0] sm:$0xff]  ;;  %v1911_v6 = vld [vmem:[%s21553_s18 + $0x2f48] sm:$0xff] }
 0x1dc   : > { %10185 = vmatprep.subr.bf16.mxu0 %v18646_v13  ;;  %10556 = vmatprep.subr.bf16.mxu1 %v18648_v17  ;;  %v1791_v13 = vld [vmem:[%s21553_s18 + $0x2b88] sm:$0xff]  ;;  %v18774_v17 = vcombine.high %v1790_v10, %v1798_v12  ;;  %v18773_v23 = vcombine.low %v1790_v10, %v1798_v12  ;;  %v1910_v4 = vld [vmem:[%s21553_s18 + $0x2f40] sm:$0xff] }
 0x1dd   : > { %v18776_v18 = vcombine.high %v1791_v13, %v1799_v14  ;;  %v18775_v24 = vcombine.low %v1791_v13, %v1799_v14  ;;  %v1926_v12 = vld [vmem:[%s21553_s18 + $0x2fc0] sm:$0xff]  ;;  %v1919_v13 = vld [vmem:[%s21553_s18 + $0x2f88] sm:$0xff] }
 0x1de   : > { %v1927_v14 = vld [vmem:[%s21553_s18 + $0x2fc8] sm:$0xff] }
 0x1df   : > { %10186 = vmatpush1.bf16.msra.mxu0 %v18645_v19  ;;  %10557 = vmatpush1.bf16.msra.mxu1 %v18647_v20  ;;  %v1806_v19 = vld [vmem:[%s21553_s18 + $0x2c00] sm:$0xff] }
 0x1e0   : > { %10208 = vmatprep.subr.bf16.mxu0 %v18662_v21  ;;  %10579 = vmatprep.subr.bf16.mxu1 %v18664_v26  ;;  %v1814_v20 = vld [vmem:[%s21553_s18 + $0x2c40] sm:$0xff]  ;;  %v1807_v21 = vld [vmem:[%s21553_s18 + $0x2c08] sm:$0xff] }
 0x1e1   : > { %v18790_v25 = vcombine.high %v1806_v19, %v1814_v20 }
 0x1e2   : > { %10188 = vmatmul.mubr.bf16.vlgmr.msra.gmra.mrb[0].mxu0 %v20140_v22  ;;  %10559 = vmatmul.mubr.bf16.vlgmr.msra.gmra.mrb[0].mxu1 %v20140_v22  ;;  %v1815_v22 = vld [vmem:[%s21553_s18 + $0x2c48] sm:$0xff] }
 0x1e3   : > { %10209 = vmatpush1.bf16.msra.mxu0 %v18661_v28  ;;  %10580 = vmatpush1.bf16.msra.mxu1 %v18663_v30  ;;  %v18792_v26 = vcombine.high %v1807_v21, %v1815_v22  ;;  %v1830_v28 = vld [vmem:[%s21553_s18 + $0x2cc0] sm:$0xff]  ;;  %v1831_v30 = vld [vmem:[%s21553_s18 + $0x2cc8] sm:$0xff]  ;;  %v18791_v32 = vcombine.low %v1807_v21, %v1815_v22 }
 0x1e4   : > { %10210 = vmatprep.subr.bf16.mxu0 %v18678_v31  ;;  %10581 = vmatprep.subr.bf16.mxu1 %v18680_v35  ;;  %v18789_v31 = vcombine.low %v1806_v19, %v1814_v20  ;;  %v18806_v33 = vcombine.high %v1822_v27, %v1830_v28  ;;  %v18808_v34 = vcombine.high %v1823_v29, %v1831_v30  ;;  %v1838_v35 = vld [vmem:[%s21553_s18 + $0x2d00] sm:$0xff]  ;;  %v1935_v21 = vld [vmem:[%s21553_s18 + $0x3008] sm:$0xff] }
 0x1e5   : > { %10197 = vmatprep.mubr.bf16.mxu0 %v20141_v36  ;;  %10568 = vmatprep.mubr.bf16.mxu1 %v20141_v36  ;;  %v1846_v36 = vld [vmem:[%s21553_s18 + $0x2d40] sm:$0xff]  ;;  %v1943_v22 = vld [vmem:[%s21553_s18 + $0x3048] sm:$0xff] }
 0x1e6   : > { %v18822_v41 = vcombine.high %v1838_v35, %v1846_v36  ;;  %v18821_v47 = vcombine.low %v1838_v35, %v1846_v36  ;;  %v1934_v19 = vld [vmem:[%s21553_s18 + $0x3000] sm:$0xff]  ;;  %v400_v36 = vld [vmem:[%s21553_s18 + $0x10] sm:$0xff] }
 0x1e7   : > { %10211 = vmatpush1.bf16.msra.mxu0 %v18677_v37  ;;  %10582 = vmatpush1.bf16.msra.mxu1 %v18679_v39  ;;  %v1839_v37 = vld [vmem:[%s21553_s18 + $0x2d08] sm:$0xff]  ;;  %v18805_v39 = vcombine.low %v1822_v27, %v1830_v28  ;;  %v1942_v20 = vld [vmem:[%s21553_s18 + $0x3040] sm:$0xff] }
 0x1e8   : > { %10212 = vmatprep.subr.bf16.mxu0 %v18694_v40  ;;  %10583 = vmatprep.subr.bf16.mxu1 %v18696_v44  ;;  %v18807_v40 = vcombine.low %v1823_v29, %v1831_v30  ;;  %v18824_v42 = vcombine.high %v1839_v37, %v1847_v38  ;;  %v1862_v44 = vld [vmem:[%s21553_s18 + $0x2dc0] sm:$0xff]  ;;  %v20146_v27 = vld [vmem:[#allocation6 + $0x28] ss:$52 sps:$4 sm:$0xff]   ;;  %v18917_v30 = vcombine.low %v1934_v19, %v1942_v20 }
 0x1e9   : > { %v1950_v28 = vld [vmem:[%s21553_s18 + $0x3080] sm:$0xff] }
 0x1ea   : > { %10198 = vmatmul.mubr.bf16.gmra.mrb[4].mxu0 %v20143_v45  ;;  %10569 = vmatmul.mubr.bf16.gmra.mrb[4].mxu1 %v20143_v45  ;;  %v1855_v45 = vld [vmem:[%s21553_s18 + $0x2d88] sm:$0xff]  ;;  %v1958_v29 = vld [vmem:[%s21553_s18 + $0x30c0] sm:$0xff] }
 0x1eb   : > { %10213 = vmatpush1.bf16.msra.mxu0 %v18693_v46  ;;  %10584 = vmatpush1.bf16.msra.mxu1 %v18695_v48  ;;  %v1863_v46 = vld [vmem:[%s21553_s18 + $0x2dc8] sm:$0xff]  ;;  %v18823_v48 = vcombine.low %v1839_v37, %v1847_v38  ;;  %v18934_v35 = vcombine.high %v1950_v28, %v1958_v29  ;;  %v408_v37 = vld [vmem:[%s21553_s18 + $0x50] sm:$0xff] }
 0x1ec   : > { %10214 = vmatprep.subr.bf16.mxu0 %v18710_v49  ;;  %10585 = vmatprep.subr.bf16.mxu1 %v18712_v53  ;;  %v18838_v49 = vcombine.high %v1854_v43, %v1862_v44  ;;  %v18840_v50 = vcombine.high %v1855_v45, %v1863_v46  ;;  %v1871_v53 = vld [vmem:[%s21553_s18 + $0x2e08] sm:$0xff] }
 0x1ed   : > { %10240 = vmatprep.mubr.bf16.mxu0 %v20144_v54  ;;  %10611 = vmatprep.mubr.bf16.mxu1 %v20144_v54  ;;  %v1879_v54 = vld [vmem:[%s21553_s18 + $0x2e48] sm:$0xff] }
 0x1ee   : > { %v18856_v58 = vcombine.high %v1871_v53, %v1879_v54 }
 0x1ef   : > { %10215 = vmatpush1.bf16.msra.mxu0 %v18709_v55  ;;  %10586 = vmatpush1.bf16.msra.mxu1 %v18711_v56  ;;  %v18837_v55 = vcombine.low %v1854_v43, %v1862_v44  ;;  %v18839_v56 = vcombine.low %v1855_v45, %v1863_v46  ;;  %v17386_v43 = vcombine.high %v400_v36, %v408_v37  ;;  %v20149_v45 = vld [vmem:[#allocation6 + $0x90] ss:$52 sps:$4 sm:$0xff]   ;;  %v21291_v46 = vmov 0  }
 0x1f0   : > { %10216 = vmatprep.subr.bf16.mxu0 %v18726_v57  ;;  %10587 = vmatprep.subr.bf16.mxu1 %v18728_v61  ;;  %v18854_v57 = vcombine.high %v1870_v51, %v1878_v52  ;;  %v1887_v61 = vld [vmem:[%s21553_s18 + $0x2e88] sm:$0xff] }
 0x1f1   : > { %v18872_v2 = vcombine.high %v1887_v61, %v1895_v62 }
 0x1f3   : > { %10217 = vmatpush1.bf16.msra.mxu0 %v18725_v63  ;;  %10588 = vmatpush1.bf16.msra.mxu1 %v18727_v0  ;;  %v18853_v63 = vcombine.low %v1870_v51, %v1878_v52  ;;  %v18855_v0 = vcombine.low %v1871_v53, %v1879_v54  ;;  %v425_v51 = vld [vmem:[%s21553_s18 + $0xd8] sm:$0xff]  ;;  %v17385_v52 = vcombine.low %v400_v36, %v408_v37 }
 0x1f4   : > { %10218 = vmatprep.subr.bf16.mxu0 %v18742_v1  ;;  %10589 = vmatprep.subr.bf16.mxu1 %v18744_v5  ;;  %v18870_v1 = vcombine.high %v1886_v59, %v1894_v60  ;;  %v1903_v5 = vld [vmem:[%s21553_s18 + $0x2f08] sm:$0xff]  ;;  %v513_v36 = vld [vmem:[%s21553_s18 + $0x398] sm:$0xff] }
 0x1f5   : > { %v18888_v10 = vcombine.high %v1903_v5, %v1911_v6  ;;  %v521_v37 = vld [vmem:[%s21553_s18 + $0x3d8] sm:$0xff] }
 0x1f7   : > { %10219 = vmatpush1.bf16.msra.mxu0 %v18741_v7  ;;  %10590 = vmatpush1.bf16.msra.mxu1 %v18743_v8  ;;  %v18869_v7 = vcombine.low %v1886_v59, %v1894_v60  ;;  %v18871_v8 = vcombine.low %v1887_v61, %v1895_v62  ;;  %v441_v59 = vld [vmem:[%s21553_s18 + $0x158] sm:$0xff] }
 0x1f8   : > { %10220 = vmatprep.subr.bf16.mxu0 %v18758_v9  ;;  %10591 = vmatprep.subr.bf16.mxu1 %v18760_v11  ;;  %v18886_v9 = vcombine.high %v1902_v3, %v1910_v4  ;;  %v1918_v11 = vld [vmem:[%s21553_s18 + $0x2f80] sm:$0xff] }
 0x1fb   : > { %10221 = vmatpush1.bf16.msra.mxu0 %v18757_v15  ;;  %10592 = vmatpush1.bf16.msra.mxu1 %v18759_v16  ;;  %v18885_v15 = vcombine.low %v1902_v3, %v1910_v4  ;;  %v18887_v16 = vcombine.low %v1903_v5, %v1911_v6  ;;  %v449_v3 = vld [vmem:[%s21553_s18 + $0x198] sm:$0xff] }
 0x1fc   : > { %10222 = vmatprep.subr.bf16.mxu0 %v18774_v17  ;;  %10593 = vmatprep.subr.bf16.mxu1 %v18776_v18  ;;  %v18902_v17 = vcombine.high %v1918_v11, %v1926_v12  ;;  %v18904_v18 = vcombine.high %v1919_v13, %v1927_v14  ;;  %v457_v4 = vld [vmem:[%s21553_s18 + $0x1d8] sm:$0xff] }
 0x1ff   : > { %10223 = vmatpush1.bf16.msra.mxu0 %v18773_v23  ;;  %10594 = vmatpush1.bf16.msra.mxu1 %v18775_v24  ;;  %v18901_v23 = vcombine.low %v1918_v11, %v1926_v12  ;;  %v18903_v24 = vcombine.low %v1919_v13, %v1927_v14  ;;  %v465_v11 = vld [vmem:[%s21553_s18 + $0x218] sm:$0xff]  ;;  %v17435_v14 = vcombine.low %v449_v3, %v457_v4 }
 0x200   : > { %10224 = vmatprep.subr.bf16.mxu0 %v18790_v25  ;;  %10595 = vmatprep.subr.bf16.mxu1 %v18792_v26  ;;  %v18918_v25 = vcombine.high %v1934_v19, %v1942_v20  ;;  %v18920_v26 = vcombine.high %v1935_v21, %v1943_v22  ;;  %v473_v12 = vld [vmem:[%s21553_s18 + $0x258] sm:$0xff] }
 0x201   : > { %v20984_v19 = vld [vmem:[#allocation6 + $0x4] ss:$52 sps:$4 sm:$0xff]  }
 0x202   : > { %v481_v20 = vld [vmem:[%s21553_s18 + $0x298] sm:$0xff] }
 0x203   : > { %10225 = vmatpush1.bf16.msra.mxu0 %v18789_v31  ;;  %10596 = vmatpush1.bf16.msra.mxu1 %v18791_v32  ;;  %v1951_v31 = vld [vmem:[%s21553_s18 + $0x3088] sm:$0xff] }
 0x204   : > { %10226 = vmatprep.subr.bf16.mxu0 %v18806_v33  ;;  %10597 = vmatprep.subr.bf16.mxu1 %v18808_v34  ;;  %v1959_v32 = vld [vmem:[%s21553_s18 + $0x30c8] sm:$0xff]  ;;  %v18919_v33 = vcombine.low %v1935_v21, %v1943_v22  ;;  %v489_v21 = vld [vmem:[%s21553_s18 + $0x2d8] sm:$0xff] }
 0x205   : > { %v20147_v34 = vld [vmem:[#allocation6 + $0x94] ss:$52 sps:$4 sm:$0xff]   ;;  %v18936_v38 = vcombine.high %v1951_v31, %v1959_v32 }
 0x207   : > { %10227 = vmatpush1.bf16.msra.mxu0 %v18805_v39  ;;  %10598 = vmatpush1.bf16.msra.mxu1 %v18807_v40  ;;  %v401_v39 = vld [vmem:[%s21553_s18 + $0x18] sm:$0xff] }
 0x208   : > { %10228 = vmatprep.subr.bf16.mxu0 %v18822_v41  ;;  %10599 = vmatprep.subr.bf16.mxu1 %v18824_v42  ;;  %v409_v40 = vld [vmem:[%s21553_s18 + $0x58] sm:$0xff]  ;;  %v18933_v41 = vcombine.low %v1950_v28, %v1958_v29  ;;  %v18935_v42 = vcombine.low %v1951_v31, %v1959_v32  ;;  %v17467_v31 = vcombine.low %v481_v20, %v489_v21 }
 0x209   : > { %v17388_v44 = vcombine.high %v401_v39, %v409_v40  ;;  %v17387_v53 = vcombine.low %v401_v39, %v409_v40  ;;  %v497_v28 = vld [vmem:[%s21553_s18 + $0x318] sm:$0xff] }
 0x20a   : > { %v505_v29 = vld [vmem:[%s21553_s18 + $0x358] sm:$0xff] }
 0x20b   : > { %10229 = vmatpush1.bf16.msra.mxu0 %v18821_v47  ;;  %10600 = vmatpush1.bf16.msra.mxu1 %v18823_v48  ;;  %v416_v47 = vld [vmem:[%s21553_s18 + $0x90] sm:$0xff]  ;;  %v17483_v39 = vcombine.low %v497_v28, %v505_v29 }
 0x20c   : > { %10230 = vmatprep.subr.bf16.mxu0 %v18838_v49  ;;  %10601 = vmatprep.subr.bf16.mxu1 %v18840_v50  ;;  %v424_v48 = vld [vmem:[%s21553_s18 + $0xd0] sm:$0xff]  ;;  %v417_v50 = vld [vmem:[%s21553_s18 + $0x98] sm:$0xff] }
 0x20d   : > { %v20150_v49 = vld [vmem:[#allocation6 + $0x30] ss:$52 sps:$4 sm:$0xff]   ;;  %v17402_v54 = vcombine.high %v416_v47, %v424_v48  ;;  %v17401_v60 = vcombine.low %v416_v47, %v424_v48  ;;  %v17403_v61 = vcombine.low %v417_v50, %v425_v51  ;;  %v17499_v48 = vcombine.low %v513_v36, %v521_v37 }
 0x20f   : > { %10231 = vmatpush1.bf16.msra.mxu0 %v18837_v55  ;;  %10602 = vmatpush1.bf16.msra.mxu1 %v18839_v56  ;;  %v17404_v55 = vcombine.high %v417_v50, %v425_v51  ;;  %v432_v56 = vld [vmem:[%s21553_s18 + $0x110] sm:$0xff] }
 0x210   : > { %10232 = vmatprep.subr.bf16.mxu0 %v18854_v57  ;;  %10603 = vmatprep.subr.bf16.mxu1 %v18856_v58  ;;  %v440_v57 = vld [vmem:[%s21553_s18 + $0x150] sm:$0xff]  ;;  %v433_v58 = vld [vmem:[%s21553_s18 + $0x118] sm:$0xff] }
 0x211   : > { %v17418_v62 = vcombine.high %v432_v56, %v440_v57  ;;  %v17417_v5 = vcombine.low %v432_v56, %v440_v57  ;;  %v17419_v6 = vcombine.low %v433_v58, %v441_v59  ;;  %v544_v51 = vld [vmem:[%s21553_s18 + $0x490] sm:$0xff] }
 0x213   : > { %10233 = vmatpush1.bf16.msra.mxu0 %v18853_v63  ;;  %10604 = vmatpush1.bf16.msra.mxu1 %v18855_v0  ;;  %v17420_v63 = vcombine.high %v433_v58, %v441_v59  ;;  %v448_v0 = vld [vmem:[%s21553_s18 + $0x190] sm:$0xff] }
 0x214   : > { %10234 = vmatprep.subr.bf16.mxu0 %v18870_v1  ;;  %10605 = vmatprep.subr.bf16.mxu1 %v18872_v2  ;;  %v456_v1 = vld [vmem:[%s21553_s18 + $0x1d0] sm:$0xff]  ;;  %v20151_v2 = vld [vmem:[#allocation6 + $0x98] ss:$52 sps:$4 sm:$0xff]  }
 0x215   : > { %v17433_v13 = vcombine.low %v448_v0, %v456_v1  ;;  %v560_v59 = vld [vmem:[%s21553_s18 + $0x510] sm:$0xff] }
 0x217   : > { %10235 = vmatpush1.bf16.msra.mxu0 %v18869_v7  ;;  %10606 = vmatpush1.bf16.msra.mxu1 %v18871_v8  ;;  %v17434_v7 = vcombine.high %v448_v0, %v456_v1  ;;  %v17436_v8 = vcombine.high %v449_v3, %v457_v4  ;;  %v576_v3 = vld [vmem:[%s21553_s18 + $0x590] sm:$0xff] }
 0x218   : > { %10236 = vmatprep.subr.bf16.mxu0 %v18886_v9  ;;  %10607 = vmatprep.subr.bf16.mxu1 %v18888_v10  ;;  %v464_v9 = vld [vmem:[%s21553_s18 + $0x210] sm:$0xff] }
 0x219   : > { %v472_v10 = vld [vmem:[%s21553_s18 + $0x250] sm:$0xff] }
 0x21a   : > { %v17449_v22 = vcombine.low %v464_v9, %v472_v10  ;;  %v584_v4 = vld [vmem:[%s21553_s18 + $0x5d0] sm:$0xff] }
 0x21b   : > { %10237 = vmatpush1.bf16.msra.mxu0 %v18885_v15  ;;  %10608 = vmatpush1.bf16.msra.mxu1 %v18887_v16  ;;  %v17450_v15 = vcombine.high %v464_v9, %v472_v10  ;;  %v17452_v16 = vcombine.high %v465_v11, %v473_v12  ;;  %v17562_v9 = vcombine.high %v576_v3, %v584_v4 }
 0x21c   : > { %10238 = vmatprep.subr.bf16.mxu0 %v18902_v17  ;;  %10609 = vmatprep.subr.bf16.mxu1 %v18904_v18  ;;  %v480_v17 = vld [vmem:[%s21553_s18 + $0x290] sm:$0xff] }
 0x21d   : > { %v488_v18 = vld [vmem:[%s21553_s18 + $0x2d0] sm:$0xff] }
 0x21f   : > { %10239 = vmatpush1.bf16.msra.mxu0 %v18901_v23  ;;  %10610 = vmatpush1.bf16.msra.mxu1 %v18903_v24  ;;  %v17451_v23 = vcombine.low %v465_v11, %v473_v12  ;;  %v17466_v24 = vcombine.high %v480_v17, %v488_v18  ;;  %v592_v11 = vld [vmem:[%s21553_s18 + $0x610] sm:$0xff] }
 0x220   : > { %10261 = vmatprep.subr.bf16.mxu0 %v18918_v25  ;;  %10632 = vmatprep.subr.bf16.mxu1 %v18920_v26  ;;  %v17468_v25 = vcombine.high %v481_v20, %v489_v21  ;;  %v496_v26 = vld [vmem:[%s21553_s18 + $0x310] sm:$0xff]  ;;  %v609_v21 = vld [vmem:[%s21553_s18 + $0x698] sm:$0xff] }
 0x221   : > { %v600_v12 = vld [vmem:[%s21553_s18 + $0x650] sm:$0xff] }
 0x222   : > { %10241 = vmatmul.mubr.bf16.vlgmr.msra.gmra.mrb[0].mxu0 %v20146_v27  ;;  %10612 = vmatmul.mubr.bf16.vlgmr.msra.gmra.mrb[0].mxu1 %v20146_v27  ;;  %v504_v27 = vld [vmem:[%s21553_s18 + $0x350] sm:$0xff] }
 0x223   : > { %10262 = vmatpush1.bf16.msra.mxu0 %v18917_v30  ;;  %10633 = vmatpush1.bf16.msra.mxu1 %v18919_v33  ;;  %v17465_v30 = vcombine.low %v480_v17, %v488_v18  ;;  %v17482_v32 = vcombine.high %v496_v26, %v504_v27  ;;  %v17484_v33 = vcombine.high %v497_v28, %v505_v29  ;;  %v616_v20 = vld [vmem:[%s21553_s18 + $0x6d0] sm:$0xff]  ;;  %v625_v29 = vld [vmem:[%s21553_s18 + $0x718] sm:$0xff] }
 0x224   : > { %10250 = vmatprep.mubr.bf16.mxu0 %v20147_v34  ;;  %10621 = vmatprep.mubr.bf16.mxu1 %v20147_v34  ;;  %v512_v34 = vld [vmem:[%s21553_s18 + $0x390] sm:$0xff]  ;;  %v17578_v17 = vcombine.high %v592_v11, %v600_v12 }
 0x225   : > { %10263 = vmatprep.subr.bf16.mxu0 %v18934_v35  ;;  %10634 = vmatprep.subr.bf16.mxu1 %v18936_v38  ;;  %v520_v35 = vld [vmem:[%s21553_s18 + $0x3d0] sm:$0xff]  ;;  %v17481_v38 = vcombine.low %v496_v26, %v504_v27 }
 0x226   : > { %v17498_v40 = vcombine.high %v512_v34, %v520_v35  ;;  %v17497_v47 = vcombine.low %v512_v34, %v520_v35  ;;  %v624_v27 = vld [vmem:[%s21553_s18 + $0x710] sm:$0xff] }
 0x227   : > { %10264 = vmatpush1.bf16.msra.mxu0 %v18933_v41  ;;  %10635 = vmatpush1.bf16.msra.mxu1 %v18935_v42  ;;  %v17500_v41 = vcombine.high %v513_v36, %v521_v37  ;;  %v528_v42 = vld [vmem:[%s21553_s18 + $0x410] sm:$0xff]  ;;  %v641_v37 = vld [vmem:[%s21553_s18 + $0x798] sm:$0xff] }
 0x228   : > { %10685 = vmatprep.subr.bf16.mxu0 %v17386_v43  ;;  %11056 = vmatprep.subr.bf16.mxu1 %v17388_v44  ;;  %v536_v43 = vld [vmem:[%s21553_s18 + $0x450] sm:$0xff]  ;;  %v529_v44 = vld [vmem:[%s21553_s18 + $0x418] sm:$0xff] }
 0x229   : > { %v632_v28 = vld [vmem:[%s21553_s18 + $0x750] sm:$0xff] }
 0x22a   : > { %10251 = vmatmul.mubr.bf16.gmra.mrb[4].mxu0 %v20149_v45  ;;  %10622 = vmatmul.mubr.bf16.gmra.mrb[4].mxu1 %v20149_v45  ;;  %v537_v45 = vld [vmem:[%s21553_s18 + $0x458] sm:$0xff]  ;;  %v640_v35 = vld [vmem:[%s21553_s18 + $0x790] sm:$0xff] }
 0x22b   : > { %10293 = vmatprep.mubr.bf16.mxu0 %v21291_v46  ;;  %10664 = vmatprep.mubr.bf16.mxu1 %v21291_v46  ;;  %v17516_v50 = vcombine.high %v529_v44, %v537_v45  ;;  %v17515_v56 = vcombine.low %v529_v44, %v537_v45  ;;  %v648_v36 = vld [vmem:[%s21553_s18 + $0x7d0] sm:$0xff]  ;;  %v657_v45 = vld [vmem:[%s21553_s18 + $0x818] sm:$0xff] }
 0x22c   : > { %v664_v44 = vld [vmem:[%s21553_s18 + $0x850] sm:$0xff] }
 0x232   : > { %18949 = vmatmul.mubr.msk.bf16.vlgmr.msra.gmra.mrb[0].mxu0 %vm9936_vm0, %v20150_v49  ;;  %18951 = vmatmul.mubr.msk.bf16.vlgmr.msra.gmra.mrb[0].mxu1 %vm9936_vm0, %v20150_v49  ;;  %v17514_v49 = vcombine.high %v528_v42, %v536_v43 }
 0x233   : > { %10686 = vmatpush1.bf16.msra.mxu0 %v17385_v52  ;;  %11057 = vmatpush1.bf16.msra.mxu1 %v17387_v53  ;;  %v552_v52 = vld [vmem:[%s21553_s18 + $0x4d0] sm:$0xff]  ;;  %v545_v53 = vld [vmem:[%s21553_s18 + $0x498] sm:$0xff] }
 0x234   : > { %10687 = vmatprep.subr.bf16.mxu0 %v17402_v54  ;;  %11058 = vmatprep.subr.bf16.mxu1 %v17404_v55  ;;  %v553_v54 = vld [vmem:[%s21553_s18 + $0x4d8] sm:$0xff]  ;;  %v17513_v55 = vcombine.low %v528_v42, %v536_v43  ;;  %v17530_v57 = vcombine.high %v544_v51, %v552_v52  ;;  %v656_v43 = vld [vmem:[%s21553_s18 + $0x810] sm:$0xff] }
 0x235   : > { %10303 = vmatprep.mubr.bf16.mxu0 %v21291_v46  ;;  %10674 = vmatprep.mubr.bf16.mxu1 %v21291_v46  ;;  %v17532_v58 = vcombine.high %v545_v53, %v553_v54  ;;  %v17531_v0 = vcombine.low %v545_v53, %v553_v54  ;;  %v680_v53 = vld [vmem:[%s21553_s18 + $0x8d0] sm:$0xff]  ;;  %v673_v54 = vld [vmem:[%s21553_s18 + $0x898] sm:$0xff] }
 0x237   : > { %10688 = vmatpush1.bf16.msra.mxu0 %v17401_v60  ;;  %11059 = vmatpush1.bf16.msra.mxu1 %v17403_v61  ;;  %v568_v60 = vld [vmem:[%s21553_s18 + $0x550] sm:$0xff]  ;;  %v561_v61 = vld [vmem:[%s21553_s18 + $0x518] sm:$0xff] }
 0x238   : > { %10689 = vmatprep.subr.bf16.mxu0 %v17418_v62  ;;  %11060 = vmatprep.subr.bf16.mxu1 %v17420_v63  ;;  %v569_v62 = vld [vmem:[%s21553_s18 + $0x558] sm:$0xff]  ;;  %v17529_v63 = vcombine.low %v544_v51, %v552_v52  ;;  %v17546_v1 = vcombine.high %v560_v59, %v568_v60  ;;  %v672_v52 = vld [vmem:[%s21553_s18 + $0x890] sm:$0xff] }
 0x23a   : > { %18950 = vmatmul.mubr.msk.bf16.gmra.mrb[4].mxu0 %vm9936_vm0, %v20151_v2  ;;  %18952 = vmatmul.mubr.msk.bf16.gmra.mrb[4].mxu1 %vm9936_vm0, %v20151_v2  ;;  %v17548_v2 = vcombine.high %v561_v61, %v569_v62 }
 0x23b   : > { %10690 = vmatpush1.bf16.msra.mxu0 %v17417_v5  ;;  %11061 = vmatpush1.bf16.msra.mxu1 %v17419_v6  ;;  %v577_v5 = vld [vmem:[%s21553_s18 + $0x598] sm:$0xff] }
 0x23c   : > { %10691 = vmatprep.subr.bf16.mxu0 %v17434_v7  ;;  %11062 = vmatprep.subr.bf16.mxu1 %v17436_v8  ;;  %v585_v6 = vld [vmem:[%s21553_s18 + $0x5d8] sm:$0xff]  ;;  %v17545_v7 = vcombine.low %v560_v59, %v568_v60  ;;  %v17547_v8 = vcombine.low %v561_v61, %v569_v62  ;;  %v688_v60 = vld [vmem:[%s21553_s18 + $0x910] sm:$0xff] }
 0x23d   : > { %10717 = vmatprep.mubr.bf16.mxu0 %v20984_v19  ;;  %11088 = vmatprep.mubr.bf16.mxu1 %v20984_v19  ;;  %v17564_v10 = vcombine.high %v577_v5, %v585_v6  ;;  %v608_v19 = vld [vmem:[%s21553_s18 + $0x690] sm:$0xff] }
 0x23e   : > { %v696_v61 = vld [vmem:[%s21553_s18 + $0x950] sm:$0xff] }
 0x23f   : > { %10692 = vmatpush1.bf16.msra.mxu0 %v17433_v13  ;;  %11063 = vmatpush1.bf16.msra.mxu1 %v17435_v14  ;;  %v593_v13 = vld [vmem:[%s21553_s18 + $0x618] sm:$0xff]  ;;  %v20985_v62 = vld [vmem:[#allocation6] ss:$52 sps:$4 sm:$0xff]  }
 0x240   : > { %10693 = vmatprep.subr.bf16.mxu0 %v17450_v15  ;;  %11064 = vmatprep.subr.bf16.mxu1 %v17452_v16  ;;  %v601_v14 = vld [vmem:[%s21553_s18 + $0x658] sm:$0xff]  ;;  %v17561_v15 = vcombine.low %v576_v3, %v584_v4  ;;  %v17563_v16 = vcombine.low %v577_v5, %v585_v6  ;;  %v17674_v3 = vcombine.high %v688_v60, %v696_v61  ;;  %v704_v5 = vld [vmem:[%s21553_s18 + $0x990] sm:$0xff] }
 0x241   : > { %v17580_v18 = vcombine.high %v593_v13, %v601_v14  ;;  %v712_v6 = vld [vmem:[%s21553_s18 + $0x9d0] sm:$0xff] }
 0x243   : > { %10694 = vmatpush1.bf16.msra.mxu0 %v17449_v22  ;;  %11065 = vmatpush1.bf16.msra.mxu1 %v17451_v23  ;;  %v617_v22 = vld [vmem:[%s21553_s18 + $0x6d8] sm:$0xff]  ;;  %v17577_v23 = vcombine.low %v592_v11, %v600_v12  ;;  %v17690_v12 = vcombine.high %v704_v5, %v712_v6 }
 0x244   : > { %10695 = vmatprep.subr.bf16.mxu0 %v17466_v24  ;;  %11066 = vmatprep.subr.bf16.mxu1 %v17468_v25  ;;  %v17579_v24 = vcombine.low %v593_v13, %v601_v14  ;;  %v17594_v25 = vcombine.high %v608_v19, %v616_v20  ;;  %v17596_v26 = vcombine.high %v609_v21, %v617_v22  ;;  %v720_v14 = vld [vmem:[%s21553_s18 + $0xa10] sm:$0xff] }
 0x247   : > { %10696 = vmatpush1.bf16.msra.mxu0 %v17465_v30  ;;  %11067 = vmatpush1.bf16.msra.mxu1 %v17467_v31  ;;  %v633_v30 = vld [vmem:[%s21553_s18 + $0x758] sm:$0xff]  ;;  %v17593_v31 = vcombine.low %v608_v19, %v616_v20  ;;  %v17689_v19 = vcombine.low %v704_v5, %v712_v6 }
 0x248   : > { %10697 = vmatprep.subr.bf16.mxu0 %v17482_v32  ;;  %11068 = vmatprep.subr.bf16.mxu1 %v17484_v33  ;;  %v17595_v32 = vcombine.low %v609_v21, %v617_v22  ;;  %v17610_v33 = vcombine.high %v624_v27, %v632_v28  ;;  %v17612_v34 = vcombine.high %v625_v29, %v633_v30 }
 0x24b   : > { %10698 = vmatpush1.bf16.msra.mxu0 %v17481_v38  ;;  %11069 = vmatpush1.bf16.msra.mxu1 %v17483_v39  ;;  %v649_v38 = vld [vmem:[%s21553_s18 + $0x7d8] sm:$0xff]  ;;  %v17609_v39 = vcombine.low %v624_v27, %v632_v28 }
 0x24c   : > { %10699 = vmatprep.subr.bf16.mxu0 %v17498_v40  ;;  %11070 = vmatprep.subr.bf16.mxu1 %v17500_v41  ;;  %v17611_v40 = vcombine.low %v625_v29, %v633_v30  ;;  %v17626_v41 = vcombine.high %v640_v35, %v648_v36  ;;  %v17628_v42 = vcombine.high %v641_v37, %v649_v38  ;;  %v745_v27 = vld [vmem:[%s21553_s18 + $0xad8] sm:$0xff] }
 0x24f   : > { %10700 = vmatpush1.bf16.msra.mxu0 %v17497_v47  ;;  %11071 = vmatpush1.bf16.msra.mxu1 %v17499_v48  ;;  %v665_v47 = vld [vmem:[%s21553_s18 + $0x858] sm:$0xff]  ;;  %v17625_v48 = vcombine.low %v640_v35, %v648_v36 }
 0x250   : > { %10701 = vmatprep.subr.bf16.mxu0 %v17514_v49  ;;  %11072 = vmatprep.subr.bf16.mxu1 %v17516_v50  ;;  %v17627_v49 = vcombine.low %v641_v37, %v649_v38  ;;  %v17642_v50 = vcombine.high %v656_v43, %v664_v44  ;;  %v17644_v51 = vcombine.high %v657_v45, %v665_v47  ;;  %v761_v35 = vld [vmem:[%s21553_s18 + $0xb58] sm:$0xff] }
 0x253   : > { %10702 = vmatpush1.bf16.msra.mxu0 %v17513_v55  ;;  %11073 = vmatpush1.bf16.msra.mxu1 %v17515_v56  ;;  %v681_v55 = vld [vmem:[%s21553_s18 + $0x8d8] sm:$0xff]  ;;  %v17641_v56 = vcombine.low %v656_v43, %v664_v44 }
 0x254   : > { %10703 = vmatprep.subr.bf16.mxu0 %v17530_v57  ;;  %11074 = vmatprep.subr.bf16.mxu1 %v17532_v58  ;;  %v17643_v57 = vcombine.low %v657_v45, %v665_v47  ;;  %v17658_v58 = vcombine.high %v672_v52, %v680_v53  ;;  %v17660_v59 = vcombine.high %v673_v54, %v681_v55  ;;  %v777_v43 = vld [vmem:[%s21553_s18 + $0xbd8] sm:$0xff] }
 0x257   : > { %10704 = vmatpush1.bf16.msra.mxu0 %v17529_v63  ;;  %11075 = vmatpush1.bf16.msra.mxu1 %v17531_v0  ;;  %v689_v63 = vld [vmem:[%s21553_s18 + $0x918] sm:$0xff] }
 0x258   : > { %10705 = vmatprep.subr.bf16.mxu0 %v17546_v1  ;;  %11076 = vmatprep.subr.bf16.mxu1 %v17548_v2  ;;  %v697_v0 = vld [vmem:[%s21553_s18 + $0x958] sm:$0xff]  ;;  %v17657_v1 = vcombine.low %v672_v52, %v680_v53  ;;  %v17659_v2 = vcombine.low %v673_v54, %v681_v55 }
 0x259   : > { %v17676_v4 = vcombine.high %v689_v63, %v697_v0  ;;  %v17675_v11 = vcombine.low %v689_v63, %v697_v0  ;;  %v793_v52 = vld [vmem:[%s21553_s18 + $0xc58] sm:$0xff] }
 0x25b   : > { %10706 = vmatpush1.bf16.msra.mxu0 %v17545_v7  ;;  %11077 = vmatpush1.bf16.msra.mxu1 %v17547_v8  ;;  %v20986_v7 = vld [vmem:[#allocation6 + $0x6c] ss:$52 sps:$4 sm:$0xff]   ;;  %v705_v8 = vld [vmem:[%s21553_s18 + $0x998] sm:$0xff] }
 0x25c   : > { %10707 = vmatprep.subr.bf16.mxu0 %v17562_v9  ;;  %11078 = vmatprep.subr.bf16.mxu1 %v17564_v10  ;;  %v713_v9 = vld [vmem:[%s21553_s18 + $0x9d8] sm:$0xff]  ;;  %v17673_v10 = vcombine.low %v688_v60, %v696_v61 }
 0x25d   : > { %v17692_v13 = vcombine.high %v705_v8, %v713_v9  ;;  %v17691_v20 = vcombine.low %v705_v8, %v713_v9  ;;  %v809_v60 = vld [vmem:[%s21553_s18 + $0xcd8] sm:$0xff]  ;;  %v832_v9 = vld [vmem:[%s21553_s18 + $0xd90] sm:$0xff] }
 0x25f   : > { %10708 = vmatpush1.bf16.msra.mxu0 %v17561_v15  ;;  %11079 = vmatpush1.bf16.msra.mxu1 %v17563_v16  ;;  %v728_v15 = vld [vmem:[%s21553_s18 + $0xa50] sm:$0xff]  ;;  %v721_v16 = vld [vmem:[%s21553_s18 + $0xa18] sm:$0xff] }
 0x260   : > { %10709 = vmatprep.subr.bf16.mxu0 %v17578_v17  ;;  %11080 = vmatprep.subr.bf16.mxu1 %v17580_v18  ;;  %v729_v17 = vld [vmem:[%s21553_s18 + $0xa58] sm:$0xff]  ;;  %v17706_v21 = vcombine.high %v720_v14, %v728_v15  ;;  %v17705_v28 = vcombine.low %v720_v14, %v728_v15 }
 0x261   : > { %v20987_v18 = vld [vmem:[#allocation6 + $0x68] ss:$52 sps:$4 sm:$0xff]   ;;  %v17708_v22 = vcombine.high %v721_v16, %v729_v17  ;;  %v17707_v29 = vcombine.low %v721_v16, %v729_v17  ;;  %v848_v17 = vld [vmem:[%s21553_s18 + $0xe10] sm:$0xff] }
 0x263   : > { %10710 = vmatpush1.bf16.msra.mxu0 %v17577_v23  ;;  %11081 = vmatpush1.bf16.msra.mxu1 %v17579_v24  ;;  %v736_v23 = vld [vmem:[%s21553_s18 + $0xa90] sm:$0xff] }
 0x264   : > { %10711 = vmatprep.subr.bf16.mxu0 %v17594_v25  ;;  %11082 = vmatprep.subr.bf16.mxu1 %v17596_v26  ;;  %v744_v24 = vld [vmem:[%s21553_s18 + $0xad0] sm:$0xff]  ;;  %v20988_v25 = vld [vmem:[#allocation6 + $0xc] ss:$52 sps:$4 sm:$0xff]   ;;  %v737_v26 = vld [vmem:[%s21553_s18 + $0xa98] sm:$0xff] }
 0x265   : > { %v17722_v30 = vcombine.high %v736_v23, %v744_v24  ;;  %v17721_v36 = vcombine.low %v736_v23, %v744_v24  ;;  %v17723_v37 = vcombine.low %v737_v26, %v745_v27 }
 0x267   : > { %10712 = vmatpush1.bf16.msra.mxu0 %v17593_v31  ;;  %11083 = vmatpush1.bf16.msra.mxu1 %v17595_v32  ;;  %v17724_v31 = vcombine.high %v737_v26, %v745_v27  ;;  %v752_v32 = vld [vmem:[%s21553_s18 + $0xb10] sm:$0xff]  ;;  %v865_v27 = vld [vmem:[%s21553_s18 + $0xe98] sm:$0xff] }
 0x268   : > { %10713 = vmatprep.subr.bf16.mxu0 %v17610_v33  ;;  %11084 = vmatprep.subr.bf16.mxu1 %v17612_v34  ;;  %v760_v33 = vld [vmem:[%s21553_s18 + $0xb50] sm:$0xff]  ;;  %v753_v34 = vld [vmem:[%s21553_s18 + $0xb18] sm:$0xff] }
 0x269   : > { %v17738_v38 = vcombine.high %v752_v32, %v760_v33  ;;  %v17737_v44 = vcombine.low %v752_v32, %v760_v33  ;;  %v17739_v45 = vcombine.low %v753_v34, %v761_v35  ;;  %v872_v26 = vld [vmem:[%s21553_s18 + $0xed0] sm:$0xff] }
 0x26a   : > { %v880_v33 = vld [vmem:[%s21553_s18 + $0xf10] sm:$0xff] }
 0x26b   : > { %10714 = vmatpush1.bf16.msra.mxu0 %v17609_v39  ;;  %11085 = vmatpush1.bf16.msra.mxu1 %v17611_v40  ;;  %v17740_v39 = vcombine.high %v753_v34, %v761_v35  ;;  %v768_v40 = vld [vmem:[%s21553_s18 + $0xb90] sm:$0xff]  ;;  %v881_v35 = vld [vmem:[%s21553_s18 + $0xf18] sm:$0xff] }
 0x26c   : > { %10715 = vmatprep.subr.bf16.mxu0 %v17626_v41  ;;  %11086 = vmatprep.subr.bf16.mxu1 %v17628_v42  ;;  %v776_v41 = vld [vmem:[%s21553_s18 + $0xbd0] sm:$0xff]  ;;  %v769_v42 = vld [vmem:[%s21553_s18 + $0xb98] sm:$0xff] }
 0x26d   : > { %v17754_v47 = vcombine.high %v768_v40, %v776_v41  ;;  %v17753_v53 = vcombine.low %v768_v40, %v776_v41  ;;  %v17755_v54 = vcombine.low %v769_v42, %v777_v43  ;;  %v888_v34 = vld [vmem:[%s21553_s18 + $0xf50] sm:$0xff] }
 0x26e   : > { %v896_v41 = vld [vmem:[%s21553_s18 + $0xf90] sm:$0xff] }
 0x26f   : > { %10716 = vmatpush1.bf16.msra.mxu0 %v17625_v48  ;;  %11087 = vmatpush1.bf16.msra.mxu1 %v17627_v49  ;;  %v17756_v48 = vcombine.high %v769_v42, %v777_v43  ;;  %v784_v49 = vld [vmem:[%s21553_s18 + $0xc10] sm:$0xff]  ;;  %v897_v43 = vld [vmem:[%s21553_s18 + $0xf98] sm:$0xff] }
 0x270   : > { %10738 = vmatprep.subr.bf16.mxu0 %v17642_v50  ;;  %11109 = vmatprep.subr.bf16.mxu1 %v17644_v51  ;;  %v792_v50 = vld [vmem:[%s21553_s18 + $0xc50] sm:$0xff]  ;;  %v785_v51 = vld [vmem:[%s21553_s18 + $0xc18] sm:$0xff] }
 0x271   : > { %v17770_v55 = vcombine.high %v784_v49, %v792_v50  ;;  %v17769_v61 = vcombine.low %v784_v49, %v792_v50  ;;  %v904_v42 = vld [vmem:[%s21553_s18 + $0xfd0] sm:$0xff] }
 0x272   : > { %10718 = vmatmul.mubr.bf16.vlgmr.msra.gmra.mrb[8].mxu0 %v20985_v62  ;;  %11089 = vmatmul.mubr.bf16.vlgmr.msra.gmra.mrb[8].mxu1 %v20985_v62  ;;  %v17771_v62 = vcombine.low %v785_v51, %v793_v52  ;;  %v912_v50 = vld [vmem:[%s21553_s18 + $0x1010] sm:$0xff] }
 0x273   : > { %10739 = vmatpush1.bf16.msra.mxu0 %v17641_v56  ;;  %11110 = vmatpush1.bf16.msra.mxu1 %v17643_v57  ;;  %v17772_v56 = vcombine.high %v785_v51, %v793_v52  ;;  %v800_v57 = vld [vmem:[%s21553_s18 + $0xc90] sm:$0xff]  ;;  %v913_v52 = vld [vmem:[%s21553_s18 + $0x1018] sm:$0xff] }
 0x274   : > { %10740 = vmatprep.subr.bf16.mxu0 %v17658_v58  ;;  %11111 = vmatprep.subr.bf16.mxu1 %v17660_v59  ;;  %v808_v58 = vld [vmem:[%s21553_s18 + $0xcd0] sm:$0xff]  ;;  %v801_v59 = vld [vmem:[%s21553_s18 + $0xc98] sm:$0xff] }
 0x275   : > { %10727 = vmatprep.mubr.bf16.mxu0 %v20986_v7  ;;  %11098 = vmatprep.mubr.bf16.mxu1 %v20986_v7  ;;  %v17786_v63 = vcombine.high %v800_v57, %v808_v58  ;;  %v17788_v0 = vcombine.high %v801_v59, %v809_v60  ;;  %v17785_v5 = vcombine.low %v800_v57, %v808_v58  ;;  %v920_v51 = vld [vmem:[%s21553_s18 + $0x1050] sm:$0xff] }
 0x276   : > { %v17787_v6 = vcombine.low %v801_v59, %v809_v60  ;;  %v928_v58 = vld [vmem:[%s21553_s18 + $0x1090] sm:$0xff]  ;;  %v929_v60 = vld [vmem:[%s21553_s18 + $0x1098] sm:$0xff] }
 0x277   : > { %10741 = vmatpush1.bf16.msra.mxu0 %v17657_v1  ;;  %11112 = vmatpush1.bf16.msra.mxu1 %v17659_v2  ;;  %v816_v1 = vld [vmem:[%s21553_s18 + $0xd10] sm:$0xff] }
 0x278   : > { %10742 = vmatprep.subr.bf16.mxu0 %v17674_v3  ;;  %11113 = vmatprep.subr.bf16.mxu1 %v17676_v4  ;;  %v824_v2 = vld [vmem:[%s21553_s18 + $0xd50] sm:$0xff]  ;;  %v817_v3 = vld [vmem:[%s21553_s18 + $0xd18] sm:$0xff] }
 0x279   : > { %v825_v4 = vld [vmem:[%s21553_s18 + $0xd58] sm:$0xff]  ;;  %v17802_v7 = vcombine.high %v816_v1, %v824_v2  ;;  %v936_v59 = vld [vmem:[%s21553_s18 + $0x10d0] sm:$0xff] }
 0x27a   : > { %10728 = vmatmul.mubr.bf16.gmra.mrb[12].mxu0 %v20987_v18  ;;  %11099 = vmatmul.mubr.bf16.gmra.mrb[12].mxu1 %v20987_v18  ;;  %v17804_v8 = vcombine.high %v817_v3, %v825_v4  ;;  %v17803_v14 = vcombine.low %v817_v3, %v825_v4  ;;  %v856_v18 = vld [vmem:[%s21553_s18 + $0xe50] sm:$0xff]  ;;  %v20989_v4 = vld [vmem:[#allocation6 + $0x8] ss:$52 sps:$4 sm:$0xff]  }
 0x27b   : > { %10743 = vmatpush1.bf16.msra.mxu0 %v17673_v10  ;;  %11114 = vmatpush1.bf16.msra.mxu1 %v17675_v11  ;;  %v840_v10 = vld [vmem:[%s21553_s18 + $0xdd0] sm:$0xff]  ;;  %v833_v11 = vld [vmem:[%s21553_s18 + $0xd98] sm:$0xff]  ;;  %v17834_v23 = vcombine.high %v848_v17, %v856_v18 }
 0x27c   : > { %10744 = vmatprep.subr.bf16.mxu0 %v17690_v12  ;;  %11115 = vmatprep.subr.bf16.mxu1 %v17692_v13  ;;  %v841_v12 = vld [vmem:[%s21553_s18 + $0xdd8] sm:$0xff]  ;;  %v17801_v13 = vcombine.low %v816_v1, %v824_v2  ;;  %v17818_v15 = vcombine.high %v832_v9, %v840_v10  ;;  %v944_v2 = vld [vmem:[%s21553_s18 + $0x1110] sm:$0xff] }
 0x27d   : > { %10770 = vmatprep.mubr.bf16.mxu0 %v20988_v25  ;;  %11141 = vmatprep.mubr.bf16.mxu1 %v20988_v25  ;;  %v17820_v16 = vcombine.high %v833_v11, %v841_v12  ;;  %v864_v25 = vld [vmem:[%s21553_s18 + $0xe90] sm:$0xff] }
 0x27e   : > { %v952_v3 = vld [vmem:[%s21553_s18 + $0x1150] sm:$0xff] }
 0x27f   : > { %10745 = vmatpush1.bf16.msra.mxu0 %v17689_v19  ;;  %11116 = vmatpush1.bf16.msra.mxu1 %v17691_v20  ;;  %v849_v19 = vld [vmem:[%s21553_s18 + $0xe18] sm:$0xff] }
 0x280   : > { %10746 = vmatprep.subr.bf16.mxu0 %v17706_v21  ;;  %11117 = vmatprep.subr.bf16.mxu1 %v17708_v22  ;;  %v857_v20 = vld [vmem:[%s21553_s18 + $0xe58] sm:$0xff]  ;;  %v17817_v21 = vcombine.low %v832_v9, %v840_v10  ;;  %v17819_v22 = vcombine.low %v833_v11, %v841_v12  ;;  %v17930_v9 = vcombine.high %v944_v2, %v952_v3  ;;  %v960_v11 = vld [vmem:[%s21553_s18 + $0x1190] sm:$0xff] }
 0x281   : > { %v17836_v24 = vcombine.high %v849_v19, %v857_v20  ;;  %v968_v12 = vld [vmem:[%s21553_s18 + $0x11d0] sm:$0xff] }
 0x283   : > { %10747 = vmatpush1.bf16.msra.mxu0 %v17705_v28  ;;  %11118 = vmatpush1.bf16.msra.mxu1 %v17707_v29  ;;  %v873_v28 = vld [vmem:[%s21553_s18 + $0xed8] sm:$0xff]  ;;  %v17833_v29 = vcombine.low %v848_v17, %v856_v18  ;;  %v17946_v18 = vcombine.high %v960_v11, %v968_v12 }
 0x284   : > { %10748 = vmatprep.subr.bf16.mxu0 %v17722_v30  ;;  %11119 = vmatprep.subr.bf16.mxu1 %v17724_v31  ;;  %v17835_v30 = vcombine.low %v849_v19, %v857_v20  ;;  %v17850_v31 = vcombine.high %v864_v25, %v872_v26  ;;  %v17852_v32 = vcombine.high %v865_v27, %v873_v28  ;;  %v976_v20 = vld [vmem:[%s21553_s18 + $0x1210] sm:$0xff] }
 0x287   : > { %10749 = vmatpush1.bf16.msra.mxu0 %v17721_v36  ;;  %11120 = vmatpush1.bf16.msra.mxu1 %v17723_v37  ;;  %v889_v36 = vld [vmem:[%s21553_s18 + $0xf58] sm:$0xff]  ;;  %v17849_v37 = vcombine.low %v864_v25, %v872_v26  ;;  %v17945_v25 = vcombine.low %v960_v11, %v968_v12 }
 0x288   : > { %10750 = vmatprep.subr.bf16.mxu0 %v17738_v38  ;;  %11121 = vmatprep.subr.bf16.mxu1 %v17740_v39  ;;  %v17851_v38 = vcombine.low %v865_v27, %v873_v28  ;;  %v17866_v39 = vcombine.high %v880_v33, %v888_v34  ;;  %v17868_v40 = vcombine.high %v881_v35, %v889_v36 }
 0x28b   : > { %10751 = vmatpush1.bf16.msra.mxu0 %v17737_v44  ;;  %11122 = vmatpush1.bf16.msra.mxu1 %v17739_v45  ;;  %v905_v44 = vld [vmem:[%s21553_s18 + $0xfd8] sm:$0xff]  ;;  %v17865_v45 = vcombine.low %v880_v33, %v888_v34 }
 0x28c   : > { %10752 = vmatprep.subr.bf16.mxu0 %v17754_v47  ;;  %11123 = vmatprep.subr.bf16.mxu1 %v17756_v48  ;;  %v17867_v47 = vcombine.low %v881_v35, %v889_v36  ;;  %v17882_v48 = vcombine.high %v896_v41, %v904_v42  ;;  %v17884_v49 = vcombine.high %v897_v43, %v905_v44  ;;  %v1001_v33 = vld [vmem:[%s21553_s18 + $0x12d8] sm:$0xff] }
 0x28f   : > { %10753 = vmatpush1.bf16.msra.mxu0 %v17753_v53  ;;  %11124 = vmatpush1.bf16.msra.mxu1 %v17755_v54  ;;  %v921_v53 = vld [vmem:[%s21553_s18 + $0x1058] sm:$0xff]  ;;  %v17881_v54 = vcombine.low %v896_v41, %v904_v42 }
 0x290   : > { %10754 = vmatprep.subr.bf16.mxu0 %v17770_v55  ;;  %11125 = vmatprep.subr.bf16.mxu1 %v17772_v56  ;;  %v17883_v55 = vcombine.low %v897_v43, %v905_v44  ;;  %v17898_v56 = vcombine.high %v912_v50, %v920_v51  ;;  %v17900_v57 = vcombine.high %v913_v52, %v921_v53  ;;  %v1017_v41 = vld [vmem:[%s21553_s18 + $0x1358] sm:$0xff] }
 0x293   : > { %10755 = vmatpush1.bf16.msra.mxu0 %v17769_v61  ;;  %11126 = vmatpush1.bf16.msra.mxu1 %v17771_v62  ;;  %v937_v61 = vld [vmem:[%s21553_s18 + $0x10d8] sm:$0xff]  ;;  %v17897_v62 = vcombine.low %v912_v50, %v920_v51 }
 0x294   : > { %10756 = vmatprep.subr.bf16.mxu0 %v17786_v63  ;;  %11127 = vmatprep.subr.bf16.mxu1 %v17788_v0  ;;  %v17899_v63 = vcombine.low %v913_v52, %v921_v53  ;;  %v17914_v0 = vcombine.high %v928_v58, %v936_v59  ;;  %v17916_v1 = vcombine.high %v929_v60, %v937_v61  ;;  %v1033_v50 = vld [vmem:[%s21553_s18 + $0x13d8] sm:$0xff] }
 0x297   : > { %10757 = vmatpush1.bf16.msra.mxu0 %v17785_v5  ;;  %11128 = vmatpush1.bf16.msra.mxu1 %v17787_v6  ;;  %v945_v5 = vld [vmem:[%s21553_s18 + $0x1118] sm:$0xff] }
 0x298   : > { %10758 = vmatprep.subr.bf16.mxu0 %v17802_v7  ;;  %11129 = vmatprep.subr.bf16.mxu1 %v17804_v8  ;;  %v953_v6 = vld [vmem:[%s21553_s18 + $0x1158] sm:$0xff]  ;;  %v17913_v7 = vcombine.low %v928_v58, %v936_v59  ;;  %v17915_v8 = vcombine.low %v929_v60, %v937_v61 }
 0x299   : > { %v17932_v10 = vcombine.high %v945_v5, %v953_v6  ;;  %v17931_v17 = vcombine.low %v945_v5, %v953_v6  ;;  %v1049_v58 = vld [vmem:[%s21553_s18 + $0x1458] sm:$0xff] }
 0x29b   : > { %10759 = vmatpush1.bf16.msra.mxu0 %v17801_v13  ;;  %11130 = vmatpush1.bf16.msra.mxu1 %v17803_v14  ;;  %v20990_v13 = vld [vmem:[#allocation6 + $0x74] ss:$52 sps:$4 sm:$0xff]   ;;  %v961_v14 = vld [vmem:[%s21553_s18 + $0x1198] sm:$0xff] }
 0x29c   : > { %10760 = vmatprep.subr.bf16.mxu0 %v17818_v15  ;;  %11131 = vmatprep.subr.bf16.mxu1 %v17820_v16  ;;  %v969_v15 = vld [vmem:[%s21553_s18 + $0x11d8] sm:$0xff]  ;;  %v17929_v16 = vcombine.low %v944_v2, %v952_v3 }
 0x29d   : > { %v17948_v19 = vcombine.high %v961_v14, %v969_v15  ;;  %v17947_v26 = vcombine.low %v961_v14, %v969_v15  ;;  %v1065_v2 = vld [vmem:[%s21553_s18 + $0x14d8] sm:$0xff]  ;;  %v1088_v15 = vld [vmem:[%s21553_s18 + $0x1590] sm:$0xff] }
 0x29f   : > { %10761 = vmatpush1.bf16.msra.mxu0 %v17817_v21  ;;  %11132 = vmatpush1.bf16.msra.mxu1 %v17819_v22  ;;  %v984_v21 = vld [vmem:[%s21553_s18 + $0x1250] sm:$0xff]  ;;  %v977_v22 = vld [vmem:[%s21553_s18 + $0x1218] sm:$0xff] }
 0x2a0   : > { %10762 = vmatprep.subr.bf16.mxu0 %v17834_v23  ;;  %11133 = vmatprep.subr.bf16.mxu1 %v17836_v24  ;;  %v985_v23 = vld [vmem:[%s21553_s18 + $0x1258] sm:$0xff]  ;;  %v20991_v24 = vld [vmem:[#allocation6 + $0x70] ss:$52 sps:$4 sm:$0xff]   ;;  %v17962_v27 = vcombine.high %v976_v20, %v984_v21  ;;  %v17961_v34 = vcombine.low %v976_v20, %v984_v21 }
 0x2a1   : > { %v17964_v28 = vcombine.high %v977_v22, %v985_v23  ;;  %v17963_v35 = vcombine.low %v977_v22, %v985_v23  ;;  %v1104_v23 = vld [vmem:[%s21553_s18 + $0x1610] sm:$0xff] }
 0x2a3   : > { %10763 = vmatpush1.bf16.msra.mxu0 %v17833_v29  ;;  %11134 = vmatpush1.bf16.msra.mxu1 %v17835_v30  ;;  %v992_v29 = vld [vmem:[%s21553_s18 + $0x1290] sm:$0xff] }
 0x2a4   : > { %10764 = vmatprep.subr.bf16.mxu0 %v17850_v31  ;;  %11135 = vmatprep.subr.bf16.mxu1 %v17852_v32  ;;  %v1000_v30 = vld [vmem:[%s21553_s18 + $0x12d0] sm:$0xff]  ;;  %v993_v32 = vld [vmem:[%s21553_s18 + $0x1298] sm:$0xff] }
 0x2a5   : > { %v20992_v31 = vld [vmem:[#allocation6 + $0x14] ss:$52 sps:$4 sm:$0xff]   ;;  %v17978_v36 = vcombine.high %v992_v29, %v1000_v30  ;;  %v17977_v42 = vcombine.low %v992_v29, %v1000_v30  ;;  %v17979_v43 = vcombine.low %v993_v32, %v1001_v33 }
 0x2a7   : > { %10765 = vmatpush1.bf16.msra.mxu0 %v17849_v37  ;;  %11136 = vmatpush1.bf16.msra.mxu1 %v17851_v38  ;;  %v17980_v37 = vcombine.high %v993_v32, %v1001_v33  ;;  %v1008_v38 = vld [vmem:[%s21553_s18 + $0x1310] sm:$0xff]  ;;  %v1121_v33 = vld [vmem:[%s21553_s18 + $0x1698] sm:$0xff] }
 0x2a8   : > { %10766 = vmatprep.subr.bf16.mxu0 %v17866_v39  ;;  %11137 = vmatprep.subr.bf16.mxu1 %v17868_v40  ;;  %v1016_v39 = vld [vmem:[%s21553_s18 + $0x1350] sm:$0xff]  ;;  %v1009_v40 = vld [vmem:[%s21553_s18 + $0x1318] sm:$0xff] }
 0x2a9   : > { %v17994_v44 = vcombine.high %v1008_v38, %v1016_v39  ;;  %v17993_v51 = vcombine.low %v1008_v38, %v1016_v39  ;;  %v17995_v52 = vcombine.low %v1009_v40, %v1017_v41  ;;  %v1128_v32 = vld [vmem:[%s21553_s18 + $0x16d0] sm:$0xff] }
 0x2aa   : > { %v1136_v39 = vld [vmem:[%s21553_s18 + $0x1710] sm:$0xff] }
 0x2ab   : > { %10767 = vmatpush1.bf16.msra.mxu0 %v17865_v45  ;;  %11138 = vmatpush1.bf16.msra.mxu1 %v17867_v47  ;;  %v17996_v45 = vcombine.high %v1009_v40, %v1017_v41  ;;  %v1024_v47 = vld [vmem:[%s21553_s18 + $0x1390] sm:$0xff]  ;;  %v1137_v41 = vld [vmem:[%s21553_s18 + $0x1718] sm:$0xff] }
 0x2ac   : > { %10768 = vmatprep.subr.bf16.mxu0 %v17882_v48  ;;  %11139 = vmatprep.subr.bf16.mxu1 %v17884_v49  ;;  %v1032_v48 = vld [vmem:[%s21553_s18 + $0x13d0] sm:$0xff]  ;;  %v1025_v49 = vld [vmem:[%s21553_s18 + $0x1398] sm:$0xff] }
 0x2ad   : > { %v18010_v53 = vcombine.high %v1024_v47, %v1032_v48  ;;  %v18009_v59 = vcombine.low %v1024_v47, %v1032_v48  ;;  %v18011_v60 = vcombine.low %v1025_v49, %v1033_v50  ;;  %v1144_v40 = vld [vmem:[%s21553_s18 + $0x1750] sm:$0xff] }
 0x2ae   : > { %v1152_v48 = vld [vmem:[%s21553_s18 + $0x1790] sm:$0xff] }
 0x2af   : > { %10769 = vmatpush1.bf16.msra.mxu0 %v17881_v54  ;;  %11140 = vmatpush1.bf16.msra.mxu1 %v17883_v55  ;;  %v18012_v54 = vcombine.high %v1025_v49, %v1033_v50  ;;  %v1040_v55 = vld [vmem:[%s21553_s18 + $0x1410] sm:$0xff]  ;;  %v1153_v50 = vld [vmem:[%s21553_s18 + $0x1798] sm:$0xff] }
 0x2b0   : > { %10791 = vmatprep.subr.bf16.mxu0 %v17898_v56  ;;  %11162 = vmatprep.subr.bf16.mxu1 %v17900_v57  ;;  %v1048_v56 = vld [vmem:[%s21553_s18 + $0x1450] sm:$0xff]  ;;  %v1041_v57 = vld [vmem:[%s21553_s18 + $0x1418] sm:$0xff] }
 0x2b1   : > { %v18026_v61 = vcombine.high %v1040_v55, %v1048_v56  ;;  %v18025_v3 = vcombine.low %v1040_v55, %v1048_v56  ;;  %v1160_v49 = vld [vmem:[%s21553_s18 + $0x17d0] sm:$0xff] }
 0x2b2   : > { %10771 = vmatmul.mubr.bf16.vlgmr.msra.gmra.mrb[8].mxu0 %v20989_v4  ;;  %11142 = vmatmul.mubr.bf16.vlgmr.msra.gmra.mrb[8].mxu1 %v20989_v4  ;;  %v18027_v4 = vcombine.low %v1041_v57, %v1049_v58  ;;  %v1168_v56 = vld [vmem:[%s21553_s18 + $0x1810] sm:$0xff] }
 0x2b3   : > { %10792 = vmatpush1.bf16.msra.mxu0 %v17897_v62  ;;  %11163 = vmatpush1.bf16.msra.mxu1 %v17899_v63  ;;  %v18028_v62 = vcombine.high %v1041_v57, %v1049_v58  ;;  %v1056_v63 = vld [vmem:[%s21553_s18 + $0x1490] sm:$0xff]  ;;  %v1169_v58 = vld [vmem:[%s21553_s18 + $0x1818] sm:$0xff] }
 0x2b4   : > { %10793 = vmatprep.subr.bf16.mxu0 %v17914_v0  ;;  %11164 = vmatprep.subr.bf16.mxu1 %v17916_v1  ;;  %v1064_v0 = vld [vmem:[%s21553_s18 + $0x14d0] sm:$0xff]  ;;  %v1057_v1 = vld [vmem:[%s21553_s18 + $0x1498] sm:$0xff] }
 0x2b5   : > { %10780 = vmatprep.mubr.bf16.mxu0 %v20990_v13  ;;  %11151 = vmatprep.mubr.bf16.mxu1 %v20990_v13  ;;  %v18042_v5 = vcombine.high %v1056_v63, %v1064_v0  ;;  %v18044_v6 = vcombine.high %v1057_v1, %v1065_v2  ;;  %v18041_v11 = vcombine.low %v1056_v63, %v1064_v0  ;;  %v1176_v57 = vld [vmem:[%s21553_s18 + $0x1850] sm:$0xff] }
 0x2b6   : > { %v18043_v12 = vcombine.low %v1057_v1, %v1065_v2  ;;  %v1184_v0 = vld [vmem:[%s21553_s18 + $0x1890] sm:$0xff]  ;;  %v1185_v2 = vld [vmem:[%s21553_s18 + $0x1898] sm:$0xff] }
 0x2b7   : > { %10794 = vmatpush1.bf16.msra.mxu0 %v17913_v7  ;;  %11165 = vmatpush1.bf16.msra.mxu1 %v17915_v8  ;;  %v1072_v7 = vld [vmem:[%s21553_s18 + $0x1510] sm:$0xff] }
 0x2b8   : > { %10795 = vmatprep.subr.bf16.mxu0 %v17930_v9  ;;  %11166 = vmatprep.subr.bf16.mxu1 %v17932_v10  ;;  %v1080_v8 = vld [vmem:[%s21553_s18 + $0x1550] sm:$0xff]  ;;  %v1073_v9 = vld [vmem:[%s21553_s18 + $0x1518] sm:$0xff] }
 0x2b9   : > { %v1081_v10 = vld [vmem:[%s21553_s18 + $0x1558] sm:$0xff]  ;;  %v18058_v13 = vcombine.high %v1072_v7, %v1080_v8  ;;  %v1192_v1 = vld [vmem:[%s21553_s18 + $0x18d0] sm:$0xff] }
 0x2ba   : > { %10781 = vmatmul.mubr.bf16.gmra.mrb[12].mxu0 %v20991_v24  ;;  %11152 = vmatmul.mubr.bf16.gmra.mrb[12].mxu1 %v20991_v24  ;;  %v18060_v14 = vcombine.high %v1073_v9, %v1081_v10  ;;  %v18059_v20 = vcombine.low %v1073_v9, %v1081_v10  ;;  %v1112_v24 = vld [vmem:[%s21553_s18 + $0x1650] sm:$0xff] }
 0x2bb   : > { %10796 = vmatpush1.bf16.msra.mxu0 %v17929_v16  ;;  %11167 = vmatpush1.bf16.msra.mxu1 %v17931_v17  ;;  %v1096_v16 = vld [vmem:[%s21553_s18 + $0x15d0] sm:$0xff]  ;;  %v1089_v17 = vld [vmem:[%s21553_s18 + $0x1598] sm:$0xff]  ;;  %v18090_v29 = vcombine.high %v1104_v23, %v1112_v24 }
 0x2bc   : > { %10797 = vmatprep.subr.bf16.mxu0 %v17946_v18  ;;  %11168 = vmatprep.subr.bf16.mxu1 %v17948_v19  ;;  %v1097_v18 = vld [vmem:[%s21553_s18 + $0x15d8] sm:$0xff]  ;;  %v18057_v19 = vcombine.low %v1072_v7, %v1080_v8  ;;  %v18074_v21 = vcombine.high %v1088_v15, %v1096_v16  ;;  %v1200_v8 = vld [vmem:[%s21553_s18 + $0x1910] sm:$0xff] }
 0x2bd   : > { %10823 = vmatprep.mubr.bf16.mxu0 %v20992_v31  ;;  %11194 = vmatprep.mubr.bf16.mxu1 %v20992_v31  ;;  %v18076_v22 = vcombine.high %v1089_v17, %v1097_v18  ;;  %v1120_v31 = vld [vmem:[%s21553_s18 + $0x1690] sm:$0xff] }
 0x2be   : > { %v1208_v9 = vld [vmem:[%s21553_s18 + $0x1950] sm:$0xff] }
 0x2bf   : > { %10798 = vmatpush1.bf16.msra.mxu0 %v17945_v25  ;;  %11169 = vmatpush1.bf16.msra.mxu1 %v17947_v26  ;;  %v1105_v25 = vld [vmem:[%s21553_s18 + $0x1618] sm:$0xff]  ;;  %v20993_v10 = vld [vmem:[#allocation6 + $0x10] ss:$52 sps:$4 sm:$0xff]  }
 0x2c0   : > { %10799 = vmatprep.subr.bf16.mxu0 %v17962_v27  ;;  %11170 = vmatprep.subr.bf16.mxu1 %v17964_v28  ;;  %v1113_v26 = vld [vmem:[%s21553_s18 + $0x1658] sm:$0xff]  ;;  %v18073_v27 = vcombine.low %v1088_v15, %v1096_v16  ;;  %v18075_v28 = vcombine.low %v1089_v17, %v1097_v18  ;;  %v18186_v15 = vcombine.high %v1200_v8, %v1208_v9  ;;  %v1216_v17 = vld [vmem:[%s21553_s18 + $0x1990] sm:$0xff] }
 0x2c1   : > { %v18092_v30 = vcombine.high %v1105_v25, %v1113_v26  ;;  %v1224_v18 = vld [vmem:[%s21553_s18 + $0x19d0] sm:$0xff] }
 0x2c3   : > { %10800 = vmatpush1.bf16.msra.mxu0 %v17961_v34  ;;  %11171 = vmatpush1.bf16.msra.mxu1 %v17963_v35  ;;  %v1129_v34 = vld [vmem:[%s21553_s18 + $0x16d8] sm:$0xff]  ;;  %v18089_v35 = vcombine.low %v1104_v23, %v1112_v24  ;;  %v18202_v24 = vcombine.high %v1216_v17, %v1224_v18 }
 0x2c4   : > { %10801 = vmatprep.subr.bf16.mxu0 %v17978_v36  ;;  %11172 = vmatprep.subr.bf16.mxu1 %v17980_v37  ;;  %v18091_v36 = vcombine.low %v1105_v25, %v1113_v26  ;;  %v18106_v37 = vcombine.high %v1120_v31, %v1128_v32  ;;  %v18108_v38 = vcombine.high %v1121_v33, %v1129_v34  ;;  %v1232_v26 = vld [vmem:[%s21553_s18 + $0x1a10] sm:$0xff] }
 0x2c7   : > { %10802 = vmatpush1.bf16.msra.mxu0 %v17977_v42  ;;  %11173 = vmatpush1.bf16.msra.mxu1 %v17979_v43  ;;  %v1145_v42 = vld [vmem:[%s21553_s18 + $0x1758] sm:$0xff]  ;;  %v18105_v43 = vcombine.low %v1120_v31, %v1128_v32  ;;  %v18201_v31 = vcombine.low %v1216_v17, %v1224_v18 }
 0x2c8   : > { %10803 = vmatprep.subr.bf16.mxu0 %v17994_v44  ;;  %11174 = vmatprep.subr.bf16.mxu1 %v17996_v45  ;;  %v18107_v44 = vcombine.low %v1121_v33, %v1129_v34  ;;  %v18122_v45 = vcombine.high %v1136_v39, %v1144_v40  ;;  %v18124_v47 = vcombine.high %v1137_v41, %v1145_v42  ;;  %v1305_v17 = vld [vmem:[%s21553_s18 + $0x1c58] sm:$0xff] }
 0x2cb   : > { %10804 = vmatpush1.bf16.msra.mxu0 %v17993_v51  ;;  %11175 = vmatpush1.bf16.msra.mxu1 %v17995_v52  ;;  %v1161_v51 = vld [vmem:[%s21553_s18 + $0x17d8] sm:$0xff]  ;;  %v18121_v52 = vcombine.low %v1136_v39, %v1144_v40 }
 0x2cc   : > { %10805 = vmatprep.subr.bf16.mxu0 %v18010_v53  ;;  %11176 = vmatprep.subr.bf16.mxu1 %v18012_v54  ;;  %v18123_v53 = vcombine.low %v1137_v41, %v1145_v42  ;;  %v18138_v54 = vcombine.high %v1152_v48, %v1160_v49  ;;  %v18140_v55 = vcombine.high %v1153_v50, %v1161_v51  ;;  %v1257_v39 = vld [vmem:[%s21553_s18 + $0x1ad8] sm:$0xff] }
 0x2cf   : > { %10806 = vmatpush1.bf16.msra.mxu0 %v18009_v59  ;;  %11177 = vmatpush1.bf16.msra.mxu1 %v18011_v60  ;;  %v1177_v59 = vld [vmem:[%s21553_s18 + $0x1858] sm:$0xff]  ;;  %v18137_v60 = vcombine.low %v1152_v48, %v1160_v49 }
 0x2d0   : > { %10807 = vmatprep.subr.bf16.mxu0 %v18026_v61  ;;  %11178 = vmatprep.subr.bf16.mxu1 %v18028_v62  ;;  %v18139_v61 = vcombine.low %v1153_v50, %v1161_v51  ;;  %v18154_v62 = vcombine.high %v1168_v56, %v1176_v57  ;;  %v18156_v63 = vcombine.high %v1169_v58, %v1177_v59  ;;  %v1273_v48 = vld [vmem:[%s21553_s18 + $0x1b58] sm:$0xff] }
 0x2d3   : > { %10808 = vmatpush1.bf16.msra.mxu0 %v18025_v3  ;;  %11179 = vmatpush1.bf16.msra.mxu1 %v18027_v4  ;;  %v1193_v3 = vld [vmem:[%s21553_s18 + $0x18d8] sm:$0xff]  ;;  %v18153_v4 = vcombine.low %v1168_v56, %v1176_v57 }
 0x2d4   : > { %10809 = vmatprep.subr.bf16.mxu0 %v18042_v5  ;;  %11180 = vmatprep.subr.bf16.mxu1 %v18044_v6  ;;  %v18155_v5 = vcombine.low %v1169_v58, %v1177_v59  ;;  %v18170_v6 = vcombine.high %v1184_v0, %v1192_v1  ;;  %v18172_v7 = vcombine.high %v1185_v2, %v1193_v3  ;;  %v22193_v59 = vld [vmem:[%s21553_s18 + $0x1b98] sm:$0xff] }
 0x2d7   : > { %10810 = vmatpush1.bf16.msra.mxu0 %v18041_v11  ;;  %11181 = vmatpush1.bf16.msra.mxu1 %v18043_v12  ;;  %v1201_v11 = vld [vmem:[%s21553_s18 + $0x1918] sm:$0xff] }
 0x2d8   : > { %10811 = vmatprep.subr.bf16.mxu0 %v18058_v13  ;;  %11182 = vmatprep.subr.bf16.mxu1 %v18060_v14  ;;  %v1209_v12 = vld [vmem:[%s21553_s18 + $0x1958] sm:$0xff]  ;;  %v18169_v13 = vcombine.low %v1184_v0, %v1192_v1  ;;  %v18171_v14 = vcombine.low %v1185_v2, %v1193_v3  ;;  %v22199_v2 = vld [vmem:[%s21553_s18 + $0x1c10] sm:$0xff] }
 0x2d9   : > { %v18188_v16 = vcombine.high %v1201_v11, %v1209_v12  ;;  %v18187_v23 = vcombine.low %v1201_v11, %v1209_v12 }
 0x2db   : > { %10812 = vmatpush1.bf16.msra.mxu0 %v18057_v19  ;;  %11183 = vmatpush1.bf16.msra.mxu1 %v18059_v20  ;;  %v20994_v19 = vld [vmem:[#allocation6 + $0x7c] ss:$52 sps:$4 sm:$0xff]  }
 0x2dc   : > { %10813 = vmatprep.subr.bf16.mxu0 %v18074_v21  ;;  %11184 = vmatprep.subr.bf16.mxu1 %v18076_v22  ;;  %v1217_v20 = vld [vmem:[%s21553_s18 + $0x1998] sm:$0xff]  ;;  %v18185_v22 = vcombine.low %v1200_v8, %v1208_v9 }
 0x2dd   : > { %v1225_v21 = vld [vmem:[%s21553_s18 + $0x19d8] sm:$0xff] }
 0x2de   : > { %v18204_v25 = vcombine.high %v1217_v20, %v1225_v21  ;;  %v18203_v32 = vcombine.low %v1217_v20, %v1225_v21 }
 0x2df   : > { %10814 = vmatpush1.bf16.msra.mxu0 %v18073_v27  ;;  %11185 = vmatpush1.bf16.msra.mxu1 %v18075_v28  ;;  %v1240_v27 = vld [vmem:[%s21553_s18 + $0x1a50] sm:$0xff]  ;;  %v1233_v28 = vld [vmem:[%s21553_s18 + $0x1a18] sm:$0xff] }
 0x2e0   : > { %10815 = vmatprep.subr.bf16.mxu0 %v18090_v29  ;;  %11186 = vmatprep.subr.bf16.mxu1 %v18092_v30  ;;  %v1241_v29 = vld [vmem:[%s21553_s18 + $0x1a58] sm:$0xff]  ;;  %v18218_v33 = vcombine.high %v1232_v26, %v1240_v27  ;;  %v18217_v40 = vcombine.low %v1232_v26, %v1240_v27  ;;  %v1312_v26 = vld [vmem:[%s21553_s18 + $0x1c90] sm:$0xff] }
 0x2e1   : > { %v20995_v30 = vld [vmem:[#allocation6 + $0x78] ss:$52 sps:$4 sm:$0xff]   ;;  %v18220_v34 = vcombine.high %v1233_v28, %v1241_v29  ;;  %v18219_v41 = vcombine.low %v1233_v28, %v1241_v29  ;;  %v1320_v27 = vld [vmem:[%s21553_s18 + $0x1cd0] sm:$0xff] }
 0x2e3   : > { %10816 = vmatpush1.bf16.msra.mxu0 %v18089_v35  ;;  %11187 = vmatpush1.bf16.msra.mxu1 %v18091_v36  ;;  %v1248_v35 = vld [vmem:[%s21553_s18 + $0x1a90] sm:$0xff] }
 0x2e4   : > { %10817 = vmatprep.subr.bf16.mxu0 %v18106_v37  ;;  %11188 = vmatprep.subr.bf16.mxu1 %v18108_v38  ;;  %v1256_v36 = vld [vmem:[%s21553_s18 + $0x1ad0] sm:$0xff]  ;;  %v1249_v38 = vld [vmem:[%s21553_s18 + $0x1a98] sm:$0xff] }
 0x2e5   : > { %v20996_v37 = vld [vmem:[#allocation6 + $0x1c] ss:$52 sps:$4 sm:$0xff]   ;;  %v18234_v42 = vcombine.high %v1248_v35, %v1256_v36  ;;  %v18233_v49 = vcombine.low %v1248_v35, %v1256_v36  ;;  %v18235_v50 = vcombine.low %v1249_v38, %v1257_v39 }
 0x2e7   : > { %10818 = vmatpush1.bf16.msra.mxu0 %v18105_v43  ;;  %11189 = vmatpush1.bf16.msra.mxu1 %v18107_v44  ;;  %v18236_v43 = vcombine.high %v1249_v38, %v1257_v39  ;;  %v1264_v44 = vld [vmem:[%s21553_s18 + $0x1b10] sm:$0xff] }
 0x2e8   : > { %10819 = vmatprep.subr.bf16.mxu0 %v18122_v45  ;;  %11190 = vmatprep.subr.bf16.mxu1 %v18124_v47  ;;  %v1272_v45 = vld [vmem:[%s21553_s18 + $0x1b50] sm:$0xff]  ;;  %v1265_v47 = vld [vmem:[%s21553_s18 + $0x1b18] sm:$0xff] }
 0x2e9   : > { %v18250_v51 = vcombine.high %v1264_v44, %v1272_v45  ;;  %v18249_v1 = vcombine.low %v1264_v44, %v1272_v45  ;;  %v1328_v38 = vld [vmem:[%s21553_s18 + $0x1d10] sm:$0xff]  ;;  %v18298_v44 = vcombine.high %v1312_v26, %v1320_v27 }
 0x2eb   : > { %10820 = vmatpush1.bf16.msra.mxu0 %v18121_v52  ;;  %11191 = vmatpush1.bf16.msra.mxu1 %v18123_v53  ;;  %v18252_v53 = vcombine.high %v1265_v47, %v1273_v48 }
 0x2ec   : > { %10821 = vmatprep.subr.bf16.mxu0 %v18138_v54  ;;  %11192 = vmatprep.subr.bf16.mxu1 %v18140_v55  ;;  %v22189_v54 = vld [vmem:[%s21553_s18 + $0x1b90] sm:$0xff] }
 0x2ed   : > { %v1288_v55 = vld [vmem:[%s21553_s18 + $0x1bd0] sm:$0xff] }
 0x2ee   : > { %v18266_v8 = vcombine.high %v22189_v54, %v1288_v55  ;;  %v18265_v20 = vcombine.low %v22189_v54, %v1288_v55  ;;  %v1337_v54 = vld [vmem:[%s21553_s18 + $0x1d58] sm:$0xff] }
 0x2ef   : > { %10822 = vmatpush1.bf16.msra.mxu0 %v18137_v60  ;;  %11193 = vmatpush1.bf16.msra.mxu1 %v18139_v61  ;;  %v22196_v60 = vld [vmem:[%s21553_s18 + $0x1bd8] sm:$0xff] }
 0x2f0   : > { %10844 = vmatprep.subr.bf16.mxu0 %v18154_v62  ;;  %11215 = vmatprep.subr.bf16.mxu1 %v18156_v63  ;;  %v18268_v12 = vcombine.high %v22193_v59, %v22196_v60 }
 0x2f2   : > { %10824 = vmatmul.mubr.bf16.vlgmr.msra.gmra.mrb[8].mxu0 %v20993_v10  ;;  %11195 = vmatmul.mubr.bf16.vlgmr.msra.gmra.mrb[8].mxu1 %v20993_v10 }
 0x2f3   : > { %10845 = vmatpush1.bf16.msra.mxu0 %v18153_v4  ;;  %11216 = vmatpush1.bf16.msra.mxu1 %v18155_v5 }
 0x2f4   : > { %10846 = vmatprep.subr.bf16.mxu0 %v18170_v6  ;;  %11217 = vmatprep.subr.bf16.mxu1 %v18172_v7  ;;  %v18251_v7 = vcombine.low %v1265_v47, %v1273_v48 }
 0x2f5   : > { %10833 = vmatprep.mubr.bf16.mxu0 %v20994_v19  ;;  %11204 = vmatprep.mubr.bf16.mxu1 %v20994_v19 }
 0x2f7   : > { %10847 = vmatpush1.bf16.msra.mxu0 %v18169_v13  ;;  %11218 = vmatpush1.bf16.msra.mxu1 %v18171_v14  ;;  %v22210_v13 = vld [vmem:[%s21553_s18 + $0x1c50] sm:$0xff] }
 0x2f8   : > { %10848 = vmatprep.subr.bf16.mxu0 %v18186_v15  ;;  %11219 = vmatprep.subr.bf16.mxu1 %v18188_v16  ;;  %v1297_v16 = vld [vmem:[%s21553_s18 + $0x1c18] sm:$0xff] }
 0x2fa   : > { %10834 = vmatmul.mubr.bf16.gmra.mrb[12].mxu0 %v20995_v30  ;;  %11205 = vmatmul.mubr.bf16.gmra.mrb[12].mxu1 %v20995_v30 }
 0x2fb   : > { %10849 = vmatpush1.bf16.msra.mxu0 %v18185_v22  ;;  %11220 = vmatpush1.bf16.msra.mxu1 %v18187_v23  ;;  %v18267_v22 = vcombine.low %v22193_v59, %v22196_v60  ;;  %v18282_v23 = vcombine.high %v22199_v2, %v22210_v13 }
 0x2fc   : > { %10850 = vmatprep.subr.bf16.mxu0 %v18202_v24  ;;  %11221 = vmatprep.subr.bf16.mxu1 %v18204_v25  ;;  %v18284_v25 = vcombine.high %v1297_v16, %v1305_v17 }
 0x2fd   : > { %10876 = vmatprep.mubr.bf16.mxu0 %v20996_v37  ;;  %11247 = vmatprep.mubr.bf16.mxu1 %v20996_v37  ;;  %v18281_v37 = vcombine.low %v22199_v2, %v22210_v13 }
 0x2ff   : > { %10851 = vmatpush1.bf16.msra.mxu0 %v18201_v31  ;;  %11222 = vmatpush1.bf16.msra.mxu1 %v18203_v32  ;;  %v1313_v31 = vld [vmem:[%s21553_s18 + $0x1c98] sm:$0xff] }
 0x300   : > { %10852 = vmatprep.subr.bf16.mxu0 %v18218_v33  ;;  %11223 = vmatprep.subr.bf16.mxu1 %v18220_v34  ;;  %v1321_v32 = vld [vmem:[%s21553_s18 + $0x1cd8] sm:$0xff] }
 0x301   : > { %v18299_v59 = vcombine.low %v1313_v31, %v1321_v32 }
 0x303   : > { %10853 = vmatpush1.bf16.msra.mxu0 %v18217_v40  ;;  %11224 = vmatpush1.bf16.msra.mxu1 %v18219_v41 }
 0x304   : > { %10854 = vmatprep.subr.bf16.mxu0 %v18234_v42  ;;  %11225 = vmatprep.subr.bf16.mxu1 %v18236_v43  ;;  %v18283_v43 = vcombine.low %v1297_v16, %v1305_v17  ;;  %v1384_v16 = vld [vmem:[%s21553_s18 + $0x1ed0] sm:$0xff]  ;;  %v1377_v17 = vld [vmem:[%s21553_s18 + $0x1e98] sm:$0xff] }
 0x305   : > { %v10295_v52 = vpop.f32.mrb[0].mxu0  ;;  %v10666_v57 = vpop.f32.mrb[0].mxu1 }
 0x306   : > { %v12911_v56 = vmul.f32 0.020408163, %v10295_v52  ;;  %v10297_v58 = vpop.f32.mrb[1].mxu0  ;;  %v12913_v61 = vmul.f32 0.020408163, %v10666_v57  ;;  %v10668_v63 = vpop.f32.mrb[1].mxu1  ;;  %v18297_v57 = vcombine.low %v1312_v26, %v1320_v27 }
 0x307   : > { %v12912_v62 = vmul.f32 0.020408163, %v10297_v58  ;;  %10855 = vmatpush1.bf16.msra.mxu0 %v18233_v49  ;;  %v10299_v0 = vpop.f32.mrb[2].mxu0  ;;  %v12914_v3 = vmul.f32 0.020408163, %v10668_v63  ;;  %11226 = vmatpush1.bf16.msra.mxu1 %v18235_v50  ;;  %v10670_v5 = vpop.f32.mrb[2].mxu1  ;;  %v18300_v49 = vcombine.high %v1313_v31, %v1321_v32 }
 0x308   : > { %12975 = vst [vmem:[%s22201_s10] sm:$0xff] %v12911_v56  ;;  %v12927_v4 = vmul.f32 0.020408163, %v10299_v0  ;;  %v10301_v6 = vpop.f32.mrb[3].mxu0  ;;  %10856 = vmatprep.subr.bf16.mxu0 %v18250_v51  ;;  %12977 = vst [vmem:[%s22201_s10 + $0x10] sm:$0xff] %v12913_v61  ;;  %v12929_v9 = vmul.f32 0.020408163, %v10670_v5  ;;  %11227 = vmatprep.subr.bf16.mxu1 %v18252_v53 }
 0x309   : > { %12976 = vst [vmem:[%s22201_s10 + $0x8] sm:$0xff] %v12912_v62  ;;  %v12928_v10 = vmul.f32 0.020408163, %v10301_v6  ;;  %v10672_v11 = vpop.f32.mrb[3].mxu1  ;;  %12978 = vst [vmem:[%s22201_s10 + $0x18] sm:$0xff] %v12914_v3  ;;  %v1336_v50 = vld [vmem:[%s21553_s18 + $0x1d50] sm:$0xff] }
 0x30a   : > { %12991 = vst [vmem:[%s22201_s10 + $0x80] sm:$0xff] %v12927_v4  ;;  %v22214_v14 = vpack.c.bf16 %v12927_v4, %v12911_v56  ;;  %v12930_v15 = vmul.f32 0.020408163, %v10672_v11  ;;  %12993 = vst [vmem:[%s22201_s10 + $0x90] sm:$0xff] %v12929_v9  ;;  %v22219_v18 = vpack.c.bf16 %v12929_v9, %v12913_v61  ;;  %v1329_v53 = vld [vmem:[%s21553_s18 + $0x1d18] sm:$0xff]  ;;  %v18314_v60 = vcombine.high %v1328_v38, %v1336_v50  ;;  %v1352_v63 = vld [vmem:[%s21553_s18 + $0x1dd0] sm:$0xff] }
 0x30b   : > { %12992 = vst [vmem:[%s22201_s10 + $0x88] sm:$0xff] %v12928_v10  ;;  %v22222_v19 = vpack.c.bf16 %v12928_v10, %v12912_v62  ;;  %10857 = vmatpush1.bf16.msra.mxu0 %v18249_v1  ;;  %11228 = vmatpush1.bf16.msra.mxu1 %v18251_v7  ;;  %v18316_v61 = vcombine.high %v1329_v53, %v1337_v54  ;;  %v1344_v62 = vld [vmem:[%s21553_s18 + $0x1d90] sm:$0xff]  ;;  %v1345_v0 = vld [vmem:[%s21553_s18 + $0x1d98] sm:$0xff] }
 0x30c   : > { %12994 = vst [vmem:[%s22201_s10 + $0x98] sm:$0xff] %v12930_v15  ;;  %v22226_v21 = vpack.c.bf16 %v12930_v15, %v12914_v3  ;;  %10858 = vmatprep.subr.bf16.mxu0 %v18266_v8  ;;  %11229 = vmatprep.subr.bf16.mxu1 %v18268_v12  ;;  %v1353_v1 = vld [vmem:[%s21553_s18 + $0x1dd8] sm:$0xff]  ;;  %v18313_v2 = vcombine.low %v1328_v38, %v1336_v50  ;;  %v1360_v6 = vld [vmem:[%s21553_s18 + $0x1e10] sm:$0xff] }
 0x30d   : > { %v10305_v24 = vpop.f32.mrb[4].mxu0  ;;  %v10676_v29 = vpop.f32.mrb[4].mxu1  ;;  %v18315_v3 = vcombine.low %v1329_v53, %v1337_v54  ;;  %v18330_v4 = vcombine.high %v1344_v62, %v1352_v63  ;;  %v18332_v5 = vcombine.high %v1345_v0, %v1353_v1  ;;  %v1368_v7 = vld [vmem:[%s21553_s18 + $0x1e50] sm:$0xff]  ;;  %v1361_v8 = vld [vmem:[%s21553_s18 + $0x1e18] sm:$0xff]  ;;  %v18329_v10 = vcombine.low %v1344_v62, %v1352_v63 }
 0x30e   : > { %v12943_v28 = vmul.f32 0.020408163, %v10305_v24  ;;  %v10307_v30 = vpop.f32.mrb[5].mxu0  ;;  %v12945_v33 = vmul.f32 0.020408163, %v10676_v29  ;;  %v10678_v35 = vpop.f32.mrb[5].mxu1  ;;  %v18331_v11 = vcombine.low %v1345_v0, %v1353_v1  ;;  %v18346_v12 = vcombine.high %v1360_v6, %v1368_v7 }
 0x30f   : > { %v12944_v34 = vmul.f32 0.020408163, %v10307_v30  ;;  %10859 = vmatpush1.bf16.msra.mxu0 %v18265_v20  ;;  %v10309_v36 = vpop.f32.mrb[6].mxu0  ;;  %v12946_v39 = vmul.f32 0.020408163, %v10678_v35  ;;  %11230 = vmatpush1.bf16.msra.mxu1 %v18267_v22  ;;  %v10680_v41 = vpop.f32.mrb[6].mxu1  ;;  %v18345_v22 = vcombine.low %v1360_v6, %v1368_v7 }
 0x310   : > { %13007 = vst [vmem:[%s22201_s10 + $0x100] sm:$0xff] %v12943_v28  ;;  %v12959_v40 = vmul.f32 0.020408163, %v10309_v36  ;;  %v10311_v42 = vpop.f32.mrb[7].mxu0  ;;  %10860 = vmatprep.subr.bf16.mxu0 %v18282_v23  ;;  %13009 = vst [vmem:[%s22201_s10 + $0x110] sm:$0xff] %v12945_v33  ;;  %v10682_v48 = vpop.f32.mrb[7].mxu1  ;;  %11231 = vmatprep.subr.bf16.mxu1 %v18284_v25 }
 0x311   : > { %13008 = vst [vmem:[%s22201_s10 + $0x108] sm:$0xff] %v12944_v34  ;;  %v12961_v45 = vmul.f32 0.020408163, %v10680_v41  ;;  %v12960_v47 = vmul.f32 0.020408163, %v10311_v42  ;;  %13010 = vst [vmem:[%s22201_s10 + $0x118] sm:$0xff] %v12946_v39 }
 0x312   : > { %13023 = vst [vmem:[%s22201_s10 + $0x180] sm:$0xff] %v12959_v40  ;;  %v22245_v51 = vpack.c.bf16 %v12959_v40, %v12943_v28  ;;  %v12962_v52 = vmul.f32 0.020408163, %v10682_v48  ;;  %v1369_v9 = vld [vmem:[%s21553_s18 + $0x1e58] sm:$0xff]  ;;  %v1376_v15 = vld [vmem:[%s21553_s18 + $0x1e90] sm:$0xff] }
 0x313   : > { %13025 = vst [vmem:[%s22201_s10 + $0x190] sm:$0xff] %v12961_v45  ;;  %v22250_v55 = vpack.c.bf16 %v12961_v45, %v12945_v33  ;;  %13024 = vst [vmem:[%s22201_s10 + $0x188] sm:$0xff] %v12960_v47  ;;  %v22253_v56 = vpack.c.bf16 %v12960_v47, %v12944_v34  ;;  %10861 = vmatpush1.bf16.msra.mxu0 %v18281_v37  ;;  %11232 = vmatpush1.bf16.msra.mxu1 %v18283_v43  ;;  %v1385_v20 = vld [vmem:[%s21553_s18 + $0x1ed8] sm:$0xff]  ;;  %v1392_v26 = vld [vmem:[%s21553_s18 + $0x1f10] sm:$0xff] }
 0x314   : > { %13026 = vst [vmem:[%s22201_s10 + $0x198] sm:$0xff] %v12962_v52  ;;  %v22256_v58 = vpack.c.bf16 %v12962_v52, %v12946_v39  ;;  %10862 = vmatprep.subr.bf16.mxu0 %v18298_v44  ;;  %11233 = vmatprep.subr.bf16.mxu1 %v18300_v49  ;;  %v18348_v13 = vcombine.high %v1361_v8, %v1369_v9  ;;  %v1400_v27 = vld [vmem:[%s21553_s18 + $0x1f50] sm:$0xff]  ;;  %v1393_v28 = vld [vmem:[%s21553_s18 + $0x1f18] sm:$0xff] }
 0x315   : > { %v18347_v23 = vcombine.low %v1361_v8, %v1369_v9  ;;  %v18362_v24 = vcombine.high %v1376_v15, %v1384_v16  ;;  %v18364_v25 = vcombine.high %v1377_v17, %v1385_v20  ;;  %v1401_v29 = vld [vmem:[%s21553_s18 + $0x1f58] sm:$0xff]  ;;  %v18361_v30 = vcombine.low %v1376_v15, %v1384_v16  ;;  %v1408_v34 = vld [vmem:[%s21553_s18 + $0x1f90] sm:$0xff] }
 0x316   : > { %v18363_v31 = vcombine.low %v1377_v17, %v1385_v20  ;;  %v18378_v32 = vcombine.high %v1392_v26, %v1400_v27  ;;  %v18380_v33 = vcombine.high %v1393_v28, %v1401_v29  ;;  %v1416_v35 = vld [vmem:[%s21553_s18 + $0x1fd0] sm:$0xff]  ;;  %v1409_v36 = vld [vmem:[%s21553_s18 + $0x1f98] sm:$0xff]  ;;  %v18377_v38 = vcombine.low %v1392_v26, %v1400_v27 }
 0x317   : > { %10863 = vmatpush1.bf16.msra.mxu0 %v18297_v57  ;;  %11234 = vmatpush1.bf16.msra.mxu1 %v18299_v59  ;;  %v1417_v37 = vld [vmem:[%s21553_s18 + $0x1fd8] sm:$0xff]  ;;  %v18379_v39 = vcombine.low %v1393_v28, %v1401_v29  ;;  %v18394_v40 = vcombine.high %v1408_v34, %v1416_v35  ;;  %v1424_v42 = vld [vmem:[%s21553_s18 + $0x2010] sm:$0xff]  ;;  %v18393_v47 = vcombine.low %v1408_v34, %v1416_v35 }
 0x318   : > { %10864 = vmatprep.subr.bf16.mxu0 %v18314_v60  ;;  %11235 = vmatprep.subr.bf16.mxu1 %v18316_v61  ;;  %v18396_v41 = vcombine.high %v1409_v36, %v1417_v37  ;;  %v1432_v43 = vld [vmem:[%s21553_s18 + $0x2050] sm:$0xff]  ;;  %v1425_v44 = vld [vmem:[%s21553_s18 + $0x2018] sm:$0xff]  ;;  %v18395_v48 = vcombine.low %v1409_v36, %v1417_v37 }
 0x319   : > { %v1433_v45 = vld [vmem:[%s21553_s18 + $0x2058] sm:$0xff]  ;;  %v18410_v49 = vcombine.high %v1424_v42, %v1432_v43  ;;  %v1440_v52 = vld [vmem:[%s21553_s18 + $0x2090] sm:$0xff]  ;;  %v18409_v59 = vcombine.low %v1424_v42, %v1432_v43 }
 0x31a   : > { %v18412_v50 = vcombine.high %v1425_v44, %v1433_v45  ;;  %v1448_v53 = vld [vmem:[%s21553_s18 + $0x20d0] sm:$0xff]  ;;  %v1441_v54 = vld [vmem:[%s21553_s18 + $0x2098] sm:$0xff]  ;;  %v18411_v60 = vcombine.low %v1425_v44, %v1433_v45 }
 0x31b   : > { %10865 = vmatpush1.bf16.msra.mxu0 %v18313_v2  ;;  %11236 = vmatpush1.bf16.msra.mxu1 %v18315_v3  ;;  %v1449_v57 = vld [vmem:[%s21553_s18 + $0x20d8] sm:$0xff]  ;;  %v18426_v61 = vcombine.high %v1440_v52, %v1448_v53  ;;  %v1456_v63 = vld [vmem:[%s21553_s18 + $0x2110] sm:$0xff] }
 0x31c   : > { %10866 = vmatprep.subr.bf16.mxu0 %v18330_v4  ;;  %11237 = vmatprep.subr.bf16.mxu1 %v18332_v5  ;;  %v18428_v62 = vcombine.high %v1441_v54, %v1449_v57  ;;  %v1464_v0 = vld [vmem:[%s21553_s18 + $0x2150] sm:$0xff]  ;;  %v20997_v1 = vld [vmem:[#allocation6 + $0x18] ss:$52 sps:$4 sm:$0xff]   ;;  %v18425_v4 = vcombine.low %v1440_v52, %v1448_v53  ;;  %v18427_v5 = vcombine.low %v1441_v54, %v1449_v57 }
 0x31d   : > { %v1457_v2 = vld [vmem:[%s21553_s18 + $0x2118] sm:$0xff]  ;;  %v18442_v6 = vcombine.high %v1456_v63, %v1464_v0  ;;  %v1472_v8 = vld [vmem:[%s21553_s18 + $0x2190] sm:$0xff] }
 0x31e   : > { %v1465_v3 = vld [vmem:[%s21553_s18 + $0x2158] sm:$0xff]  ;;  %v1480_v9 = vld [vmem:[%s21553_s18 + $0x21d0] sm:$0xff] }
 0x31f   : > { %10867 = vmatpush1.bf16.msra.mxu0 %v18329_v10  ;;  %11238 = vmatpush1.bf16.msra.mxu1 %v18331_v11  ;;  %v18444_v7 = vcombine.high %v1457_v2, %v1465_v3  ;;  %v20998_v10 = vld [vmem:[#allocation6 + $0x84] ss:$52 sps:$4 sm:$0xff]   ;;  %v18443_v15 = vcombine.low %v1457_v2, %v1465_v3  ;;  %v18458_v16 = vcombine.high %v1472_v8, %v1480_v9  ;;  %v1488_v20 = vld [vmem:[%s21553_s18 + $0x2210] sm:$0xff] }
 0x320   : > { %10868 = vmatprep.subr.bf16.mxu0 %v18346_v12  ;;  %11239 = vmatprep.subr.bf16.mxu1 %v18348_v13  ;;  %v1473_v11 = vld [vmem:[%s21553_s18 + $0x2198] sm:$0xff]  ;;  %v18441_v13 = vcombine.low %v1456_v63, %v1464_v0  ;;  %v18457_v26 = vcombine.low %v1472_v8, %v1480_v9 }
 0x321   : > { %v1481_v12 = vld [vmem:[%s21553_s18 + $0x21d8] sm:$0xff] }
 0x322   : > { %v18460_v17 = vcombine.high %v1473_v11, %v1481_v12  ;;  %v18459_v27 = vcombine.low %v1473_v11, %v1481_v12  ;;  %v1513_v34 = vld [vmem:[%s21553_s18 + $0x22d8] sm:$0xff]  ;;  %v1584_v12 = vld [vmem:[%s21553_s18 + $0x2510] sm:$0xff] }
 0x323   : > { %10869 = vmatpush1.bf16.msra.mxu0 %v18345_v22  ;;  %11240 = vmatpush1.bf16.msra.mxu1 %v18347_v23  ;;  %v1496_v22 = vld [vmem:[%s21553_s18 + $0x2250] sm:$0xff]  ;;  %v1489_v23 = vld [vmem:[%s21553_s18 + $0x2218] sm:$0xff] }
 0x324   : > { %10870 = vmatprep.subr.bf16.mxu0 %v18362_v24  ;;  %11241 = vmatprep.subr.bf16.mxu1 %v18364_v25  ;;  %v1497_v24 = vld [vmem:[%s21553_s18 + $0x2258] sm:$0xff]  ;;  %v20999_v25 = vld [vmem:[#allocation6 + $0x80] ss:$52 sps:$4 sm:$0xff]   ;;  %v18474_v28 = vcombine.high %v1488_v20, %v1496_v22  ;;  %v18473_v35 = vcombine.low %v1488_v20, %v1496_v22 }
 0x325   : > { %v18476_v29 = vcombine.high %v1489_v23, %v1497_v24  ;;  %v18475_v36 = vcombine.low %v1489_v23, %v1497_v24  ;;  %v1529_v42 = vld [vmem:[%s21553_s18 + $0x2358] sm:$0xff]  ;;  %v1600_v24 = vld [vmem:[%s21553_s18 + $0x2590] sm:$0xff] }
 0x326   : > { %v1545_v52 = vld [vmem:[%s21553_s18 + $0x23d8] sm:$0xff] }
 0x327   : > { %10871 = vmatpush1.bf16.msra.mxu0 %v18361_v30  ;;  %11242 = vmatpush1.bf16.msra.mxu1 %v18363_v31  ;;  %v1504_v30 = vld [vmem:[%s21553_s18 + $0x2290] sm:$0xff]  ;;  %v1561_v63 = vld [vmem:[%s21553_s18 + $0x2458] sm:$0xff] }
 0x328   : > { %10872 = vmatprep.subr.bf16.mxu0 %v18378_v32  ;;  %11243 = vmatprep.subr.bf16.mxu1 %v18380_v33  ;;  %v1512_v31 = vld [vmem:[%s21553_s18 + $0x22d0] sm:$0xff]  ;;  %v21000_v32 = vld [vmem:[#allocation6 + $0x24] ss:$52 sps:$4 sm:$0xff]  }
 0x329   : > { %v1505_v33 = vld [vmem:[%s21553_s18 + $0x2298] sm:$0xff]  ;;  %v18490_v37 = vcombine.high %v1504_v30, %v1512_v31  ;;  %v18489_v43 = vcombine.low %v1504_v30, %v1512_v31 }
 0x32a   : > { %v18491_v44 = vcombine.low %v1505_v33, %v1513_v34 }
 0x32b   : > { %10873 = vmatpush1.bf16.msra.mxu0 %v18377_v38  ;;  %11244 = vmatpush1.bf16.msra.mxu1 %v18379_v39  ;;  %v18492_v38 = vcombine.high %v1505_v33, %v1513_v34  ;;  %v1520_v39 = vld [vmem:[%s21553_s18 + $0x2310] sm:$0xff]  ;;  %v1617_v34 = vld [vmem:[%s21553_s18 + $0x2618] sm:$0xff] }
 0x32c   : > { %10874 = vmatprep.subr.bf16.mxu0 %v18394_v40  ;;  %11245 = vmatprep.subr.bf16.mxu1 %v18396_v41  ;;  %v1528_v40 = vld [vmem:[%s21553_s18 + $0x2350] sm:$0xff]  ;;  %v1521_v41 = vld [vmem:[%s21553_s18 + $0x2318] sm:$0xff] }
 0x32d   : > { %v18506_v45 = vcombine.high %v1520_v39, %v1528_v40  ;;  %v18505_v53 = vcombine.low %v1520_v39, %v1528_v40  ;;  %v18507_v54 = vcombine.low %v1521_v41, %v1529_v42  ;;  %v1624_v33 = vld [vmem:[%s21553_s18 + $0x2650] sm:$0xff] }
 0x32e   : > { %v1632_v40 = vld [vmem:[%s21553_s18 + $0x2690] sm:$0xff] }
 0x32f   : > { %10875 = vmatpush1.bf16.msra.mxu0 %v18393_v47  ;;  %11246 = vmatpush1.bf16.msra.mxu1 %v18395_v48  ;;  %v18508_v47 = vcombine.high %v1521_v41, %v1529_v42  ;;  %v1536_v48 = vld [vmem:[%s21553_s18 + $0x2390] sm:$0xff]  ;;  %v1633_v42 = vld [vmem:[%s21553_s18 + $0x2698] sm:$0xff] }
 0x330   : > { %10897 = vmatprep.subr.bf16.mxu0 %v18410_v49  ;;  %11268 = vmatprep.subr.bf16.mxu1 %v18412_v50  ;;  %v1544_v49 = vld [vmem:[%s21553_s18 + $0x23d0] sm:$0xff]  ;;  %v1537_v50 = vld [vmem:[%s21553_s18 + $0x2398] sm:$0xff] }
 0x331   : > { %v18522_v57 = vcombine.high %v1536_v48, %v1544_v49  ;;  %v18521_v0 = vcombine.low %v1536_v48, %v1544_v49  ;;  %v1640_v41 = vld [vmem:[%s21553_s18 + $0x26d0] sm:$0xff] }
 0x332   : > { %10877 = vmatmul.mubr.bf16.vlgmr.msra.gmra.mrb[8].mxu0 %v20997_v1  ;;  %11248 = vmatmul.mubr.bf16.vlgmr.msra.gmra.mrb[8].mxu1 %v20997_v1  ;;  %v18523_v1 = vcombine.low %v1537_v50, %v1545_v52  ;;  %v1648_v49 = vld [vmem:[%s21553_s18 + $0x2710] sm:$0xff] }
 0x333   : > { %10898 = vmatpush1.bf16.msra.mxu0 %v18409_v59  ;;  %11269 = vmatpush1.bf16.msra.mxu1 %v18411_v60  ;;  %v18524_v59 = vcombine.high %v1537_v50, %v1545_v52  ;;  %v1552_v60 = vld [vmem:[%s21553_s18 + $0x2410] sm:$0xff]  ;;  %v1649_v52 = vld [vmem:[%s21553_s18 + $0x2718] sm:$0xff] }
 0x334   : > { %10899 = vmatprep.subr.bf16.mxu0 %v18426_v61  ;;  %11270 = vmatprep.subr.bf16.mxu1 %v18428_v62  ;;  %v1560_v61 = vld [vmem:[%s21553_s18 + $0x2450] sm:$0xff]  ;;  %v1553_v62 = vld [vmem:[%s21553_s18 + $0x2418] sm:$0xff] }
 0x335   : > { %10886 = vmatprep.mubr.bf16.mxu0 %v20998_v10  ;;  %11257 = vmatprep.mubr.bf16.mxu1 %v20998_v10  ;;  %v18538_v2 = vcombine.high %v1552_v60, %v1560_v61  ;;  %v18540_v3 = vcombine.high %v1553_v62, %v1561_v63  ;;  %v18537_v8 = vcombine.low %v1552_v60, %v1560_v61  ;;  %v1656_v50 = vld [vmem:[%s21553_s18 + $0x2750] sm:$0xff] }
 0x336   : > { %v18539_v9 = vcombine.low %v1553_v62, %v1561_v63  ;;  %v1664_v61 = vld [vmem:[%s21553_s18 + $0x2790] sm:$0xff]  ;;  %v1665_v63 = vld [vmem:[%s21553_s18 + $0x2798] sm:$0xff] }
 0x337   : > { %10900 = vmatpush1.bf16.msra.mxu0 %v18425_v4  ;;  %11271 = vmatpush1.bf16.msra.mxu1 %v18427_v5  ;;  %v1568_v4 = vld [vmem:[%s21553_s18 + $0x2490] sm:$0xff] }
 0x338   : > { %10901 = vmatprep.subr.bf16.mxu0 %v18442_v6  ;;  %11272 = vmatprep.subr.bf16.mxu1 %v18444_v7  ;;  %v1576_v5 = vld [vmem:[%s21553_s18 + $0x24d0] sm:$0xff]  ;;  %v1569_v6 = vld [vmem:[%s21553_s18 + $0x2498] sm:$0xff] }
 0x339   : > { %v1577_v7 = vld [vmem:[%s21553_s18 + $0x24d8] sm:$0xff]  ;;  %v18554_v10 = vcombine.high %v1568_v4, %v1576_v5  ;;  %v1672_v62 = vld [vmem:[%s21553_s18 + $0x27d0] sm:$0xff] }
 0x33a   : > { %10887 = vmatmul.mubr.bf16.gmra.mrb[12].mxu0 %v20999_v25  ;;  %11258 = vmatmul.mubr.bf16.gmra.mrb[12].mxu1 %v20999_v25  ;;  %v18556_v11 = vcombine.high %v1569_v6, %v1577_v7  ;;  %v18555_v20 = vcombine.low %v1569_v6, %v1577_v7  ;;  %v1608_v25 = vld [vmem:[%s21553_s18 + $0x25d0] sm:$0xff]  ;;  %v1681_v7 = vld [vmem:[%s21553_s18 + $0x2818] sm:$0xff] }
 0x33b   : > { %10902 = vmatpush1.bf16.msra.mxu0 %v18441_v13  ;;  %11273 = vmatpush1.bf16.msra.mxu1 %v18443_v15  ;;  %v1592_v13 = vld [vmem:[%s21553_s18 + $0x2550] sm:$0xff]  ;;  %v1585_v15 = vld [vmem:[%s21553_s18 + $0x2518] sm:$0xff]  ;;  %v18586_v30 = vcombine.high %v1600_v24, %v1608_v25 }
 0x33c   : > { %10903 = vmatprep.subr.bf16.mxu0 %v18458_v16  ;;  %11274 = vmatprep.subr.bf16.mxu1 %v18460_v17  ;;  %v1593_v16 = vld [vmem:[%s21553_s18 + $0x2558] sm:$0xff]  ;;  %v18553_v17 = vcombine.low %v1568_v4, %v1576_v5  ;;  %v18570_v22 = vcombine.high %v1584_v12, %v1592_v13  ;;  %v1680_v5 = vld [vmem:[%s21553_s18 + $0x2810] sm:$0xff] }
 0x33d   : > { %10929 = vmatprep.mubr.bf16.mxu0 %v21000_v32  ;;  %11300 = vmatprep.mubr.bf16.mxu1 %v21000_v32  ;;  %v18572_v23 = vcombine.high %v1585_v15, %v1593_v16  ;;  %v1616_v32 = vld [vmem:[%s21553_s18 + $0x2610] sm:$0xff] }
 0x33e   : > { %v1688_v6 = vld [vmem:[%s21553_s18 + $0x2850] sm:$0xff] }
 0x33f   : > { %10904 = vmatpush1.bf16.msra.mxu0 %v18457_v26  ;;  %11275 = vmatpush1.bf16.msra.mxu1 %v18459_v27  ;;  %v1601_v26 = vld [vmem:[%s21553_s18 + $0x2598] sm:$0xff] }
 0x340   : > { %10905 = vmatprep.subr.bf16.mxu0 %v18474_v28  ;;  %11276 = vmatprep.subr.bf16.mxu1 %v18476_v29  ;;  %v1609_v27 = vld [vmem:[%s21553_s18 + $0x25d8] sm:$0xff]  ;;  %v18569_v28 = vcombine.low %v1584_v12, %v1592_v13  ;;  %v18571_v29 = vcombine.low %v1585_v15, %v1593_v16  ;;  %v1696_v13 = vld [vmem:[%s21553_s18 + $0x2890] sm:$0xff] }
 0x341   : > { %v18588_v31 = vcombine.high %v1601_v26, %v1609_v27  ;;  %v1704_v15 = vld [vmem:[%s21553_s18 + $0x28d0] sm:$0xff]  ;;  %v1697_v16 = vld [vmem:[%s21553_s18 + $0x2898] sm:$0xff] }
 0x343   : > { %10906 = vmatpush1.bf16.msra.mxu0 %v18473_v35  ;;  %11277 = vmatpush1.bf16.msra.mxu1 %v18475_v36  ;;  %v1625_v35 = vld [vmem:[%s21553_s18 + $0x2658] sm:$0xff]  ;;  %v18585_v36 = vcombine.low %v1600_v24, %v1608_v25  ;;  %v1712_v25 = vld [vmem:[%s21553_s18 + $0x2910] sm:$0xff] }
 0x344   : > { %10907 = vmatprep.subr.bf16.mxu0 %v18490_v37  ;;  %11278 = vmatprep.subr.bf16.mxu1 %v18492_v38  ;;  %v18587_v37 = vcombine.low %v1601_v26, %v1609_v27  ;;  %v18602_v38 = vcombine.high %v1616_v32, %v1624_v33  ;;  %v18604_v39 = vcombine.high %v1617_v34, %v1625_v35  ;;  %v1720_v26 = vld [vmem:[%s21553_s18 + $0x2950] sm:$0xff] }
 0x345   : > { %v21001_v27 = vld [vmem:[#allocation6 + $0x20] ss:$52 sps:$4 sm:$0xff]  }
 0x347   : > { %10908 = vmatpush1.bf16.msra.mxu0 %v18489_v43  ;;  %11279 = vmatpush1.bf16.msra.mxu1 %v18491_v44  ;;  %v1641_v43 = vld [vmem:[%s21553_s18 + $0x26d8] sm:$0xff]  ;;  %v18601_v44 = vcombine.low %v1616_v32, %v1624_v33  ;;  %v18698_v32 = vcombine.high %v1712_v25, %v1720_v26 }
 0x348   : > { %10909 = vmatprep.subr.bf16.mxu0 %v18506_v45  ;;  %11280 = vmatprep.subr.bf16.mxu1 %v18508_v47  ;;  %v18603_v45 = vcombine.low %v1617_v34, %v1625_v35  ;;  %v18618_v47 = vcombine.high %v1632_v40, %v1640_v41  ;;  %v18620_v48 = vcombine.high %v1633_v42, %v1641_v43  ;;  %v1728_v34 = vld [vmem:[%s21553_s18 + $0x2990] sm:$0xff] }
 0x349   : > { %v1736_v35 = vld [vmem:[%s21553_s18 + $0x29d0] sm:$0xff] }
 0x34b   : > { %10910 = vmatpush1.bf16.msra.mxu0 %v18505_v53  ;;  %11281 = vmatpush1.bf16.msra.mxu1 %v18507_v54  ;;  %v1657_v53 = vld [vmem:[%s21553_s18 + $0x2758] sm:$0xff]  ;;  %v18617_v54 = vcombine.low %v1632_v40, %v1640_v41  ;;  %v18714_v41 = vcombine.high %v1728_v34, %v1736_v35 }
 0x34c   : > { %10911 = vmatprep.subr.bf16.mxu0 %v18522_v57  ;;  %11282 = vmatprep.subr.bf16.mxu1 %v18524_v59  ;;  %v18619_v57 = vcombine.low %v1633_v42, %v1641_v43  ;;  %v18634_v59 = vcombine.high %v1648_v49, %v1656_v50  ;;  %v18636_v60 = vcombine.high %v1649_v52, %v1657_v53  ;;  %v1744_v43 = vld [vmem:[%s21553_s18 + $0x2a10] sm:$0xff] }
 0x34f   : > { %10912 = vmatpush1.bf16.msra.mxu0 %v18521_v0  ;;  %11283 = vmatpush1.bf16.msra.mxu1 %v18523_v1  ;;  %v1673_v0 = vld [vmem:[%s21553_s18 + $0x27d8] sm:$0xff]  ;;  %v18633_v1 = vcombine.low %v1648_v49, %v1656_v50  ;;  %v18713_v49 = vcombine.low %v1728_v34, %v1736_v35 }
 0x350   : > { %10913 = vmatprep.subr.bf16.mxu0 %v18538_v2  ;;  %11284 = vmatprep.subr.bf16.mxu1 %v18540_v3  ;;  %v18635_v2 = vcombine.low %v1649_v52, %v1657_v53  ;;  %v18650_v3 = vcombine.high %v1664_v61, %v1672_v62  ;;  %v18652_v4 = vcombine.high %v1665_v63, %v1673_v0 }
 0x353   : > { %10914 = vmatpush1.bf16.msra.mxu0 %v18537_v8  ;;  %11285 = vmatpush1.bf16.msra.mxu1 %v18539_v9  ;;  %v1689_v8 = vld [vmem:[%s21553_s18 + $0x2858] sm:$0xff]  ;;  %v18649_v9 = vcombine.low %v1664_v61, %v1672_v62 }
 0x354   : > { %10915 = vmatprep.subr.bf16.mxu0 %v18554_v10  ;;  %11286 = vmatprep.subr.bf16.mxu1 %v18556_v11  ;;  %v18651_v10 = vcombine.low %v1665_v63, %v1673_v0  ;;  %v18666_v11 = vcombine.high %v1680_v5, %v1688_v6  ;;  %v18668_v12 = vcombine.high %v1681_v7, %v1689_v8  ;;  %v1769_v61 = vld [vmem:[%s21553_s18 + $0x2ad8] sm:$0xff] }
 0x357   : > { %10916 = vmatpush1.bf16.msra.mxu0 %v18553_v17  ;;  %11287 = vmatpush1.bf16.msra.mxu1 %v18555_v20  ;;  %v1705_v17 = vld [vmem:[%s21553_s18 + $0x28d8] sm:$0xff]  ;;  %v18665_v20 = vcombine.low %v1680_v5, %v1688_v6 }
 0x358   : > { %10917 = vmatprep.subr.bf16.mxu0 %v18570_v22  ;;  %11288 = vmatprep.subr.bf16.mxu1 %v18572_v23  ;;  %v18667_v22 = vcombine.low %v1681_v7, %v1689_v8  ;;  %v18682_v23 = vcombine.high %v1696_v13, %v1704_v15  ;;  %v18684_v24 = vcombine.high %v1697_v16, %v1705_v17  ;;  %v1785_v5 = vld [vmem:[%s21553_s18 + $0x2b58] sm:$0xff] }
 0x35b   : > { %10918 = vmatpush1.bf16.msra.mxu0 %v18569_v28  ;;  %11289 = vmatpush1.bf16.msra.mxu1 %v18571_v29  ;;  %v1713_v28 = vld [vmem:[%s21553_s18 + $0x2918] sm:$0xff] }
 0x35c   : > { %10919 = vmatprep.subr.bf16.mxu0 %v18586_v30  ;;  %11290 = vmatprep.subr.bf16.mxu1 %v18588_v31  ;;  %v1721_v29 = vld [vmem:[%s21553_s18 + $0x2958] sm:$0xff]  ;;  %v18681_v30 = vcombine.low %v1696_v13, %v1704_v15  ;;  %v18683_v31 = vcombine.low %v1697_v16, %v1705_v17 }
 0x35d   : > { %v18700_v33 = vcombine.high %v1713_v28, %v1721_v29  ;;  %v18699_v40 = vcombine.low %v1713_v28, %v1721_v29  ;;  %v1801_v13 = vld [vmem:[%s21553_s18 + $0x2bd8] sm:$0xff] }
 0x35f   : > { %10920 = vmatpush1.bf16.msra.mxu0 %v18585_v36  ;;  %11291 = vmatpush1.bf16.msra.mxu1 %v18587_v37  ;;  %v21002_v36 = vld [vmem:[#allocation6 + $0x8c] ss:$52 sps:$4 sm:$0xff]   ;;  %v1729_v37 = vld [vmem:[%s21553_s18 + $0x2998] sm:$0xff] }
 0x360   : > { %10921 = vmatprep.subr.bf16.mxu0 %v18602_v38  ;;  %11292 = vmatprep.subr.bf16.mxu1 %v18604_v39  ;;  %v1737_v38 = vld [vmem:[%s21553_s18 + $0x29d8] sm:$0xff]  ;;  %v18697_v39 = vcombine.low %v1712_v25, %v1720_v26 }
 0x361   : > { %v18716_v42 = vcombine.high %v1729_v37, %v1737_v38  ;;  %v18715_v50 = vcombine.low %v1729_v37, %v1737_v38  ;;  %v1817_v25 = vld [vmem:[%s21553_s18 + $0x2c58] sm:$0xff]  ;;  %v1840_v38 = vld [vmem:[%s21553_s18 + $0x2d10] sm:$0xff] }
 0x363   : > { %10922 = vmatpush1.bf16.msra.mxu0 %v18601_v44  ;;  %11293 = vmatpush1.bf16.msra.mxu1 %v18603_v45  ;;  %v1752_v44 = vld [vmem:[%s21553_s18 + $0x2a50] sm:$0xff]  ;;  %v1745_v45 = vld [vmem:[%s21553_s18 + $0x2a18] sm:$0xff] }
 0x364   : > { %10923 = vmatprep.subr.bf16.mxu0 %v18618_v47  ;;  %11294 = vmatprep.subr.bf16.mxu1 %v18620_v48  ;;  %v1753_v47 = vld [vmem:[%s21553_s18 + $0x2a58] sm:$0xff]  ;;  %v18730_v52 = vcombine.high %v1744_v43, %v1752_v44  ;;  %v18729_v62 = vcombine.low %v1744_v43, %v1752_v44 }
 0x365   : > { %v21003_v48 = vld [vmem:[#allocation6 + $0x88] ss:$52 sps:$4 sm:$0xff]   ;;  %v18732_v53 = vcombine.high %v1745_v45, %v1753_v47  ;;  %v18731_v63 = vcombine.low %v1745_v45, %v1753_v47  ;;  %v1856_v47 = vld [vmem:[%s21553_s18 + $0x2d90] sm:$0xff] }
 0x367   : > { %10924 = vmatpush1.bf16.msra.mxu0 %v18617_v54  ;;  %11295 = vmatpush1.bf16.msra.mxu1 %v18619_v57  ;;  %v1760_v54 = vld [vmem:[%s21553_s18 + $0x2a90] sm:$0xff] }
 0x368   : > { %10925 = vmatprep.subr.bf16.mxu0 %v18634_v59  ;;  %11296 = vmatprep.subr.bf16.mxu1 %v18636_v60  ;;  %v1768_v57 = vld [vmem:[%s21553_s18 + $0x2ad0] sm:$0xff]  ;;  %v21004_v59 = vld [vmem:[#allocation6 + $0x2c] ss:$52 sps:$4 sm:$0xff]   ;;  %v1761_v60 = vld [vmem:[%s21553_s18 + $0x2a98] sm:$0xff] }
 0x369   : > { %v18746_v0 = vcombine.high %v1760_v54, %v1768_v57  ;;  %v18745_v6 = vcombine.low %v1760_v54, %v1768_v57  ;;  %v18747_v7 = vcombine.low %v1761_v60, %v1769_v61 }
 0x36b   : > { %10926 = vmatpush1.bf16.msra.mxu0 %v18633_v1  ;;  %11297 = vmatpush1.bf16.msra.mxu1 %v18635_v2  ;;  %v18748_v1 = vcombine.high %v1761_v60, %v1769_v61  ;;  %v1776_v2 = vld [vmem:[%s21553_s18 + $0x2b10] sm:$0xff]  ;;  %v1873_v61 = vld [vmem:[%s21553_s18 + $0x2e18] sm:$0xff] }
 0x36c   : > { %10927 = vmatprep.subr.bf16.mxu0 %v18650_v3  ;;  %11298 = vmatprep.subr.bf16.mxu1 %v18652_v4  ;;  %v1784_v3 = vld [vmem:[%s21553_s18 + $0x2b50] sm:$0xff]  ;;  %v1777_v4 = vld [vmem:[%s21553_s18 + $0x2b18] sm:$0xff] }
 0x36d   : > { %v18762_v8 = vcombine.high %v1776_v2, %v1784_v3  ;;  %v18761_v15 = vcombine.low %v1776_v2, %v1784_v3  ;;  %v18763_v16 = vcombine.low %v1777_v4, %v1785_v5  ;;  %v1880_v60 = vld [vmem:[%s21553_s18 + $0x2e50] sm:$0xff] }
 0x36e   : > { %v1888_v3 = vld [vmem:[%s21553_s18 + $0x2e90] sm:$0xff] }
 0x36f   : > { %10928 = vmatpush1.bf16.msra.mxu0 %v18649_v9  ;;  %11299 = vmatpush1.bf16.msra.mxu1 %v18651_v10  ;;  %v18764_v9 = vcombine.high %v1777_v4, %v1785_v5  ;;  %v1792_v10 = vld [vmem:[%s21553_s18 + $0x2b90] sm:$0xff]  ;;  %v1889_v5 = vld [vmem:[%s21553_s18 + $0x2e98] sm:$0xff] }
 0x370   : > { %10950 = vmatprep.subr.bf16.mxu0 %v18666_v11  ;;  %11321 = vmatprep.subr.bf16.mxu1 %v18668_v12  ;;  %v1800_v11 = vld [vmem:[%s21553_s18 + $0x2bd0] sm:$0xff]  ;;  %v1793_v12 = vld [vmem:[%s21553_s18 + $0x2b98] sm:$0xff] }
 0x371   : > { %v18778_v17 = vcombine.high %v1792_v10, %v1800_v11  ;;  %v18777_v26 = vcombine.low %v1792_v10, %v1800_v11  ;;  %v1896_v4 = vld [vmem:[%s21553_s18 + $0x2ed0] sm:$0xff] }
 0x372   : > { %10930 = vmatmul.mubr.bf16.vlgmr.msra.gmra.mrb[8].mxu0 %v21001_v27  ;;  %11301 = vmatmul.mubr.bf16.vlgmr.msra.gmra.mrb[8].mxu1 %v21001_v27  ;;  %v18779_v27 = vcombine.low %v1793_v12, %v1801_v13  ;;  %v1904_v11 = vld [vmem:[%s21553_s18 + $0x2f10] sm:$0xff] }
 0x373   : > { %10951 = vmatpush1.bf16.msra.mxu0 %v18665_v20  ;;  %11322 = vmatpush1.bf16.msra.mxu1 %v18667_v22  ;;  %v18780_v20 = vcombine.high %v1793_v12, %v1801_v13  ;;  %v1808_v22 = vld [vmem:[%s21553_s18 + $0x2c10] sm:$0xff]  ;;  %v1905_v13 = vld [vmem:[%s21553_s18 + $0x2f18] sm:$0xff] }
 0x374   : > { %10952 = vmatprep.subr.bf16.mxu0 %v18682_v23  ;;  %11323 = vmatprep.subr.bf16.mxu1 %v18684_v24  ;;  %v1816_v23 = vld [vmem:[%s21553_s18 + $0x2c50] sm:$0xff]  ;;  %v1809_v24 = vld [vmem:[%s21553_s18 + $0x2c18] sm:$0xff] }
 0x375   : > { %10939 = vmatprep.mubr.bf16.mxu0 %v21002_v36  ;;  %11310 = vmatprep.mubr.bf16.mxu1 %v21002_v36  ;;  %v18794_v28 = vcombine.high %v1808_v22, %v1816_v23  ;;  %v18796_v29 = vcombine.high %v1809_v24, %v1817_v25  ;;  %v18793_v34 = vcombine.low %v1808_v22, %v1816_v23  ;;  %v1912_v12 = vld [vmem:[%s21553_s18 + $0x2f50] sm:$0xff] }
 0x376   : > { %v18795_v35 = vcombine.low %v1809_v24, %v1817_v25  ;;  %v1920_v23 = vld [vmem:[%s21553_s18 + $0x2f90] sm:$0xff]  ;;  %v1921_v25 = vld [vmem:[%s21553_s18 + $0x2f98] sm:$0xff] }
 0x377   : > { %10953 = vmatpush1.bf16.msra.mxu0 %v18681_v30  ;;  %11324 = vmatpush1.bf16.msra.mxu1 %v18683_v31  ;;  %v1824_v30 = vld [vmem:[%s21553_s18 + $0x2c90] sm:$0xff] }
 0x378   : > { %10954 = vmatprep.subr.bf16.mxu0 %v18698_v32  ;;  %11325 = vmatprep.subr.bf16.mxu1 %v18700_v33  ;;  %v1832_v31 = vld [vmem:[%s21553_s18 + $0x2cd0] sm:$0xff]  ;;  %v1825_v32 = vld [vmem:[%s21553_s18 + $0x2c98] sm:$0xff] }
 0x379   : > { %v1833_v33 = vld [vmem:[%s21553_s18 + $0x2cd8] sm:$0xff]  ;;  %v18810_v36 = vcombine.high %v1824_v30, %v1832_v31  ;;  %v1928_v24 = vld [vmem:[%s21553_s18 + $0x2fd0] sm:$0xff] }
 0x37a   : > { %10940 = vmatmul.mubr.bf16.gmra.mrb[12].mxu0 %v21003_v48  ;;  %11311 = vmatmul.mubr.bf16.gmra.mrb[12].mxu1 %v21003_v48  ;;  %v18812_v37 = vcombine.high %v1825_v32, %v1833_v33  ;;  %v18811_v43 = vcombine.low %v1825_v32, %v1833_v33  ;;  %v1864_v48 = vld [vmem:[%s21553_s18 + $0x2dd0] sm:$0xff]  ;;  %v1937_v33 = vld [vmem:[%s21553_s18 + $0x3018] sm:$0xff] }
 0x37b   : > { %10955 = vmatpush1.bf16.msra.mxu0 %v18697_v39  ;;  %11326 = vmatpush1.bf16.msra.mxu1 %v18699_v40  ;;  %v1848_v39 = vld [vmem:[%s21553_s18 + $0x2d50] sm:$0xff]  ;;  %v1841_v40 = vld [vmem:[%s21553_s18 + $0x2d18] sm:$0xff]  ;;  %v18842_v54 = vcombine.high %v1856_v47, %v1864_v48 }
 0x37c   : > { %10956 = vmatprep.subr.bf16.mxu0 %v18714_v41  ;;  %11327 = vmatprep.subr.bf16.mxu1 %v18716_v42  ;;  %v1849_v41 = vld [vmem:[%s21553_s18 + $0x2d58] sm:$0xff]  ;;  %v18809_v42 = vcombine.low %v1824_v30, %v1832_v31  ;;  %v18826_v44 = vcombine.high %v1840_v38, %v1848_v39  ;;  %v1936_v31 = vld [vmem:[%s21553_s18 + $0x3010] sm:$0xff] }
 0x37d   : > { %10982 = vmatprep.mubr.bf16.mxu0 %v21004_v59  ;;  %11353 = vmatprep.mubr.bf16.mxu1 %v21004_v59  ;;  %v18828_v45 = vcombine.high %v1841_v40, %v1849_v41  ;;  %v1872_v59 = vld [vmem:[%s21553_s18 + $0x2e10] sm:$0xff] }
 0x37e   : > { %v1944_v32 = vld [vmem:[%s21553_s18 + $0x3050] sm:$0xff] }
 0x37f   : > { %10957 = vmatpush1.bf16.msra.mxu0 %v18713_v49  ;;  %11328 = vmatpush1.bf16.msra.mxu1 %v18715_v50  ;;  %v1857_v49 = vld [vmem:[%s21553_s18 + $0x2d98] sm:$0xff] }
 0x380   : > { %10958 = vmatprep.subr.bf16.mxu0 %v18730_v52  ;;  %11329 = vmatprep.subr.bf16.mxu1 %v18732_v53  ;;  %v1865_v50 = vld [vmem:[%s21553_s18 + $0x2dd8] sm:$0xff]  ;;  %v18825_v52 = vcombine.low %v1840_v38, %v1848_v39  ;;  %v18827_v53 = vcombine.low %v1841_v40, %v1849_v41  ;;  %v1952_v39 = vld [vmem:[%s21553_s18 + $0x3090] sm:$0xff]  ;;  %v18921_v41 = vcombine.low %v1936_v31, %v1944_v32 }
 0x381   : > { %v18844_v57 = vcombine.high %v1857_v49, %v1865_v50  ;;  %v1960_v40 = vld [vmem:[%s21553_s18 + $0x30d0] sm:$0xff] }
 0x383   : > { %10959 = vmatpush1.bf16.msra.mxu0 %v18729_v62  ;;  %11330 = vmatpush1.bf16.msra.mxu1 %v18731_v63  ;;  %v1881_v62 = vld [vmem:[%s21553_s18 + $0x2e58] sm:$0xff]  ;;  %v18841_v63 = vcombine.low %v1856_v47, %v1864_v48  ;;  %v402_v47 = vld [vmem:[%s21553_s18 + $0x20] sm:$0xff] }
 0x384   : > { %10960 = vmatprep.subr.bf16.mxu0 %v18746_v0  ;;  %11331 = vmatprep.subr.bf16.mxu1 %v18748_v1  ;;  %v18843_v0 = vcombine.low %v1857_v49, %v1865_v50  ;;  %v18858_v1 = vcombine.high %v1872_v59, %v1880_v60  ;;  %v18860_v2 = vcombine.high %v1873_v61, %v1881_v62  ;;  %v410_v48 = vld [vmem:[%s21553_s18 + $0x60] sm:$0xff]  ;;  %v21005_v49 = vld [vmem:[#allocation6 + $0x28] ss:$52 sps:$4 sm:$0xff]  }
 0x387   : > { %10961 = vmatpush1.bf16.msra.mxu0 %v18745_v6  ;;  %11332 = vmatpush1.bf16.msra.mxu1 %v18747_v7  ;;  %v1897_v6 = vld [vmem:[%s21553_s18 + $0x2ed8] sm:$0xff]  ;;  %v18857_v7 = vcombine.low %v1872_v59, %v1880_v60  ;;  %v17390_v60 = vcombine.high %v402_v47, %v410_v48 }
 0x388   : > { %10962 = vmatprep.subr.bf16.mxu0 %v18762_v8  ;;  %11333 = vmatprep.subr.bf16.mxu1 %v18764_v9  ;;  %v18859_v8 = vcombine.low %v1873_v61, %v1881_v62  ;;  %v18874_v9 = vcombine.high %v1888_v3, %v1896_v4  ;;  %v18876_v10 = vcombine.high %v1889_v5, %v1897_v6  ;;  %v21007_v62 = vld [vmem:[#allocation6 + $0x90] ss:$52 sps:$4 sm:$0xff]  }
 0x38b   : > { %10963 = vmatpush1.bf16.msra.mxu0 %v18761_v15  ;;  %11334 = vmatpush1.bf16.msra.mxu1 %v18763_v16  ;;  %v1913_v15 = vld [vmem:[%s21553_s18 + $0x2f58] sm:$0xff]  ;;  %v18873_v16 = vcombine.low %v1888_v3, %v1896_v4  ;;  %v17389_v3 = vcombine.low %v402_v47, %v410_v48  ;;  %v498_v47 = vld [vmem:[%s21553_s18 + $0x320] sm:$0xff] }
 0x38c   : > { %10964 = vmatprep.subr.bf16.mxu0 %v18778_v17  ;;  %11335 = vmatprep.subr.bf16.mxu1 %v18780_v20  ;;  %v18875_v17 = vcombine.low %v1889_v5, %v1897_v6  ;;  %v18890_v20 = vcombine.high %v1904_v11, %v1912_v12  ;;  %v18892_v22 = vcombine.high %v1905_v13, %v1913_v15  ;;  %v506_v48 = vld [vmem:[%s21553_s18 + $0x360] sm:$0xff] }
 0x38f   : > { %10965 = vmatpush1.bf16.msra.mxu0 %v18777_v26  ;;  %11336 = vmatpush1.bf16.msra.mxu1 %v18779_v27  ;;  %v1929_v26 = vld [vmem:[%s21553_s18 + $0x2fd8] sm:$0xff]  ;;  %v18889_v27 = vcombine.low %v1904_v11, %v1912_v12  ;;  %v443_v11 = vld [vmem:[%s21553_s18 + $0x168] sm:$0xff] }
 0x390   : > { %10966 = vmatprep.subr.bf16.mxu0 %v18794_v28  ;;  %11337 = vmatprep.subr.bf16.mxu1 %v18796_v29  ;;  %v18891_v28 = vcombine.low %v1905_v13, %v1913_v15  ;;  %v18906_v29 = vcombine.high %v1920_v23, %v1928_v24  ;;  %v18908_v30 = vcombine.high %v1921_v25, %v1929_v26 }
 0x393   : > { %10967 = vmatpush1.bf16.msra.mxu0 %v18793_v34  ;;  %11338 = vmatpush1.bf16.msra.mxu1 %v18795_v35  ;;  %v1945_v34 = vld [vmem:[%s21553_s18 + $0x3058] sm:$0xff]  ;;  %v18905_v35 = vcombine.low %v1920_v23, %v1928_v24  ;;  %v459_v23 = vld [vmem:[%s21553_s18 + $0x1e8] sm:$0xff] }
 0x394   : > { %10968 = vmatprep.subr.bf16.mxu0 %v18810_v36  ;;  %11339 = vmatprep.subr.bf16.mxu1 %v18812_v37  ;;  %v18907_v36 = vcombine.low %v1921_v25, %v1929_v26  ;;  %v18922_v37 = vcombine.high %v1936_v31, %v1944_v32  ;;  %v18924_v38 = vcombine.high %v1937_v33, %v1945_v34  ;;  %v467_v31 = vld [vmem:[%s21553_s18 + $0x228] sm:$0xff] }
 0x395   : > { %v475_v32 = vld [vmem:[%s21553_s18 + $0x268] sm:$0xff] }
 0x397   : > { %10969 = vmatpush1.bf16.msra.mxu0 %v18809_v42  ;;  %11340 = vmatpush1.bf16.msra.mxu1 %v18811_v43  ;;  %v1953_v42 = vld [vmem:[%s21553_s18 + $0x3098] sm:$0xff] }
 0x398   : > { %10970 = vmatprep.subr.bf16.mxu0 %v18826_v44  ;;  %11341 = vmatprep.subr.bf16.mxu1 %v18828_v45  ;;  %v1961_v43 = vld [vmem:[%s21553_s18 + $0x30d8] sm:$0xff]  ;;  %v18923_v44 = vcombine.low %v1937_v33, %v1945_v34  ;;  %v18938_v45 = vcombine.high %v1952_v39, %v1960_v40 }
 0x399   : > { %v18940_v50 = vcombine.high %v1953_v42, %v1961_v43  ;;  %v18939_v59 = vcombine.low %v1953_v42, %v1961_v43  ;;  %v17455_v43 = vcombine.low %v467_v31, %v475_v32 }
 0x39b   : > { %10971 = vmatpush1.bf16.msra.mxu0 %v18825_v52  ;;  %11342 = vmatpush1.bf16.msra.mxu1 %v18827_v53  ;;  %v403_v52 = vld [vmem:[%s21553_s18 + $0x28] sm:$0xff] }
 0x39c   : > { %10972 = vmatprep.subr.bf16.mxu0 %v18842_v54  ;;  %11343 = vmatprep.subr.bf16.mxu1 %v18844_v57  ;;  %v411_v53 = vld [vmem:[%s21553_s18 + $0x68] sm:$0xff]  ;;  %v18937_v54 = vcombine.low %v1952_v39, %v1960_v40  ;;  %v21010_v39 = vld [vmem:[#allocation6 + $0x4] ss:$52 sps:$4 sm:$0xff]  }
 0x39d   : > { %v21006_v57 = vld [vmem:[#allocation6 + $0x94] ss:$52 sps:$4 sm:$0xff]   ;;  %v17392_v61 = vcombine.high %v403_v52, %v411_v53  ;;  %v17391_v4 = vcombine.low %v403_v52, %v411_v53 }
 0x39e   : > { %v483_v40 = vld [vmem:[%s21553_s18 + $0x2a8] sm:$0xff] }
 0x39f   : > { %10973 = vmatpush1.bf16.msra.mxu0 %v18841_v63  ;;  %11344 = vmatpush1.bf16.msra.mxu1 %v18843_v0  ;;  %v418_v63 = vld [vmem:[%s21553_s18 + $0xa0] sm:$0xff] }
 0x3a0   : > { %10974 = vmatprep.subr.bf16.mxu0 %v18858_v1  ;;  %11345 = vmatprep.subr.bf16.mxu1 %v18860_v2  ;;  %v426_v0 = vld [vmem:[%s21553_s18 + $0xe0] sm:$0xff]  ;;  %v419_v1 = vld [vmem:[%s21553_s18 + $0xa8] sm:$0xff] }
 0x3a1   : > { %v427_v2 = vld [vmem:[%s21553_s18 + $0xe8] sm:$0xff]  ;;  %v17406_v5 = vcombine.high %v418_v63, %v426_v0  ;;  %v17405_v12 = vcombine.low %v418_v63, %v426_v0  ;;  %v17485_v63 = vcombine.low %v498_v47, %v506_v48 }
 0x3a2   : > { %v17408_v6 = vcombine.high %v419_v1, %v427_v2  ;;  %v17407_v13 = vcombine.low %v419_v1, %v427_v2 }
 0x3a3   : > { %10975 = vmatpush1.bf16.msra.mxu0 %v18857_v7  ;;  %11346 = vmatpush1.bf16.msra.mxu1 %v18859_v8  ;;  %v434_v7 = vld [vmem:[%s21553_s18 + $0x120] sm:$0xff] }
 0x3a4   : > { %10976 = vmatprep.subr.bf16.mxu0 %v18874_v9  ;;  %11347 = vmatprep.subr.bf16.mxu1 %v18876_v10  ;;  %v442_v8 = vld [vmem:[%s21553_s18 + $0x160] sm:$0xff]  ;;  %v435_v10 = vld [vmem:[%s21553_s18 + $0x128] sm:$0xff] }
 0x3a5   : > { %v21008_v9 = vld [vmem:[#allocation6 + $0x30] ss:$52 sps:$4 sm:$0xff]   ;;  %v17422_v15 = vcombine.high %v434_v7, %v442_v8  ;;  %v17421_v24 = vcombine.low %v434_v7, %v442_v8  ;;  %v17423_v25 = vcombine.low %v435_v10, %v443_v11 }
 0x3a7   : > { %10977 = vmatpush1.bf16.msra.mxu0 %v18873_v16  ;;  %11348 = vmatpush1.bf16.msra.mxu1 %v18875_v17  ;;  %v17424_v16 = vcombine.high %v435_v10, %v443_v11  ;;  %v450_v17 = vld [vmem:[%s21553_s18 + $0x1a0] sm:$0xff] }
 0x3a8   : > { %10978 = vmatprep.subr.bf16.mxu0 %v18890_v20  ;;  %11349 = vmatprep.subr.bf16.mxu1 %v18892_v22  ;;  %v458_v20 = vld [vmem:[%s21553_s18 + $0x1e0] sm:$0xff]  ;;  %v451_v22 = vld [vmem:[%s21553_s18 + $0x1a8] sm:$0xff] }
 0x3a9   : > { %v17438_v26 = vcombine.high %v450_v17, %v458_v20  ;;  %v17437_v33 = vcombine.low %v450_v17, %v458_v20  ;;  %v17439_v34 = vcombine.low %v451_v22, %v459_v23  ;;  %v546_v11 = vld [vmem:[%s21553_s18 + $0x4a0] sm:$0xff] }
 0x3ab   : > { %10979 = vmatpush1.bf16.msra.mxu0 %v18889_v27  ;;  %11350 = vmatpush1.bf16.msra.mxu1 %v18891_v28  ;;  %v17440_v27 = vcombine.high %v451_v22, %v459_v23  ;;  %v466_v28 = vld [vmem:[%s21553_s18 + $0x220] sm:$0xff] }
 0x3ac   : > { %10980 = vmatprep.subr.bf16.mxu0 %v18906_v29  ;;  %11351 = vmatprep.subr.bf16.mxu1 %v18908_v30  ;;  %v474_v29 = vld [vmem:[%s21553_s18 + $0x260] sm:$0xff]  ;;  %v21009_v30 = vld [vmem:[#allocation6 + $0x98] ss:$52 sps:$4 sm:$0xff]  }
 0x3ad   : > { %v17453_v42 = vcombine.low %v466_v28, %v474_v29  ;;  %v562_v23 = vld [vmem:[%s21553_s18 + $0x520] sm:$0xff] }
 0x3af   : > { %10981 = vmatpush1.bf16.msra.mxu0 %v18905_v35  ;;  %11352 = vmatpush1.bf16.msra.mxu1 %v18907_v36  ;;  %v17454_v35 = vcombine.high %v466_v28, %v474_v29  ;;  %v17456_v36 = vcombine.high %v467_v31, %v475_v32  ;;  %v578_v31 = vld [vmem:[%s21553_s18 + $0x5a0] sm:$0xff] }
 0x3b0   : > { %11003 = vmatprep.subr.bf16.mxu0 %v18922_v37  ;;  %11374 = vmatprep.subr.bf16.mxu1 %v18924_v38  ;;  %v482_v37 = vld [vmem:[%s21553_s18 + $0x2a0] sm:$0xff] }
 0x3b1   : > { %v490_v38 = vld [vmem:[%s21553_s18 + $0x2e0] sm:$0xff] }
 0x3b2   : > { %10983 = vmatmul.mubr.bf16.vlgmr.msra.gmra.mrb[8].mxu0 %v21005_v49  ;;  %11354 = vmatmul.mubr.bf16.vlgmr.msra.gmra.mrb[8].mxu1 %v21005_v49  ;;  %v499_v49 = vld [vmem:[%s21553_s18 + $0x328] sm:$0xff]  ;;  %v17469_v52 = vcombine.low %v482_v37, %v490_v38  ;;  %v586_v32 = vld [vmem:[%s21553_s18 + $0x5e0] sm:$0xff] }
 0x3b3   : > { %11004 = vmatpush1.bf16.msra.mxu0 %v18921_v41  ;;  %11375 = vmatpush1.bf16.msra.mxu1 %v18923_v44  ;;  %v491_v41 = vld [vmem:[%s21553_s18 + $0x2e8] sm:$0xff]  ;;  %v17470_v44 = vcombine.high %v482_v37, %v490_v38  ;;  %v17566_v37 = vcombine.high %v578_v31, %v586_v32 }
 0x3b4   : > { %10992 = vmatprep.mubr.bf16.mxu0 %v21006_v57  ;;  %11363 = vmatprep.mubr.bf16.mxu1 %v21006_v57  ;;  %v17471_v53 = vcombine.low %v483_v40, %v491_v41 }
 0x3b5   : > { %11005 = vmatprep.subr.bf16.mxu0 %v18938_v45  ;;  %11376 = vmatprep.subr.bf16.mxu1 %v18940_v50  ;;  %v17472_v45 = vcombine.high %v483_v40, %v491_v41  ;;  %v507_v50 = vld [vmem:[%s21553_s18 + $0x368] sm:$0xff]  ;;  %v602_v40 = vld [vmem:[%s21553_s18 + $0x660] sm:$0xff] }
 0x3b6   : > { %v17488_v57 = vcombine.high %v499_v49, %v507_v50  ;;  %v17487_v0 = vcombine.low %v499_v49, %v507_v50  ;;  %v595_v41 = vld [vmem:[%s21553_s18 + $0x628] sm:$0xff]  ;;  %v618_v49 = vld [vmem:[%s21553_s18 + $0x6e0] sm:$0xff] }
 0x3b7   : > { %11006 = vmatpush1.bf16.msra.mxu0 %v18937_v54  ;;  %11377 = vmatpush1.bf16.msra.mxu1 %v18939_v59  ;;  %v17486_v54 = vcombine.high %v498_v47, %v506_v48  ;;  %v514_v59 = vld [vmem:[%s21553_s18 + $0x3a0] sm:$0xff]  ;;  %v611_v50 = vld [vmem:[%s21553_s18 + $0x6a8] sm:$0xff] }
 0x3b8   : > { %11427 = vmatprep.subr.bf16.mxu0 %v17390_v60  ;;  %11798 = vmatprep.subr.bf16.mxu1 %v17392_v61  ;;  %v522_v60 = vld [vmem:[%s21553_s18 + $0x3e0] sm:$0xff]  ;;  %v515_v61 = vld [vmem:[%s21553_s18 + $0x3a8] sm:$0xff] }
 0x3b9   : > { %v17502_v1 = vcombine.high %v514_v59, %v522_v60  ;;  %v17501_v7 = vcombine.low %v514_v59, %v522_v60  ;;  %v610_v48 = vld [vmem:[%s21553_s18 + $0x6a0] sm:$0xff] }
 0x3ba   : > { %10993 = vmatmul.mubr.bf16.gmra.mrb[12].mxu0 %v21007_v62  ;;  %11364 = vmatmul.mubr.bf16.gmra.mrb[12].mxu1 %v21007_v62  ;;  %v523_v62 = vld [vmem:[%s21553_s18 + $0x3e8] sm:$0xff]  ;;  %v626_v60 = vld [vmem:[%s21553_s18 + $0x720] sm:$0xff] }
 0x3bb   : > { %11035 = vmatprep.mubr.bf16.mxu0 %v21291_v46  ;;  %11406 = vmatprep.mubr.bf16.mxu1 %v21291_v46  ;;  %v17504_v2 = vcombine.high %v515_v61, %v523_v62  ;;  %v17503_v8 = vcombine.low %v515_v61, %v523_v62  ;;  %v634_v61 = vld [vmem:[%s21553_s18 + $0x760] sm:$0xff]  ;;  %v627_v62 = vld [vmem:[%s21553_s18 + $0x728] sm:$0xff] }
 0x3c2   : > { %18953 = vmatmul.mubr.msk.bf16.vlgmr.msra.gmra.mrb[8].mxu0 %vm9936_vm0, %v21008_v9  ;;  %18955 = vmatmul.mubr.msk.bf16.vlgmr.msra.gmra.mrb[8].mxu1 %vm9936_vm0, %v21008_v9 }
 0x3c3   : > { %11428 = vmatpush1.bf16.msra.mxu0 %v17389_v3  ;;  %11799 = vmatpush1.bf16.msra.mxu1 %v17391_v4  ;;  %v530_v3 = vld [vmem:[%s21553_s18 + $0x420] sm:$0xff] }
 0x3c4   : > { %11429 = vmatprep.subr.bf16.mxu0 %v17406_v5  ;;  %11800 = vmatprep.subr.bf16.mxu1 %v17408_v6  ;;  %v538_v4 = vld [vmem:[%s21553_s18 + $0x460] sm:$0xff]  ;;  %v531_v5 = vld [vmem:[%s21553_s18 + $0x428] sm:$0xff] }
 0x3c5   : > { %11045 = vmatprep.mubr.bf16.mxu0 %v21291_v46  ;;  %11416 = vmatprep.mubr.bf16.mxu1 %v21291_v46  ;;  %v539_v6 = vld [vmem:[%s21553_s18 + $0x468] sm:$0xff]  ;;  %v17518_v9 = vcombine.high %v530_v3, %v538_v4 }
 0x3c6   : > { %v17520_v10 = vcombine.high %v531_v5, %v539_v6  ;;  %v17519_v17 = vcombine.low %v531_v5, %v539_v6  ;;  %v650_v5 = vld [vmem:[%s21553_s18 + $0x7e0] sm:$0xff]  ;;  %v643_v6 = vld [vmem:[%s21553_s18 + $0x7a8] sm:$0xff] }
 0x3c7   : > { %11430 = vmatpush1.bf16.msra.mxu0 %v17405_v12  ;;  %11801 = vmatpush1.bf16.msra.mxu1 %v17407_v13  ;;  %v554_v12 = vld [vmem:[%s21553_s18 + $0x4e0] sm:$0xff]  ;;  %v547_v13 = vld [vmem:[%s21553_s18 + $0x4a8] sm:$0xff] }
 0x3c8   : > { %11431 = vmatprep.subr.bf16.mxu0 %v17422_v15  ;;  %11802 = vmatprep.subr.bf16.mxu1 %v17424_v16  ;;  %v555_v15 = vld [vmem:[%s21553_s18 + $0x4e8] sm:$0xff]  ;;  %v17517_v16 = vcombine.low %v530_v3, %v538_v4  ;;  %v17534_v20 = vcombine.high %v546_v11, %v554_v12  ;;  %v642_v4 = vld [vmem:[%s21553_s18 + $0x7a0] sm:$0xff] }
 0x3c9   : > { %v17536_v22 = vcombine.high %v547_v13, %v555_v15  ;;  %v17535_v28 = vcombine.low %v547_v13, %v555_v15  ;;  %v666_v13 = vld [vmem:[%s21553_s18 + $0x860] sm:$0xff]  ;;  %v659_v15 = vld [vmem:[%s21553_s18 + $0x828] sm:$0xff] }
 0x3ca   : > { %18954 = vmatmul.mubr.msk.bf16.gmra.mrb[12].mxu0 %vm9936_vm0, %v21009_v30  ;;  %18956 = vmatmul.mubr.msk.bf16.gmra.mrb[12].mxu1 %vm9936_vm0, %v21009_v30 }
 0x3cb   : > { %11432 = vmatpush1.bf16.msra.mxu0 %v17421_v24  ;;  %11803 = vmatpush1.bf16.msra.mxu1 %v17423_v25  ;;  %v570_v24 = vld [vmem:[%s21553_s18 + $0x560] sm:$0xff]  ;;  %v563_v25 = vld [vmem:[%s21553_s18 + $0x528] sm:$0xff] }
 0x3cc   : > { %11433 = vmatprep.subr.bf16.mxu0 %v17438_v26  ;;  %11804 = vmatprep.subr.bf16.mxu1 %v17440_v27  ;;  %v571_v26 = vld [vmem:[%s21553_s18 + $0x568] sm:$0xff]  ;;  %v17533_v27 = vcombine.low %v546_v11, %v554_v12  ;;  %v17550_v29 = vcombine.high %v562_v23, %v570_v24  ;;  %v658_v12 = vld [vmem:[%s21553_s18 + $0x820] sm:$0xff] }
 0x3cd   : > { %11459 = vmatprep.mubr.bf16.mxu0 %v21010_v39  ;;  %11830 = vmatprep.mubr.bf16.mxu1 %v21010_v39  ;;  %v17552_v30 = vcombine.high %v563_v25, %v571_v26  ;;  %v594_v39 = vld [vmem:[%s21553_s18 + $0x620] sm:$0xff] }
 0x3cf   : > { %11434 = vmatpush1.bf16.msra.mxu0 %v17437_v33  ;;  %11805 = vmatpush1.bf16.msra.mxu1 %v17439_v34  ;;  %v579_v33 = vld [vmem:[%s21553_s18 + $0x5a8] sm:$0xff] }
 0x3d0   : > { %11435 = vmatprep.subr.bf16.mxu0 %v17454_v35  ;;  %11806 = vmatprep.subr.bf16.mxu1 %v17456_v36  ;;  %v587_v34 = vld [vmem:[%s21553_s18 + $0x5e8] sm:$0xff]  ;;  %v17549_v35 = vcombine.low %v562_v23, %v570_v24  ;;  %v17551_v36 = vcombine.low %v563_v25, %v571_v26  ;;  %v674_v24 = vld [vmem:[%s21553_s18 + $0x8a0] sm:$0xff] }
 0x3d1   : > { %v17568_v38 = vcombine.high %v579_v33, %v587_v34  ;;  %v682_v25 = vld [vmem:[%s21553_s18 + $0x8e0] sm:$0xff]  ;;  %v675_v26 = vld [vmem:[%s21553_s18 + $0x8a8] sm:$0xff] }
 0x3d3   : > { %11436 = vmatpush1.bf16.msra.mxu0 %v17453_v42  ;;  %11807 = vmatpush1.bf16.msra.mxu1 %v17455_v43  ;;  %v603_v42 = vld [vmem:[%s21553_s18 + $0x668] sm:$0xff]  ;;  %v17565_v43 = vcombine.low %v578_v31, %v586_v32  ;;  %v690_v32 = vld [vmem:[%s21553_s18 + $0x920] sm:$0xff] }
 0x3d4   : > { %11437 = vmatprep.subr.bf16.mxu0 %v17470_v44  ;;  %11808 = vmatprep.subr.bf16.mxu1 %v17472_v45  ;;  %v17567_v44 = vcombine.low %v579_v33, %v587_v34  ;;  %v17582_v45 = vcombine.high %v594_v39, %v602_v40  ;;  %v17584_v47 = vcombine.high %v595_v41, %v603_v42  ;;  %v698_v33 = vld [vmem:[%s21553_s18 + $0x960] sm:$0xff] }
 0x3d5   : > { %v21011_v34 = vld [vmem:[#allocation6] ss:$52 sps:$4 sm:$0xff]  }
 0x3d7   : > { %11438 = vmatpush1.bf16.msra.mxu0 %v17469_v52  ;;  %11809 = vmatpush1.bf16.msra.mxu1 %v17471_v53  ;;  %v619_v52 = vld [vmem:[%s21553_s18 + $0x6e8] sm:$0xff]  ;;  %v17581_v53 = vcombine.low %v594_v39, %v602_v40  ;;  %v17678_v39 = vcombine.high %v690_v32, %v698_v33 }
 0x3d8   : > { %11439 = vmatprep.subr.bf16.mxu0 %v17486_v54  ;;  %11810 = vmatprep.subr.bf16.mxu1 %v17488_v57  ;;  %v17583_v54 = vcombine.low %v595_v41, %v603_v42  ;;  %v17598_v57 = vcombine.high %v610_v48, %v618_v49  ;;  %v17600_v59 = vcombine.high %v611_v50, %v619_v52  ;;  %v706_v41 = vld [vmem:[%s21553_s18 + $0x9a0] sm:$0xff] }
 0x3d9   : > { %v714_v42 = vld [vmem:[%s21553_s18 + $0x9e0] sm:$0xff] }
 0x3db   : > { %11440 = vmatpush1.bf16.msra.mxu0 %v17485_v63  ;;  %11811 = vmatpush1.bf16.msra.mxu1 %v17487_v0  ;;  %v635_v63 = vld [vmem:[%s21553_s18 + $0x768] sm:$0xff]  ;;  %v17597_v0 = vcombine.low %v610_v48, %v618_v49  ;;  %v17694_v49 = vcombine.high %v706_v41, %v714_v42 }
 0x3dc   : > { %11441 = vmatprep.subr.bf16.mxu0 %v17502_v1  ;;  %11812 = vmatprep.subr.bf16.mxu1 %v17504_v2  ;;  %v17599_v1 = vcombine.low %v611_v50, %v619_v52  ;;  %v17614_v2 = vcombine.high %v626_v60, %v634_v61  ;;  %v17616_v3 = vcombine.high %v627_v62, %v635_v63  ;;  %v722_v52 = vld [vmem:[%s21553_s18 + $0xa20] sm:$0xff] }
 0x3df   : > { %11442 = vmatpush1.bf16.msra.mxu0 %v17501_v7  ;;  %11813 = vmatpush1.bf16.msra.mxu1 %v17503_v8  ;;  %v651_v7 = vld [vmem:[%s21553_s18 + $0x7e8] sm:$0xff]  ;;  %v17613_v8 = vcombine.low %v626_v60, %v634_v61  ;;  %v17693_v60 = vcombine.low %v706_v41, %v714_v42 }
 0x3e0   : > { %11443 = vmatprep.subr.bf16.mxu0 %v17518_v9  ;;  %11814 = vmatprep.subr.bf16.mxu1 %v17520_v10  ;;  %v17615_v9 = vcombine.low %v627_v62, %v635_v63  ;;  %v17630_v10 = vcombine.high %v642_v4, %v650_v5  ;;  %v17632_v11 = vcombine.high %v643_v6, %v651_v7 }
 0x3e3   : > { %11444 = vmatpush1.bf16.msra.mxu0 %v17517_v16  ;;  %11815 = vmatpush1.bf16.msra.mxu1 %v17519_v17  ;;  %v667_v16 = vld [vmem:[%s21553_s18 + $0x868] sm:$0xff]  ;;  %v17629_v17 = vcombine.low %v642_v4, %v650_v5 }
 0x3e4   : > { %11445 = vmatprep.subr.bf16.mxu0 %v17534_v20  ;;  %11816 = vmatprep.subr.bf16.mxu1 %v17536_v22  ;;  %v17631_v20 = vcombine.low %v643_v6, %v651_v7  ;;  %v17646_v22 = vcombine.high %v658_v12, %v666_v13  ;;  %v17648_v23 = vcombine.high %v659_v15, %v667_v16  ;;  %v747_v4 = vld [vmem:[%s21553_s18 + $0xae8] sm:$0xff] }
 0x3e7   : > { %11446 = vmatpush1.bf16.msra.mxu0 %v17533_v27  ;;  %11817 = vmatpush1.bf16.msra.mxu1 %v17535_v28  ;;  %v683_v27 = vld [vmem:[%s21553_s18 + $0x8e8] sm:$0xff]  ;;  %v17645_v28 = vcombine.low %v658_v12, %v666_v13 }
 0x3e8   : > { %11447 = vmatprep.subr.bf16.mxu0 %v17550_v29  ;;  %11818 = vmatprep.subr.bf16.mxu1 %v17552_v30  ;;  %v17647_v29 = vcombine.low %v659_v15, %v667_v16  ;;  %v17662_v30 = vcombine.high %v674_v24, %v682_v25  ;;  %v17664_v31 = vcombine.high %v675_v26, %v683_v27  ;;  %v763_v12 = vld [vmem:[%s21553_s18 + $0xb68] sm:$0xff] }
 0x3eb   : > { %11448 = vmatpush1.bf16.msra.mxu0 %v17549_v35  ;;  %11819 = vmatpush1.bf16.msra.mxu1 %v17551_v36  ;;  %v691_v35 = vld [vmem:[%s21553_s18 + $0x928] sm:$0xff] }
 0x3ec   : > { %11449 = vmatprep.subr.bf16.mxu0 %v17566_v37  ;;  %11820 = vmatprep.subr.bf16.mxu1 %v17568_v38  ;;  %v699_v36 = vld [vmem:[%s21553_s18 + $0x968] sm:$0xff]  ;;  %v17661_v37 = vcombine.low %v674_v24, %v682_v25  ;;  %v17663_v38 = vcombine.low %v675_v26, %v683_v27 }
 0x3ed   : > { %v17680_v40 = vcombine.high %v691_v35, %v699_v36  ;;  %v17679_v48 = vcombine.low %v691_v35, %v699_v36  ;;  %v779_v24 = vld [vmem:[%s21553_s18 + $0xbe8] sm:$0xff] }
 0x3ef   : > { %11450 = vmatpush1.bf16.msra.mxu0 %v17565_v43  ;;  %11821 = vmatpush1.bf16.msra.mxu1 %v17567_v44  ;;  %v21012_v43 = vld [vmem:[#allocation6 + $0x6c] ss:$52 sps:$4 sm:$0xff]  }
 0x3f0   : > { %11451 = vmatprep.subr.bf16.mxu0 %v17582_v45  ;;  %11822 = vmatprep.subr.bf16.mxu1 %v17584_v47  ;;  %v707_v44 = vld [vmem:[%s21553_s18 + $0x9a8] sm:$0xff]  ;;  %v17677_v47 = vcombine.low %v690_v32, %v698_v33 }
 0x3f1   : > { %v715_v45 = vld [vmem:[%s21553_s18 + $0x9e8] sm:$0xff] }
 0x3f2   : > { %v17696_v50 = vcombine.high %v707_v44, %v715_v45  ;;  %v17695_v61 = vcombine.low %v707_v44, %v715_v45  ;;  %v795_v32 = vld [vmem:[%s21553_s18 + $0xc68] sm:$0xff]  ;;  %v818_v45 = vld [vmem:[%s21553_s18 + $0xd20] sm:$0xff] }
 0x3f3   : > { %11452 = vmatpush1.bf16.msra.mxu0 %v17581_v53  ;;  %11823 = vmatpush1.bf16.msra.mxu1 %v17583_v54  ;;  %v730_v53 = vld [vmem:[%s21553_s18 + $0xa60] sm:$0xff]  ;;  %v723_v54 = vld [vmem:[%s21553_s18 + $0xa28] sm:$0xff] }
 0x3f4   : > { %11453 = vmatprep.subr.bf16.mxu0 %v17598_v57  ;;  %11824 = vmatprep.subr.bf16.mxu1 %v17600_v59  ;;  %v731_v57 = vld [vmem:[%s21553_s18 + $0xa68] sm:$0xff]  ;;  %v17710_v62 = vcombine.high %v722_v52, %v730_v53  ;;  %v17709_v5 = vcombine.low %v722_v52, %v730_v53 }
 0x3f5   : > { %v21013_v59 = vld [vmem:[#allocation6 + $0x68] ss:$52 sps:$4 sm:$0xff]   ;;  %v17712_v63 = vcombine.high %v723_v54, %v731_v57  ;;  %v17711_v6 = vcombine.low %v723_v54, %v731_v57  ;;  %v834_v57 = vld [vmem:[%s21553_s18 + $0xda0] sm:$0xff] }
 0x3f7   : > { %11454 = vmatpush1.bf16.msra.mxu0 %v17597_v0  ;;  %11825 = vmatpush1.bf16.msra.mxu1 %v17599_v1  ;;  %v738_v0 = vld [vmem:[%s21553_s18 + $0xaa0] sm:$0xff] }
 0x3f8   : > { %11455 = vmatprep.subr.bf16.mxu0 %v17614_v2  ;;  %11826 = vmatprep.subr.bf16.mxu1 %v17616_v3  ;;  %v746_v1 = vld [vmem:[%s21553_s18 + $0xae0] sm:$0xff]  ;;  %v739_v3 = vld [vmem:[%s21553_s18 + $0xaa8] sm:$0xff] }
 0x3f9   : > { %v21014_v2 = vld [vmem:[#allocation6 + $0xc] ss:$52 sps:$4 sm:$0xff]   ;;  %v17726_v7 = vcombine.high %v738_v0, %v746_v1  ;;  %v17725_v13 = vcombine.low %v738_v0, %v746_v1  ;;  %v17727_v15 = vcombine.low %v739_v3, %v747_v4 }
 0x3fb   : > { %11456 = vmatpush1.bf16.msra.mxu0 %v17613_v8  ;;  %11827 = vmatpush1.bf16.msra.mxu1 %v17615_v9  ;;  %v17728_v8 = vcombine.high %v739_v3, %v747_v4  ;;  %v754_v9 = vld [vmem:[%s21553_s18 + $0xb20] sm:$0xff]  ;;  %v851_v4 = vld [vmem:[%s21553_s18 + $0xe28] sm:$0xff] }
 0x3fc   : > { %11457 = vmatprep.subr.bf16.mxu0 %v17630_v10  ;;  %11828 = vmatprep.subr.bf16.mxu1 %v17632_v11  ;;  %v762_v10 = vld [vmem:[%s21553_s18 + $0xb60] sm:$0xff]  ;;  %v755_v11 = vld [vmem:[%s21553_s18 + $0xb28] sm:$0xff] }
 0x3fd   : > { %v17742_v16 = vcombine.high %v754_v9, %v762_v10  ;;  %v17741_v25 = vcombine.low %v754_v9, %v762_v10  ;;  %v17743_v26 = vcombine.low %v755_v11, %v763_v12  ;;  %v858_v3 = vld [vmem:[%s21553_s18 + $0xe60] sm:$0xff] }
 0x3fe   : > { %v866_v10 = vld [vmem:[%s21553_s18 + $0xea0] sm:$0xff] }
 0x3ff   : > { %11458 = vmatpush1.bf16.msra.mxu0 %v17629_v17  ;;  %11829 = vmatpush1.bf16.msra.mxu1 %v17631_v20  ;;  %v17744_v17 = vcombine.high %v755_v11, %v763_v12  ;;  %v770_v20 = vld [vmem:[%s21553_s18 + $0xba0] sm:$0xff]  ;;  %v867_v12 = vld [vmem:[%s21553_s18 + $0xea8] sm:$0xff] }
 0x400   : > { %11480 = vmatprep.subr.bf16.mxu0 %v17646_v22  ;;  %11851 = vmatprep.subr.bf16.mxu1 %v17648_v23  ;;  %v778_v22 = vld [vmem:[%s21553_s18 + $0xbe0] sm:$0xff]  ;;  %v771_v23 = vld [vmem:[%s21553_s18 + $0xba8] sm:$0xff] }
 0x401   : > { %v17758_v27 = vcombine.high %v770_v20, %v778_v22  ;;  %v17757_v33 = vcombine.low %v770_v20, %v778_v22  ;;  %v874_v11 = vld [vmem:[%s21553_s18 + $0xee0] sm:$0xff] }
 0x402   : > { %11460 = vmatmul.mubr.bf16.vlgmr.msra.gmra.mrb[16].mxu0 %v21011_v34  ;;  %11831 = vmatmul.mubr.bf16.vlgmr.msra.gmra.mrb[16].mxu1 %v21011_v34  ;;  %v17759_v34 = vcombine.low %v771_v23, %v779_v24  ;;  %v882_v22 = vld [vmem:[%s21553_s18 + $0xf20] sm:$0xff] }
 0x403   : > { %11481 = vmatpush1.bf16.msra.mxu0 %v17645_v28  ;;  %11852 = vmatpush1.bf16.msra.mxu1 %v17647_v29  ;;  %v17760_v28 = vcombine.high %v771_v23, %v779_v24  ;;  %v786_v29 = vld [vmem:[%s21553_s18 + $0xc20] sm:$0xff]  ;;  %v883_v24 = vld [vmem:[%s21553_s18 + $0xf28] sm:$0xff] }
 0x404   : > { %11482 = vmatprep.subr.bf16.mxu0 %v17662_v30  ;;  %11853 = vmatprep.subr.bf16.mxu1 %v17664_v31  ;;  %v794_v30 = vld [vmem:[%s21553_s18 + $0xc60] sm:$0xff]  ;;  %v787_v31 = vld [vmem:[%s21553_s18 + $0xc28] sm:$0xff] }
 0x405   : > { %11469 = vmatprep.mubr.bf16.mxu0 %v21012_v43  ;;  %11840 = vmatprep.mubr.bf16.mxu1 %v21012_v43  ;;  %v17774_v35 = vcombine.high %v786_v29, %v794_v30  ;;  %v17776_v36 = vcombine.high %v787_v31, %v795_v32  ;;  %v17773_v41 = vcombine.low %v786_v29, %v794_v30  ;;  %v890_v23 = vld [vmem:[%s21553_s18 + $0xf60] sm:$0xff] }
 0x406   : > { %v17775_v42 = vcombine.low %v787_v31, %v795_v32  ;;  %v898_v30 = vld [vmem:[%s21553_s18 + $0xfa0] sm:$0xff]  ;;  %v899_v32 = vld [vmem:[%s21553_s18 + $0xfa8] sm:$0xff] }
 0x407   : > { %11483 = vmatpush1.bf16.msra.mxu0 %v17661_v37  ;;  %11854 = vmatpush1.bf16.msra.mxu1 %v17663_v38  ;;  %v802_v37 = vld [vmem:[%s21553_s18 + $0xca0] sm:$0xff] }
 0x408   : > { %11484 = vmatprep.subr.bf16.mxu0 %v17678_v39  ;;  %11855 = vmatprep.subr.bf16.mxu1 %v17680_v40  ;;  %v810_v38 = vld [vmem:[%s21553_s18 + $0xce0] sm:$0xff]  ;;  %v803_v39 = vld [vmem:[%s21553_s18 + $0xca8] sm:$0xff] }
 0x409   : > { %v811_v40 = vld [vmem:[%s21553_s18 + $0xce8] sm:$0xff]  ;;  %v17790_v43 = vcombine.high %v802_v37, %v810_v38  ;;  %v906_v31 = vld [vmem:[%s21553_s18 + $0xfe0] sm:$0xff] }
 0x40a   : > { %11470 = vmatmul.mubr.bf16.gmra.mrb[20].mxu0 %v21013_v59  ;;  %11841 = vmatmul.mubr.bf16.gmra.mrb[20].mxu1 %v21013_v59  ;;  %v17792_v44 = vcombine.high %v803_v39, %v811_v40  ;;  %v17791_v52 = vcombine.low %v803_v39, %v811_v40  ;;  %v842_v59 = vld [vmem:[%s21553_s18 + $0xde0] sm:$0xff]  ;;  %v915_v40 = vld [vmem:[%s21553_s18 + $0x1028] sm:$0xff] }
 0x40b   : > { %11485 = vmatpush1.bf16.msra.mxu0 %v17677_v47  ;;  %11856 = vmatpush1.bf16.msra.mxu1 %v17679_v48  ;;  %v826_v47 = vld [vmem:[%s21553_s18 + $0xd60] sm:$0xff]  ;;  %v819_v48 = vld [vmem:[%s21553_s18 + $0xd28] sm:$0xff]  ;;  %v17822_v0 = vcombine.high %v834_v57, %v842_v59 }
 0x40c   : > { %11486 = vmatprep.subr.bf16.mxu0 %v17694_v49  ;;  %11857 = vmatprep.subr.bf16.mxu1 %v17696_v50  ;;  %v827_v49 = vld [vmem:[%s21553_s18 + $0xd68] sm:$0xff]  ;;  %v17789_v50 = vcombine.low %v802_v37, %v810_v38  ;;  %v17806_v53 = vcombine.high %v818_v45, %v826_v47  ;;  %v914_v38 = vld [vmem:[%s21553_s18 + $0x1020] sm:$0xff] }
 0x40d   : > { %11512 = vmatprep.mubr.bf16.mxu0 %v21014_v2  ;;  %11883 = vmatprep.mubr.bf16.mxu1 %v21014_v2  ;;  %v17808_v54 = vcombine.high %v819_v48, %v827_v49  ;;  %v850_v2 = vld [vmem:[%s21553_s18 + $0xe20] sm:$0xff] }
 0x40e   : > { %v922_v39 = vld [vmem:[%s21553_s18 + $0x1060] sm:$0xff] }
 0x40f   : > { %11487 = vmatpush1.bf16.msra.mxu0 %v17693_v60  ;;  %11858 = vmatpush1.bf16.msra.mxu1 %v17695_v61  ;;  %v835_v60 = vld [vmem:[%s21553_s18 + $0xda8] sm:$0xff] }
 0x410   : > { %11488 = vmatprep.subr.bf16.mxu0 %v17710_v62  ;;  %11859 = vmatprep.subr.bf16.mxu1 %v17712_v63  ;;  %v843_v61 = vld [vmem:[%s21553_s18 + $0xde8] sm:$0xff]  ;;  %v17805_v62 = vcombine.low %v818_v45, %v826_v47  ;;  %v17807_v63 = vcombine.low %v819_v48, %v827_v49  ;;  %v930_v47 = vld [vmem:[%s21553_s18 + $0x10a0] sm:$0xff] }
 0x411   : > { %v17824_v1 = vcombine.high %v835_v60, %v843_v61  ;;  %v938_v48 = vld [vmem:[%s21553_s18 + $0x10e0] sm:$0xff]  ;;  %v931_v49 = vld [vmem:[%s21553_s18 + $0x10a8] sm:$0xff] }
 0x413   : > { %11489 = vmatpush1.bf16.msra.mxu0 %v17709_v5  ;;  %11860 = vmatpush1.bf16.msra.mxu1 %v17711_v6  ;;  %v859_v5 = vld [vmem:[%s21553_s18 + $0xe68] sm:$0xff]  ;;  %v17821_v6 = vcombine.low %v834_v57, %v842_v59  ;;  %v946_v59 = vld [vmem:[%s21553_s18 + $0x1120] sm:$0xff] }
 0x414   : > { %11490 = vmatprep.subr.bf16.mxu0 %v17726_v7  ;;  %11861 = vmatprep.subr.bf16.mxu1 %v17728_v8  ;;  %v17823_v7 = vcombine.low %v835_v60, %v843_v61  ;;  %v17838_v8 = vcombine.high %v850_v2, %v858_v3  ;;  %v17840_v9 = vcombine.high %v851_v4, %v859_v5  ;;  %v954_v60 = vld [vmem:[%s21553_s18 + $0x1160] sm:$0xff]  ;;  %v21015_v61 = vld [vmem:[#allocation6 + $0x8] ss:$52 sps:$4 sm:$0xff]  }
 0x417   : > { %11491 = vmatpush1.bf16.msra.mxu0 %v17725_v13  ;;  %11862 = vmatpush1.bf16.msra.mxu1 %v17727_v15  ;;  %v875_v13 = vld [vmem:[%s21553_s18 + $0xee8] sm:$0xff]  ;;  %v17837_v15 = vcombine.low %v850_v2, %v858_v3  ;;  %v17934_v2 = vcombine.high %v946_v59, %v954_v60 }
 0x418   : > { %11492 = vmatprep.subr.bf16.mxu0 %v17742_v16  ;;  %11863 = vmatprep.subr.bf16.mxu1 %v17744_v17  ;;  %v17839_v16 = vcombine.low %v851_v4, %v859_v5  ;;  %v17854_v17 = vcombine.high %v866_v10, %v874_v11  ;;  %v17856_v20 = vcombine.high %v867_v12, %v875_v13  ;;  %v962_v4 = vld [vmem:[%s21553_s18 + $0x11a0] sm:$0xff] }
 0x419   : > { %v970_v5 = vld [vmem:[%s21553_s18 + $0x11e0] sm:$0xff] }
 0x41b   : > { %11493 = vmatpush1.bf16.msra.mxu0 %v17741_v25  ;;  %11864 = vmatpush1.bf16.msra.mxu1 %v17743_v26  ;;  %v891_v25 = vld [vmem:[%s21553_s18 + $0xf68] sm:$0xff]  ;;  %v17853_v26 = vcombine.low %v866_v10, %v874_v11  ;;  %v17950_v11 = vcombine.high %v962_v4, %v970_v5 }
 0x41c   : > { %11494 = vmatprep.subr.bf16.mxu0 %v17758_v27  ;;  %11865 = vmatprep.subr.bf16.mxu1 %v17760_v28  ;;  %v17855_v27 = vcombine.low %v867_v12, %v875_v13  ;;  %v17870_v28 = vcombine.high %v882_v22, %v890_v23  ;;  %v17872_v29 = vcombine.high %v883_v24, %v891_v25  ;;  %v978_v13 = vld [vmem:[%s21553_s18 + $0x1220] sm:$0xff] }
 0x41f   : > { %11495 = vmatpush1.bf16.msra.mxu0 %v17757_v33  ;;  %11866 = vmatpush1.bf16.msra.mxu1 %v17759_v34  ;;  %v907_v33 = vld [vmem:[%s21553_s18 + $0xfe8] sm:$0xff]  ;;  %v17869_v34 = vcombine.low %v882_v22, %v890_v23  ;;  %v17949_v22 = vcombine.low %v962_v4, %v970_v5 }
 0x420   : > { %11496 = vmatprep.subr.bf16.mxu0 %v17774_v35  ;;  %11867 = vmatprep.subr.bf16.mxu1 %v17776_v36  ;;  %v17871_v35 = vcombine.low %v883_v24, %v891_v25  ;;  %v17886_v36 = vcombine.high %v898_v30, %v906_v31  ;;  %v17888_v37 = vcombine.high %v899_v32, %v907_v33 }
 0x423   : > { %11497 = vmatpush1.bf16.msra.mxu0 %v17773_v41  ;;  %11868 = vmatpush1.bf16.msra.mxu1 %v17775_v42  ;;  %v923_v41 = vld [vmem:[%s21553_s18 + $0x1068] sm:$0xff]  ;;  %v17885_v42 = vcombine.low %v898_v30, %v906_v31 }
 0x424   : > { %11498 = vmatprep.subr.bf16.mxu0 %v17790_v43  ;;  %11869 = vmatprep.subr.bf16.mxu1 %v17792_v44  ;;  %v17887_v43 = vcombine.low %v899_v32, %v907_v33  ;;  %v17902_v44 = vcombine.high %v914_v38, %v922_v39  ;;  %v17904_v45 = vcombine.high %v915_v40, %v923_v41  ;;  %v1003_v30 = vld [vmem:[%s21553_s18 + $0x12e8] sm:$0xff] }
 0x427   : > { %11499 = vmatpush1.bf16.msra.mxu0 %v17789_v50  ;;  %11870 = vmatpush1.bf16.msra.mxu1 %v17791_v52  ;;  %v939_v50 = vld [vmem:[%s21553_s18 + $0x10e8] sm:$0xff]  ;;  %v17901_v52 = vcombine.low %v914_v38, %v922_v39 }
 0x428   : > { %11500 = vmatprep.subr.bf16.mxu0 %v17806_v53  ;;  %11871 = vmatprep.subr.bf16.mxu1 %v17808_v54  ;;  %v17903_v53 = vcombine.low %v915_v40, %v923_v41  ;;  %v17918_v54 = vcombine.high %v930_v47, %v938_v48  ;;  %v17920_v57 = vcombine.high %v931_v49, %v939_v50  ;;  %v1019_v38 = vld [vmem:[%s21553_s18 + $0x1368] sm:$0xff] }
 0x42b   : > { %11501 = vmatpush1.bf16.msra.mxu0 %v17805_v62  ;;  %11872 = vmatpush1.bf16.msra.mxu1 %v17807_v63  ;;  %v947_v62 = vld [vmem:[%s21553_s18 + $0x1128] sm:$0xff] }
 0x42c   : > { %11502 = vmatprep.subr.bf16.mxu0 %v17822_v0  ;;  %11873 = vmatprep.subr.bf16.mxu1 %v17824_v1  ;;  %v955_v63 = vld [vmem:[%s21553_s18 + $0x1168] sm:$0xff]  ;;  %v17917_v0 = vcombine.low %v930_v47, %v938_v48  ;;  %v17919_v1 = vcombine.low %v931_v49, %v939_v50 }
 0x42d   : > { %v17936_v3 = vcombine.high %v947_v62, %v955_v63  ;;  %v17935_v10 = vcombine.low %v947_v62, %v955_v63  ;;  %v1035_v47 = vld [vmem:[%s21553_s18 + $0x13e8] sm:$0xff] }
 0x42f   : > { %11503 = vmatpush1.bf16.msra.mxu0 %v17821_v6  ;;  %11874 = vmatpush1.bf16.msra.mxu1 %v17823_v7  ;;  %v21016_v6 = vld [vmem:[#allocation6 + $0x74] ss:$52 sps:$4 sm:$0xff]  }
 0x430   : > { %11504 = vmatprep.subr.bf16.mxu0 %v17838_v8  ;;  %11875 = vmatprep.subr.bf16.mxu1 %v17840_v9  ;;  %v963_v7 = vld [vmem:[%s21553_s18 + $0x11a8] sm:$0xff]  ;;  %v17933_v9 = vcombine.low %v946_v59, %v954_v60 }
 0x431   : > { %v971_v8 = vld [vmem:[%s21553_s18 + $0x11e8] sm:$0xff] }
 0x432   : > { %v17952_v12 = vcombine.high %v963_v7, %v971_v8  ;;  %v17951_v23 = vcombine.low %v963_v7, %v971_v8  ;;  %v1051_v59 = vld [vmem:[%s21553_s18 + $0x1468] sm:$0xff]  ;;  %v1074_v8 = vld [vmem:[%s21553_s18 + $0x1520] sm:$0xff] }
 0x433   : > { %11505 = vmatpush1.bf16.msra.mxu0 %v17837_v15  ;;  %11876 = vmatpush1.bf16.msra.mxu1 %v17839_v16  ;;  %v986_v15 = vld [vmem:[%s21553_s18 + $0x1260] sm:$0xff]  ;;  %v979_v16 = vld [vmem:[%s21553_s18 + $0x1228] sm:$0xff] }
 0x434   : > { %11506 = vmatprep.subr.bf16.mxu0 %v17854_v17  ;;  %11877 = vmatprep.subr.bf16.mxu1 %v17856_v20  ;;  %v987_v17 = vld [vmem:[%s21553_s18 + $0x1268] sm:$0xff]  ;;  %v21017_v20 = vld [vmem:[#allocation6 + $0x70] ss:$52 sps:$4 sm:$0xff]   ;;  %v17966_v24 = vcombine.high %v978_v13, %v986_v15  ;;  %v17965_v31 = vcombine.low %v978_v13, %v986_v15 }
 0x435   : > { %v17968_v25 = vcombine.high %v979_v16, %v987_v17  ;;  %v17967_v32 = vcombine.low %v979_v16, %v987_v17  ;;  %v1090_v17 = vld [vmem:[%s21553_s18 + $0x15a0] sm:$0xff] }
 0x437   : > { %11507 = vmatpush1.bf16.msra.mxu0 %v17853_v26  ;;  %11878 = vmatpush1.bf16.msra.mxu1 %v17855_v27  ;;  %v994_v26 = vld [vmem:[%s21553_s18 + $0x12a0] sm:$0xff] }
 0x438   : > { %11508 = vmatprep.subr.bf16.mxu0 %v17870_v28  ;;  %11879 = vmatprep.subr.bf16.mxu1 %v17872_v29  ;;  %v1002_v27 = vld [vmem:[%s21553_s18 + $0x12e0] sm:$0xff]  ;;  %v21018_v28 = vld [vmem:[#allocation6 + $0x14] ss:$52 sps:$4 sm:$0xff]  }
 0x439   : > { %v995_v29 = vld [vmem:[%s21553_s18 + $0x12a8] sm:$0xff]  ;;  %v17982_v33 = vcombine.high %v994_v26, %v1002_v27  ;;  %v17981_v39 = vcombine.low %v994_v26, %v1002_v27 }
 0x43a   : > { %v17983_v40 = vcombine.low %v995_v29, %v1003_v30 }
 0x43b   : > { %11509 = vmatpush1.bf16.msra.mxu0 %v17869_v34  ;;  %11880 = vmatpush1.bf16.msra.mxu1 %v17871_v35  ;;  %v17984_v34 = vcombine.high %v995_v29, %v1003_v30  ;;  %v1010_v35 = vld [vmem:[%s21553_s18 + $0x1320] sm:$0xff]  ;;  %v1107_v30 = vld [vmem:[%s21553_s18 + $0x1628] sm:$0xff] }
 0x43c   : > { %11510 = vmatprep.subr.bf16.mxu0 %v17886_v36  ;;  %11881 = vmatprep.subr.bf16.mxu1 %v17888_v37  ;;  %v1018_v36 = vld [vmem:[%s21553_s18 + $0x1360] sm:$0xff]  ;;  %v1011_v37 = vld [vmem:[%s21553_s18 + $0x1328] sm:$0xff] }
 0x43d   : > { %v17998_v41 = vcombine.high %v1010_v35, %v1018_v36  ;;  %v17997_v48 = vcombine.low %v1010_v35, %v1018_v36  ;;  %v17999_v49 = vcombine.low %v1011_v37, %v1019_v38  ;;  %v1114_v29 = vld [vmem:[%s21553_s18 + $0x1660] sm:$0xff] }
 0x43e   : > { %v1122_v36 = vld [vmem:[%s21553_s18 + $0x16a0] sm:$0xff] }
 0x43f   : > { %11511 = vmatpush1.bf16.msra.mxu0 %v17885_v42  ;;  %11882 = vmatpush1.bf16.msra.mxu1 %v17887_v43  ;;  %v18000_v42 = vcombine.high %v1011_v37, %v1019_v38  ;;  %v1026_v43 = vld [vmem:[%s21553_s18 + $0x13a0] sm:$0xff]  ;;  %v1123_v38 = vld [vmem:[%s21553_s18 + $0x16a8] sm:$0xff] }
 0x440   : > { %11533 = vmatprep.subr.bf16.mxu0 %v17902_v44  ;;  %11904 = vmatprep.subr.bf16.mxu1 %v17904_v45  ;;  %v1034_v44 = vld [vmem:[%s21553_s18 + $0x13e0] sm:$0xff]  ;;  %v1027_v45 = vld [vmem:[%s21553_s18 + $0x13a8] sm:$0xff] }
 0x441   : > { %v18014_v50 = vcombine.high %v1026_v43, %v1034_v44  ;;  %v18013_v60 = vcombine.low %v1026_v43, %v1034_v44  ;;  %v1130_v37 = vld [vmem:[%s21553_s18 + $0x16e0] sm:$0xff] }
 0x442   : > { %11513 = vmatmul.mubr.bf16.vlgmr.msra.gmra.mrb[16].mxu0 %v21015_v61  ;;  %11884 = vmatmul.mubr.bf16.vlgmr.msra.gmra.mrb[16].mxu1 %v21015_v61  ;;  %v18015_v61 = vcombine.low %v1027_v45, %v1035_v47  ;;  %v1138_v44 = vld [vmem:[%s21553_s18 + $0x1720] sm:$0xff] }
 0x443   : > { %11534 = vmatpush1.bf16.msra.mxu0 %v17901_v52  ;;  %11905 = vmatpush1.bf16.msra.mxu1 %v17903_v53  ;;  %v18016_v52 = vcombine.high %v1027_v45, %v1035_v47  ;;  %v1042_v53 = vld [vmem:[%s21553_s18 + $0x1420] sm:$0xff]  ;;  %v1139_v47 = vld [vmem:[%s21553_s18 + $0x1728] sm:$0xff] }
 0x444   : > { %11535 = vmatprep.subr.bf16.mxu0 %v17918_v54  ;;  %11906 = vmatprep.subr.bf16.mxu1 %v17920_v57  ;;  %v1050_v54 = vld [vmem:[%s21553_s18 + $0x1460] sm:$0xff]  ;;  %v1043_v57 = vld [vmem:[%s21553_s18 + $0x1428] sm:$0xff] }
 0x445   : > { %11522 = vmatprep.mubr.bf16.mxu0 %v21016_v6  ;;  %11893 = vmatprep.mubr.bf16.mxu1 %v21016_v6  ;;  %v18030_v62 = vcombine.high %v1042_v53, %v1050_v54  ;;  %v18032_v63 = vcombine.high %v1043_v57, %v1051_v59  ;;  %v18029_v4 = vcombine.low %v1042_v53, %v1050_v54  ;;  %v1146_v45 = vld [vmem:[%s21553_s18 + $0x1760] sm:$0xff] }
 0x446   : > { %v18031_v5 = vcombine.low %v1043_v57, %v1051_v59  ;;  %v1154_v54 = vld [vmem:[%s21553_s18 + $0x17a0] sm:$0xff]  ;;  %v1155_v59 = vld [vmem:[%s21553_s18 + $0x17a8] sm:$0xff] }
 0x447   : > { %11536 = vmatpush1.bf16.msra.mxu0 %v17917_v0  ;;  %11907 = vmatpush1.bf16.msra.mxu1 %v17919_v1  ;;  %v1058_v0 = vld [vmem:[%s21553_s18 + $0x14a0] sm:$0xff] }
 0x448   : > { %11537 = vmatprep.subr.bf16.mxu0 %v17934_v2  ;;  %11908 = vmatprep.subr.bf16.mxu1 %v17936_v3  ;;  %v1066_v1 = vld [vmem:[%s21553_s18 + $0x14e0] sm:$0xff]  ;;  %v1059_v2 = vld [vmem:[%s21553_s18 + $0x14a8] sm:$0xff] }
 0x449   : > { %v1067_v3 = vld [vmem:[%s21553_s18 + $0x14e8] sm:$0xff]  ;;  %v18046_v6 = vcombine.high %v1058_v0, %v1066_v1  ;;  %v1162_v57 = vld [vmem:[%s21553_s18 + $0x17e0] sm:$0xff] }
 0x44a   : > { %11523 = vmatmul.mubr.bf16.gmra.mrb[20].mxu0 %v21017_v20  ;;  %11894 = vmatmul.mubr.bf16.gmra.mrb[20].mxu1 %v21017_v20  ;;  %v18048_v7 = vcombine.high %v1059_v2, %v1067_v3  ;;  %v18047_v13 = vcombine.low %v1059_v2, %v1067_v3  ;;  %v1098_v20 = vld [vmem:[%s21553_s18 + $0x15e0] sm:$0xff]  ;;  %v1171_v3 = vld [vmem:[%s21553_s18 + $0x1828] sm:$0xff] }
 0x44b   : > { %11538 = vmatpush1.bf16.msra.mxu0 %v17933_v9  ;;  %11909 = vmatpush1.bf16.msra.mxu1 %v17935_v10  ;;  %v1082_v9 = vld [vmem:[%s21553_s18 + $0x1560] sm:$0xff]  ;;  %v1075_v10 = vld [vmem:[%s21553_s18 + $0x1528] sm:$0xff]  ;;  %v18078_v26 = vcombine.high %v1090_v17, %v1098_v20 }
 0x44c   : > { %11539 = vmatprep.subr.bf16.mxu0 %v17950_v11  ;;  %11910 = vmatprep.subr.bf16.mxu1 %v17952_v12  ;;  %v1083_v11 = vld [vmem:[%s21553_s18 + $0x1568] sm:$0xff]  ;;  %v18045_v12 = vcombine.low %v1058_v0, %v1066_v1  ;;  %v18062_v15 = vcombine.high %v1074_v8, %v1082_v9  ;;  %v1170_v1 = vld [vmem:[%s21553_s18 + $0x1820] sm:$0xff] }
 0x44d   : > { %11565 = vmatprep.mubr.bf16.mxu0 %v21018_v28  ;;  %11936 = vmatprep.mubr.bf16.mxu1 %v21018_v28  ;;  %v18064_v16 = vcombine.high %v1075_v10, %v1083_v11  ;;  %v1106_v28 = vld [vmem:[%s21553_s18 + $0x1620] sm:$0xff] }
 0x44e   : > { %v1178_v2 = vld [vmem:[%s21553_s18 + $0x1860] sm:$0xff] }
 0x44f   : > { %11540 = vmatpush1.bf16.msra.mxu0 %v17949_v22  ;;  %11911 = vmatpush1.bf16.msra.mxu1 %v17951_v23  ;;  %v1091_v22 = vld [vmem:[%s21553_s18 + $0x15a8] sm:$0xff] }
 0x450   : > { %11541 = vmatprep.subr.bf16.mxu0 %v17966_v24  ;;  %11912 = vmatprep.subr.bf16.mxu1 %v17968_v25  ;;  %v1099_v23 = vld [vmem:[%s21553_s18 + $0x15e8] sm:$0xff]  ;;  %v18061_v24 = vcombine.low %v1074_v8, %v1082_v9  ;;  %v18063_v25 = vcombine.low %v1075_v10, %v1083_v11  ;;  %v1186_v9 = vld [vmem:[%s21553_s18 + $0x18a0] sm:$0xff] }
 0x451   : > { %v18080_v27 = vcombine.high %v1091_v22, %v1099_v23  ;;  %v1194_v10 = vld [vmem:[%s21553_s18 + $0x18e0] sm:$0xff]  ;;  %v1187_v11 = vld [vmem:[%s21553_s18 + $0x18a8] sm:$0xff] }
 0x453   : > { %11542 = vmatpush1.bf16.msra.mxu0 %v17965_v31  ;;  %11913 = vmatpush1.bf16.msra.mxu1 %v17967_v32  ;;  %v1115_v31 = vld [vmem:[%s21553_s18 + $0x1668] sm:$0xff]  ;;  %v18077_v32 = vcombine.low %v1090_v17, %v1098_v20  ;;  %v1202_v20 = vld [vmem:[%s21553_s18 + $0x1920] sm:$0xff] }
 0x454   : > { %11543 = vmatprep.subr.bf16.mxu0 %v17982_v33  ;;  %11914 = vmatprep.subr.bf16.mxu1 %v17984_v34  ;;  %v18079_v33 = vcombine.low %v1091_v22, %v1099_v23  ;;  %v18094_v34 = vcombine.high %v1106_v28, %v1114_v29  ;;  %v18096_v35 = vcombine.high %v1107_v30, %v1115_v31  ;;  %v1210_v22 = vld [vmem:[%s21553_s18 + $0x1960] sm:$0xff] }
 0x455   : > { %v21019_v23 = vld [vmem:[#allocation6 + $0x10] ss:$52 sps:$4 sm:$0xff]  }
 0x457   : > { %11544 = vmatpush1.bf16.msra.mxu0 %v17981_v39  ;;  %11915 = vmatpush1.bf16.msra.mxu1 %v17983_v40  ;;  %v1131_v39 = vld [vmem:[%s21553_s18 + $0x16e8] sm:$0xff]  ;;  %v18093_v40 = vcombine.low %v1106_v28, %v1114_v29  ;;  %v18190_v28 = vcombine.high %v1202_v20, %v1210_v22 }
 0x458   : > { %11545 = vmatprep.subr.bf16.mxu0 %v17998_v41  ;;  %11916 = vmatprep.subr.bf16.mxu1 %v18000_v42  ;;  %v18095_v41 = vcombine.low %v1107_v30, %v1115_v31  ;;  %v18110_v42 = vcombine.high %v1122_v36, %v1130_v37  ;;  %v18112_v43 = vcombine.high %v1123_v38, %v1131_v39  ;;  %v1218_v30 = vld [vmem:[%s21553_s18 + $0x19a0] sm:$0xff] }
 0x459   : > { %v1226_v31 = vld [vmem:[%s21553_s18 + $0x19e0] sm:$0xff] }
 0x45b   : > { %11546 = vmatpush1.bf16.msra.mxu0 %v17997_v48  ;;  %11917 = vmatpush1.bf16.msra.mxu1 %v17999_v49  ;;  %v1147_v48 = vld [vmem:[%s21553_s18 + $0x1768] sm:$0xff]  ;;  %v18109_v49 = vcombine.low %v1122_v36, %v1130_v37  ;;  %v18206_v37 = vcombine.high %v1218_v30, %v1226_v31 }
 0x45c   : > { %11547 = vmatprep.subr.bf16.mxu0 %v18014_v50  ;;  %11918 = vmatprep.subr.bf16.mxu1 %v18016_v52  ;;  %v18111_v50 = vcombine.low %v1123_v38, %v1131_v39  ;;  %v18126_v52 = vcombine.high %v1138_v44, %v1146_v45  ;;  %v18128_v53 = vcombine.high %v1139_v47, %v1147_v48  ;;  %v1234_v39 = vld [vmem:[%s21553_s18 + $0x1a20] sm:$0xff] }
 0x45f   : > { %11548 = vmatpush1.bf16.msra.mxu0 %v18013_v60  ;;  %11919 = vmatpush1.bf16.msra.mxu1 %v18015_v61  ;;  %v1163_v60 = vld [vmem:[%s21553_s18 + $0x17e8] sm:$0xff]  ;;  %v18125_v61 = vcombine.low %v1138_v44, %v1146_v45  ;;  %v18205_v44 = vcombine.low %v1218_v30, %v1226_v31 }
 0x460   : > { %11549 = vmatprep.subr.bf16.mxu0 %v18030_v62  ;;  %11920 = vmatprep.subr.bf16.mxu1 %v18032_v63  ;;  %v18127_v62 = vcombine.low %v1139_v47, %v1147_v48  ;;  %v18142_v63 = vcombine.high %v1154_v54, %v1162_v57  ;;  %v18144_v0 = vcombine.high %v1155_v59, %v1163_v60 }
 0x463   : > { %11550 = vmatpush1.bf16.msra.mxu0 %v18029_v4  ;;  %11921 = vmatpush1.bf16.msra.mxu1 %v18031_v5  ;;  %v1179_v4 = vld [vmem:[%s21553_s18 + $0x1868] sm:$0xff]  ;;  %v18141_v5 = vcombine.low %v1154_v54, %v1162_v57 }
 0x464   : > { %11551 = vmatprep.subr.bf16.mxu0 %v18046_v6  ;;  %11922 = vmatprep.subr.bf16.mxu1 %v18048_v7  ;;  %v18143_v6 = vcombine.low %v1155_v59, %v1163_v60  ;;  %v18158_v7 = vcombine.high %v1170_v1, %v1178_v2  ;;  %v18160_v8 = vcombine.high %v1171_v3, %v1179_v4  ;;  %v1259_v54 = vld [vmem:[%s21553_s18 + $0x1ae8] sm:$0xff] }
 0x467   : > { %11552 = vmatpush1.bf16.msra.mxu0 %v18045_v12  ;;  %11923 = vmatpush1.bf16.msra.mxu1 %v18047_v13  ;;  %v1195_v12 = vld [vmem:[%s21553_s18 + $0x18e8] sm:$0xff]  ;;  %v18157_v13 = vcombine.low %v1170_v1, %v1178_v2 }
 0x468   : > { %11553 = vmatprep.subr.bf16.mxu0 %v18062_v15  ;;  %11924 = vmatprep.subr.bf16.mxu1 %v18064_v16  ;;  %v18159_v15 = vcombine.low %v1171_v3, %v1179_v4  ;;  %v18174_v16 = vcombine.high %v1186_v9, %v1194_v10  ;;  %v18176_v17 = vcombine.high %v1187_v11, %v1195_v12  ;;  %v1275_v1 = vld [vmem:[%s21553_s18 + $0x1b68] sm:$0xff] }
 0x46b   : > { %11554 = vmatpush1.bf16.msra.mxu0 %v18061_v24  ;;  %11925 = vmatpush1.bf16.msra.mxu1 %v18063_v25  ;;  %v1203_v24 = vld [vmem:[%s21553_s18 + $0x1928] sm:$0xff] }
 0x46c   : > { %11555 = vmatprep.subr.bf16.mxu0 %v18078_v26  ;;  %11926 = vmatprep.subr.bf16.mxu1 %v18080_v27  ;;  %v1211_v25 = vld [vmem:[%s21553_s18 + $0x1968] sm:$0xff]  ;;  %v18173_v26 = vcombine.low %v1186_v9, %v1194_v10  ;;  %v18175_v27 = vcombine.low %v1187_v11, %v1195_v12 }
 0x46d   : > { %v18192_v29 = vcombine.high %v1203_v24, %v1211_v25  ;;  %v18191_v36 = vcombine.low %v1203_v24, %v1211_v25  ;;  %v22645_v12 = vld [vmem:[%s21553_s18 + $0x1ba8] sm:$0xff] }
 0x46f   : > { %11556 = vmatpush1.bf16.msra.mxu0 %v18077_v32  ;;  %11927 = vmatpush1.bf16.msra.mxu1 %v18079_v33  ;;  %v21020_v32 = vld [vmem:[#allocation6 + $0x7c] ss:$52 sps:$4 sm:$0xff]   ;;  %v1219_v33 = vld [vmem:[%s21553_s18 + $0x19a8] sm:$0xff] }
 0x470   : > { %11557 = vmatprep.subr.bf16.mxu0 %v18094_v34  ;;  %11928 = vmatprep.subr.bf16.mxu1 %v18096_v35  ;;  %v1227_v34 = vld [vmem:[%s21553_s18 + $0x19e8] sm:$0xff]  ;;  %v18189_v35 = vcombine.low %v1202_v20, %v1210_v22 }
 0x471   : > { %v18208_v38 = vcombine.high %v1219_v33, %v1227_v34  ;;  %v18207_v45 = vcombine.low %v1219_v33, %v1227_v34  ;;  %v22656_v34 = vld [vmem:[%s21553_s18 + $0x1c60] sm:$0xff] }
 0x473   : > { %11558 = vmatpush1.bf16.msra.mxu0 %v18093_v40  ;;  %11929 = vmatpush1.bf16.msra.mxu1 %v18095_v41  ;;  %v1242_v40 = vld [vmem:[%s21553_s18 + $0x1a60] sm:$0xff]  ;;  %v1235_v41 = vld [vmem:[%s21553_s18 + $0x1a28] sm:$0xff] }
 0x474   : > { %11559 = vmatprep.subr.bf16.mxu0 %v18110_v42  ;;  %11930 = vmatprep.subr.bf16.mxu1 %v18112_v43  ;;  %v1243_v42 = vld [vmem:[%s21553_s18 + $0x1a68] sm:$0xff]  ;;  %v18222_v47 = vcombine.high %v1234_v39, %v1242_v40  ;;  %v18221_v57 = vcombine.low %v1234_v39, %v1242_v40 }
 0x475   : > { %v21021_v43 = vld [vmem:[#allocation6 + $0x78] ss:$52 sps:$4 sm:$0xff]   ;;  %v18224_v48 = vcombine.high %v1235_v41, %v1243_v42  ;;  %v18223_v59 = vcombine.low %v1235_v41, %v1243_v42 }
 0x477   : > { %11560 = vmatpush1.bf16.msra.mxu0 %v18109_v49  ;;  %11931 = vmatpush1.bf16.msra.mxu1 %v18111_v50  ;;  %v1250_v49 = vld [vmem:[%s21553_s18 + $0x1aa0] sm:$0xff] }
 0x478   : > { %11561 = vmatprep.subr.bf16.mxu0 %v18126_v52  ;;  %11932 = vmatprep.subr.bf16.mxu1 %v18128_v53  ;;  %v1258_v50 = vld [vmem:[%s21553_s18 + $0x1ae0] sm:$0xff]  ;;  %v21022_v52 = vld [vmem:[#allocation6 + $0x1c] ss:$52 sps:$4 sm:$0xff]   ;;  %v1251_v53 = vld [vmem:[%s21553_s18 + $0x1aa8] sm:$0xff] }
 0x479   : > { %v18238_v60 = vcombine.high %v1250_v49, %v1258_v50  ;;  %v18237_v2 = vcombine.low %v1250_v49, %v1258_v50  ;;  %v18239_v3 = vcombine.low %v1251_v53, %v1259_v54  ;;  %v1322_v49 = vld [vmem:[%s21553_s18 + $0x1ce0] sm:$0xff] }
 0x47b   : > { %11562 = vmatpush1.bf16.msra.mxu0 %v18125_v61  ;;  %11933 = vmatpush1.bf16.msra.mxu1 %v18127_v62  ;;  %v18240_v61 = vcombine.high %v1251_v53, %v1259_v54  ;;  %v1266_v62 = vld [vmem:[%s21553_s18 + $0x1b20] sm:$0xff]  ;;  %v1315_v54 = vld [vmem:[%s21553_s18 + $0x1ca8] sm:$0xff] }
 0x47c   : > { %11563 = vmatprep.subr.bf16.mxu0 %v18142_v63  ;;  %11934 = vmatprep.subr.bf16.mxu1 %v18144_v0  ;;  %v1274_v63 = vld [vmem:[%s21553_s18 + $0x1b60] sm:$0xff]  ;;  %v1267_v0 = vld [vmem:[%s21553_s18 + $0x1b28] sm:$0xff] }
 0x47d   : > { %v18254_v4 = vcombine.high %v1266_v62, %v1274_v63  ;;  %v18253_v22 = vcombine.low %v1266_v62, %v1274_v63 }
 0x47f   : > { %11564 = vmatpush1.bf16.msra.mxu0 %v18141_v5  ;;  %11935 = vmatpush1.bf16.msra.mxu1 %v18143_v6  ;;  %v18256_v6 = vcombine.high %v1267_v0, %v1275_v1 }
 0x480   : > { %11586 = vmatprep.subr.bf16.mxu0 %v18158_v7  ;;  %11957 = vmatprep.subr.bf16.mxu1 %v18160_v8  ;;  %v1282_v7 = vld [vmem:[%s21553_s18 + $0x1ba0] sm:$0xff] }
 0x481   : > { %v1290_v8 = vld [vmem:[%s21553_s18 + $0x1be0] sm:$0xff] }
 0x482   : > { %11566 = vmatmul.mubr.bf16.vlgmr.msra.gmra.mrb[16].mxu0 %v21019_v23  ;;  %11937 = vmatmul.mubr.bf16.vlgmr.msra.gmra.mrb[16].mxu1 %v21019_v23  ;;  %v22649_v23 = vld [vmem:[%s21553_s18 + $0x1c20] sm:$0xff]  ;;  %v18269_v41 = vcombine.low %v1282_v7, %v1290_v8 }
 0x483   : > { %11587 = vmatpush1.bf16.msra.mxu0 %v18157_v13  ;;  %11958 = vmatpush1.bf16.msra.mxu1 %v18159_v15  ;;  %v1291_v13 = vld [vmem:[%s21553_s18 + $0x1be8] sm:$0xff]  ;;  %v18285_v63 = vcombine.low %v22649_v23, %v22656_v34 }
 0x484   : > { %11588 = vmatprep.subr.bf16.mxu0 %v18174_v16  ;;  %11959 = vmatprep.subr.bf16.mxu1 %v18176_v17  ;;  %v18272_v33 = vcombine.high %v22645_v12, %v1291_v13 }
 0x485   : > { %11575 = vmatprep.mubr.bf16.mxu0 %v21020_v32  ;;  %11946 = vmatprep.mubr.bf16.mxu1 %v21020_v32 }
 0x487   : > { %11589 = vmatpush1.bf16.msra.mxu0 %v18173_v26  ;;  %11960 = vmatpush1.bf16.msra.mxu1 %v18175_v27 }
 0x488   : > { %11590 = vmatprep.subr.bf16.mxu0 %v18190_v28  ;;  %11961 = vmatprep.subr.bf16.mxu1 %v18192_v29  ;;  %v18255_v28 = vcombine.low %v1267_v0, %v1275_v1  ;;  %v18270_v29 = vcombine.high %v1282_v7, %v1290_v8  ;;  %v1330_v0 = vld [vmem:[%s21553_s18 + $0x1d20] sm:$0xff] }
 0x48a   : > { %11576 = vmatmul.mubr.bf16.gmra.mrb[20].mxu0 %v21021_v43  ;;  %11947 = vmatmul.mubr.bf16.gmra.mrb[20].mxu1 %v21021_v43  ;;  %v18271_v43 = vcombine.low %v22645_v12, %v1291_v13 }
 0x48b   : > { %11591 = vmatpush1.bf16.msra.mxu0 %v18189_v35  ;;  %11962 = vmatpush1.bf16.msra.mxu1 %v18191_v36 }
 0x48c   : > { %11592 = vmatprep.subr.bf16.mxu0 %v18206_v37  ;;  %11963 = vmatprep.subr.bf16.mxu1 %v18208_v38  ;;  %v1299_v37 = vld [vmem:[%s21553_s18 + $0x1c28] sm:$0xff] }
 0x48d   : > { %11618 = vmatprep.mubr.bf16.mxu0 %v21022_v52  ;;  %11989 = vmatprep.mubr.bf16.mxu1 %v21022_v52  ;;  %v1307_v38 = vld [vmem:[%s21553_s18 + $0x1c68] sm:$0xff] }
 0x48f   : > { %11593 = vmatpush1.bf16.msra.mxu0 %v18205_v44  ;;  %11964 = vmatpush1.bf16.msra.mxu1 %v18207_v45  ;;  %v18286_v44 = vcombine.high %v22649_v23, %v22656_v34 }
 0x490   : > { %11594 = vmatprep.subr.bf16.mxu0 %v18222_v47  ;;  %11965 = vmatprep.subr.bf16.mxu1 %v18224_v48  ;;  %v18288_v47 = vcombine.high %v1299_v37, %v1307_v38  ;;  %v1314_v48 = vld [vmem:[%s21553_s18 + $0x1ca0] sm:$0xff] }
 0x493   : > { %11595 = vmatpush1.bf16.msra.mxu0 %v18221_v57  ;;  %11966 = vmatpush1.bf16.msra.mxu1 %v18223_v59  ;;  %v1323_v57 = vld [vmem:[%s21553_s18 + $0x1ce8] sm:$0xff] }
 0x494   : > { %11596 = vmatprep.subr.bf16.mxu0 %v18238_v60  ;;  %11967 = vmatprep.subr.bf16.mxu1 %v18240_v61 }
 0x495   : > { %v11037_v5 = vpop.f32.mrb[8].mxu0  ;;  %v11408_v10 = vpop.f32.mrb[8].mxu1 }
 0x496   : > { %v12915_v9 = vmul.f32 0.020408163, %v11037_v5  ;;  %v11039_v11 = vpop.f32.mrb[9].mxu0  ;;  %v12917_v15 = vmul.f32 0.020408163, %v11408_v10  ;;  %v11410_v17 = vpop.f32.mrb[9].mxu1  ;;  %v18287_v5 = vcombine.low %v1299_v37, %v1307_v38  ;;  %v18304_v10 = vcombine.high %v1315_v54, %v1323_v57 }
 0x497   : > { %v12916_v16 = vmul.f32 0.020408163, %v11039_v11  ;;  %11597 = vmatpush1.bf16.msra.mxu0 %v18237_v2  ;;  %v11041_v20 = vpop.f32.mrb[10].mxu0  ;;  %v12918_v24 = vmul.f32 0.020408163, %v11410_v17  ;;  %11968 = vmatpush1.bf16.msra.mxu1 %v18239_v3  ;;  %v11412_v26 = vpop.f32.mrb[10].mxu1 }
 0x498   : > { %12979 = vst [vmem:[%s22201_s10 + $0x20] sm:$0xff] %v12915_v9  ;;  %v12931_v25 = vmul.f32 0.020408163, %v11041_v20  ;;  %v11043_v27 = vpop.f32.mrb[11].mxu0  ;;  %11598 = vmatprep.subr.bf16.mxu0 %v18254_v4  ;;  %12981 = vst [vmem:[%s22201_s10 + $0x30] sm:$0xff] %v12917_v15  ;;  %v11414_v32 = vpop.f32.mrb[11].mxu1  ;;  %11969 = vmatprep.subr.bf16.mxu1 %v18256_v6  ;;  %v18302_v6 = vcombine.high %v1314_v48, %v1322_v49 }
 0x499   : > { %12980 = vst [vmem:[%s22201_s10 + $0x28] sm:$0xff] %v12916_v16  ;;  %v12933_v30 = vmul.f32 0.020408163, %v11412_v26  ;;  %v12932_v31 = vmul.f32 0.020408163, %v11043_v27  ;;  %12982 = vst [vmem:[%s22201_s10 + $0x38] sm:$0xff] %v12918_v24 }
 0x49a   : > { %12995 = vst [vmem:[%s22201_s10 + $0xa0] sm:$0xff] %v12931_v25  ;;  %v22660_v35 = vpack.c.bf16 %v12931_v25, %v12915_v9  ;;  %v12934_v36 = vmul.f32 0.020408163, %v11414_v32  ;;  %v1338_v11 = vld [vmem:[%s21553_s18 + $0x1d60] sm:$0xff]  ;;  %v1363_v38 = vld [vmem:[%s21553_s18 + $0x1e28] sm:$0xff] }
 0x49b   : > { %12997 = vst [vmem:[%s22201_s10 + $0xb0] sm:$0xff] %v12933_v30  ;;  %v22665_v39 = vpack.c.bf16 %v12933_v30, %v12917_v15  ;;  %12996 = vst [vmem:[%s22201_s10 + $0xa8] sm:$0xff] %v12932_v31  ;;  %v22668_v40 = vpack.c.bf16 %v12932_v31, %v12916_v16  ;;  %11599 = vmatpush1.bf16.msra.mxu0 %v18253_v22  ;;  %11970 = vmatpush1.bf16.msra.mxu1 %v18255_v28  ;;  %v1331_v15 = vld [vmem:[%s21553_s18 + $0x1d28] sm:$0xff]  ;;  %v1346_v27 = vld [vmem:[%s21553_s18 + $0x1da0] sm:$0xff] }
 0x49c   : > { %12998 = vst [vmem:[%s22201_s10 + $0xb8] sm:$0xff] %v12934_v36  ;;  %v22671_v42 = vpack.c.bf16 %v12934_v36, %v12918_v24  ;;  %11600 = vmatprep.subr.bf16.mxu0 %v18270_v29  ;;  %11971 = vmatprep.subr.bf16.mxu1 %v18272_v33  ;;  %v1339_v16 = vld [vmem:[%s21553_s18 + $0x1d68] sm:$0xff]  ;;  %v18301_v22 = vcombine.low %v1314_v48, %v1322_v49  ;;  %v1354_v28 = vld [vmem:[%s21553_s18 + $0x1de0] sm:$0xff] }
 0x49d   : > { %v11047_v45 = vpop.f32.mrb[12].mxu0  ;;  %v11418_v52 = vpop.f32.mrb[12].mxu1  ;;  %v18303_v24 = vcombine.low %v1315_v54, %v1323_v57  ;;  %v18318_v25 = vcombine.high %v1330_v0, %v1338_v11  ;;  %v18320_v26 = vcombine.high %v1331_v15, %v1339_v16  ;;  %v1347_v29 = vld [vmem:[%s21553_s18 + $0x1da8] sm:$0xff]  ;;  %v18317_v31 = vcombine.low %v1330_v0, %v1338_v11  ;;  %v1362_v36 = vld [vmem:[%s21553_s18 + $0x1e20] sm:$0xff] }
 0x49e   : > { %v12947_v50 = vmul.f32 0.020408163, %v11047_v45  ;;  %v11049_v53 = vpop.f32.mrb[13].mxu0  ;;  %v12949_v59 = vmul.f32 0.020408163, %v11418_v52  ;;  %v11420_v61 = vpop.f32.mrb[13].mxu1  ;;  %v18319_v32 = vcombine.low %v1331_v15, %v1339_v16  ;;  %v18334_v33 = vcombine.high %v1346_v27, %v1354_v28 }
 0x49f   : > { %v12948_v60 = vmul.f32 0.020408163, %v11049_v53  ;;  %11601 = vmatpush1.bf16.msra.mxu0 %v18269_v41  ;;  %v11051_v62 = vpop.f32.mrb[14].mxu0  ;;  %v12950_v1 = vmul.f32 0.020408163, %v11420_v61  ;;  %11972 = vmatpush1.bf16.msra.mxu1 %v18271_v43  ;;  %v11422_v3 = vpop.f32.mrb[14].mxu1  ;;  %v18333_v43 = vcombine.low %v1346_v27, %v1354_v28 }
 0x4a0   : > { %13011 = vst [vmem:[%s22201_s10 + $0x120] sm:$0xff] %v12947_v50  ;;  %v12963_v2 = vmul.f32 0.020408163, %v11051_v62  ;;  %v11053_v4 = vpop.f32.mrb[15].mxu0  ;;  %11602 = vmatprep.subr.bf16.mxu0 %v18286_v44  ;;  %13013 = vst [vmem:[%s22201_s10 + $0x130] sm:$0xff] %v12949_v59  ;;  %v11424_v9 = vpop.f32.mrb[15].mxu1  ;;  %11973 = vmatprep.subr.bf16.mxu1 %v18288_v47 }
 0x4a1   : > { %13012 = vst [vmem:[%s22201_s10 + $0x128] sm:$0xff] %v12948_v60  ;;  %v12965_v7 = vmul.f32 0.020408163, %v11422_v3  ;;  %v12964_v8 = vmul.f32 0.020408163, %v11053_v4  ;;  %13014 = vst [vmem:[%s22201_s10 + $0x138] sm:$0xff] %v12950_v1 }
 0x4a2   : > { %13027 = vst [vmem:[%s22201_s10 + $0x1a0] sm:$0xff] %v12963_v2  ;;  %v22689_v12 = vpack.c.bf16 %v12963_v2, %v12947_v50  ;;  %v12966_v13 = vmul.f32 0.020408163, %v11424_v9  ;;  %v1355_v30 = vld [vmem:[%s21553_s18 + $0x1de8] sm:$0xff]  ;;  %v1370_v37 = vld [vmem:[%s21553_s18 + $0x1e60] sm:$0xff] }
 0x4a3   : > { %13029 = vst [vmem:[%s22201_s10 + $0x1b0] sm:$0xff] %v12965_v7  ;;  %v22694_v17 = vpack.c.bf16 %v12965_v7, %v12949_v59  ;;  %13028 = vst [vmem:[%s22201_s10 + $0x1a8] sm:$0xff] %v12964_v8  ;;  %v22697_v20 = vpack.c.bf16 %v12964_v8, %v12948_v60  ;;  %11603 = vmatpush1.bf16.msra.mxu0 %v18285_v63  ;;  %11974 = vmatpush1.bf16.msra.mxu1 %v18287_v5  ;;  %v1371_v41 = vld [vmem:[%s21553_s18 + $0x1e68] sm:$0xff]  ;;  %v1378_v48 = vld [vmem:[%s21553_s18 + $0x1ea0] sm:$0xff] }
 0x4a4   : > { %13030 = vst [vmem:[%s22201_s10 + $0x1b8] sm:$0xff] %v12966_v13  ;;  %v22700_v23 = vpack.c.bf16 %v12966_v13, %v12950_v1  ;;  %11604 = vmatprep.subr.bf16.mxu0 %v18302_v6  ;;  %11975 = vmatprep.subr.bf16.mxu1 %v18304_v10  ;;  %v18336_v34 = vcombine.high %v1347_v29, %v1355_v30  ;;  %v1386_v49 = vld [vmem:[%s21553_s18 + $0x1ee0] sm:$0xff]  ;;  %v1379_v50 = vld [vmem:[%s21553_s18 + $0x1ea8] sm:$0xff] }
 0x4a5   : > { %v18335_v44 = vcombine.low %v1347_v29, %v1355_v30  ;;  %v18350_v45 = vcombine.high %v1362_v36, %v1370_v37  ;;  %v18352_v47 = vcombine.high %v1363_v38, %v1371_v41  ;;  %v1387_v52 = vld [vmem:[%s21553_s18 + $0x1ee8] sm:$0xff]  ;;  %v18349_v53 = vcombine.low %v1362_v36, %v1370_v37  ;;  %v1394_v60 = vld [vmem:[%s21553_s18 + $0x1f20] sm:$0xff] }
 0x4a6   : > { %v18351_v54 = vcombine.low %v1363_v38, %v1371_v41  ;;  %v18366_v57 = vcombine.high %v1378_v48, %v1386_v49  ;;  %v18368_v59 = vcombine.high %v1379_v50, %v1387_v52  ;;  %v1402_v61 = vld [vmem:[%s21553_s18 + $0x1f60] sm:$0xff]  ;;  %v1395_v62 = vld [vmem:[%s21553_s18 + $0x1f28] sm:$0xff]  ;;  %v18365_v0 = vcombine.low %v1378_v48, %v1386_v49 }
 0x4a7   : > { %11605 = vmatpush1.bf16.msra.mxu0 %v18301_v22  ;;  %11976 = vmatpush1.bf16.msra.mxu1 %v18303_v24  ;;  %v1403_v63 = vld [vmem:[%s21553_s18 + $0x1f68] sm:$0xff]  ;;  %v18367_v1 = vcombine.low %v1379_v50, %v1387_v52  ;;  %v18382_v2 = vcombine.high %v1394_v60, %v1402_v61  ;;  %v1410_v4 = vld [vmem:[%s21553_s18 + $0x1fa0] sm:$0xff]  ;;  %v18381_v8 = vcombine.low %v1394_v60, %v1402_v61 }
 0x4a8   : > { %11606 = vmatprep.subr.bf16.mxu0 %v18318_v25  ;;  %11977 = vmatprep.subr.bf16.mxu1 %v18320_v26  ;;  %v18384_v3 = vcombine.high %v1395_v62, %v1403_v63  ;;  %v1418_v5 = vld [vmem:[%s21553_s18 + $0x1fe0] sm:$0xff]  ;;  %v1411_v6 = vld [vmem:[%s21553_s18 + $0x1fa8] sm:$0xff]  ;;  %v18383_v9 = vcombine.low %v1395_v62, %v1403_v63 }
 0x4a9   : > { %v1419_v7 = vld [vmem:[%s21553_s18 + $0x1fe8] sm:$0xff]  ;;  %v18398_v10 = vcombine.high %v1410_v4, %v1418_v5  ;;  %v1426_v13 = vld [vmem:[%s21553_s18 + $0x2020] sm:$0xff]  ;;  %v18397_v24 = vcombine.low %v1410_v4, %v1418_v5 }
 0x4aa   : > { %v18400_v11 = vcombine.high %v1411_v6, %v1419_v7  ;;  %v1434_v15 = vld [vmem:[%s21553_s18 + $0x2060] sm:$0xff]  ;;  %v1427_v16 = vld [vmem:[%s21553_s18 + $0x2028] sm:$0xff]  ;;  %v18399_v25 = vcombine.low %v1411_v6, %v1419_v7 }
 0x4ab   : > { %11607 = vmatpush1.bf16.msra.mxu0 %v18317_v31  ;;  %11978 = vmatpush1.bf16.msra.mxu1 %v18319_v32  ;;  %v1435_v22 = vld [vmem:[%s21553_s18 + $0x2068] sm:$0xff]  ;;  %v18414_v26 = vcombine.high %v1426_v13, %v1434_v15  ;;  %v1442_v28 = vld [vmem:[%s21553_s18 + $0x20a0] sm:$0xff]  ;;  %v18413_v32 = vcombine.low %v1426_v13, %v1434_v15 }
 0x4ac   : > { %11608 = vmatprep.subr.bf16.mxu0 %v18334_v33  ;;  %11979 = vmatprep.subr.bf16.mxu1 %v18336_v34  ;;  %v18416_v27 = vcombine.high %v1427_v16, %v1435_v22  ;;  %v1450_v29 = vld [vmem:[%s21553_s18 + $0x20e0] sm:$0xff]  ;;  %v1443_v30 = vld [vmem:[%s21553_s18 + $0x20a8] sm:$0xff]  ;;  %v18415_v33 = vcombine.low %v1427_v16, %v1435_v22 }
 0x4ad   : > { %v1451_v31 = vld [vmem:[%s21553_s18 + $0x20e8] sm:$0xff]  ;;  %v18430_v34 = vcombine.high %v1442_v28, %v1450_v29  ;;  %v1458_v37 = vld [vmem:[%s21553_s18 + $0x2120] sm:$0xff] }
 0x4ae   : > { %v18432_v36 = vcombine.high %v1443_v30, %v1451_v31  ;;  %v1466_v38 = vld [vmem:[%s21553_s18 + $0x2160] sm:$0xff]  ;;  %v21023_v41 = vld [vmem:[#allocation6 + $0x18] ss:$52 sps:$4 sm:$0xff]  }
 0x4af   : > { %11609 = vmatpush1.bf16.msra.mxu0 %v18333_v43  ;;  %11980 = vmatpush1.bf16.msra.mxu1 %v18335_v44  ;;  %v1459_v43 = vld [vmem:[%s21553_s18 + $0x2128] sm:$0xff]  ;;  %v18446_v48 = vcombine.high %v1458_v37, %v1466_v38  ;;  %v1474_v50 = vld [vmem:[%s21553_s18 + $0x21a0] sm:$0xff] }
 0x4b0   : > { %11610 = vmatprep.subr.bf16.mxu0 %v18350_v45  ;;  %11981 = vmatprep.subr.bf16.mxu1 %v18352_v47  ;;  %v1467_v44 = vld [vmem:[%s21553_s18 + $0x2168] sm:$0xff]  ;;  %v18429_v45 = vcombine.low %v1442_v28, %v1450_v29  ;;  %v18431_v47 = vcombine.low %v1443_v30, %v1451_v31  ;;  %v1482_v52 = vld [vmem:[%s21553_s18 + $0x21e0] sm:$0xff] }
 0x4b1   : > { %v18448_v49 = vcombine.high %v1459_v43, %v1467_v44  ;;  %v18447_v60 = vcombine.low %v1459_v43, %v1467_v44  ;;  %v18462_v61 = vcombine.high %v1474_v50, %v1482_v52  ;;  %v1490_v63 = vld [vmem:[%s21553_s18 + $0x2220] sm:$0xff]  ;;  %v18461_v4 = vcombine.low %v1474_v50, %v1482_v52  ;;  %v1515_v13 = vld [vmem:[%s21553_s18 + $0x22e8] sm:$0xff] }
 0x4b2   : > { %v1531_v28 = vld [vmem:[%s21553_s18 + $0x2368] sm:$0xff] }
 0x4b3   : > { %11611 = vmatpush1.bf16.msra.mxu0 %v18349_v53  ;;  %11982 = vmatpush1.bf16.msra.mxu1 %v18351_v54  ;;  %v21024_v53 = vld [vmem:[#allocation6 + $0x84] ss:$52 sps:$4 sm:$0xff]   ;;  %v1475_v54 = vld [vmem:[%s21553_s18 + $0x21a8] sm:$0xff] }
 0x4b4   : > { %11612 = vmatprep.subr.bf16.mxu0 %v18366_v57  ;;  %11983 = vmatprep.subr.bf16.mxu1 %v18368_v59  ;;  %v1483_v57 = vld [vmem:[%s21553_s18 + $0x21e8] sm:$0xff]  ;;  %v18445_v59 = vcombine.low %v1458_v37, %v1466_v38 }
 0x4b5   : > { %v18464_v62 = vcombine.high %v1475_v54, %v1483_v57  ;;  %v18463_v5 = vcombine.low %v1475_v54, %v1483_v57  ;;  %v1547_v37 = vld [vmem:[%s21553_s18 + $0x23e8] sm:$0xff]  ;;  %v1570_v57 = vld [vmem:[%s21553_s18 + $0x24a0] sm:$0xff] }
 0x4b7   : > { %11613 = vmatpush1.bf16.msra.mxu0 %v18365_v0  ;;  %11984 = vmatpush1.bf16.msra.mxu1 %v18367_v1  ;;  %v1498_v0 = vld [vmem:[%s21553_s18 + $0x2260] sm:$0xff]  ;;  %v1491_v1 = vld [vmem:[%s21553_s18 + $0x2228] sm:$0xff] }
 0x4b8   : > { %11614 = vmatprep.subr.bf16.mxu0 %v18382_v2  ;;  %11985 = vmatprep.subr.bf16.mxu1 %v18384_v3  ;;  %v1499_v2 = vld [vmem:[%s21553_s18 + $0x2268] sm:$0xff]  ;;  %v21025_v3 = vld [vmem:[#allocation6 + $0x80] ss:$52 sps:$4 sm:$0xff]   ;;  %v18478_v6 = vcombine.high %v1490_v63, %v1498_v0  ;;  %v18477_v15 = vcombine.low %v1490_v63, %v1498_v0 }
 0x4b9   : > { %v18480_v7 = vcombine.high %v1491_v1, %v1499_v2  ;;  %v18479_v16 = vcombine.low %v1491_v1, %v1499_v2  ;;  %v1586_v2 = vld [vmem:[%s21553_s18 + $0x2520] sm:$0xff] }
 0x4bb   : > { %11615 = vmatpush1.bf16.msra.mxu0 %v18381_v8  ;;  %11986 = vmatpush1.bf16.msra.mxu1 %v18383_v9  ;;  %v1506_v8 = vld [vmem:[%s21553_s18 + $0x22a0] sm:$0xff] }
 0x4bc   : > { %11616 = vmatprep.subr.bf16.mxu0 %v18398_v10  ;;  %11987 = vmatprep.subr.bf16.mxu1 %v18400_v11  ;;  %v1514_v9 = vld [vmem:[%s21553_s18 + $0x22e0] sm:$0xff]  ;;  %v1507_v11 = vld [vmem:[%s21553_s18 + $0x22a8] sm:$0xff] }
 0x4bd   : > { %v21026_v10 = vld [vmem:[#allocation6 + $0x24] ss:$52 sps:$4 sm:$0xff]   ;;  %v18494_v22 = vcombine.high %v1506_v8, %v1514_v9  ;;  %v18493_v29 = vcombine.low %v1506_v8, %v1514_v9  ;;  %v18495_v30 = vcombine.low %v1507_v11, %v1515_v13 }
 0x4bf   : > { %11617 = vmatpush1.bf16.msra.mxu0 %v18397_v24  ;;  %11988 = vmatpush1.bf16.msra.mxu1 %v18399_v25  ;;  %v18496_v24 = vcombine.high %v1507_v11, %v1515_v13  ;;  %v1522_v25 = vld [vmem:[%s21553_s18 + $0x2320] sm:$0xff]  ;;  %v1603_v13 = vld [vmem:[%s21553_s18 + $0x25a8] sm:$0xff] }
 0x4c0   : > { %11639 = vmatprep.subr.bf16.mxu0 %v18414_v26  ;;  %12010 = vmatprep.subr.bf16.mxu1 %v18416_v27  ;;  %v1530_v26 = vld [vmem:[%s21553_s18 + $0x2360] sm:$0xff]  ;;  %v1523_v27 = vld [vmem:[%s21553_s18 + $0x2328] sm:$0xff] }
 0x4c1   : > { %v18510_v31 = vcombine.high %v1522_v25, %v1530_v26  ;;  %v18509_v38 = vcombine.low %v1522_v25, %v1530_v26  ;;  %v1610_v11 = vld [vmem:[%s21553_s18 + $0x25e0] sm:$0xff] }
 0x4c2   : > { %11619 = vmatmul.mubr.bf16.vlgmr.msra.gmra.mrb[16].mxu0 %v21023_v41  ;;  %11990 = vmatmul.mubr.bf16.vlgmr.msra.gmra.mrb[16].mxu1 %v21023_v41  ;;  %v18511_v41 = vcombine.low %v1523_v27, %v1531_v28  ;;  %v1618_v26 = vld [vmem:[%s21553_s18 + $0x2620] sm:$0xff] }
 0x4c3   : > { %11640 = vmatpush1.bf16.msra.mxu0 %v18413_v32  ;;  %12011 = vmatpush1.bf16.msra.mxu1 %v18415_v33  ;;  %v18512_v32 = vcombine.high %v1523_v27, %v1531_v28  ;;  %v1538_v33 = vld [vmem:[%s21553_s18 + $0x23a0] sm:$0xff]  ;;  %v1619_v28 = vld [vmem:[%s21553_s18 + $0x2628] sm:$0xff] }
 0x4c4   : > { %11641 = vmatprep.subr.bf16.mxu0 %v18430_v34  ;;  %12012 = vmatprep.subr.bf16.mxu1 %v18432_v36  ;;  %v1546_v34 = vld [vmem:[%s21553_s18 + $0x23e0] sm:$0xff]  ;;  %v1539_v36 = vld [vmem:[%s21553_s18 + $0x23a8] sm:$0xff] }
 0x4c5   : > { %11628 = vmatprep.mubr.bf16.mxu0 %v21024_v53  ;;  %11999 = vmatprep.mubr.bf16.mxu1 %v21024_v53  ;;  %v18526_v43 = vcombine.high %v1538_v33, %v1546_v34  ;;  %v18528_v44 = vcombine.high %v1539_v36, %v1547_v37  ;;  %v18525_v50 = vcombine.low %v1538_v33, %v1546_v34  ;;  %v1626_v27 = vld [vmem:[%s21553_s18 + $0x2660] sm:$0xff] }
 0x4c6   : > { %v18527_v52 = vcombine.low %v1539_v36, %v1547_v37  ;;  %v1634_v34 = vld [vmem:[%s21553_s18 + $0x26a0] sm:$0xff]  ;;  %v1635_v37 = vld [vmem:[%s21553_s18 + $0x26a8] sm:$0xff] }
 0x4c7   : > { %11642 = vmatpush1.bf16.msra.mxu0 %v18429_v45  ;;  %12013 = vmatpush1.bf16.msra.mxu1 %v18431_v47  ;;  %v1554_v45 = vld [vmem:[%s21553_s18 + $0x2420] sm:$0xff] }
 0x4c8   : > { %11643 = vmatprep.subr.bf16.mxu0 %v18446_v48  ;;  %12014 = vmatprep.subr.bf16.mxu1 %v18448_v49  ;;  %v1562_v47 = vld [vmem:[%s21553_s18 + $0x2460] sm:$0xff]  ;;  %v1555_v48 = vld [vmem:[%s21553_s18 + $0x2428] sm:$0xff] }
 0x4c9   : > { %v1563_v49 = vld [vmem:[%s21553_s18 + $0x2468] sm:$0xff]  ;;  %v18542_v53 = vcombine.high %v1554_v45, %v1562_v47  ;;  %v1642_v36 = vld [vmem:[%s21553_s18 + $0x26e0] sm:$0xff] }
 0x4ca   : > { %11629 = vmatmul.mubr.bf16.gmra.mrb[20].mxu0 %v21025_v3  ;;  %12000 = vmatmul.mubr.bf16.gmra.mrb[20].mxu1 %v21025_v3  ;;  %v18544_v54 = vcombine.high %v1555_v48, %v1563_v49  ;;  %v18543_v63 = vcombine.low %v1555_v48, %v1563_v49  ;;  %v1594_v3 = vld [vmem:[%s21553_s18 + $0x2560] sm:$0xff]  ;;  %v1651_v49 = vld [vmem:[%s21553_s18 + $0x2728] sm:$0xff] }
 0x4cb   : > { %11644 = vmatpush1.bf16.msra.mxu0 %v18445_v59  ;;  %12015 = vmatpush1.bf16.msra.mxu1 %v18447_v60  ;;  %v1578_v59 = vld [vmem:[%s21553_s18 + $0x24e0] sm:$0xff]  ;;  %v1571_v60 = vld [vmem:[%s21553_s18 + $0x24a8] sm:$0xff]  ;;  %v18574_v8 = vcombine.high %v1586_v2, %v1594_v3 }
 0x4cc   : > { %11645 = vmatprep.subr.bf16.mxu0 %v18462_v61  ;;  %12016 = vmatprep.subr.bf16.mxu1 %v18464_v62  ;;  %v1579_v61 = vld [vmem:[%s21553_s18 + $0x24e8] sm:$0xff]  ;;  %v18541_v62 = vcombine.low %v1554_v45, %v1562_v47  ;;  %v18558_v0 = vcombine.high %v1570_v57, %v1578_v59  ;;  %v1650_v47 = vld [vmem:[%s21553_s18 + $0x2720] sm:$0xff] }
 0x4cd   : > { %11671 = vmatprep.mubr.bf16.mxu0 %v21026_v10  ;;  %12042 = vmatprep.mubr.bf16.mxu1 %v21026_v10  ;;  %v18560_v1 = vcombine.high %v1571_v60, %v1579_v61  ;;  %v1602_v10 = vld [vmem:[%s21553_s18 + $0x25a0] sm:$0xff] }
 0x4ce   : > { %v1658_v48 = vld [vmem:[%s21553_s18 + $0x2760] sm:$0xff] }
 0x4cf   : > { %11646 = vmatpush1.bf16.msra.mxu0 %v18461_v4  ;;  %12017 = vmatpush1.bf16.msra.mxu1 %v18463_v5  ;;  %v1587_v4 = vld [vmem:[%s21553_s18 + $0x2528] sm:$0xff] }
 0x4d0   : > { %11647 = vmatprep.subr.bf16.mxu0 %v18478_v6  ;;  %12018 = vmatprep.subr.bf16.mxu1 %v18480_v7  ;;  %v1595_v5 = vld [vmem:[%s21553_s18 + $0x2568] sm:$0xff]  ;;  %v18557_v6 = vcombine.low %v1570_v57, %v1578_v59  ;;  %v18559_v7 = vcombine.low %v1571_v60, %v1579_v61  ;;  %v1666_v59 = vld [vmem:[%s21553_s18 + $0x27a0] sm:$0xff] }
 0x4d1   : > { %v18576_v9 = vcombine.high %v1587_v4, %v1595_v5  ;;  %v1674_v60 = vld [vmem:[%s21553_s18 + $0x27e0] sm:$0xff]  ;;  %v1667_v61 = vld [vmem:[%s21553_s18 + $0x27a8] sm:$0xff] }
 0x4d3   : > { %11648 = vmatpush1.bf16.msra.mxu0 %v18477_v15  ;;  %12019 = vmatpush1.bf16.msra.mxu1 %v18479_v16  ;;  %v1611_v15 = vld [vmem:[%s21553_s18 + $0x25e8] sm:$0xff]  ;;  %v18573_v16 = vcombine.low %v1586_v2, %v1594_v3  ;;  %v1682_v3 = vld [vmem:[%s21553_s18 + $0x2820] sm:$0xff] }
 0x4d4   : > { %11649 = vmatprep.subr.bf16.mxu0 %v18494_v22  ;;  %12020 = vmatprep.subr.bf16.mxu1 %v18496_v24  ;;  %v18575_v22 = vcombine.low %v1587_v4, %v1595_v5  ;;  %v18590_v24 = vcombine.high %v1602_v10, %v1610_v11  ;;  %v18592_v25 = vcombine.high %v1603_v13, %v1611_v15  ;;  %v1690_v4 = vld [vmem:[%s21553_s18 + $0x2860] sm:$0xff]  ;;  %v1683_v5 = vld [vmem:[%s21553_s18 + $0x2828] sm:$0xff] }
 0x4d7   : > { %11650 = vmatpush1.bf16.msra.mxu0 %v18493_v29  ;;  %12021 = vmatpush1.bf16.msra.mxu1 %v18495_v30  ;;  %v1627_v29 = vld [vmem:[%s21553_s18 + $0x2668] sm:$0xff]  ;;  %v18589_v30 = vcombine.low %v1602_v10, %v1610_v11  ;;  %v1698_v11 = vld [vmem:[%s21553_s18 + $0x28a0] sm:$0xff] }
 0x4d8   : > { %11651 = vmatprep.subr.bf16.mxu0 %v18510_v31  ;;  %12022 = vmatprep.subr.bf16.mxu1 %v18512_v32  ;;  %v18591_v31 = vcombine.low %v1603_v13, %v1611_v15  ;;  %v18606_v32 = vcombine.high %v1618_v26, %v1626_v27  ;;  %v18608_v33 = vcombine.high %v1619_v28, %v1627_v29  ;;  %v1706_v13 = vld [vmem:[%s21553_s18 + $0x28e0] sm:$0xff]  ;;  %v1699_v15 = vld [vmem:[%s21553_s18 + $0x28a8] sm:$0xff] }
 0x4db   : > { %11652 = vmatpush1.bf16.msra.mxu0 %v18509_v38  ;;  %12023 = vmatpush1.bf16.msra.mxu1 %v18511_v41  ;;  %v1643_v38 = vld [vmem:[%s21553_s18 + $0x26e8] sm:$0xff]  ;;  %v18605_v41 = vcombine.low %v1618_v26, %v1626_v27  ;;  %v1714_v27 = vld [vmem:[%s21553_s18 + $0x2920] sm:$0xff] }
 0x4dc   : > { %11653 = vmatprep.subr.bf16.mxu0 %v18526_v43  ;;  %12024 = vmatprep.subr.bf16.mxu1 %v18528_v44  ;;  %v18607_v43 = vcombine.low %v1619_v28, %v1627_v29  ;;  %v18622_v44 = vcombine.high %v1634_v34, %v1642_v36  ;;  %v18624_v45 = vcombine.high %v1635_v37, %v1643_v38  ;;  %v1722_v28 = vld [vmem:[%s21553_s18 + $0x2960] sm:$0xff] }
 0x4dd   : > { %v21027_v29 = vld [vmem:[#allocation6 + $0x20] ss:$52 sps:$4 sm:$0xff]  }
 0x4df   : > { %11654 = vmatpush1.bf16.msra.mxu0 %v18525_v50  ;;  %12025 = vmatpush1.bf16.msra.mxu1 %v18527_v52  ;;  %v1659_v50 = vld [vmem:[%s21553_s18 + $0x2768] sm:$0xff]  ;;  %v18621_v52 = vcombine.low %v1634_v34, %v1642_v36  ;;  %v18702_v34 = vcombine.high %v1714_v27, %v1722_v28 }
 0x4e0   : > { %11655 = vmatprep.subr.bf16.mxu0 %v18542_v53  ;;  %12026 = vmatprep.subr.bf16.mxu1 %v18544_v54  ;;  %v18623_v53 = vcombine.low %v1635_v37, %v1643_v38  ;;  %v18638_v54 = vcombine.high %v1650_v47, %v1658_v48  ;;  %v18640_v57 = vcombine.high %v1651_v49, %v1659_v50  ;;  %v1730_v37 = vld [vmem:[%s21553_s18 + $0x29a0] sm:$0xff] }
 0x4e1   : > { %v1738_v38 = vld [vmem:[%s21553_s18 + $0x29e0] sm:$0xff] }
 0x4e3   : > { %11656 = vmatpush1.bf16.msra.mxu0 %v18541_v62  ;;  %12027 = vmatpush1.bf16.msra.mxu1 %v18543_v63  ;;  %v1675_v62 = vld [vmem:[%s21553_s18 + $0x27e8] sm:$0xff]  ;;  %v18637_v63 = vcombine.low %v1650_v47, %v1658_v48  ;;  %v18718_v48 = vcombine.high %v1730_v37, %v1738_v38 }
 0x4e4   : > { %11657 = vmatprep.subr.bf16.mxu0 %v18558_v0  ;;  %12028 = vmatprep.subr.bf16.mxu1 %v18560_v1  ;;  %v18639_v0 = vcombine.low %v1651_v49, %v1659_v50  ;;  %v18654_v1 = vcombine.high %v1666_v59, %v1674_v60  ;;  %v18656_v2 = vcombine.high %v1667_v61, %v1675_v62  ;;  %v1746_v50 = vld [vmem:[%s21553_s18 + $0x2a20] sm:$0xff] }
 0x4e7   : > { %11658 = vmatpush1.bf16.msra.mxu0 %v18557_v6  ;;  %12029 = vmatpush1.bf16.msra.mxu1 %v18559_v7  ;;  %v1691_v6 = vld [vmem:[%s21553_s18 + $0x2868] sm:$0xff]  ;;  %v18653_v7 = vcombine.low %v1666_v59, %v1674_v60  ;;  %v18717_v59 = vcombine.low %v1730_v37, %v1738_v38 }
 0x4e8   : > { %11659 = vmatprep.subr.bf16.mxu0 %v18574_v8  ;;  %12030 = vmatprep.subr.bf16.mxu1 %v18576_v9  ;;  %v18655_v8 = vcombine.low %v1667_v61, %v1675_v62  ;;  %v18670_v9 = vcombine.high %v1682_v3, %v1690_v4  ;;  %v18672_v10 = vcombine.high %v1683_v5, %v1691_v6 }
 0x4eb   : > { %11660 = vmatpush1.bf16.msra.mxu0 %v18573_v16  ;;  %12031 = vmatpush1.bf16.msra.mxu1 %v18575_v22  ;;  %v1707_v16 = vld [vmem:[%s21553_s18 + $0x28e8] sm:$0xff]  ;;  %v18669_v22 = vcombine.low %v1682_v3, %v1690_v4 }
 0x4ec   : > { %11661 = vmatprep.subr.bf16.mxu0 %v18590_v24  ;;  %12032 = vmatprep.subr.bf16.mxu1 %v18592_v25  ;;  %v18671_v24 = vcombine.low %v1683_v5, %v1691_v6  ;;  %v18686_v25 = vcombine.high %v1698_v11, %v1706_v13  ;;  %v18688_v26 = vcombine.high %v1699_v15, %v1707_v16  ;;  %v1771_v3 = vld [vmem:[%s21553_s18 + $0x2ae8] sm:$0xff] }
 0x4ef   : > { %11662 = vmatpush1.bf16.msra.mxu0 %v18589_v30  ;;  %12033 = vmatpush1.bf16.msra.mxu1 %v18591_v31  ;;  %v1715_v30 = vld [vmem:[%s21553_s18 + $0x2928] sm:$0xff] }
 0x4f0   : > { %11663 = vmatprep.subr.bf16.mxu0 %v18606_v32  ;;  %12034 = vmatprep.subr.bf16.mxu1 %v18608_v33  ;;  %v1723_v31 = vld [vmem:[%s21553_s18 + $0x2968] sm:$0xff]  ;;  %v18685_v32 = vcombine.low %v1698_v11, %v1706_v13  ;;  %v18687_v33 = vcombine.low %v1699_v15, %v1707_v16 }
 0x4f1   : > { %v18704_v36 = vcombine.high %v1715_v30, %v1723_v31  ;;  %v18703_v47 = vcombine.low %v1715_v30, %v1723_v31  ;;  %v1787_v11 = vld [vmem:[%s21553_s18 + $0x2b68] sm:$0xff] }
 0x4f3   : > { %11664 = vmatpush1.bf16.msra.mxu0 %v18605_v41  ;;  %12035 = vmatpush1.bf16.msra.mxu1 %v18607_v43  ;;  %v21028_v41 = vld [vmem:[#allocation6 + $0x8c] ss:$52 sps:$4 sm:$0xff]  }
 0x4f4   : > { %11665 = vmatprep.subr.bf16.mxu0 %v18622_v44  ;;  %12036 = vmatprep.subr.bf16.mxu1 %v18624_v45  ;;  %v1731_v43 = vld [vmem:[%s21553_s18 + $0x29a8] sm:$0xff]  ;;  %v18701_v45 = vcombine.low %v1714_v27, %v1722_v28 }
 0x4f5   : > { %v1739_v44 = vld [vmem:[%s21553_s18 + $0x29e8] sm:$0xff] }
 0x4f6   : > { %v18720_v49 = vcombine.high %v1731_v43, %v1739_v44  ;;  %v18719_v60 = vcombine.low %v1731_v43, %v1739_v44  ;;  %v1803_v27 = vld [vmem:[%s21553_s18 + $0x2be8] sm:$0xff]  ;;  %v1826_v44 = vld [vmem:[%s21553_s18 + $0x2ca0] sm:$0xff] }
 0x4f7   : > { %11666 = vmatpush1.bf16.msra.mxu0 %v18621_v52  ;;  %12037 = vmatpush1.bf16.msra.mxu1 %v18623_v53  ;;  %v1754_v52 = vld [vmem:[%s21553_s18 + $0x2a60] sm:$0xff]  ;;  %v1747_v53 = vld [vmem:[%s21553_s18 + $0x2a28] sm:$0xff] }
 0x4f8   : > { %11667 = vmatprep.subr.bf16.mxu0 %v18638_v54  ;;  %12038 = vmatprep.subr.bf16.mxu1 %v18640_v57  ;;  %v1755_v54 = vld [vmem:[%s21553_s18 + $0x2a68] sm:$0xff]  ;;  %v18734_v61 = vcombine.high %v1746_v50, %v1754_v52  ;;  %v18733_v4 = vcombine.low %v1746_v50, %v1754_v52 }
 0x4f9   : > { %v21029_v57 = vld [vmem:[#allocation6 + $0x88] ss:$52 sps:$4 sm:$0xff]   ;;  %v18736_v62 = vcombine.high %v1747_v53, %v1755_v54  ;;  %v18735_v5 = vcombine.low %v1747_v53, %v1755_v54  ;;  %v1842_v54 = vld [vmem:[%s21553_s18 + $0x2d20] sm:$0xff] }
 0x4fb   : > { %11668 = vmatpush1.bf16.msra.mxu0 %v18637_v63  ;;  %12039 = vmatpush1.bf16.msra.mxu1 %v18639_v0  ;;  %v1762_v63 = vld [vmem:[%s21553_s18 + $0x2aa0] sm:$0xff] }
 0x4fc   : > { %11669 = vmatprep.subr.bf16.mxu0 %v18654_v1  ;;  %12040 = vmatprep.subr.bf16.mxu1 %v18656_v2  ;;  %v1770_v0 = vld [vmem:[%s21553_s18 + $0x2ae0] sm:$0xff]  ;;  %v1763_v2 = vld [vmem:[%s21553_s18 + $0x2aa8] sm:$0xff] }
 0x4fd   : > { %v21030_v1 = vld [vmem:[#allocation6 + $0x2c] ss:$52 sps:$4 sm:$0xff]   ;;  %v18750_v6 = vcombine.high %v1762_v63, %v1770_v0  ;;  %v18749_v13 = vcombine.low %v1762_v63, %v1770_v0  ;;  %v18751_v15 = vcombine.low %v1763_v2, %v1771_v3 }
 0x4ff   : > { %11670 = vmatpush1.bf16.msra.mxu0 %v18653_v7  ;;  %12041 = vmatpush1.bf16.msra.mxu1 %v18655_v8  ;;  %v18752_v7 = vcombine.high %v1763_v2, %v1771_v3  ;;  %v1778_v8 = vld [vmem:[%s21553_s18 + $0x2b20] sm:$0xff]  ;;  %v1859_v3 = vld [vmem:[%s21553_s18 + $0x2da8] sm:$0xff] }
 0x500   : > { %11692 = vmatprep.subr.bf16.mxu0 %v18670_v9  ;;  %12063 = vmatprep.subr.bf16.mxu1 %v18672_v10  ;;  %v1786_v9 = vld [vmem:[%s21553_s18 + $0x2b60] sm:$0xff]  ;;  %v1779_v10 = vld [vmem:[%s21553_s18 + $0x2b28] sm:$0xff] }
 0x501   : > { %v18766_v16 = vcombine.high %v1778_v8, %v1786_v9  ;;  %v18765_v28 = vcombine.low %v1778_v8, %v1786_v9  ;;  %v1866_v2 = vld [vmem:[%s21553_s18 + $0x2de0] sm:$0xff] }
 0x502   : > { %11672 = vmatmul.mubr.bf16.vlgmr.msra.gmra.mrb[16].mxu0 %v21027_v29  ;;  %12043 = vmatmul.mubr.bf16.vlgmr.msra.gmra.mrb[16].mxu1 %v21027_v29  ;;  %v18767_v29 = vcombine.low %v1779_v10, %v1787_v11  ;;  %v1874_v9 = vld [vmem:[%s21553_s18 + $0x2e20] sm:$0xff] }
 0x503   : > { %11693 = vmatpush1.bf16.msra.mxu0 %v18669_v22  ;;  %12064 = vmatpush1.bf16.msra.mxu1 %v18671_v24  ;;  %v18768_v22 = vcombine.high %v1779_v10, %v1787_v11  ;;  %v1794_v24 = vld [vmem:[%s21553_s18 + $0x2ba0] sm:$0xff]  ;;  %v1875_v11 = vld [vmem:[%s21553_s18 + $0x2e28] sm:$0xff] }
 0x504   : > { %11694 = vmatprep.subr.bf16.mxu0 %v18686_v25  ;;  %12065 = vmatprep.subr.bf16.mxu1 %v18688_v26  ;;  %v1802_v25 = vld [vmem:[%s21553_s18 + $0x2be0] sm:$0xff]  ;;  %v1795_v26 = vld [vmem:[%s21553_s18 + $0x2ba8] sm:$0xff] }
 0x505   : > { %11681 = vmatprep.mubr.bf16.mxu0 %v21028_v41  ;;  %12052 = vmatprep.mubr.bf16.mxu1 %v21028_v41  ;;  %v18782_v30 = vcombine.high %v1794_v24, %v1802_v25  ;;  %v18784_v31 = vcombine.high %v1795_v26, %v1803_v27  ;;  %v18781_v37 = vcombine.low %v1794_v24, %v1802_v25  ;;  %v1882_v10 = vld [vmem:[%s21553_s18 + $0x2e60] sm:$0xff] }
 0x506   : > { %v18783_v38 = vcombine.low %v1795_v26, %v1803_v27  ;;  %v1890_v25 = vld [vmem:[%s21553_s18 + $0x2ea0] sm:$0xff]  ;;  %v1891_v27 = vld [vmem:[%s21553_s18 + $0x2ea8] sm:$0xff] }
 0x507   : > { %11695 = vmatpush1.bf16.msra.mxu0 %v18685_v32  ;;  %12066 = vmatpush1.bf16.msra.mxu1 %v18687_v33  ;;  %v1810_v32 = vld [vmem:[%s21553_s18 + $0x2c20] sm:$0xff] }
 0x508   : > { %11696 = vmatprep.subr.bf16.mxu0 %v18702_v34  ;;  %12067 = vmatprep.subr.bf16.mxu1 %v18704_v36  ;;  %v1818_v33 = vld [vmem:[%s21553_s18 + $0x2c60] sm:$0xff]  ;;  %v1811_v34 = vld [vmem:[%s21553_s18 + $0x2c28] sm:$0xff] }
 0x509   : > { %v1819_v36 = vld [vmem:[%s21553_s18 + $0x2c68] sm:$0xff]  ;;  %v18798_v41 = vcombine.high %v1810_v32, %v1818_v33  ;;  %v1898_v26 = vld [vmem:[%s21553_s18 + $0x2ee0] sm:$0xff] }
 0x50a   : > { %11682 = vmatmul.mubr.bf16.gmra.mrb[20].mxu0 %v21029_v57  ;;  %12053 = vmatmul.mubr.bf16.gmra.mrb[20].mxu1 %v21029_v57  ;;  %v18800_v43 = vcombine.high %v1811_v34, %v1819_v36  ;;  %v18799_v50 = vcombine.low %v1811_v34, %v1819_v36  ;;  %v1850_v57 = vld [vmem:[%s21553_s18 + $0x2d60] sm:$0xff]  ;;  %v1907_v36 = vld [vmem:[%s21553_s18 + $0x2f28] sm:$0xff] }
 0x50b   : > { %11697 = vmatpush1.bf16.msra.mxu0 %v18701_v45  ;;  %12068 = vmatpush1.bf16.msra.mxu1 %v18703_v47  ;;  %v1834_v45 = vld [vmem:[%s21553_s18 + $0x2ce0] sm:$0xff]  ;;  %v1827_v47 = vld [vmem:[%s21553_s18 + $0x2ca8] sm:$0xff]  ;;  %v18830_v63 = vcombine.high %v1842_v54, %v1850_v57 }
 0x50c   : > { %11698 = vmatprep.subr.bf16.mxu0 %v18718_v48  ;;  %12069 = vmatprep.subr.bf16.mxu1 %v18720_v49  ;;  %v1835_v48 = vld [vmem:[%s21553_s18 + $0x2ce8] sm:$0xff]  ;;  %v18797_v49 = vcombine.low %v1810_v32, %v1818_v33  ;;  %v18814_v52 = vcombine.high %v1826_v44, %v1834_v45  ;;  %v1906_v33 = vld [vmem:[%s21553_s18 + $0x2f20] sm:$0xff] }
 0x50d   : > { %11724 = vmatprep.mubr.bf16.mxu0 %v21030_v1  ;;  %12095 = vmatprep.mubr.bf16.mxu1 %v21030_v1  ;;  %v18816_v53 = vcombine.high %v1827_v47, %v1835_v48  ;;  %v1858_v1 = vld [vmem:[%s21553_s18 + $0x2da0] sm:$0xff] }
 0x50e   : > { %v1914_v34 = vld [vmem:[%s21553_s18 + $0x2f60] sm:$0xff] }
 0x50f   : > { %11699 = vmatpush1.bf16.msra.mxu0 %v18717_v59  ;;  %12070 = vmatpush1.bf16.msra.mxu1 %v18719_v60  ;;  %v1843_v59 = vld [vmem:[%s21553_s18 + $0x2d28] sm:$0xff] }
 0x510   : > { %11700 = vmatprep.subr.bf16.mxu0 %v18734_v61  ;;  %12071 = vmatprep.subr.bf16.mxu1 %v18736_v62  ;;  %v1851_v60 = vld [vmem:[%s21553_s18 + $0x2d68] sm:$0xff]  ;;  %v18813_v61 = vcombine.low %v1826_v44, %v1834_v45  ;;  %v18815_v62 = vcombine.low %v1827_v47, %v1835_v48  ;;  %v1922_v45 = vld [vmem:[%s21553_s18 + $0x2fa0] sm:$0xff] }
 0x511   : > { %v18832_v0 = vcombine.high %v1843_v59, %v1851_v60  ;;  %v1930_v47 = vld [vmem:[%s21553_s18 + $0x2fe0] sm:$0xff]  ;;  %v1923_v48 = vld [vmem:[%s21553_s18 + $0x2fa8] sm:$0xff] }
 0x513   : > { %11701 = vmatpush1.bf16.msra.mxu0 %v18733_v4  ;;  %12072 = vmatpush1.bf16.msra.mxu1 %v18735_v5  ;;  %v1867_v4 = vld [vmem:[%s21553_s18 + $0x2de8] sm:$0xff]  ;;  %v18829_v5 = vcombine.low %v1842_v54, %v1850_v57  ;;  %v1938_v57 = vld [vmem:[%s21553_s18 + $0x3020] sm:$0xff] }
 0x514   : > { %11702 = vmatprep.subr.bf16.mxu0 %v18750_v6  ;;  %12073 = vmatprep.subr.bf16.mxu1 %v18752_v7  ;;  %v18831_v6 = vcombine.low %v1843_v59, %v1851_v60  ;;  %v18846_v7 = vcombine.high %v1858_v1, %v1866_v2  ;;  %v18848_v8 = vcombine.high %v1859_v3, %v1867_v4  ;;  %v1946_v59 = vld [vmem:[%s21553_s18 + $0x3060] sm:$0xff]  ;;  %v1939_v60 = vld [vmem:[%s21553_s18 + $0x3028] sm:$0xff] }
 0x517   : > { %11703 = vmatpush1.bf16.msra.mxu0 %v18749_v13  ;;  %12074 = vmatpush1.bf16.msra.mxu1 %v18751_v15  ;;  %v1883_v13 = vld [vmem:[%s21553_s18 + $0x2e68] sm:$0xff]  ;;  %v18845_v15 = vcombine.low %v1858_v1, %v1866_v2  ;;  %v1954_v2 = vld [vmem:[%s21553_s18 + $0x30a0] sm:$0xff] }
 0x518   : > { %11704 = vmatprep.subr.bf16.mxu0 %v18766_v16  ;;  %12075 = vmatprep.subr.bf16.mxu1 %v18768_v22  ;;  %v18847_v16 = vcombine.low %v1859_v3, %v1867_v4  ;;  %v18862_v22 = vcombine.high %v1874_v9, %v1882_v10  ;;  %v18864_v24 = vcombine.high %v1875_v11, %v1883_v13  ;;  %v1962_v3 = vld [vmem:[%s21553_s18 + $0x30e0] sm:$0xff] }
 0x519   : > { %v18925_v4 = vcombine.low %v1938_v57, %v1946_v59 }
 0x51b   : > { %11705 = vmatpush1.bf16.msra.mxu0 %v18765_v28  ;;  %12076 = vmatpush1.bf16.msra.mxu1 %v18767_v29  ;;  %v1899_v28 = vld [vmem:[%s21553_s18 + $0x2ee8] sm:$0xff]  ;;  %v18861_v29 = vcombine.low %v1874_v9, %v1882_v10  ;;  %v404_v9 = vld [vmem:[%s21553_s18 + $0x30] sm:$0xff] }
 0x51c   : > { %11706 = vmatprep.subr.bf16.mxu0 %v18782_v30  ;;  %12077 = vmatprep.subr.bf16.mxu1 %v18784_v31  ;;  %v18863_v30 = vcombine.low %v1875_v11, %v1883_v13  ;;  %v18878_v31 = vcombine.high %v1890_v25, %v1898_v26  ;;  %v18880_v32 = vcombine.high %v1891_v27, %v1899_v28  ;;  %v412_v10 = vld [vmem:[%s21553_s18 + $0x70] sm:$0xff]  ;;  %v21031_v11 = vld [vmem:[#allocation6 + $0x28] ss:$52 sps:$4 sm:$0xff]  }
 0x51f   : > { %11707 = vmatpush1.bf16.msra.mxu0 %v18781_v37  ;;  %12078 = vmatpush1.bf16.msra.mxu1 %v18783_v38  ;;  %v1915_v37 = vld [vmem:[%s21553_s18 + $0x2f68] sm:$0xff]  ;;  %v18877_v38 = vcombine.low %v1890_v25, %v1898_v26  ;;  %v17394_v26 = vcombine.high %v404_v9, %v412_v10 }
 0x520   : > { %11708 = vmatprep.subr.bf16.mxu0 %v18798_v41  ;;  %12079 = vmatprep.subr.bf16.mxu1 %v18800_v43  ;;  %v18879_v41 = vcombine.low %v1891_v27, %v1899_v28  ;;  %v18894_v43 = vcombine.high %v1906_v33, %v1914_v34  ;;  %v18896_v44 = vcombine.high %v1907_v36, %v1915_v37  ;;  %v21033_v28 = vld [vmem:[#allocation6 + $0x90] ss:$52 sps:$4 sm:$0xff]  }
 0x523   : > { %11709 = vmatpush1.bf16.msra.mxu0 %v18797_v49  ;;  %12080 = vmatpush1.bf16.msra.mxu1 %v18799_v50  ;;  %v1931_v49 = vld [vmem:[%s21553_s18 + $0x2fe8] sm:$0xff]  ;;  %v18893_v50 = vcombine.low %v1906_v33, %v1914_v34  ;;  %v17393_v33 = vcombine.low %v404_v9, %v412_v10  ;;  %v492_v9 = vld [vmem:[%s21553_s18 + $0x2f0] sm:$0xff]  ;;  %v21036_v10 = vld [vmem:[#allocation6 + $0x4] ss:$52 sps:$4 sm:$0xff]  }
 0x524   : > { %11710 = vmatprep.subr.bf16.mxu0 %v18814_v52  ;;  %12081 = vmatprep.subr.bf16.mxu1 %v18816_v53  ;;  %v18895_v52 = vcombine.low %v1907_v36, %v1915_v37  ;;  %v18910_v53 = vcombine.high %v1922_v45, %v1930_v47  ;;  %v18912_v54 = vcombine.high %v1923_v48, %v1931_v49 }
 0x527   : > { %11711 = vmatpush1.bf16.msra.mxu0 %v18813_v61  ;;  %12082 = vmatpush1.bf16.msra.mxu1 %v18815_v62  ;;  %v1947_v61 = vld [vmem:[%s21553_s18 + $0x3068] sm:$0xff]  ;;  %v18909_v62 = vcombine.low %v1922_v45, %v1930_v47  ;;  %v445_v45 = vld [vmem:[%s21553_s18 + $0x178] sm:$0xff] }
 0x528   : > { %11712 = vmatprep.subr.bf16.mxu0 %v18830_v63  ;;  %12083 = vmatprep.subr.bf16.mxu1 %v18832_v0  ;;  %v18911_v63 = vcombine.low %v1923_v48, %v1931_v49  ;;  %v18926_v0 = vcombine.high %v1938_v57, %v1946_v59  ;;  %v18928_v1 = vcombine.high %v1939_v60, %v1947_v61  ;;  %v461_v57 = vld [vmem:[%s21553_s18 + $0x1f8] sm:$0xff] }
 0x52b   : > { %11713 = vmatpush1.bf16.msra.mxu0 %v18829_v5  ;;  %12084 = vmatpush1.bf16.msra.mxu1 %v18831_v6  ;;  %v1955_v5 = vld [vmem:[%s21553_s18 + $0x30a8] sm:$0xff] }
 0x52c   : > { %11714 = vmatprep.subr.bf16.mxu0 %v18846_v7  ;;  %12085 = vmatprep.subr.bf16.mxu1 %v18848_v8  ;;  %v1963_v6 = vld [vmem:[%s21553_s18 + $0x30e8] sm:$0xff]  ;;  %v18927_v7 = vcombine.low %v1939_v60, %v1947_v61  ;;  %v18942_v8 = vcombine.high %v1954_v2, %v1962_v3 }
 0x52d   : > { %v18944_v13 = vcombine.high %v1955_v5, %v1963_v6  ;;  %v18943_v25 = vcombine.low %v1955_v5, %v1963_v6 }
 0x52f   : > { %11715 = vmatpush1.bf16.msra.mxu0 %v18845_v15  ;;  %12086 = vmatpush1.bf16.msra.mxu1 %v18847_v16  ;;  %v405_v15 = vld [vmem:[%s21553_s18 + $0x38] sm:$0xff] }
 0x530   : > { %11716 = vmatprep.subr.bf16.mxu0 %v18862_v22  ;;  %12087 = vmatprep.subr.bf16.mxu1 %v18864_v24  ;;  %v413_v16 = vld [vmem:[%s21553_s18 + $0x78] sm:$0xff]  ;;  %v18941_v22 = vcombine.low %v1954_v2, %v1962_v3  ;;  %v21032_v24 = vld [vmem:[#allocation6 + $0x94] ss:$52 sps:$4 sm:$0xff]  }
 0x531   : > { %v17396_v27 = vcombine.high %v405_v15, %v413_v16  ;;  %v17395_v34 = vcombine.low %v405_v15, %v413_v16  ;;  %v469_v2 = vld [vmem:[%s21553_s18 + $0x238] sm:$0xff] }
 0x532   : > { %v477_v3 = vld [vmem:[%s21553_s18 + $0x278] sm:$0xff] }
 0x533   : > { %11717 = vmatpush1.bf16.msra.mxu0 %v18861_v29  ;;  %12088 = vmatpush1.bf16.msra.mxu1 %v18863_v30  ;;  %v420_v29 = vld [vmem:[%s21553_s18 + $0xb0] sm:$0xff]  ;;  %v17459_v16 = vcombine.low %v469_v2, %v477_v3 }
 0x534   : > { %11718 = vmatprep.subr.bf16.mxu0 %v18878_v31  ;;  %12089 = vmatprep.subr.bf16.mxu1 %v18880_v32  ;;  %v428_v30 = vld [vmem:[%s21553_s18 + $0xf0] sm:$0xff]  ;;  %v421_v31 = vld [vmem:[%s21553_s18 + $0xb8] sm:$0xff] }
 0x535   : > { %v429_v32 = vld [vmem:[%s21553_s18 + $0xf8] sm:$0xff]  ;;  %v17410_v36 = vcombine.high %v420_v29, %v428_v30  ;;  %v17409_v47 = vcombine.low %v420_v29, %v428_v30 }
 0x536   : > { %v17412_v37 = vcombine.high %v421_v31, %v429_v32  ;;  %v17411_v48 = vcombine.low %v421_v31, %v429_v32 }
 0x537   : > { %11719 = vmatpush1.bf16.msra.mxu0 %v18877_v38  ;;  %12090 = vmatpush1.bf16.msra.mxu1 %v18879_v41  ;;  %v436_v38 = vld [vmem:[%s21553_s18 + $0x130] sm:$0xff] }
 0x538   : > { %11720 = vmatprep.subr.bf16.mxu0 %v18894_v43  ;;  %12091 = vmatprep.subr.bf16.mxu1 %v18896_v44  ;;  %v444_v41 = vld [vmem:[%s21553_s18 + $0x170] sm:$0xff]  ;;  %v437_v44 = vld [vmem:[%s21553_s18 + $0x138] sm:$0xff] }
 0x539   : > { %v21034_v43 = vld [vmem:[#allocation6 + $0x30] ss:$52 sps:$4 sm:$0xff]   ;;  %v17426_v49 = vcombine.high %v436_v38, %v444_v41  ;;  %v17425_v59 = vcombine.low %v436_v38, %v444_v41  ;;  %v17427_v60 = vcombine.low %v437_v44, %v445_v45 }
 0x53b   : > { %11721 = vmatpush1.bf16.msra.mxu0 %v18893_v50  ;;  %12092 = vmatpush1.bf16.msra.mxu1 %v18895_v52  ;;  %v17428_v50 = vcombine.high %v437_v44, %v445_v45  ;;  %v452_v52 = vld [vmem:[%s21553_s18 + $0x1b0] sm:$0xff] }
 0x53c   : > { %11722 = vmatprep.subr.bf16.mxu0 %v18910_v53  ;;  %12093 = vmatprep.subr.bf16.mxu1 %v18912_v54  ;;  %v460_v53 = vld [vmem:[%s21553_s18 + $0x1f0] sm:$0xff]  ;;  %v453_v54 = vld [vmem:[%s21553_s18 + $0x1b8] sm:$0xff] }
 0x53d   : > { %v17442_v61 = vcombine.high %v452_v52, %v460_v53  ;;  %v17443_v5 = vcombine.low %v453_v54, %v461_v57  ;;  %v532_v45 = vld [vmem:[%s21553_s18 + $0x430] sm:$0xff] }
 0x53f   : > { %11723 = vmatpush1.bf16.msra.mxu0 %v18909_v62  ;;  %12094 = vmatpush1.bf16.msra.mxu1 %v18911_v63  ;;  %v17444_v62 = vcombine.high %v453_v54, %v461_v57  ;;  %v468_v63 = vld [vmem:[%s21553_s18 + $0x230] sm:$0xff] }
 0x540   : > { %11745 = vmatprep.subr.bf16.mxu0 %v18926_v0  ;;  %12116 = vmatprep.subr.bf16.mxu1 %v18928_v1  ;;  %v476_v0 = vld [vmem:[%s21553_s18 + $0x270] sm:$0xff]  ;;  %v21035_v1 = vld [vmem:[#allocation6 + $0x98] ss:$52 sps:$4 sm:$0xff]  }
 0x541   : > { %v17458_v6 = vcombine.high %v468_v63, %v476_v0  ;;  %v17457_v15 = vcombine.low %v468_v63, %v476_v0  ;;  %v548_v57 = vld [vmem:[%s21553_s18 + $0x4b0] sm:$0xff] }
 0x542   : > { %11725 = vmatmul.mubr.bf16.vlgmr.msra.gmra.mrb[16].mxu0 %v21031_v11  ;;  %12096 = vmatmul.mubr.bf16.vlgmr.msra.gmra.mrb[16].mxu1 %v21031_v11  ;;  %v485_v11 = vld [vmem:[%s21553_s18 + $0x2b8] sm:$0xff] }
 0x543   : > { %11746 = vmatpush1.bf16.msra.mxu0 %v18925_v4  ;;  %12117 = vmatpush1.bf16.msra.mxu1 %v18927_v7  ;;  %v17441_v4 = vcombine.low %v452_v52, %v460_v53  ;;  %v17460_v7 = vcombine.high %v469_v2, %v477_v3  ;;  %v564_v2 = vld [vmem:[%s21553_s18 + $0x530] sm:$0xff] }
 0x544   : > { %11734 = vmatprep.mubr.bf16.mxu0 %v21032_v24  ;;  %12105 = vmatprep.mubr.bf16.mxu1 %v21032_v24  ;;  %v572_v3 = vld [vmem:[%s21553_s18 + $0x570] sm:$0xff] }
 0x545   : > { %11747 = vmatprep.subr.bf16.mxu0 %v18942_v8  ;;  %12118 = vmatprep.subr.bf16.mxu1 %v18944_v13  ;;  %v484_v8 = vld [vmem:[%s21553_s18 + $0x2b0] sm:$0xff]  ;;  %v493_v13 = vld [vmem:[%s21553_s18 + $0x2f8] sm:$0xff] }
 0x546   : > { %v17476_v24 = vcombine.high %v485_v11, %v493_v13  ;;  %v17473_v29 = vcombine.low %v484_v8, %v492_v9  ;;  %v17475_v30 = vcombine.low %v485_v11, %v493_v13  ;;  %v588_v11 = vld [vmem:[%s21553_s18 + $0x5f0] sm:$0xff]  ;;  %v581_v13 = vld [vmem:[%s21553_s18 + $0x5b8] sm:$0xff] }
 0x547   : > { %11748 = vmatpush1.bf16.msra.mxu0 %v18941_v22  ;;  %12119 = vmatpush1.bf16.msra.mxu1 %v18943_v25  ;;  %v17474_v22 = vcombine.high %v484_v8, %v492_v9  ;;  %v500_v25 = vld [vmem:[%s21553_s18 + $0x330] sm:$0xff]  ;;  %v17554_v8 = vcombine.high %v564_v2, %v572_v3 }
 0x548   : > { %12169 = vmatprep.subr.bf16.mxu0 %v17394_v26  ;;  %12540 = vmatprep.subr.bf16.mxu1 %v17396_v27  ;;  %v508_v26 = vld [vmem:[%s21553_s18 + $0x370] sm:$0xff]  ;;  %v501_v27 = vld [vmem:[%s21553_s18 + $0x338] sm:$0xff] }
 0x549   : > { %v17490_v31 = vcombine.high %v500_v25, %v508_v26  ;;  %v17489_v38 = vcombine.low %v500_v25, %v508_v26  ;;  %v596_v26 = vld [vmem:[%s21553_s18 + $0x630] sm:$0xff] }
 0x54a   : > { %11735 = vmatmul.mubr.bf16.gmra.mrb[20].mxu0 %v21033_v28  ;;  %12106 = vmatmul.mubr.bf16.gmra.mrb[20].mxu1 %v21033_v28  ;;  %v509_v28 = vld [vmem:[%s21553_s18 + $0x378] sm:$0xff] }
 0x54b   : > { %11777 = vmatprep.mubr.bf16.mxu0 %v21291_v46  ;;  %12148 = vmatprep.mubr.bf16.mxu1 %v21291_v46  ;;  %v17492_v32 = vcombine.high %v501_v27, %v509_v28  ;;  %v17491_v41 = vcombine.low %v501_v27, %v509_v28  ;;  %v604_v27 = vld [vmem:[%s21553_s18 + $0x670] sm:$0xff]  ;;  %v597_v28 = vld [vmem:[%s21553_s18 + $0x638] sm:$0xff] }
 0x552   : > { %18957 = vmatmul.mubr.msk.bf16.vlgmr.msra.gmra.mrb[16].mxu0 %vm9936_vm0, %v21034_v43  ;;  %18959 = vmatmul.mubr.msk.bf16.vlgmr.msra.gmra.mrb[16].mxu1 %vm9936_vm0, %v21034_v43 }
 0x553   : > { %12170 = vmatpush1.bf16.msra.mxu0 %v17393_v33  ;;  %12541 = vmatpush1.bf16.msra.mxu1 %v17395_v34  ;;  %v516_v33 = vld [vmem:[%s21553_s18 + $0x3b0] sm:$0xff] }
 0x554   : > { %12171 = vmatprep.subr.bf16.mxu0 %v17410_v36  ;;  %12542 = vmatprep.subr.bf16.mxu1 %v17412_v37  ;;  %v524_v34 = vld [vmem:[%s21553_s18 + $0x3f0] sm:$0xff]  ;;  %v517_v36 = vld [vmem:[%s21553_s18 + $0x3b8] sm:$0xff] }
 0x555   : > { %11787 = vmatprep.mubr.bf16.mxu0 %v21291_v46  ;;  %12158 = vmatprep.mubr.bf16.mxu1 %v21291_v46  ;;  %v525_v37 = vld [vmem:[%s21553_s18 + $0x3f8] sm:$0xff]  ;;  %v17506_v43 = vcombine.high %v516_v33, %v524_v34 }
 0x556   : > { %v17508_v44 = vcombine.high %v517_v36, %v525_v37  ;;  %v17507_v52 = vcombine.low %v517_v36, %v525_v37  ;;  %v620_v36 = vld [vmem:[%s21553_s18 + $0x6f0] sm:$0xff]  ;;  %v613_v37 = vld [vmem:[%s21553_s18 + $0x6b8] sm:$0xff] }
 0x557   : > { %12172 = vmatpush1.bf16.msra.mxu0 %v17409_v47  ;;  %12543 = vmatpush1.bf16.msra.mxu1 %v17411_v48  ;;  %v540_v47 = vld [vmem:[%s21553_s18 + $0x470] sm:$0xff]  ;;  %v533_v48 = vld [vmem:[%s21553_s18 + $0x438] sm:$0xff] }
 0x558   : > { %12173 = vmatprep.subr.bf16.mxu0 %v17426_v49  ;;  %12544 = vmatprep.subr.bf16.mxu1 %v17428_v50  ;;  %v541_v49 = vld [vmem:[%s21553_s18 + $0x478] sm:$0xff]  ;;  %v17505_v50 = vcombine.low %v516_v33, %v524_v34  ;;  %v17522_v53 = vcombine.high %v532_v45, %v540_v47  ;;  %v612_v34 = vld [vmem:[%s21553_s18 + $0x6b0] sm:$0xff] }
 0x559   : > { %v17524_v54 = vcombine.high %v533_v48, %v541_v49  ;;  %v17523_v63 = vcombine.low %v533_v48, %v541_v49  ;;  %v636_v48 = vld [vmem:[%s21553_s18 + $0x770] sm:$0xff]  ;;  %v629_v49 = vld [vmem:[%s21553_s18 + $0x738] sm:$0xff] }
 0x55a   : > { %18958 = vmatmul.mubr.msk.bf16.gmra.mrb[20].mxu0 %vm9936_vm0, %v21035_v1  ;;  %18960 = vmatmul.mubr.msk.bf16.gmra.mrb[20].mxu1 %vm9936_vm0, %v21035_v1 }
 0x55b   : > { %12174 = vmatpush1.bf16.msra.mxu0 %v17425_v59  ;;  %12545 = vmatpush1.bf16.msra.mxu1 %v17427_v60  ;;  %v556_v59 = vld [vmem:[%s21553_s18 + $0x4f0] sm:$0xff]  ;;  %v549_v60 = vld [vmem:[%s21553_s18 + $0x4b8] sm:$0xff] }
 0x55c   : > { %12175 = vmatprep.subr.bf16.mxu0 %v17442_v61  ;;  %12546 = vmatprep.subr.bf16.mxu1 %v17444_v62  ;;  %v557_v61 = vld [vmem:[%s21553_s18 + $0x4f8] sm:$0xff]  ;;  %v17521_v62 = vcombine.low %v532_v45, %v540_v47  ;;  %v17538_v0 = vcombine.high %v548_v57, %v556_v59  ;;  %v628_v47 = vld [vmem:[%s21553_s18 + $0x730] sm:$0xff] }
 0x55d   : > { %12201 = vmatprep.mubr.bf16.mxu0 %v21036_v10  ;;  %12572 = vmatprep.mubr.bf16.mxu1 %v21036_v10  ;;  %v17540_v1 = vcombine.high %v549_v60, %v557_v61  ;;  %v580_v10 = vld [vmem:[%s21553_s18 + $0x5b0] sm:$0xff] }
 0x55f   : > { %12176 = vmatpush1.bf16.msra.mxu0 %v17441_v4  ;;  %12547 = vmatpush1.bf16.msra.mxu1 %v17443_v5  ;;  %v565_v4 = vld [vmem:[%s21553_s18 + $0x538] sm:$0xff] }
 0x560   : > { %12177 = vmatprep.subr.bf16.mxu0 %v17458_v6  ;;  %12548 = vmatprep.subr.bf16.mxu1 %v17460_v7  ;;  %v573_v5 = vld [vmem:[%s21553_s18 + $0x578] sm:$0xff]  ;;  %v17537_v6 = vcombine.low %v548_v57, %v556_v59  ;;  %v17539_v7 = vcombine.low %v549_v60, %v557_v61  ;;  %v644_v59 = vld [vmem:[%s21553_s18 + $0x7b0] sm:$0xff] }
 0x561   : > { %v17556_v9 = vcombine.high %v565_v4, %v573_v5  ;;  %v652_v60 = vld [vmem:[%s21553_s18 + $0x7f0] sm:$0xff]  ;;  %v645_v61 = vld [vmem:[%s21553_s18 + $0x7b8] sm:$0xff] }
 0x563   : > { %12178 = vmatpush1.bf16.msra.mxu0 %v17457_v15  ;;  %12549 = vmatpush1.bf16.msra.mxu1 %v17459_v16  ;;  %v589_v15 = vld [vmem:[%s21553_s18 + $0x5f8] sm:$0xff]  ;;  %v17553_v16 = vcombine.low %v564_v2, %v572_v3  ;;  %v660_v3 = vld [vmem:[%s21553_s18 + $0x830] sm:$0xff] }
 0x564   : > { %12179 = vmatprep.subr.bf16.mxu0 %v17474_v22  ;;  %12550 = vmatprep.subr.bf16.mxu1 %v17476_v24  ;;  %v17555_v22 = vcombine.low %v565_v4, %v573_v5  ;;  %v17570_v24 = vcombine.high %v580_v10, %v588_v11  ;;  %v17572_v25 = vcombine.high %v581_v13, %v589_v15  ;;  %v668_v4 = vld [vmem:[%s21553_s18 + $0x870] sm:$0xff]  ;;  %v661_v5 = vld [vmem:[%s21553_s18 + $0x838] sm:$0xff] }
 0x567   : > { %12180 = vmatpush1.bf16.msra.mxu0 %v17473_v29  ;;  %12551 = vmatpush1.bf16.msra.mxu1 %v17475_v30  ;;  %v605_v29 = vld [vmem:[%s21553_s18 + $0x678] sm:$0xff]  ;;  %v17569_v30 = vcombine.low %v580_v10, %v588_v11  ;;  %v676_v11 = vld [vmem:[%s21553_s18 + $0x8b0] sm:$0xff] }
 0x568   : > { %12181 = vmatprep.subr.bf16.mxu0 %v17490_v31  ;;  %12552 = vmatprep.subr.bf16.mxu1 %v17492_v32  ;;  %v17571_v31 = vcombine.low %v581_v13, %v589_v15  ;;  %v17586_v32 = vcombine.high %v596_v26, %v604_v27  ;;  %v17588_v33 = vcombine.high %v597_v28, %v605_v29  ;;  %v684_v13 = vld [vmem:[%s21553_s18 + $0x8f0] sm:$0xff]  ;;  %v677_v15 = vld [vmem:[%s21553_s18 + $0x8b8] sm:$0xff] }
 0x56b   : > { %12182 = vmatpush1.bf16.msra.mxu0 %v17489_v38  ;;  %12553 = vmatpush1.bf16.msra.mxu1 %v17491_v41  ;;  %v621_v38 = vld [vmem:[%s21553_s18 + $0x6f8] sm:$0xff]  ;;  %v17585_v41 = vcombine.low %v596_v26, %v604_v27  ;;  %v692_v27 = vld [vmem:[%s21553_s18 + $0x930] sm:$0xff] }
 0x56c   : > { %12183 = vmatprep.subr.bf16.mxu0 %v17506_v43  ;;  %12554 = vmatprep.subr.bf16.mxu1 %v17508_v44  ;;  %v17587_v43 = vcombine.low %v597_v28, %v605_v29  ;;  %v17602_v44 = vcombine.high %v612_v34, %v620_v36  ;;  %v17604_v45 = vcombine.high %v613_v37, %v621_v38  ;;  %v700_v28 = vld [vmem:[%s21553_s18 + $0x970] sm:$0xff] }
 0x56d   : > { %v21037_v29 = vld [vmem:[#allocation6] ss:$52 sps:$4 sm:$0xff]  }
 0x56f   : > { %12184 = vmatpush1.bf16.msra.mxu0 %v17505_v50  ;;  %12555 = vmatpush1.bf16.msra.mxu1 %v17507_v52  ;;  %v637_v50 = vld [vmem:[%s21553_s18 + $0x778] sm:$0xff]  ;;  %v17601_v52 = vcombine.low %v612_v34, %v620_v36  ;;  %v17682_v34 = vcombine.high %v692_v27, %v700_v28 }
 0x570   : > { %12185 = vmatprep.subr.bf16.mxu0 %v17522_v53  ;;  %12556 = vmatprep.subr.bf16.mxu1 %v17524_v54  ;;  %v17603_v53 = vcombine.low %v613_v37, %v621_v38  ;;  %v17618_v54 = vcombine.high %v628_v47, %v636_v48  ;;  %v17620_v57 = vcombine.high %v629_v49, %v637_v50  ;;  %v708_v37 = vld [vmem:[%s21553_s18 + $0x9b0] sm:$0xff] }
 0x571   : > { %v716_v38 = vld [vmem:[%s21553_s18 + $0x9f0] sm:$0xff] }
 0x573   : > { %12186 = vmatpush1.bf16.msra.mxu0 %v17521_v62  ;;  %12557 = vmatpush1.bf16.msra.mxu1 %v17523_v63  ;;  %v653_v62 = vld [vmem:[%s21553_s18 + $0x7f8] sm:$0xff]  ;;  %v17617_v63 = vcombine.low %v628_v47, %v636_v48  ;;  %v17698_v48 = vcombine.high %v708_v37, %v716_v38 }
 0x574   : > { %12187 = vmatprep.subr.bf16.mxu0 %v17538_v0  ;;  %12558 = vmatprep.subr.bf16.mxu1 %v17540_v1  ;;  %v17619_v0 = vcombine.low %v629_v49, %v637_v50  ;;  %v17634_v1 = vcombine.high %v644_v59, %v652_v60  ;;  %v17636_v2 = vcombine.high %v645_v61, %v653_v62  ;;  %v724_v50 = vld [vmem:[%s21553_s18 + $0xa30] sm:$0xff] }
 0x577   : > { %12188 = vmatpush1.bf16.msra.mxu0 %v17537_v6  ;;  %12559 = vmatpush1.bf16.msra.mxu1 %v17539_v7  ;;  %v669_v6 = vld [vmem:[%s21553_s18 + $0x878] sm:$0xff]  ;;  %v17633_v7 = vcombine.low %v644_v59, %v652_v60  ;;  %v17697_v59 = vcombine.low %v708_v37, %v716_v38 }
 0x578   : > { %12189 = vmatprep.subr.bf16.mxu0 %v17554_v8  ;;  %12560 = vmatprep.subr.bf16.mxu1 %v17556_v9  ;;  %v17635_v8 = vcombine.low %v645_v61, %v653_v62  ;;  %v17650_v9 = vcombine.high %v660_v3, %v668_v4  ;;  %v17652_v10 = vcombine.high %v661_v5, %v669_v6 }
 0x57b   : > { %12190 = vmatpush1.bf16.msra.mxu0 %v17553_v16  ;;  %12561 = vmatpush1.bf16.msra.mxu1 %v17555_v22  ;;  %v685_v16 = vld [vmem:[%s21553_s18 + $0x8f8] sm:$0xff]  ;;  %v17649_v22 = vcombine.low %v660_v3, %v668_v4 }
 0x57c   : > { %12191 = vmatprep.subr.bf16.mxu0 %v17570_v24  ;;  %12562 = vmatprep.subr.bf16.mxu1 %v17572_v25  ;;  %v17651_v24 = vcombine.low %v661_v5, %v669_v6  ;;  %v17666_v25 = vcombine.high %v676_v11, %v684_v13  ;;  %v17668_v26 = vcombine.high %v677_v15, %v685_v16  ;;  %v749_v3 = vld [vmem:[%s21553_s18 + $0xaf8] sm:$0xff] }
 0x57f   : > { %12192 = vmatpush1.bf16.msra.mxu0 %v17569_v30  ;;  %12563 = vmatpush1.bf16.msra.mxu1 %v17571_v31  ;;  %v693_v30 = vld [vmem:[%s21553_s18 + $0x938] sm:$0xff] }
 0x580   : > { %12193 = vmatprep.subr.bf16.mxu0 %v17586_v32  ;;  %12564 = vmatprep.subr.bf16.mxu1 %v17588_v33  ;;  %v701_v31 = vld [vmem:[%s21553_s18 + $0x978] sm:$0xff]  ;;  %v17665_v32 = vcombine.low %v676_v11, %v684_v13  ;;  %v17667_v33 = vcombine.low %v677_v15, %v685_v16 }
 0x581   : > { %v17684_v36 = vcombine.high %v693_v30, %v701_v31  ;;  %v17683_v47 = vcombine.low %v693_v30, %v701_v31  ;;  %v765_v11 = vld [vmem:[%s21553_s18 + $0xb78] sm:$0xff] }
 0x583   : > { %12194 = vmatpush1.bf16.msra.mxu0 %v17585_v41  ;;  %12565 = vmatpush1.bf16.msra.mxu1 %v17587_v43  ;;  %v21038_v41 = vld [vmem:[#allocation6 + $0x6c] ss:$52 sps:$4 sm:$0xff]   ;;  %v709_v43 = vld [vmem:[%s21553_s18 + $0x9b8] sm:$0xff] }
 0x584   : > { %12195 = vmatprep.subr.bf16.mxu0 %v17602_v44  ;;  %12566 = vmatprep.subr.bf16.mxu1 %v17604_v45  ;;  %v717_v44 = vld [vmem:[%s21553_s18 + $0x9f8] sm:$0xff]  ;;  %v17681_v45 = vcombine.low %v692_v27, %v700_v28 }
 0x585   : > { %v17700_v49 = vcombine.high %v709_v43, %v717_v44  ;;  %v17699_v60 = vcombine.low %v709_v43, %v717_v44  ;;  %v781_v27 = vld [vmem:[%s21553_s18 + $0xbf8] sm:$0xff]  ;;  %v804_v44 = vld [vmem:[%s21553_s18 + $0xcb0] sm:$0xff] }
 0x587   : > { %12196 = vmatpush1.bf16.msra.mxu0 %v17601_v52  ;;  %12567 = vmatpush1.bf16.msra.mxu1 %v17603_v53  ;;  %v732_v52 = vld [vmem:[%s21553_s18 + $0xa70] sm:$0xff]  ;;  %v725_v53 = vld [vmem:[%s21553_s18 + $0xa38] sm:$0xff] }
 0x588   : > { %12197 = vmatprep.subr.bf16.mxu0 %v17618_v54  ;;  %12568 = vmatprep.subr.bf16.mxu1 %v17620_v57  ;;  %v733_v54 = vld [vmem:[%s21553_s18 + $0xa78] sm:$0xff]  ;;  %v17714_v61 = vcombine.high %v724_v50, %v732_v52  ;;  %v17713_v4 = vcombine.low %v724_v50, %v732_v52 }
 0x589   : > { %v21039_v57 = vld [vmem:[#allocation6 + $0x68] ss:$52 sps:$4 sm:$0xff]   ;;  %v17716_v62 = vcombine.high %v725_v53, %v733_v54  ;;  %v17715_v5 = vcombine.low %v725_v53, %v733_v54  ;;  %v820_v54 = vld [vmem:[%s21553_s18 + $0xd30] sm:$0xff] }
 0x58b   : > { %12198 = vmatpush1.bf16.msra.mxu0 %v17617_v63  ;;  %12569 = vmatpush1.bf16.msra.mxu1 %v17619_v0  ;;  %v740_v63 = vld [vmem:[%s21553_s18 + $0xab0] sm:$0xff] }
 0x58c   : > { %12199 = vmatprep.subr.bf16.mxu0 %v17634_v1  ;;  %12570 = vmatprep.subr.bf16.mxu1 %v17636_v2  ;;  %v748_v0 = vld [vmem:[%s21553_s18 + $0xaf0] sm:$0xff]  ;;  %v21040_v1 = vld [vmem:[#allocation6 + $0xc] ss:$52 sps:$4 sm:$0xff]   ;;  %v741_v2 = vld [vmem:[%s21553_s18 + $0xab8] sm:$0xff] }
 0x58d   : > { %v17730_v6 = vcombine.high %v740_v63, %v748_v0  ;;  %v17729_v13 = vcombine.low %v740_v63, %v748_v0  ;;  %v17731_v15 = vcombine.low %v741_v2, %v749_v3 }
 0x58f   : > { %12200 = vmatpush1.bf16.msra.mxu0 %v17633_v7  ;;  %12571 = vmatpush1.bf16.msra.mxu1 %v17635_v8  ;;  %v17732_v7 = vcombine.high %v741_v2, %v749_v3  ;;  %v756_v8 = vld [vmem:[%s21553_s18 + $0xb30] sm:$0xff]  ;;  %v837_v3 = vld [vmem:[%s21553_s18 + $0xdb8] sm:$0xff] }
 0x590   : > { %12222 = vmatprep.subr.bf16.mxu0 %v17650_v9  ;;  %12593 = vmatprep.subr.bf16.mxu1 %v17652_v10  ;;  %v764_v9 = vld [vmem:[%s21553_s18 + $0xb70] sm:$0xff]  ;;  %v757_v10 = vld [vmem:[%s21553_s18 + $0xb38] sm:$0xff] }
 0x591   : > { %v17746_v16 = vcombine.high %v756_v8, %v764_v9  ;;  %v17745_v28 = vcombine.low %v756_v8, %v764_v9  ;;  %v844_v2 = vld [vmem:[%s21553_s18 + $0xdf0] sm:$0xff] }
 0x592   : > { %12202 = vmatmul.mubr.bf16.vlgmr.msra.gmra.mrb[24].mxu0 %v21037_v29  ;;  %12573 = vmatmul.mubr.bf16.vlgmr.msra.gmra.mrb[24].mxu1 %v21037_v29  ;;  %v17747_v29 = vcombine.low %v757_v10, %v765_v11  ;;  %v852_v9 = vld [vmem:[%s21553_s18 + $0xe30] sm:$0xff] }
 0x593   : > { %12223 = vmatpush1.bf16.msra.mxu0 %v17649_v22  ;;  %12594 = vmatpush1.bf16.msra.mxu1 %v17651_v24  ;;  %v17748_v22 = vcombine.high %v757_v10, %v765_v11  ;;  %v772_v24 = vld [vmem:[%s21553_s18 + $0xbb0] sm:$0xff]  ;;  %v853_v11 = vld [vmem:[%s21553_s18 + $0xe38] sm:$0xff] }
 0x594   : > { %12224 = vmatprep.subr.bf16.mxu0 %v17666_v25  ;;  %12595 = vmatprep.subr.bf16.mxu1 %v17668_v26  ;;  %v780_v25 = vld [vmem:[%s21553_s18 + $0xbf0] sm:$0xff]  ;;  %v773_v26 = vld [vmem:[%s21553_s18 + $0xbb8] sm:$0xff] }
 0x595   : > { %12211 = vmatprep.mubr.bf16.mxu0 %v21038_v41  ;;  %12582 = vmatprep.mubr.bf16.mxu1 %v21038_v41  ;;  %v17762_v30 = vcombine.high %v772_v24, %v780_v25  ;;  %v17764_v31 = vcombine.high %v773_v26, %v781_v27  ;;  %v17761_v37 = vcombine.low %v772_v24, %v780_v25  ;;  %v860_v10 = vld [vmem:[%s21553_s18 + $0xe70] sm:$0xff] }
 0x596   : > { %v17763_v38 = vcombine.low %v773_v26, %v781_v27  ;;  %v868_v25 = vld [vmem:[%s21553_s18 + $0xeb0] sm:$0xff]  ;;  %v869_v27 = vld [vmem:[%s21553_s18 + $0xeb8] sm:$0xff] }
 0x597   : > { %12225 = vmatpush1.bf16.msra.mxu0 %v17665_v32  ;;  %12596 = vmatpush1.bf16.msra.mxu1 %v17667_v33  ;;  %v788_v32 = vld [vmem:[%s21553_s18 + $0xc30] sm:$0xff] }
 0x598   : > { %12226 = vmatprep.subr.bf16.mxu0 %v17682_v34  ;;  %12597 = vmatprep.subr.bf16.mxu1 %v17684_v36  ;;  %v796_v33 = vld [vmem:[%s21553_s18 + $0xc70] sm:$0xff]  ;;  %v789_v34 = vld [vmem:[%s21553_s18 + $0xc38] sm:$0xff] }
 0x599   : > { %v797_v36 = vld [vmem:[%s21553_s18 + $0xc78] sm:$0xff]  ;;  %v17778_v41 = vcombine.high %v788_v32, %v796_v33  ;;  %v876_v26 = vld [vmem:[%s21553_s18 + $0xef0] sm:$0xff] }
 0x59a   : > { %12212 = vmatmul.mubr.bf16.gmra.mrb[28].mxu0 %v21039_v57  ;;  %12583 = vmatmul.mubr.bf16.gmra.mrb[28].mxu1 %v21039_v57  ;;  %v17780_v43 = vcombine.high %v789_v34, %v797_v36  ;;  %v17779_v50 = vcombine.low %v789_v34, %v797_v36  ;;  %v828_v57 = vld [vmem:[%s21553_s18 + $0xd70] sm:$0xff]  ;;  %v885_v36 = vld [vmem:[%s21553_s18 + $0xf38] sm:$0xff] }
 0x59b   : > { %12227 = vmatpush1.bf16.msra.mxu0 %v17681_v45  ;;  %12598 = vmatpush1.bf16.msra.mxu1 %v17683_v47  ;;  %v812_v45 = vld [vmem:[%s21553_s18 + $0xcf0] sm:$0xff]  ;;  %v805_v47 = vld [vmem:[%s21553_s18 + $0xcb8] sm:$0xff]  ;;  %v17810_v63 = vcombine.high %v820_v54, %v828_v57 }
 0x59c   : > { %12228 = vmatprep.subr.bf16.mxu0 %v17698_v48  ;;  %12599 = vmatprep.subr.bf16.mxu1 %v17700_v49  ;;  %v813_v48 = vld [vmem:[%s21553_s18 + $0xcf8] sm:$0xff]  ;;  %v17777_v49 = vcombine.low %v788_v32, %v796_v33  ;;  %v17794_v52 = vcombine.high %v804_v44, %v812_v45  ;;  %v884_v33 = vld [vmem:[%s21553_s18 + $0xf30] sm:$0xff] }
 0x59d   : > { %12254 = vmatprep.mubr.bf16.mxu0 %v21040_v1  ;;  %12625 = vmatprep.mubr.bf16.mxu1 %v21040_v1  ;;  %v17796_v53 = vcombine.high %v805_v47, %v813_v48  ;;  %v836_v1 = vld [vmem:[%s21553_s18 + $0xdb0] sm:$0xff] }
 0x59e   : > { %v892_v34 = vld [vmem:[%s21553_s18 + $0xf70] sm:$0xff] }
 0x59f   : > { %12229 = vmatpush1.bf16.msra.mxu0 %v17697_v59  ;;  %12600 = vmatpush1.bf16.msra.mxu1 %v17699_v60  ;;  %v821_v59 = vld [vmem:[%s21553_s18 + $0xd38] sm:$0xff] }
 0x5a0   : > { %12230 = vmatprep.subr.bf16.mxu0 %v17714_v61  ;;  %12601 = vmatprep.subr.bf16.mxu1 %v17716_v62  ;;  %v829_v60 = vld [vmem:[%s21553_s18 + $0xd78] sm:$0xff]  ;;  %v17793_v61 = vcombine.low %v804_v44, %v812_v45  ;;  %v17795_v62 = vcombine.low %v805_v47, %v813_v48  ;;  %v900_v45 = vld [vmem:[%s21553_s18 + $0xfb0] sm:$0xff] }
 0x5a1   : > { %v17812_v0 = vcombine.high %v821_v59, %v829_v60  ;;  %v908_v47 = vld [vmem:[%s21553_s18 + $0xff0] sm:$0xff]  ;;  %v901_v48 = vld [vmem:[%s21553_s18 + $0xfb8] sm:$0xff] }
 0x5a3   : > { %12231 = vmatpush1.bf16.msra.mxu0 %v17713_v4  ;;  %12602 = vmatpush1.bf16.msra.mxu1 %v17715_v5  ;;  %v845_v4 = vld [vmem:[%s21553_s18 + $0xdf8] sm:$0xff]  ;;  %v17809_v5 = vcombine.low %v820_v54, %v828_v57  ;;  %v916_v57 = vld [vmem:[%s21553_s18 + $0x1030] sm:$0xff] }
 0x5a4   : > { %12232 = vmatprep.subr.bf16.mxu0 %v17730_v6  ;;  %12603 = vmatprep.subr.bf16.mxu1 %v17732_v7  ;;  %v17811_v6 = vcombine.low %v821_v59, %v829_v60  ;;  %v17826_v7 = vcombine.high %v836_v1, %v844_v2  ;;  %v17828_v8 = vcombine.high %v837_v3, %v845_v4  ;;  %v924_v59 = vld [vmem:[%s21553_s18 + $0x1070] sm:$0xff]  ;;  %v917_v60 = vld [vmem:[%s21553_s18 + $0x1038] sm:$0xff] }
 0x5a7   : > { %12233 = vmatpush1.bf16.msra.mxu0 %v17729_v13  ;;  %12604 = vmatpush1.bf16.msra.mxu1 %v17731_v15  ;;  %v861_v13 = vld [vmem:[%s21553_s18 + $0xe78] sm:$0xff]  ;;  %v17825_v15 = vcombine.low %v836_v1, %v844_v2  ;;  %v932_v2 = vld [vmem:[%s21553_s18 + $0x10b0] sm:$0xff] }
 0x5a8   : > { %12234 = vmatprep.subr.bf16.mxu0 %v17746_v16  ;;  %12605 = vmatprep.subr.bf16.mxu1 %v17748_v22  ;;  %v17827_v16 = vcombine.low %v837_v3, %v845_v4  ;;  %v17842_v22 = vcombine.high %v852_v9, %v860_v10  ;;  %v17844_v24 = vcombine.high %v853_v11, %v861_v13  ;;  %v940_v3 = vld [vmem:[%s21553_s18 + $0x10f0] sm:$0xff]  ;;  %v933_v4 = vld [vmem:[%s21553_s18 + $0x10b8] sm:$0xff] }
 0x5ab   : > { %12235 = vmatpush1.bf16.msra.mxu0 %v17745_v28  ;;  %12606 = vmatpush1.bf16.msra.mxu1 %v17747_v29  ;;  %v877_v28 = vld [vmem:[%s21553_s18 + $0xef8] sm:$0xff]  ;;  %v17841_v29 = vcombine.low %v852_v9, %v860_v10  ;;  %v948_v10 = vld [vmem:[%s21553_s18 + $0x1130] sm:$0xff] }
 0x5ac   : > { %12236 = vmatprep.subr.bf16.mxu0 %v17762_v30  ;;  %12607 = vmatprep.subr.bf16.mxu1 %v17764_v31  ;;  %v17843_v30 = vcombine.low %v853_v11, %v861_v13  ;;  %v17858_v31 = vcombine.high %v868_v25, %v876_v26  ;;  %v17860_v32 = vcombine.high %v869_v27, %v877_v28  ;;  %v956_v11 = vld [vmem:[%s21553_s18 + $0x1170] sm:$0xff]  ;;  %v21041_v13 = vld [vmem:[#allocation6 + $0x8] ss:$52 sps:$4 sm:$0xff]  }
 0x5af   : > { %12237 = vmatpush1.bf16.msra.mxu0 %v17761_v37  ;;  %12608 = vmatpush1.bf16.msra.mxu1 %v17763_v38  ;;  %v893_v37 = vld [vmem:[%s21553_s18 + $0xf78] sm:$0xff]  ;;  %v17857_v38 = vcombine.low %v868_v25, %v876_v26  ;;  %v17938_v25 = vcombine.high %v948_v10, %v956_v11 }
 0x5b0   : > { %12238 = vmatprep.subr.bf16.mxu0 %v17778_v41  ;;  %12609 = vmatprep.subr.bf16.mxu1 %v17780_v43  ;;  %v17859_v41 = vcombine.low %v869_v27, %v877_v28  ;;  %v17874_v43 = vcombine.high %v884_v33, %v892_v34  ;;  %v17876_v44 = vcombine.high %v885_v36, %v893_v37  ;;  %v964_v27 = vld [vmem:[%s21553_s18 + $0x11b0] sm:$0xff] }
 0x5b1   : > { %v972_v28 = vld [vmem:[%s21553_s18 + $0x11f0] sm:$0xff] }
 0x5b3   : > { %12239 = vmatpush1.bf16.msra.mxu0 %v17777_v49  ;;  %12610 = vmatpush1.bf16.msra.mxu1 %v17779_v50  ;;  %v909_v49 = vld [vmem:[%s21553_s18 + $0xff8] sm:$0xff]  ;;  %v17873_v50 = vcombine.low %v884_v33, %v892_v34  ;;  %v17954_v34 = vcombine.high %v964_v27, %v972_v28 }
 0x5b4   : > { %12240 = vmatprep.subr.bf16.mxu0 %v17794_v52  ;;  %12611 = vmatprep.subr.bf16.mxu1 %v17796_v53  ;;  %v17875_v52 = vcombine.low %v885_v36, %v893_v37  ;;  %v17890_v53 = vcombine.high %v900_v45, %v908_v47  ;;  %v17892_v54 = vcombine.high %v901_v48, %v909_v49  ;;  %v980_v37 = vld [vmem:[%s21553_s18 + $0x1230] sm:$0xff] }
 0x5b7   : > { %12241 = vmatpush1.bf16.msra.mxu0 %v17793_v61  ;;  %12612 = vmatpush1.bf16.msra.mxu1 %v17795_v62  ;;  %v925_v61 = vld [vmem:[%s21553_s18 + $0x1078] sm:$0xff]  ;;  %v17889_v62 = vcombine.low %v900_v45, %v908_v47  ;;  %v17953_v45 = vcombine.low %v964_v27, %v972_v28 }
 0x5b8   : > { %12242 = vmatprep.subr.bf16.mxu0 %v17810_v63  ;;  %12613 = vmatprep.subr.bf16.mxu1 %v17812_v0  ;;  %v17891_v63 = vcombine.low %v901_v48, %v909_v49  ;;  %v17906_v0 = vcombine.high %v916_v57, %v924_v59  ;;  %v17908_v1 = vcombine.high %v917_v60, %v925_v61 }
 0x5bb   : > { %12243 = vmatpush1.bf16.msra.mxu0 %v17809_v5  ;;  %12614 = vmatpush1.bf16.msra.mxu1 %v17811_v6  ;;  %v941_v5 = vld [vmem:[%s21553_s18 + $0x10f8] sm:$0xff]  ;;  %v17905_v6 = vcombine.low %v916_v57, %v924_v59 }
 0x5bc   : > { %12244 = vmatprep.subr.bf16.mxu0 %v17826_v7  ;;  %12615 = vmatprep.subr.bf16.mxu1 %v17828_v8  ;;  %v17907_v7 = vcombine.low %v917_v60, %v925_v61  ;;  %v17922_v8 = vcombine.high %v932_v2, %v940_v3  ;;  %v17924_v9 = vcombine.high %v933_v4, %v941_v5  ;;  %v1005_v57 = vld [vmem:[%s21553_s18 + $0x12f8] sm:$0xff] }
 0x5bf   : > { %12245 = vmatpush1.bf16.msra.mxu0 %v17825_v15  ;;  %12616 = vmatpush1.bf16.msra.mxu1 %v17827_v16  ;;  %v949_v15 = vld [vmem:[%s21553_s18 + $0x1138] sm:$0xff] }
 0x5c0   : > { %12246 = vmatprep.subr.bf16.mxu0 %v17842_v22  ;;  %12617 = vmatprep.subr.bf16.mxu1 %v17844_v24  ;;  %v957_v16 = vld [vmem:[%s21553_s18 + $0x1178] sm:$0xff]  ;;  %v17921_v22 = vcombine.low %v932_v2, %v940_v3  ;;  %v17923_v24 = vcombine.low %v933_v4, %v941_v5 }
 0x5c1   : > { %v17940_v26 = vcombine.high %v949_v15, %v957_v16  ;;  %v17939_v33 = vcombine.low %v949_v15, %v957_v16  ;;  %v1021_v2 = vld [vmem:[%s21553_s18 + $0x1378] sm:$0xff] }
 0x5c3   : > { %12247 = vmatpush1.bf16.msra.mxu0 %v17841_v29  ;;  %12618 = vmatpush1.bf16.msra.mxu1 %v17843_v30  ;;  %v21042_v29 = vld [vmem:[#allocation6 + $0x74] ss:$52 sps:$4 sm:$0xff]   ;;  %v965_v30 = vld [vmem:[%s21553_s18 + $0x11b8] sm:$0xff] }
 0x5c4   : > { %12248 = vmatprep.subr.bf16.mxu0 %v17858_v31  ;;  %12619 = vmatprep.subr.bf16.mxu1 %v17860_v32  ;;  %v973_v31 = vld [vmem:[%s21553_s18 + $0x11f8] sm:$0xff]  ;;  %v17937_v32 = vcombine.low %v948_v10, %v956_v11 }
 0x5c5   : > { %v17956_v36 = vcombine.high %v965_v30, %v973_v31  ;;  %v17955_v47 = vcombine.low %v965_v30, %v973_v31  ;;  %v1037_v10 = vld [vmem:[%s21553_s18 + $0x13f8] sm:$0xff]  ;;  %v1060_v31 = vld [vmem:[%s21553_s18 + $0x14b0] sm:$0xff] }
 0x5c7   : > { %12249 = vmatpush1.bf16.msra.mxu0 %v17857_v38  ;;  %12620 = vmatpush1.bf16.msra.mxu1 %v17859_v41  ;;  %v988_v38 = vld [vmem:[%s21553_s18 + $0x1270] sm:$0xff]  ;;  %v981_v41 = vld [vmem:[%s21553_s18 + $0x1238] sm:$0xff] }
 0x5c8   : > { %12250 = vmatprep.subr.bf16.mxu0 %v17874_v43  ;;  %12621 = vmatprep.subr.bf16.mxu1 %v17876_v44  ;;  %v989_v43 = vld [vmem:[%s21553_s18 + $0x1278] sm:$0xff]  ;;  %v21043_v44 = vld [vmem:[#allocation6 + $0x70] ss:$52 sps:$4 sm:$0xff]   ;;  %v17970_v48 = vcombine.high %v980_v37, %v988_v38  ;;  %v17969_v59 = vcombine.low %v980_v37, %v988_v38 }
 0x5c9   : > { %v17972_v49 = vcombine.high %v981_v41, %v989_v43  ;;  %v17971_v60 = vcombine.low %v981_v41, %v989_v43  ;;  %v1076_v43 = vld [vmem:[%s21553_s18 + $0x1530] sm:$0xff] }
 0x5cb   : > { %12251 = vmatpush1.bf16.msra.mxu0 %v17873_v50  ;;  %12622 = vmatpush1.bf16.msra.mxu1 %v17875_v52  ;;  %v996_v50 = vld [vmem:[%s21553_s18 + $0x12b0] sm:$0xff] }
 0x5cc   : > { %12252 = vmatprep.subr.bf16.mxu0 %v17890_v53  ;;  %12623 = vmatprep.subr.bf16.mxu1 %v17892_v54  ;;  %v1004_v52 = vld [vmem:[%s21553_s18 + $0x12f0] sm:$0xff]  ;;  %v997_v54 = vld [vmem:[%s21553_s18 + $0x12b8] sm:$0xff] }
 0x5cd   : > { %v21044_v53 = vld [vmem:[#allocation6 + $0x14] ss:$52 sps:$4 sm:$0xff]   ;;  %v17986_v61 = vcombine.high %v996_v50, %v1004_v52  ;;  %v17985_v3 = vcombine.low %v996_v50, %v1004_v52  ;;  %v17987_v4 = vcombine.low %v997_v54, %v1005_v57 }
 0x5cf   : > { %12253 = vmatpush1.bf16.msra.mxu0 %v17889_v62  ;;  %12624 = vmatpush1.bf16.msra.mxu1 %v17891_v63  ;;  %v17988_v62 = vcombine.high %v997_v54, %v1005_v57  ;;  %v1012_v63 = vld [vmem:[%s21553_s18 + $0x1330] sm:$0xff]  ;;  %v1093_v57 = vld [vmem:[%s21553_s18 + $0x15b8] sm:$0xff] }
 0x5d0   : > { %12275 = vmatprep.subr.bf16.mxu0 %v17906_v0  ;;  %12646 = vmatprep.subr.bf16.mxu1 %v17908_v1  ;;  %v1020_v0 = vld [vmem:[%s21553_s18 + $0x1370] sm:$0xff]  ;;  %v1013_v1 = vld [vmem:[%s21553_s18 + $0x1338] sm:$0xff] }
 0x5d1   : > { %v18002_v5 = vcombine.high %v1012_v63, %v1020_v0  ;;  %v18001_v11 = vcombine.low %v1012_v63, %v1020_v0  ;;  %v1100_v54 = vld [vmem:[%s21553_s18 + $0x15f0] sm:$0xff] }
 0x5d2   : > { %12255 = vmatmul.mubr.bf16.vlgmr.msra.gmra.mrb[24].mxu0 %v21041_v13  ;;  %12626 = vmatmul.mubr.bf16.vlgmr.msra.gmra.mrb[24].mxu1 %v21041_v13  ;;  %v18003_v13 = vcombine.low %v1013_v1, %v1021_v2  ;;  %v1108_v0 = vld [vmem:[%s21553_s18 + $0x1630] sm:$0xff] }
 0x5d3   : > { %12276 = vmatpush1.bf16.msra.mxu0 %v17905_v6  ;;  %12647 = vmatpush1.bf16.msra.mxu1 %v17907_v7  ;;  %v18004_v6 = vcombine.high %v1013_v1, %v1021_v2  ;;  %v1028_v7 = vld [vmem:[%s21553_s18 + $0x13b0] sm:$0xff]  ;;  %v1109_v2 = vld [vmem:[%s21553_s18 + $0x1638] sm:$0xff] }
 0x5d4   : > { %12277 = vmatprep.subr.bf16.mxu0 %v17922_v8  ;;  %12648 = vmatprep.subr.bf16.mxu1 %v17924_v9  ;;  %v1036_v8 = vld [vmem:[%s21553_s18 + $0x13f0] sm:$0xff]  ;;  %v1029_v9 = vld [vmem:[%s21553_s18 + $0x13b8] sm:$0xff] }
 0x5d5   : > { %12264 = vmatprep.mubr.bf16.mxu0 %v21042_v29  ;;  %12635 = vmatprep.mubr.bf16.mxu1 %v21042_v29  ;;  %v18018_v15 = vcombine.high %v1028_v7, %v1036_v8  ;;  %v18020_v16 = vcombine.high %v1029_v9, %v1037_v10  ;;  %v18017_v27 = vcombine.low %v1028_v7, %v1036_v8  ;;  %v1116_v1 = vld [vmem:[%s21553_s18 + $0x1670] sm:$0xff] }
 0x5d6   : > { %v18019_v28 = vcombine.low %v1029_v9, %v1037_v10  ;;  %v1124_v8 = vld [vmem:[%s21553_s18 + $0x16b0] sm:$0xff]  ;;  %v1125_v10 = vld [vmem:[%s21553_s18 + $0x16b8] sm:$0xff] }
 0x5d7   : > { %12278 = vmatpush1.bf16.msra.mxu0 %v17921_v22  ;;  %12649 = vmatpush1.bf16.msra.mxu1 %v17923_v24  ;;  %v1044_v22 = vld [vmem:[%s21553_s18 + $0x1430] sm:$0xff] }
 0x5d8   : > { %12279 = vmatprep.subr.bf16.mxu0 %v17938_v25  ;;  %12650 = vmatprep.subr.bf16.mxu1 %v17940_v26  ;;  %v1052_v24 = vld [vmem:[%s21553_s18 + $0x1470] sm:$0xff]  ;;  %v1045_v25 = vld [vmem:[%s21553_s18 + $0x1438] sm:$0xff] }
 0x5d9   : > { %v1053_v26 = vld [vmem:[%s21553_s18 + $0x1478] sm:$0xff]  ;;  %v18034_v29 = vcombine.high %v1044_v22, %v1052_v24  ;;  %v1132_v9 = vld [vmem:[%s21553_s18 + $0x16f0] sm:$0xff] }
 0x5da   : > { %12265 = vmatmul.mubr.bf16.gmra.mrb[28].mxu0 %v21043_v44  ;;  %12636 = vmatmul.mubr.bf16.gmra.mrb[28].mxu1 %v21043_v44  ;;  %v18036_v30 = vcombine.high %v1045_v25, %v1053_v26  ;;  %v18035_v37 = vcombine.low %v1045_v25, %v1053_v26  ;;  %v1084_v44 = vld [vmem:[%s21553_s18 + $0x1570] sm:$0xff]  ;;  %v1141_v26 = vld [vmem:[%s21553_s18 + $0x1738] sm:$0xff] }
 0x5db   : > { %12280 = vmatpush1.bf16.msra.mxu0 %v17937_v32  ;;  %12651 = vmatpush1.bf16.msra.mxu1 %v17939_v33  ;;  %v1068_v32 = vld [vmem:[%s21553_s18 + $0x14f0] sm:$0xff]  ;;  %v1061_v33 = vld [vmem:[%s21553_s18 + $0x14b8] sm:$0xff]  ;;  %v18066_v50 = vcombine.high %v1076_v43, %v1084_v44 }
 0x5dc   : > { %12281 = vmatprep.subr.bf16.mxu0 %v17954_v34  ;;  %12652 = vmatprep.subr.bf16.mxu1 %v17956_v36  ;;  %v1069_v34 = vld [vmem:[%s21553_s18 + $0x14f8] sm:$0xff]  ;;  %v18033_v36 = vcombine.low %v1044_v22, %v1052_v24  ;;  %v18050_v38 = vcombine.high %v1060_v31, %v1068_v32  ;;  %v1140_v24 = vld [vmem:[%s21553_s18 + $0x1730] sm:$0xff] }
 0x5dd   : > { %12307 = vmatprep.mubr.bf16.mxu0 %v21044_v53  ;;  %12678 = vmatprep.mubr.bf16.mxu1 %v21044_v53  ;;  %v18052_v41 = vcombine.high %v1061_v33, %v1069_v34  ;;  %v1092_v53 = vld [vmem:[%s21553_s18 + $0x15b0] sm:$0xff] }
 0x5de   : > { %v1148_v25 = vld [vmem:[%s21553_s18 + $0x1770] sm:$0xff] }
 0x5df   : > { %12282 = vmatpush1.bf16.msra.mxu0 %v17953_v45  ;;  %12653 = vmatpush1.bf16.msra.mxu1 %v17955_v47  ;;  %v1077_v45 = vld [vmem:[%s21553_s18 + $0x1538] sm:$0xff] }
 0x5e0   : > { %12283 = vmatprep.subr.bf16.mxu0 %v17970_v48  ;;  %12654 = vmatprep.subr.bf16.mxu1 %v17972_v49  ;;  %v1085_v47 = vld [vmem:[%s21553_s18 + $0x1578] sm:$0xff]  ;;  %v18049_v48 = vcombine.low %v1060_v31, %v1068_v32  ;;  %v18051_v49 = vcombine.low %v1061_v33, %v1069_v34  ;;  %v1156_v32 = vld [vmem:[%s21553_s18 + $0x17b0] sm:$0xff] }
 0x5e1   : > { %v18068_v52 = vcombine.high %v1077_v45, %v1085_v47  ;;  %v1164_v33 = vld [vmem:[%s21553_s18 + $0x17f0] sm:$0xff]  ;;  %v1157_v34 = vld [vmem:[%s21553_s18 + $0x17b8] sm:$0xff] }
 0x5e3   : > { %12284 = vmatpush1.bf16.msra.mxu0 %v17969_v59  ;;  %12655 = vmatpush1.bf16.msra.mxu1 %v17971_v60  ;;  %v1101_v59 = vld [vmem:[%s21553_s18 + $0x15f8] sm:$0xff]  ;;  %v18065_v60 = vcombine.low %v1076_v43, %v1084_v44  ;;  %v1172_v44 = vld [vmem:[%s21553_s18 + $0x1830] sm:$0xff] }
 0x5e4   : > { %12285 = vmatprep.subr.bf16.mxu0 %v17986_v61  ;;  %12656 = vmatprep.subr.bf16.mxu1 %v17988_v62  ;;  %v18067_v61 = vcombine.low %v1077_v45, %v1085_v47  ;;  %v18082_v62 = vcombine.high %v1092_v53, %v1100_v54  ;;  %v18084_v63 = vcombine.high %v1093_v57, %v1101_v59  ;;  %v1180_v45 = vld [vmem:[%s21553_s18 + $0x1870] sm:$0xff]  ;;  %v1173_v47 = vld [vmem:[%s21553_s18 + $0x1838] sm:$0xff] }
 0x5e7   : > { %12286 = vmatpush1.bf16.msra.mxu0 %v17985_v3  ;;  %12657 = vmatpush1.bf16.msra.mxu1 %v17987_v4  ;;  %v1117_v3 = vld [vmem:[%s21553_s18 + $0x1678] sm:$0xff]  ;;  %v18081_v4 = vcombine.low %v1092_v53, %v1100_v54  ;;  %v1188_v54 = vld [vmem:[%s21553_s18 + $0x18b0] sm:$0xff] }
 0x5e8   : > { %12287 = vmatprep.subr.bf16.mxu0 %v18002_v5  ;;  %12658 = vmatprep.subr.bf16.mxu1 %v18004_v6  ;;  %v18083_v5 = vcombine.low %v1093_v57, %v1101_v59  ;;  %v18098_v6 = vcombine.high %v1108_v0, %v1116_v1  ;;  %v18100_v7 = vcombine.high %v1109_v2, %v1117_v3  ;;  %v1196_v57 = vld [vmem:[%s21553_s18 + $0x18f0] sm:$0xff]  ;;  %v1189_v59 = vld [vmem:[%s21553_s18 + $0x18b8] sm:$0xff] }
 0x5eb   : > { %12288 = vmatpush1.bf16.msra.mxu0 %v18001_v11  ;;  %12659 = vmatpush1.bf16.msra.mxu1 %v18003_v13  ;;  %v1133_v11 = vld [vmem:[%s21553_s18 + $0x16f8] sm:$0xff]  ;;  %v18097_v13 = vcombine.low %v1108_v0, %v1116_v1  ;;  %v1204_v1 = vld [vmem:[%s21553_s18 + $0x1930] sm:$0xff] }
 0x5ec   : > { %12289 = vmatprep.subr.bf16.mxu0 %v18018_v15  ;;  %12660 = vmatprep.subr.bf16.mxu1 %v18020_v16  ;;  %v18099_v15 = vcombine.low %v1109_v2, %v1117_v3  ;;  %v18114_v16 = vcombine.high %v1124_v8, %v1132_v9  ;;  %v18116_v22 = vcombine.high %v1125_v10, %v1133_v11  ;;  %v1212_v2 = vld [vmem:[%s21553_s18 + $0x1970] sm:$0xff] }
 0x5ed   : > { %v21045_v3 = vld [vmem:[#allocation6 + $0x10] ss:$52 sps:$4 sm:$0xff]  }
 0x5ef   : > { %12290 = vmatpush1.bf16.msra.mxu0 %v18017_v27  ;;  %12661 = vmatpush1.bf16.msra.mxu1 %v18019_v28  ;;  %v1149_v27 = vld [vmem:[%s21553_s18 + $0x1778] sm:$0xff]  ;;  %v18113_v28 = vcombine.low %v1124_v8, %v1132_v9  ;;  %v18194_v8 = vcombine.high %v1204_v1, %v1212_v2 }
 0x5f0   : > { %12291 = vmatprep.subr.bf16.mxu0 %v18034_v29  ;;  %12662 = vmatprep.subr.bf16.mxu1 %v18036_v30  ;;  %v18115_v29 = vcombine.low %v1125_v10, %v1133_v11  ;;  %v18130_v30 = vcombine.high %v1140_v24, %v1148_v25  ;;  %v18132_v31 = vcombine.high %v1141_v26, %v1149_v27  ;;  %v1220_v10 = vld [vmem:[%s21553_s18 + $0x19b0] sm:$0xff] }
 0x5f1   : > { %v1228_v11 = vld [vmem:[%s21553_s18 + $0x19f0] sm:$0xff] }
 0x5f3   : > { %12292 = vmatpush1.bf16.msra.mxu0 %v18033_v36  ;;  %12663 = vmatpush1.bf16.msra.mxu1 %v18035_v37  ;;  %v1165_v36 = vld [vmem:[%s21553_s18 + $0x17f8] sm:$0xff]  ;;  %v18129_v37 = vcombine.low %v1140_v24, %v1148_v25  ;;  %v18210_v25 = vcombine.high %v1220_v10, %v1228_v11 }
 0x5f4   : > { %12293 = vmatprep.subr.bf16.mxu0 %v18050_v38  ;;  %12664 = vmatprep.subr.bf16.mxu1 %v18052_v41  ;;  %v18131_v38 = vcombine.low %v1141_v26, %v1149_v27  ;;  %v18146_v41 = vcombine.high %v1156_v32, %v1164_v33  ;;  %v18148_v43 = vcombine.high %v1157_v34, %v1165_v36  ;;  %v1236_v27 = vld [vmem:[%s21553_s18 + $0x1a30] sm:$0xff] }
 0x5f7   : > { %12294 = vmatpush1.bf16.msra.mxu0 %v18049_v48  ;;  %12665 = vmatpush1.bf16.msra.mxu1 %v18051_v49  ;;  %v1181_v48 = vld [vmem:[%s21553_s18 + $0x1878] sm:$0xff]  ;;  %v18145_v49 = vcombine.low %v1156_v32, %v1164_v33  ;;  %v18209_v32 = vcombine.low %v1220_v10, %v1228_v11  ;;  %v23093_v11 = vld [vmem:[%s21553_s18 + $0x1c30] sm:$0xff] }
 0x5f8   : > { %12295 = vmatprep.subr.bf16.mxu0 %v18066_v50  ;;  %12666 = vmatprep.subr.bf16.mxu1 %v18068_v52  ;;  %v18147_v50 = vcombine.low %v1157_v34, %v1165_v36  ;;  %v18162_v52 = vcombine.high %v1172_v44, %v1180_v45  ;;  %v18164_v53 = vcombine.high %v1173_v47, %v1181_v48 }
 0x5fb   : > { %12296 = vmatpush1.bf16.msra.mxu0 %v18065_v60  ;;  %12667 = vmatpush1.bf16.msra.mxu1 %v18067_v61  ;;  %v1197_v60 = vld [vmem:[%s21553_s18 + $0x18f8] sm:$0xff]  ;;  %v18161_v61 = vcombine.low %v1172_v44, %v1180_v45 }
 0x5fc   : > { %12297 = vmatprep.subr.bf16.mxu0 %v18082_v62  ;;  %12668 = vmatprep.subr.bf16.mxu1 %v18084_v63  ;;  %v18163_v62 = vcombine.low %v1173_v47, %v1181_v48  ;;  %v18178_v63 = vcombine.high %v1188_v54, %v1196_v57  ;;  %v18180_v0 = vcombine.high %v1189_v59, %v1197_v60  ;;  %v1261_v44 = vld [vmem:[%s21553_s18 + $0x1af8] sm:$0xff] }
 0x5ff   : > { %12298 = vmatpush1.bf16.msra.mxu0 %v18081_v4  ;;  %12669 = vmatpush1.bf16.msra.mxu1 %v18083_v5  ;;  %v1205_v4 = vld [vmem:[%s21553_s18 + $0x1938] sm:$0xff] }
 0x600   : > { %12299 = vmatprep.subr.bf16.mxu0 %v18098_v6  ;;  %12670 = vmatprep.subr.bf16.mxu1 %v18100_v7  ;;  %v1213_v5 = vld [vmem:[%s21553_s18 + $0x1978] sm:$0xff]  ;;  %v18177_v6 = vcombine.low %v1188_v54, %v1196_v57  ;;  %v18179_v7 = vcombine.low %v1189_v59, %v1197_v60 }
 0x601   : > { %v18196_v9 = vcombine.high %v1205_v4, %v1213_v5  ;;  %v18195_v24 = vcombine.low %v1205_v4, %v1213_v5  ;;  %v1277_v54 = vld [vmem:[%s21553_s18 + $0x1b78] sm:$0xff] }
 0x602   : > { %v23089_v4 = vld [vmem:[%s21553_s18 + $0x1bb8] sm:$0xff] }
 0x603   : > { %12300 = vmatpush1.bf16.msra.mxu0 %v18097_v13  ;;  %12671 = vmatpush1.bf16.msra.mxu1 %v18099_v15  ;;  %v21046_v13 = vld [vmem:[#allocation6 + $0x7c] ss:$52 sps:$4 sm:$0xff]  }
 0x604   : > { %12301 = vmatprep.subr.bf16.mxu0 %v18114_v16  ;;  %12672 = vmatprep.subr.bf16.mxu1 %v18116_v22  ;;  %v1221_v15 = vld [vmem:[%s21553_s18 + $0x19b8] sm:$0xff]  ;;  %v18193_v22 = vcombine.low %v1204_v1, %v1212_v2 }
 0x605   : > { %v1229_v16 = vld [vmem:[%s21553_s18 + $0x19f8] sm:$0xff] }
 0x606   : > { %v18212_v26 = vcombine.high %v1221_v15, %v1229_v16  ;;  %v18211_v33 = vcombine.low %v1221_v15, %v1229_v16  ;;  %v1293_v5 = vld [vmem:[%s21553_s18 + $0x1bf8] sm:$0xff] }
 0x607   : > { %12302 = vmatpush1.bf16.msra.mxu0 %v18113_v28  ;;  %12673 = vmatpush1.bf16.msra.mxu1 %v18115_v29  ;;  %v1244_v28 = vld [vmem:[%s21553_s18 + $0x1a70] sm:$0xff]  ;;  %v1237_v29 = vld [vmem:[%s21553_s18 + $0x1a38] sm:$0xff] }
 0x608   : > { %12303 = vmatprep.subr.bf16.mxu0 %v18130_v30  ;;  %12674 = vmatprep.subr.bf16.mxu1 %v18132_v31  ;;  %v1245_v30 = vld [vmem:[%s21553_s18 + $0x1a78] sm:$0xff]  ;;  %v18226_v34 = vcombine.high %v1236_v27, %v1244_v28  ;;  %v18225_v45 = vcombine.low %v1236_v27, %v1244_v28 }
 0x609   : > { %v21047_v31 = vld [vmem:[#allocation6 + $0x78] ss:$52 sps:$4 sm:$0xff]   ;;  %v18228_v36 = vcombine.high %v1237_v29, %v1245_v30  ;;  %v18227_v47 = vcombine.low %v1237_v29, %v1245_v30  ;;  %v18276_v29 = vcombine.high %v23089_v4, %v1293_v5  ;;  %v23100_v30 = vld [vmem:[%s21553_s18 + $0x1c70] sm:$0xff] }
 0x60b   : > { %12304 = vmatpush1.bf16.msra.mxu0 %v18129_v37  ;;  %12675 = vmatpush1.bf16.msra.mxu1 %v18131_v38  ;;  %v1252_v37 = vld [vmem:[%s21553_s18 + $0x1ab0] sm:$0xff] }
 0x60c   : > { %12305 = vmatprep.subr.bf16.mxu0 %v18146_v41  ;;  %12676 = vmatprep.subr.bf16.mxu1 %v18148_v43  ;;  %v1260_v38 = vld [vmem:[%s21553_s18 + $0x1af0] sm:$0xff]  ;;  %v1253_v43 = vld [vmem:[%s21553_s18 + $0x1ab8] sm:$0xff] }
 0x60d   : > { %v21048_v41 = vld [vmem:[#allocation6 + $0x1c] ss:$52 sps:$4 sm:$0xff]   ;;  %v18242_v48 = vcombine.high %v1252_v37, %v1260_v38  ;;  %v18241_v57 = vcombine.low %v1252_v37, %v1260_v38  ;;  %v18243_v59 = vcombine.low %v1253_v43, %v1261_v44 }
 0x60f   : > { %12306 = vmatpush1.bf16.msra.mxu0 %v18145_v49  ;;  %12677 = vmatpush1.bf16.msra.mxu1 %v18147_v50  ;;  %v18244_v49 = vcombine.high %v1253_v43, %v1261_v44  ;;  %v1268_v50 = vld [vmem:[%s21553_s18 + $0x1b30] sm:$0xff]  ;;  %v18275_v43 = vcombine.low %v23089_v4, %v1293_v5  ;;  %v18290_v44 = vcombine.high %v23093_v11, %v23100_v30 }
 0x610   : > { %12328 = vmatprep.subr.bf16.mxu0 %v18162_v52  ;;  %12699 = vmatprep.subr.bf16.mxu1 %v18164_v53  ;;  %v1276_v52 = vld [vmem:[%s21553_s18 + $0x1b70] sm:$0xff]  ;;  %v1269_v53 = vld [vmem:[%s21553_s18 + $0x1b38] sm:$0xff] }
 0x611   : > { %v18258_v60 = vcombine.high %v1268_v50, %v1276_v52  ;;  %v18257_v10 = vcombine.low %v1268_v50, %v1276_v52 }
 0x612   : > { %12308 = vmatmul.mubr.bf16.vlgmr.msra.gmra.mrb[24].mxu0 %v21045_v3  ;;  %12679 = vmatmul.mubr.bf16.vlgmr.msra.gmra.mrb[24].mxu1 %v21045_v3 }
 0x613   : > { %12329 = vmatpush1.bf16.msra.mxu0 %v18161_v61  ;;  %12700 = vmatpush1.bf16.msra.mxu1 %v18163_v62  ;;  %v18260_v62 = vcombine.high %v1269_v53, %v1277_v54 }
 0x614   : > { %12330 = vmatprep.subr.bf16.mxu0 %v18178_v63  ;;  %12701 = vmatprep.subr.bf16.mxu1 %v18180_v0  ;;  %v1284_v63 = vld [vmem:[%s21553_s18 + $0x1bb0] sm:$0xff] }
 0x615   : > { %12317 = vmatprep.mubr.bf16.mxu0 %v21046_v13  ;;  %12688 = vmatprep.mubr.bf16.mxu1 %v21046_v13  ;;  %v1292_v0 = vld [vmem:[%s21553_s18 + $0x1bf0] sm:$0xff] }
 0x616   : > { %v18273_v38 = vcombine.low %v1284_v63, %v1292_v0 }
 0x617   : > { %12331 = vmatpush1.bf16.msra.mxu0 %v18177_v6  ;;  %12702 = vmatpush1.bf16.msra.mxu1 %v18179_v7 }
 0x618   : > { %12332 = vmatprep.subr.bf16.mxu0 %v18194_v8  ;;  %12703 = vmatprep.subr.bf16.mxu1 %v18196_v9 }
 0x61a   : > { %12318 = vmatmul.mubr.bf16.gmra.mrb[28].mxu0 %v21047_v31  ;;  %12689 = vmatmul.mubr.bf16.gmra.mrb[28].mxu1 %v21047_v31 }
 0x61b   : > { %12333 = vmatpush1.bf16.msra.mxu0 %v18193_v22  ;;  %12704 = vmatpush1.bf16.msra.mxu1 %v18195_v24  ;;  %v18259_v24 = vcombine.low %v1269_v53, %v1277_v54  ;;  %v1317_v54 = vld [vmem:[%s21553_s18 + $0x1cb8] sm:$0xff] }
 0x61c   : > { %12334 = vmatprep.subr.bf16.mxu0 %v18210_v25  ;;  %12705 = vmatprep.subr.bf16.mxu1 %v18212_v26  ;;  %v18274_v25 = vcombine.high %v1284_v63, %v1292_v0  ;;  %v18289_v63 = vcombine.low %v23093_v11, %v23100_v30  ;;  %v1332_v0 = vld [vmem:[%s21553_s18 + $0x1d30] sm:$0xff] }
 0x61d   : > { %12360 = vmatprep.mubr.bf16.mxu0 %v21048_v41  ;;  %12731 = vmatprep.mubr.bf16.mxu1 %v21048_v41  ;;  %v1340_v11 = vld [vmem:[%s21553_s18 + $0x1d70] sm:$0xff] }
 0x61f   : > { %12335 = vmatpush1.bf16.msra.mxu0 %v18209_v32  ;;  %12706 = vmatpush1.bf16.msra.mxu1 %v18211_v33  ;;  %v1301_v33 = vld [vmem:[%s21553_s18 + $0x1c38] sm:$0xff] }
 0x620   : > { %12336 = vmatprep.subr.bf16.mxu0 %v18226_v34  ;;  %12707 = vmatprep.subr.bf16.mxu1 %v18228_v36  ;;  %v1309_v34 = vld [vmem:[%s21553_s18 + $0x1c78] sm:$0xff] }
 0x621   : > { %v18291_v5 = vcombine.low %v1301_v33, %v1309_v34 }
 0x623   : > { %12337 = vmatpush1.bf16.msra.mxu0 %v18225_v45  ;;  %12708 = vmatpush1.bf16.msra.mxu1 %v18227_v47  ;;  %v18292_v47 = vcombine.high %v1301_v33, %v1309_v34  ;;  %v1356_v33 = vld [vmem:[%s21553_s18 + $0x1df0] sm:$0xff]  ;;  %v1349_v34 = vld [vmem:[%s21553_s18 + $0x1db8] sm:$0xff] }
 0x624   : > { %12338 = vmatprep.subr.bf16.mxu0 %v18242_v48  ;;  %12709 = vmatprep.subr.bf16.mxu1 %v18244_v49  ;;  %v1316_v48 = vld [vmem:[%s21553_s18 + $0x1cb0] sm:$0xff] }
 0x625   : > { %v11779_v61 = vpop.f32.mrb[16].mxu0  ;;  %v12150_v2 = vpop.f32.mrb[16].mxu1  ;;  %v1324_v49 = vld [vmem:[%s21553_s18 + $0x1cf0] sm:$0xff] }
 0x626   : > { %v12919_v1 = vmul.f32 0.020408163, %v11779_v61  ;;  %v11781_v3 = vpop.f32.mrb[17].mxu0  ;;  %v12921_v6 = vmul.f32 0.020408163, %v12150_v2  ;;  %v12152_v8 = vpop.f32.mrb[17].mxu1 }
 0x627   : > { %v12920_v7 = vmul.f32 0.020408163, %v11781_v3  ;;  %12339 = vmatpush1.bf16.msra.mxu0 %v18241_v57  ;;  %v11783_v9 = vpop.f32.mrb[18].mxu0  ;;  %v12922_v13 = vmul.f32 0.020408163, %v12152_v8  ;;  %12710 = vmatpush1.bf16.msra.mxu1 %v18243_v59  ;;  %v12154_v16 = vpop.f32.mrb[18].mxu1 }
 0x628   : > { %12983 = vst [vmem:[%s22201_s10 + $0x40] sm:$0xff] %v12919_v1  ;;  %v12935_v15 = vmul.f32 0.020408163, %v11783_v9  ;;  %v11785_v22 = vpop.f32.mrb[19].mxu0  ;;  %12340 = vmatprep.subr.bf16.mxu0 %v18258_v60  ;;  %12985 = vst [vmem:[%s22201_s10 + $0x50] sm:$0xff] %v12921_v6  ;;  %v12156_v28 = vpop.f32.mrb[19].mxu1  ;;  %12711 = vmatprep.subr.bf16.mxu1 %v18260_v62 }
 0x629   : > { %12984 = vst [vmem:[%s22201_s10 + $0x48] sm:$0xff] %v12920_v7  ;;  %v12937_v26 = vmul.f32 0.020408163, %v12154_v16  ;;  %v12936_v27 = vmul.f32 0.020408163, %v11785_v22  ;;  %12986 = vst [vmem:[%s22201_s10 + $0x58] sm:$0xff] %v12922_v13 }
 0x62a   : > { %12999 = vst [vmem:[%s22201_s10 + $0xc0] sm:$0xff] %v12935_v15  ;;  %v23104_v31 = vpack.c.bf16 %v12935_v15, %v12919_v1  ;;  %v12938_v32 = vmul.f32 0.020408163, %v12156_v28  ;;  %v1325_v57 = vld [vmem:[%s21553_s18 + $0x1cf8] sm:$0xff] }
 0x62b   : > { %13001 = vst [vmem:[%s22201_s10 + $0xd0] sm:$0xff] %v12937_v26  ;;  %v23109_v36 = vpack.c.bf16 %v12937_v26, %v12921_v6  ;;  %13000 = vst [vmem:[%s22201_s10 + $0xc8] sm:$0xff] %v12936_v27  ;;  %v23112_v37 = vpack.c.bf16 %v12936_v27, %v12920_v7  ;;  %12341 = vmatpush1.bf16.msra.mxu0 %v18257_v10  ;;  %12712 = vmatpush1.bf16.msra.mxu1 %v18259_v24  ;;  %v1333_v16 = vld [vmem:[%s21553_s18 + $0x1d38] sm:$0xff] }
 0x62c   : > { %13002 = vst [vmem:[%s22201_s10 + $0xd8] sm:$0xff] %v12938_v32  ;;  %v23115_v41 = vpack.c.bf16 %v12938_v32, %v12922_v13  ;;  %12342 = vmatprep.subr.bf16.mxu0 %v18274_v25  ;;  %12713 = vmatprep.subr.bf16.mxu1 %v18276_v29  ;;  %v18306_v6 = vcombine.high %v1316_v48, %v1324_v49  ;;  %v1341_v22 = vld [vmem:[%s21553_s18 + $0x1d78] sm:$0xff]  ;;  %v1348_v32 = vld [vmem:[%s21553_s18 + $0x1db0] sm:$0xff] }
 0x62d   : > { %v11789_v45 = vpop.f32.mrb[20].mxu0  ;;  %v12160_v52 = vpop.f32.mrb[20].mxu1  ;;  %v18308_v10 = vcombine.high %v1317_v54, %v1325_v57  ;;  %v18305_v26 = vcombine.low %v1316_v48, %v1324_v49  ;;  %v18307_v28 = vcombine.low %v1317_v54, %v1325_v57  ;;  %v18322_v29 = vcombine.high %v1332_v0, %v1340_v11  ;;  %v1364_v48 = vld [vmem:[%s21553_s18 + $0x1e30] sm:$0xff] }
 0x62e   : > { %v12951_v50 = vmul.f32 0.020408163, %v11789_v45  ;;  %v11791_v53 = vpop.f32.mrb[21].mxu0  ;;  %v12953_v59 = vmul.f32 0.020408163, %v12160_v52  ;;  %v12162_v61 = vpop.f32.mrb[21].mxu1  ;;  %v18324_v30 = vcombine.high %v1333_v16, %v1341_v22  ;;  %v18338_v45 = vcombine.high %v1348_v32, %v1356_v33 }
 0x62f   : > { %v12952_v60 = vmul.f32 0.020408163, %v11791_v53  ;;  %12343 = vmatpush1.bf16.msra.mxu0 %v18273_v38  ;;  %v11793_v62 = vpop.f32.mrb[22].mxu0  ;;  %v12954_v1 = vmul.f32 0.020408163, %v12162_v61  ;;  %12714 = vmatpush1.bf16.msra.mxu1 %v18275_v43  ;;  %v12164_v3 = vpop.f32.mrb[22].mxu1  ;;  %v18321_v43 = vcombine.low %v1332_v0, %v1340_v11  ;;  %v18337_v53 = vcombine.low %v1348_v32, %v1356_v33 }
 0x630   : > { %13015 = vst [vmem:[%s22201_s10 + $0x140] sm:$0xff] %v12951_v50  ;;  %v12967_v2 = vmul.f32 0.020408163, %v11793_v62  ;;  %v11795_v4 = vpop.f32.mrb[23].mxu0  ;;  %12344 = vmatprep.subr.bf16.mxu0 %v18290_v44  ;;  %13017 = vst [vmem:[%s22201_s10 + $0x150] sm:$0xff] %v12953_v59  ;;  %v12166_v9 = vpop.f32.mrb[23].mxu1  ;;  %12715 = vmatprep.subr.bf16.mxu1 %v18292_v47  ;;  %v18323_v44 = vcombine.low %v1333_v16, %v1341_v22 }
 0x631   : > { %13016 = vst [vmem:[%s22201_s10 + $0x148] sm:$0xff] %v12952_v60  ;;  %v12969_v7 = vmul.f32 0.020408163, %v12164_v3  ;;  %v12968_v8 = vmul.f32 0.020408163, %v11795_v4  ;;  %13018 = vst [vmem:[%s22201_s10 + $0x158] sm:$0xff] %v12954_v1 }
 0x632   : > { %13031 = vst [vmem:[%s22201_s10 + $0x1c0] sm:$0xff] %v12967_v2  ;;  %v23133_v13 = vpack.c.bf16 %v12967_v2, %v12951_v50  ;;  %v12970_v15 = vmul.f32 0.020408163, %v12166_v9  ;;  %v1357_v38 = vld [vmem:[%s21553_s18 + $0x1df8] sm:$0xff]  ;;  %v1372_v49 = vld [vmem:[%s21553_s18 + $0x1e70] sm:$0xff] }
 0x633   : > { %13033 = vst [vmem:[%s22201_s10 + $0x1d0] sm:$0xff] %v12969_v7  ;;  %v23138_v24 = vpack.c.bf16 %v12969_v7, %v12953_v59  ;;  %13032 = vst [vmem:[%s22201_s10 + $0x1c8] sm:$0xff] %v12968_v8  ;;  %v23141_v25 = vpack.c.bf16 %v12968_v8, %v12952_v60  ;;  %12345 = vmatpush1.bf16.msra.mxu0 %v18289_v63  ;;  %12716 = vmatpush1.bf16.msra.mxu1 %v18291_v5  ;;  %v1365_v50 = vld [vmem:[%s21553_s18 + $0x1e38] sm:$0xff]  ;;  %v1380_v60 = vld [vmem:[%s21553_s18 + $0x1eb0] sm:$0xff] }
 0x634   : > { %13034 = vst [vmem:[%s22201_s10 + $0x1d8] sm:$0xff] %v12970_v15  ;;  %v23144_v27 = vpack.c.bf16 %v12970_v15, %v12954_v1  ;;  %12346 = vmatprep.subr.bf16.mxu0 %v18306_v6  ;;  %12717 = vmatprep.subr.bf16.mxu1 %v18308_v10  ;;  %v18340_v47 = vcombine.high %v1349_v34, %v1357_v38  ;;  %v1373_v52 = vld [vmem:[%s21553_s18 + $0x1e78] sm:$0xff]  ;;  %v1388_v61 = vld [vmem:[%s21553_s18 + $0x1ef0] sm:$0xff] }
 0x635   : > { %v18339_v54 = vcombine.low %v1349_v34, %v1357_v38  ;;  %v18354_v57 = vcombine.high %v1364_v48, %v1372_v49  ;;  %v18356_v59 = vcombine.high %v1365_v50, %v1373_v52  ;;  %v1381_v62 = vld [vmem:[%s21553_s18 + $0x1eb8] sm:$0xff]  ;;  %v18353_v0 = vcombine.low %v1364_v48, %v1372_v49  ;;  %v1396_v4 = vld [vmem:[%s21553_s18 + $0x1f30] sm:$0xff] }
 0x636   : > { %v1389_v63 = vld [vmem:[%s21553_s18 + $0x1ef8] sm:$0xff]  ;;  %v18355_v1 = vcombine.low %v1365_v50, %v1373_v52  ;;  %v18370_v2 = vcombine.high %v1380_v60, %v1388_v61  ;;  %v1404_v5 = vld [vmem:[%s21553_s18 + $0x1f70] sm:$0xff]  ;;  %v18369_v8 = vcombine.low %v1380_v60, %v1388_v61 }
 0x637   : > { %12347 = vmatpush1.bf16.msra.mxu0 %v18305_v26  ;;  %12718 = vmatpush1.bf16.msra.mxu1 %v18307_v28  ;;  %v18372_v3 = vcombine.high %v1381_v62, %v1389_v63  ;;  %v1397_v6 = vld [vmem:[%s21553_s18 + $0x1f38] sm:$0xff]  ;;  %v18371_v9 = vcombine.low %v1381_v62, %v1389_v63  ;;  %v18386_v10 = vcombine.high %v1396_v4, %v1404_v5  ;;  %v1412_v15 = vld [vmem:[%s21553_s18 + $0x1fb0] sm:$0xff] }
 0x638   : > { %12348 = vmatprep.subr.bf16.mxu0 %v18322_v29  ;;  %12719 = vmatprep.subr.bf16.mxu1 %v18324_v30  ;;  %v1405_v7 = vld [vmem:[%s21553_s18 + $0x1f78] sm:$0xff]  ;;  %v1420_v16 = vld [vmem:[%s21553_s18 + $0x1ff0] sm:$0xff]  ;;  %v18385_v28 = vcombine.low %v1396_v4, %v1404_v5 }
 0x639   : > { %v18388_v11 = vcombine.high %v1397_v6, %v1405_v7  ;;  %v1413_v22 = vld [vmem:[%s21553_s18 + $0x1fb8] sm:$0xff]  ;;  %v18387_v29 = vcombine.low %v1397_v6, %v1405_v7  ;;  %v18402_v30 = vcombine.high %v1412_v15, %v1420_v16  ;;  %v1428_v33 = vld [vmem:[%s21553_s18 + $0x2030] sm:$0xff] }
 0x63a   : > { %v1421_v26 = vld [vmem:[%s21553_s18 + $0x1ff8] sm:$0xff]  ;;  %v1436_v34 = vld [vmem:[%s21553_s18 + $0x2070] sm:$0xff] }
 0x63b   : > { %12349 = vmatpush1.bf16.msra.mxu0 %v18321_v43  ;;  %12720 = vmatpush1.bf16.msra.mxu1 %v18323_v44  ;;  %v18404_v32 = vcombine.high %v1413_v22, %v1421_v26  ;;  %v1429_v38 = vld [vmem:[%s21553_s18 + $0x2038] sm:$0xff]  ;;  %v18401_v44 = vcombine.low %v1412_v15, %v1420_v16  ;;  %v1444_v49 = vld [vmem:[%s21553_s18 + $0x20b0] sm:$0xff] }
 0x63c   : > { %12350 = vmatprep.subr.bf16.mxu0 %v18338_v45  ;;  %12721 = vmatprep.subr.bf16.mxu1 %v18340_v47  ;;  %v1437_v43 = vld [vmem:[%s21553_s18 + $0x2078] sm:$0xff]  ;;  %v18403_v45 = vcombine.low %v1413_v22, %v1421_v26  ;;  %v18418_v47 = vcombine.high %v1428_v33, %v1436_v34  ;;  %v1452_v50 = vld [vmem:[%s21553_s18 + $0x20f0] sm:$0xff] }
 0x63d   : > { %v18420_v48 = vcombine.high %v1429_v38, %v1437_v43  ;;  %v1445_v52 = vld [vmem:[%s21553_s18 + $0x20b8] sm:$0xff]  ;;  %v1460_v61 = vld [vmem:[%s21553_s18 + $0x2130] sm:$0xff] }
 0x63e   : > { %v1468_v62 = vld [vmem:[%s21553_s18 + $0x2170] sm:$0xff]  ;;  %v21049_v63 = vld [vmem:[#allocation6 + $0x18] ss:$52 sps:$4 sm:$0xff]  }
 0x63f   : > { %12351 = vmatpush1.bf16.msra.mxu0 %v18337_v53  ;;  %12722 = vmatpush1.bf16.msra.mxu1 %v18339_v54  ;;  %v1453_v53 = vld [vmem:[%s21553_s18 + $0x20f8] sm:$0xff]  ;;  %v18417_v54 = vcombine.low %v1428_v33, %v1436_v34  ;;  %v18450_v4 = vcombine.high %v1460_v61, %v1468_v62  ;;  %v1476_v6 = vld [vmem:[%s21553_s18 + $0x21b0] sm:$0xff] }
 0x640   : > { %12352 = vmatprep.subr.bf16.mxu0 %v18354_v57  ;;  %12723 = vmatprep.subr.bf16.mxu1 %v18356_v59  ;;  %v18419_v57 = vcombine.low %v1429_v38, %v1437_v43  ;;  %v18434_v59 = vcombine.high %v1444_v49, %v1452_v50  ;;  %v18436_v60 = vcombine.high %v1445_v52, %v1453_v53  ;;  %v1484_v7 = vld [vmem:[%s21553_s18 + $0x21f0] sm:$0xff] }
 0x641   : > { %v18466_v16 = vcombine.high %v1476_v6, %v1484_v7  ;;  %v1492_v26 = vld [vmem:[%s21553_s18 + $0x2230] sm:$0xff]  ;;  %v18465_v33 = vcombine.low %v1476_v6, %v1484_v7 }
 0x643   : > { %12353 = vmatpush1.bf16.msra.mxu0 %v18353_v0  ;;  %12724 = vmatpush1.bf16.msra.mxu1 %v18355_v1  ;;  %v1461_v0 = vld [vmem:[%s21553_s18 + $0x2138] sm:$0xff] }
 0x644   : > { %12354 = vmatprep.subr.bf16.mxu0 %v18370_v2  ;;  %12725 = vmatprep.subr.bf16.mxu1 %v18372_v3  ;;  %v1469_v1 = vld [vmem:[%s21553_s18 + $0x2178] sm:$0xff]  ;;  %v18433_v2 = vcombine.low %v1444_v49, %v1452_v50  ;;  %v18435_v3 = vcombine.low %v1445_v52, %v1453_v53 }
 0x645   : > { %v18452_v5 = vcombine.high %v1461_v0, %v1469_v1  ;;  %v18451_v15 = vcombine.low %v1461_v0, %v1469_v1  ;;  %v1517_v49 = vld [vmem:[%s21553_s18 + $0x22f8] sm:$0xff] }
 0x647   : > { %12355 = vmatpush1.bf16.msra.mxu0 %v18369_v8  ;;  %12726 = vmatpush1.bf16.msra.mxu1 %v18371_v9  ;;  %v21050_v8 = vld [vmem:[#allocation6 + $0x84] ss:$52 sps:$4 sm:$0xff]  }
 0x648   : > { %12356 = vmatprep.subr.bf16.mxu0 %v18386_v10  ;;  %12727 = vmatprep.subr.bf16.mxu1 %v18388_v11  ;;  %v1477_v9 = vld [vmem:[%s21553_s18 + $0x21b8] sm:$0xff]  ;;  %v18449_v11 = vcombine.low %v1460_v61, %v1468_v62 }
 0x649   : > { %v1485_v10 = vld [vmem:[%s21553_s18 + $0x21f8] sm:$0xff] }
 0x64a   : > { %v18468_v22 = vcombine.high %v1477_v9, %v1485_v10  ;;  %v18467_v34 = vcombine.low %v1477_v9, %v1485_v10  ;;  %v1533_v61 = vld [vmem:[%s21553_s18 + $0x2378] sm:$0xff]  ;;  %v1556_v10 = vld [vmem:[%s21553_s18 + $0x2430] sm:$0xff] }
 0x64b   : > { %12357 = vmatpush1.bf16.msra.mxu0 %v18385_v28  ;;  %12728 = vmatpush1.bf16.msra.mxu1 %v18387_v29  ;;  %v1500_v28 = vld [vmem:[%s21553_s18 + $0x2270] sm:$0xff]  ;;  %v1493_v29 = vld [vmem:[%s21553_s18 + $0x2238] sm:$0xff] }
 0x64c   : > { %12358 = vmatprep.subr.bf16.mxu0 %v18402_v30  ;;  %12729 = vmatprep.subr.bf16.mxu1 %v18404_v32  ;;  %v1501_v30 = vld [vmem:[%s21553_s18 + $0x2278] sm:$0xff]  ;;  %v21051_v32 = vld [vmem:[#allocation6 + $0x80] ss:$52 sps:$4 sm:$0xff]   ;;  %v18482_v38 = vcombine.high %v1492_v26, %v1500_v28  ;;  %v18481_v50 = vcombine.low %v1492_v26, %v1500_v28 }
 0x64d   : > { %v18484_v43 = vcombine.high %v1493_v29, %v1501_v30  ;;  %v18483_v52 = vcombine.low %v1493_v29, %v1501_v30  ;;  %v1572_v30 = vld [vmem:[%s21553_s18 + $0x24b0] sm:$0xff] }
 0x64f   : > { %12359 = vmatpush1.bf16.msra.mxu0 %v18401_v44  ;;  %12730 = vmatpush1.bf16.msra.mxu1 %v18403_v45  ;;  %v1508_v44 = vld [vmem:[%s21553_s18 + $0x22b0] sm:$0xff] }
 0x650   : > { %12381 = vmatprep.subr.bf16.mxu0 %v18418_v47  ;;  %12752 = vmatprep.subr.bf16.mxu1 %v18420_v48  ;;  %v1516_v45 = vld [vmem:[%s21553_s18 + $0x22f0] sm:$0xff]  ;;  %v21052_v47 = vld [vmem:[#allocation6 + $0x24] ss:$52 sps:$4 sm:$0xff]  }
 0x651   : > { %v1509_v48 = vld [vmem:[%s21553_s18 + $0x22b8] sm:$0xff]  ;;  %v18498_v53 = vcombine.high %v1508_v44, %v1516_v45  ;;  %v18497_v62 = vcombine.low %v1508_v44, %v1516_v45 }
 0x652   : > { %12361 = vmatmul.mubr.bf16.vlgmr.msra.gmra.mrb[24].mxu0 %v21049_v63  ;;  %12732 = vmatmul.mubr.bf16.vlgmr.msra.gmra.mrb[24].mxu1 %v21049_v63  ;;  %v18499_v63 = vcombine.low %v1509_v48, %v1517_v49 }
 0x653   : > { %12382 = vmatpush1.bf16.msra.mxu0 %v18417_v54  ;;  %12753 = vmatpush1.bf16.msra.mxu1 %v18419_v57  ;;  %v18500_v54 = vcombine.high %v1509_v48, %v1517_v49  ;;  %v1524_v57 = vld [vmem:[%s21553_s18 + $0x2330] sm:$0xff]  ;;  %v1589_v49 = vld [vmem:[%s21553_s18 + $0x2538] sm:$0xff] }
 0x654   : > { %12383 = vmatprep.subr.bf16.mxu0 %v18434_v59  ;;  %12754 = vmatprep.subr.bf16.mxu1 %v18436_v60  ;;  %v1532_v59 = vld [vmem:[%s21553_s18 + $0x2370] sm:$0xff]  ;;  %v1525_v60 = vld [vmem:[%s21553_s18 + $0x2338] sm:$0xff] }
 0x655   : > { %12370 = vmatprep.mubr.bf16.mxu0 %v21050_v8  ;;  %12741 = vmatprep.mubr.bf16.mxu1 %v21050_v8  ;;  %v18514_v0 = vcombine.high %v1524_v57, %v1532_v59  ;;  %v18516_v1 = vcombine.high %v1525_v60, %v1533_v61  ;;  %v18513_v6 = vcombine.low %v1524_v57, %v1532_v59  ;;  %v1596_v48 = vld [vmem:[%s21553_s18 + $0x2570] sm:$0xff] }
 0x656   : > { %v18515_v7 = vcombine.low %v1525_v60, %v1533_v61  ;;  %v1604_v59 = vld [vmem:[%s21553_s18 + $0x25b0] sm:$0xff]  ;;  %v1605_v61 = vld [vmem:[%s21553_s18 + $0x25b8] sm:$0xff] }
 0x657   : > { %12384 = vmatpush1.bf16.msra.mxu0 %v18433_v2  ;;  %12755 = vmatpush1.bf16.msra.mxu1 %v18435_v3  ;;  %v1540_v2 = vld [vmem:[%s21553_s18 + $0x23b0] sm:$0xff] }
 0x658   : > { %12385 = vmatprep.subr.bf16.mxu0 %v18450_v4  ;;  %12756 = vmatprep.subr.bf16.mxu1 %v18452_v5  ;;  %v1548_v3 = vld [vmem:[%s21553_s18 + $0x23f0] sm:$0xff]  ;;  %v1541_v4 = vld [vmem:[%s21553_s18 + $0x23b8] sm:$0xff] }
 0x659   : > { %v1549_v5 = vld [vmem:[%s21553_s18 + $0x23f8] sm:$0xff]  ;;  %v18530_v8 = vcombine.high %v1540_v2, %v1548_v3  ;;  %v1612_v60 = vld [vmem:[%s21553_s18 + $0x25f0] sm:$0xff] }
 0x65a   : > { %12371 = vmatmul.mubr.bf16.gmra.mrb[28].mxu0 %v21051_v32  ;;  %12742 = vmatmul.mubr.bf16.gmra.mrb[28].mxu1 %v21051_v32  ;;  %v18532_v9 = vcombine.high %v1541_v4, %v1549_v5  ;;  %v18531_v26 = vcombine.low %v1541_v4, %v1549_v5  ;;  %v1580_v32 = vld [vmem:[%s21553_s18 + $0x24f0] sm:$0xff]  ;;  %v1621_v5 = vld [vmem:[%s21553_s18 + $0x2638] sm:$0xff] }
 0x65b   : > { %12386 = vmatpush1.bf16.msra.mxu0 %v18449_v11  ;;  %12757 = vmatpush1.bf16.msra.mxu1 %v18451_v15  ;;  %v1564_v11 = vld [vmem:[%s21553_s18 + $0x2470] sm:$0xff]  ;;  %v1557_v15 = vld [vmem:[%s21553_s18 + $0x2438] sm:$0xff]  ;;  %v18562_v44 = vcombine.high %v1572_v30, %v1580_v32 }
 0x65c   : > { %12387 = vmatprep.subr.bf16.mxu0 %v18466_v16  ;;  %12758 = vmatprep.subr.bf16.mxu1 %v18468_v22  ;;  %v1565_v16 = vld [vmem:[%s21553_s18 + $0x2478] sm:$0xff]  ;;  %v18529_v22 = vcombine.low %v1540_v2, %v1548_v3  ;;  %v18546_v28 = vcombine.high %v1556_v10, %v1564_v11  ;;  %v1620_v3 = vld [vmem:[%s21553_s18 + $0x2630] sm:$0xff] }
 0x65d   : > { %12413 = vmatprep.mubr.bf16.mxu0 %v21052_v47  ;;  %12784 = vmatprep.mubr.bf16.mxu1 %v21052_v47  ;;  %v18548_v29 = vcombine.high %v1557_v15, %v1565_v16  ;;  %v1588_v47 = vld [vmem:[%s21553_s18 + $0x2530] sm:$0xff] }
 0x65e   : > { %v1628_v4 = vld [vmem:[%s21553_s18 + $0x2670] sm:$0xff] }
 0x65f   : > { %12388 = vmatpush1.bf16.msra.mxu0 %v18465_v33  ;;  %12759 = vmatpush1.bf16.msra.mxu1 %v18467_v34  ;;  %v1573_v33 = vld [vmem:[%s21553_s18 + $0x24b8] sm:$0xff] }
 0x660   : > { %12389 = vmatprep.subr.bf16.mxu0 %v18482_v38  ;;  %12760 = vmatprep.subr.bf16.mxu1 %v18484_v43  ;;  %v1581_v34 = vld [vmem:[%s21553_s18 + $0x24f8] sm:$0xff]  ;;  %v18545_v38 = vcombine.low %v1556_v10, %v1564_v11  ;;  %v18547_v43 = vcombine.low %v1557_v15, %v1565_v16  ;;  %v1636_v11 = vld [vmem:[%s21553_s18 + $0x26b0] sm:$0xff] }
 0x661   : > { %v18564_v45 = vcombine.high %v1573_v33, %v1581_v34  ;;  %v1644_v15 = vld [vmem:[%s21553_s18 + $0x26f0] sm:$0xff]  ;;  %v1637_v16 = vld [vmem:[%s21553_s18 + $0x26b8] sm:$0xff] }
 0x663   : > { %12390 = vmatpush1.bf16.msra.mxu0 %v18481_v50  ;;  %12761 = vmatpush1.bf16.msra.mxu1 %v18483_v52  ;;  %v1597_v50 = vld [vmem:[%s21553_s18 + $0x2578] sm:$0xff]  ;;  %v18561_v52 = vcombine.low %v1572_v30, %v1580_v32  ;;  %v1652_v32 = vld [vmem:[%s21553_s18 + $0x2730] sm:$0xff] }
 0x664   : > { %12391 = vmatprep.subr.bf16.mxu0 %v18498_v53  ;;  %12762 = vmatprep.subr.bf16.mxu1 %v18500_v54  ;;  %v18563_v53 = vcombine.low %v1573_v33, %v1581_v34  ;;  %v18578_v54 = vcombine.high %v1588_v47, %v1596_v48  ;;  %v18580_v57 = vcombine.high %v1589_v49, %v1597_v50  ;;  %v1660_v33 = vld [vmem:[%s21553_s18 + $0x2770] sm:$0xff]  ;;  %v1653_v34 = vld [vmem:[%s21553_s18 + $0x2738] sm:$0xff] }
 0x667   : > { %12392 = vmatpush1.bf16.msra.mxu0 %v18497_v62  ;;  %12763 = vmatpush1.bf16.msra.mxu1 %v18499_v63  ;;  %v1613_v62 = vld [vmem:[%s21553_s18 + $0x25f8] sm:$0xff]  ;;  %v18577_v63 = vcombine.low %v1588_v47, %v1596_v48  ;;  %v1668_v48 = vld [vmem:[%s21553_s18 + $0x27b0] sm:$0xff] }
 0x668   : > { %12393 = vmatprep.subr.bf16.mxu0 %v18514_v0  ;;  %12764 = vmatprep.subr.bf16.mxu1 %v18516_v1  ;;  %v18579_v0 = vcombine.low %v1589_v49, %v1597_v50  ;;  %v18594_v1 = vcombine.high %v1604_v59, %v1612_v60  ;;  %v18596_v2 = vcombine.high %v1605_v61, %v1613_v62  ;;  %v1676_v49 = vld [vmem:[%s21553_s18 + $0x27f0] sm:$0xff]  ;;  %v1669_v50 = vld [vmem:[%s21553_s18 + $0x27b8] sm:$0xff] }
 0x66b   : > { %12394 = vmatpush1.bf16.msra.mxu0 %v18513_v6  ;;  %12765 = vmatpush1.bf16.msra.mxu1 %v18515_v7  ;;  %v1629_v6 = vld [vmem:[%s21553_s18 + $0x2678] sm:$0xff]  ;;  %v18593_v7 = vcombine.low %v1604_v59, %v1612_v60  ;;  %v1684_v60 = vld [vmem:[%s21553_s18 + $0x2830] sm:$0xff] }
 0x66c   : > { %12395 = vmatprep.subr.bf16.mxu0 %v18530_v8  ;;  %12766 = vmatprep.subr.bf16.mxu1 %v18532_v9  ;;  %v18595_v8 = vcombine.low %v1605_v61, %v1613_v62  ;;  %v18610_v9 = vcombine.high %v1620_v3, %v1628_v4  ;;  %v18612_v10 = vcombine.high %v1621_v5, %v1629_v6  ;;  %v1692_v61 = vld [vmem:[%s21553_s18 + $0x2870] sm:$0xff]  ;;  %v1685_v62 = vld [vmem:[%s21553_s18 + $0x2838] sm:$0xff] }
 0x66f   : > { %12396 = vmatpush1.bf16.msra.mxu0 %v18529_v22  ;;  %12767 = vmatpush1.bf16.msra.mxu1 %v18531_v26  ;;  %v1645_v22 = vld [vmem:[%s21553_s18 + $0x26f8] sm:$0xff]  ;;  %v18609_v26 = vcombine.low %v1620_v3, %v1628_v4  ;;  %v1700_v4 = vld [vmem:[%s21553_s18 + $0x28b0] sm:$0xff] }
 0x670   : > { %12397 = vmatprep.subr.bf16.mxu0 %v18546_v28  ;;  %12768 = vmatprep.subr.bf16.mxu1 %v18548_v29  ;;  %v18611_v28 = vcombine.low %v1621_v5, %v1629_v6  ;;  %v18626_v29 = vcombine.high %v1636_v11, %v1644_v15  ;;  %v18628_v30 = vcombine.high %v1637_v16, %v1645_v22  ;;  %v1708_v5 = vld [vmem:[%s21553_s18 + $0x28f0] sm:$0xff]  ;;  %v1701_v6 = vld [vmem:[%s21553_s18 + $0x28b8] sm:$0xff] }
 0x673   : > { %12398 = vmatpush1.bf16.msra.mxu0 %v18545_v38  ;;  %12769 = vmatpush1.bf16.msra.mxu1 %v18547_v43  ;;  %v1661_v38 = vld [vmem:[%s21553_s18 + $0x2778] sm:$0xff]  ;;  %v18625_v43 = vcombine.low %v1636_v11, %v1644_v15  ;;  %v1716_v15 = vld [vmem:[%s21553_s18 + $0x2930] sm:$0xff] }
 0x674   : > { %12399 = vmatprep.subr.bf16.mxu0 %v18562_v44  ;;  %12770 = vmatprep.subr.bf16.mxu1 %v18564_v45  ;;  %v18627_v44 = vcombine.low %v1637_v16, %v1645_v22  ;;  %v18642_v45 = vcombine.high %v1652_v32, %v1660_v33  ;;  %v18644_v47 = vcombine.high %v1653_v34, %v1661_v38  ;;  %v1724_v16 = vld [vmem:[%s21553_s18 + $0x2970] sm:$0xff] }
 0x675   : > { %v21053_v22 = vld [vmem:[#allocation6 + $0x20] ss:$52 sps:$4 sm:$0xff]  }
 0x677   : > { %12400 = vmatpush1.bf16.msra.mxu0 %v18561_v52  ;;  %12771 = vmatpush1.bf16.msra.mxu1 %v18563_v53  ;;  %v1677_v52 = vld [vmem:[%s21553_s18 + $0x27f8] sm:$0xff]  ;;  %v18641_v53 = vcombine.low %v1652_v32, %v1660_v33  ;;  %v18706_v32 = vcombine.high %v1716_v15, %v1724_v16 }
 0x678   : > { %12401 = vmatprep.subr.bf16.mxu0 %v18578_v54  ;;  %12772 = vmatprep.subr.bf16.mxu1 %v18580_v57  ;;  %v18643_v54 = vcombine.low %v1653_v34, %v1661_v38  ;;  %v18658_v57 = vcombine.high %v1668_v48, %v1676_v49  ;;  %v18660_v59 = vcombine.high %v1669_v50, %v1677_v52  ;;  %v1732_v34 = vld [vmem:[%s21553_s18 + $0x29b0] sm:$0xff] }
 0x679   : > { %v1740_v38 = vld [vmem:[%s21553_s18 + $0x29f0] sm:$0xff] }
 0x67b   : > { %12402 = vmatpush1.bf16.msra.mxu0 %v18577_v63  ;;  %12773 = vmatpush1.bf16.msra.mxu1 %v18579_v0  ;;  %v1693_v63 = vld [vmem:[%s21553_s18 + $0x2878] sm:$0xff]  ;;  %v18657_v0 = vcombine.low %v1668_v48, %v1676_v49  ;;  %v18722_v49 = vcombine.high %v1732_v34, %v1740_v38 }
 0x67c   : > { %12403 = vmatprep.subr.bf16.mxu0 %v18594_v1  ;;  %12774 = vmatprep.subr.bf16.mxu1 %v18596_v2  ;;  %v18659_v1 = vcombine.low %v1669_v50, %v1677_v52  ;;  %v18674_v2 = vcombine.high %v1684_v60, %v1692_v61  ;;  %v18676_v3 = vcombine.high %v1685_v62, %v1693_v63  ;;  %v1748_v52 = vld [vmem:[%s21553_s18 + $0x2a30] sm:$0xff] }
 0x67f   : > { %12404 = vmatpush1.bf16.msra.mxu0 %v18593_v7  ;;  %12775 = vmatpush1.bf16.msra.mxu1 %v18595_v8  ;;  %v1709_v7 = vld [vmem:[%s21553_s18 + $0x28f8] sm:$0xff]  ;;  %v18673_v8 = vcombine.low %v1684_v60, %v1692_v61  ;;  %v18721_v60 = vcombine.low %v1732_v34, %v1740_v38 }
 0x680   : > { %12405 = vmatprep.subr.bf16.mxu0 %v18610_v9  ;;  %12776 = vmatprep.subr.bf16.mxu1 %v18612_v10  ;;  %v18675_v9 = vcombine.low %v1685_v62, %v1693_v63  ;;  %v18690_v10 = vcombine.high %v1700_v4, %v1708_v5  ;;  %v18692_v11 = vcombine.high %v1701_v6, %v1709_v7 }
 0x683   : > { %12406 = vmatpush1.bf16.msra.mxu0 %v18609_v26  ;;  %12777 = vmatpush1.bf16.msra.mxu1 %v18611_v28  ;;  %v1717_v26 = vld [vmem:[%s21553_s18 + $0x2938] sm:$0xff] }
 0x684   : > { %12407 = vmatprep.subr.bf16.mxu0 %v18626_v29  ;;  %12778 = vmatprep.subr.bf16.mxu1 %v18628_v30  ;;  %v1725_v28 = vld [vmem:[%s21553_s18 + $0x2978] sm:$0xff]  ;;  %v18689_v29 = vcombine.low %v1700_v4, %v1708_v5  ;;  %v18691_v30 = vcombine.low %v1701_v6, %v1709_v7 }
 0x685   : > { %v18708_v33 = vcombine.high %v1717_v26, %v1725_v28  ;;  %v18707_v48 = vcombine.low %v1717_v26, %v1725_v28  ;;  %v1773_v4 = vld [vmem:[%s21553_s18 + $0x2af8] sm:$0xff] }
 0x687   : > { %12408 = vmatpush1.bf16.msra.mxu0 %v18625_v43  ;;  %12779 = vmatpush1.bf16.msra.mxu1 %v18627_v44  ;;  %v21054_v43 = vld [vmem:[#allocation6 + $0x8c] ss:$52 sps:$4 sm:$0xff]   ;;  %v1733_v44 = vld [vmem:[%s21553_s18 + $0x29b8] sm:$0xff] }
 0x688   : > { %12409 = vmatprep.subr.bf16.mxu0 %v18642_v45  ;;  %12780 = vmatprep.subr.bf16.mxu1 %v18644_v47  ;;  %v1741_v45 = vld [vmem:[%s21553_s18 + $0x29f8] sm:$0xff]  ;;  %v18705_v47 = vcombine.low %v1716_v15, %v1724_v16 }
 0x689   : > { %v18724_v50 = vcombine.high %v1733_v44, %v1741_v45  ;;  %v18723_v61 = vcombine.low %v1733_v44, %v1741_v45  ;;  %v1789_v15 = vld [vmem:[%s21553_s18 + $0x2b78] sm:$0xff]  ;;  %v1812_v45 = vld [vmem:[%s21553_s18 + $0x2c30] sm:$0xff] }
 0x68b   : > { %12410 = vmatpush1.bf16.msra.mxu0 %v18641_v53  ;;  %12781 = vmatpush1.bf16.msra.mxu1 %v18643_v54  ;;  %v1756_v53 = vld [vmem:[%s21553_s18 + $0x2a70] sm:$0xff]  ;;  %v1749_v54 = vld [vmem:[%s21553_s18 + $0x2a38] sm:$0xff] }
 0x68c   : > { %12411 = vmatprep.subr.bf16.mxu0 %v18658_v57  ;;  %12782 = vmatprep.subr.bf16.mxu1 %v18660_v59  ;;  %v1757_v57 = vld [vmem:[%s21553_s18 + $0x2a78] sm:$0xff]  ;;  %v18738_v62 = vcombine.high %v1748_v52, %v1756_v53  ;;  %v18737_v5 = vcombine.low %v1748_v52, %v1756_v53 }
 0x68d   : > { %v21055_v59 = vld [vmem:[#allocation6 + $0x88] ss:$52 sps:$4 sm:$0xff]   ;;  %v18740_v63 = vcombine.high %v1749_v54, %v1757_v57  ;;  %v18739_v6 = vcombine.low %v1749_v54, %v1757_v57  ;;  %v1828_v57 = vld [vmem:[%s21553_s18 + $0x2cb0] sm:$0xff] }
 0x68f   : > { %12412 = vmatpush1.bf16.msra.mxu0 %v18657_v0  ;;  %12783 = vmatpush1.bf16.msra.mxu1 %v18659_v1  ;;  %v1764_v0 = vld [vmem:[%s21553_s18 + $0x2ab0] sm:$0xff] }
 0x690   : > { %12434 = vmatprep.subr.bf16.mxu0 %v18674_v2  ;;  %12805 = vmatprep.subr.bf16.mxu1 %v18676_v3  ;;  %v1772_v1 = vld [vmem:[%s21553_s18 + $0x2af0] sm:$0xff]  ;;  %v21056_v2 = vld [vmem:[#allocation6 + $0x2c] ss:$52 sps:$4 sm:$0xff]   ;;  %v1765_v3 = vld [vmem:[%s21553_s18 + $0x2ab8] sm:$0xff] }
 0x691   : > { %v18754_v7 = vcombine.high %v1764_v0, %v1772_v1  ;;  %v18753_v16 = vcombine.low %v1764_v0, %v1772_v1 }
 0x692   : > { %12414 = vmatmul.mubr.bf16.vlgmr.msra.gmra.mrb[24].mxu0 %v21053_v22  ;;  %12785 = vmatmul.mubr.bf16.vlgmr.msra.gmra.mrb[24].mxu1 %v21053_v22  ;;  %v18755_v22 = vcombine.low %v1765_v3, %v1773_v4 }
 0x693   : > { %12435 = vmatpush1.bf16.msra.mxu0 %v18673_v8  ;;  %12806 = vmatpush1.bf16.msra.mxu1 %v18675_v9  ;;  %v18756_v8 = vcombine.high %v1765_v3, %v1773_v4  ;;  %v1780_v9 = vld [vmem:[%s21553_s18 + $0x2b30] sm:$0xff]  ;;  %v1845_v4 = vld [vmem:[%s21553_s18 + $0x2d38] sm:$0xff] }
 0x694   : > { %12436 = vmatprep.subr.bf16.mxu0 %v18690_v10  ;;  %12807 = vmatprep.subr.bf16.mxu1 %v18692_v11  ;;  %v1788_v10 = vld [vmem:[%s21553_s18 + $0x2b70] sm:$0xff]  ;;  %v1781_v11 = vld [vmem:[%s21553_s18 + $0x2b38] sm:$0xff] }
 0x695   : > { %12423 = vmatprep.mubr.bf16.mxu0 %v21054_v43  ;;  %12794 = vmatprep.mubr.bf16.mxu1 %v21054_v43  ;;  %v18770_v26 = vcombine.high %v1780_v9, %v1788_v10  ;;  %v18772_v28 = vcombine.high %v1781_v11, %v1789_v15  ;;  %v18769_v34 = vcombine.low %v1780_v9, %v1788_v10  ;;  %v1852_v3 = vld [vmem:[%s21553_s18 + $0x2d70] sm:$0xff] }
 0x696   : > { %v18771_v38 = vcombine.low %v1781_v11, %v1789_v15  ;;  %v1860_v10 = vld [vmem:[%s21553_s18 + $0x2db0] sm:$0xff]  ;;  %v1861_v15 = vld [vmem:[%s21553_s18 + $0x2db8] sm:$0xff] }
 0x697   : > { %12437 = vmatpush1.bf16.msra.mxu0 %v18689_v29  ;;  %12808 = vmatpush1.bf16.msra.mxu1 %v18691_v30  ;;  %v1796_v29 = vld [vmem:[%s21553_s18 + $0x2bb0] sm:$0xff] }
 0x698   : > { %12438 = vmatprep.subr.bf16.mxu0 %v18706_v32  ;;  %12809 = vmatprep.subr.bf16.mxu1 %v18708_v33  ;;  %v1804_v30 = vld [vmem:[%s21553_s18 + $0x2bf0] sm:$0xff]  ;;  %v1797_v32 = vld [vmem:[%s21553_s18 + $0x2bb8] sm:$0xff] }
 0x699   : > { %v1805_v33 = vld [vmem:[%s21553_s18 + $0x2bf8] sm:$0xff]  ;;  %v18786_v43 = vcombine.high %v1796_v29, %v1804_v30  ;;  %v1868_v11 = vld [vmem:[%s21553_s18 + $0x2df0] sm:$0xff] }
 0x69a   : > { %12424 = vmatmul.mubr.bf16.gmra.mrb[28].mxu0 %v21055_v59  ;;  %12795 = vmatmul.mubr.bf16.gmra.mrb[28].mxu1 %v21055_v59  ;;  %v18788_v44 = vcombine.high %v1797_v32, %v1805_v33  ;;  %v18787_v52 = vcombine.low %v1797_v32, %v1805_v33  ;;  %v1836_v59 = vld [vmem:[%s21553_s18 + $0x2cf0] sm:$0xff]  ;;  %v1877_v33 = vld [vmem:[%s21553_s18 + $0x2e38] sm:$0xff] }
 0x69b   : > { %12439 = vmatpush1.bf16.msra.mxu0 %v18705_v47  ;;  %12810 = vmatpush1.bf16.msra.mxu1 %v18707_v48  ;;  %v1820_v47 = vld [vmem:[%s21553_s18 + $0x2c70] sm:$0xff]  ;;  %v1813_v48 = vld [vmem:[%s21553_s18 + $0x2c38] sm:$0xff]  ;;  %v18818_v0 = vcombine.high %v1828_v57, %v1836_v59 }
 0x69c   : > { %12440 = vmatprep.subr.bf16.mxu0 %v18722_v49  ;;  %12811 = vmatprep.subr.bf16.mxu1 %v18724_v50  ;;  %v1821_v49 = vld [vmem:[%s21553_s18 + $0x2c78] sm:$0xff]  ;;  %v18785_v50 = vcombine.low %v1796_v29, %v1804_v30  ;;  %v18802_v53 = vcombine.high %v1812_v45, %v1820_v47  ;;  %v1876_v30 = vld [vmem:[%s21553_s18 + $0x2e30] sm:$0xff] }
 0x69d   : > { %12466 = vmatprep.mubr.bf16.mxu0 %v21056_v2  ;;  %12837 = vmatprep.mubr.bf16.mxu1 %v21056_v2  ;;  %v18804_v54 = vcombine.high %v1813_v48, %v1821_v49  ;;  %v1844_v2 = vld [vmem:[%s21553_s18 + $0x2d30] sm:$0xff] }
 0x69e   : > { %v1884_v32 = vld [vmem:[%s21553_s18 + $0x2e70] sm:$0xff] }
 0x69f   : > { %12441 = vmatpush1.bf16.msra.mxu0 %v18721_v60  ;;  %12812 = vmatpush1.bf16.msra.mxu1 %v18723_v61  ;;  %v1829_v60 = vld [vmem:[%s21553_s18 + $0x2cb8] sm:$0xff] }
 0x6a0   : > { %12442 = vmatprep.subr.bf16.mxu0 %v18738_v62  ;;  %12813 = vmatprep.subr.bf16.mxu1 %v18740_v63  ;;  %v1837_v61 = vld [vmem:[%s21553_s18 + $0x2cf8] sm:$0xff]  ;;  %v18801_v62 = vcombine.low %v1812_v45, %v1820_v47  ;;  %v18803_v63 = vcombine.low %v1813_v48, %v1821_v49  ;;  %v1892_v47 = vld [vmem:[%s21553_s18 + $0x2eb0] sm:$0xff] }
 0x6a1   : > { %v18820_v1 = vcombine.high %v1829_v60, %v1837_v61  ;;  %v1900_v48 = vld [vmem:[%s21553_s18 + $0x2ef0] sm:$0xff]  ;;  %v1893_v49 = vld [vmem:[%s21553_s18 + $0x2eb8] sm:$0xff] }
 0x6a3   : > { %12443 = vmatpush1.bf16.msra.mxu0 %v18737_v5  ;;  %12814 = vmatpush1.bf16.msra.mxu1 %v18739_v6  ;;  %v1853_v5 = vld [vmem:[%s21553_s18 + $0x2d78] sm:$0xff]  ;;  %v18817_v6 = vcombine.low %v1828_v57, %v1836_v59  ;;  %v1908_v59 = vld [vmem:[%s21553_s18 + $0x2f30] sm:$0xff] }
 0x6a4   : > { %12444 = vmatprep.subr.bf16.mxu0 %v18754_v7  ;;  %12815 = vmatprep.subr.bf16.mxu1 %v18756_v8  ;;  %v18819_v7 = vcombine.low %v1829_v60, %v1837_v61  ;;  %v18834_v8 = vcombine.high %v1844_v2, %v1852_v3  ;;  %v18836_v9 = vcombine.high %v1845_v4, %v1853_v5  ;;  %v1916_v60 = vld [vmem:[%s21553_s18 + $0x2f70] sm:$0xff]  ;;  %v1909_v61 = vld [vmem:[%s21553_s18 + $0x2f38] sm:$0xff] }
 0x6a7   : > { %12445 = vmatpush1.bf16.msra.mxu0 %v18753_v16  ;;  %12816 = vmatpush1.bf16.msra.mxu1 %v18755_v22  ;;  %v1869_v16 = vld [vmem:[%s21553_s18 + $0x2df8] sm:$0xff]  ;;  %v18833_v22 = vcombine.low %v1844_v2, %v1852_v3  ;;  %v1924_v3 = vld [vmem:[%s21553_s18 + $0x2fb0] sm:$0xff] }
 0x6a8   : > { %12446 = vmatprep.subr.bf16.mxu0 %v18770_v26  ;;  %12817 = vmatprep.subr.bf16.mxu1 %v18772_v28  ;;  %v18835_v26 = vcombine.low %v1845_v4, %v1853_v5  ;;  %v18850_v28 = vcombine.high %v1860_v10, %v1868_v11  ;;  %v18852_v29 = vcombine.high %v1861_v15, %v1869_v16  ;;  %v1932_v4 = vld [vmem:[%s21553_s18 + $0x2ff0] sm:$0xff]  ;;  %v1925_v5 = vld [vmem:[%s21553_s18 + $0x2fb8] sm:$0xff] }
 0x6ab   : > { %12447 = vmatpush1.bf16.msra.mxu0 %v18769_v34  ;;  %12818 = vmatpush1.bf16.msra.mxu1 %v18771_v38  ;;  %v1885_v34 = vld [vmem:[%s21553_s18 + $0x2e78] sm:$0xff]  ;;  %v18849_v38 = vcombine.low %v1860_v10, %v1868_v11  ;;  %v1940_v11 = vld [vmem:[%s21553_s18 + $0x3030] sm:$0xff] }
 0x6ac   : > { %12448 = vmatprep.subr.bf16.mxu0 %v18786_v43  ;;  %12819 = vmatprep.subr.bf16.mxu1 %v18788_v44  ;;  %v18851_v43 = vcombine.low %v1861_v15, %v1869_v16  ;;  %v18866_v44 = vcombine.high %v1876_v30, %v1884_v32  ;;  %v18868_v45 = vcombine.high %v1877_v33, %v1885_v34  ;;  %v1948_v15 = vld [vmem:[%s21553_s18 + $0x3070] sm:$0xff]  ;;  %v1941_v16 = vld [vmem:[%s21553_s18 + $0x3038] sm:$0xff] }
 0x6af   : > { %12449 = vmatpush1.bf16.msra.mxu0 %v18785_v50  ;;  %12820 = vmatpush1.bf16.msra.mxu1 %v18787_v52  ;;  %v1901_v50 = vld [vmem:[%s21553_s18 + $0x2ef8] sm:$0xff]  ;;  %v18865_v52 = vcombine.low %v1876_v30, %v1884_v32  ;;  %v1956_v32 = vld [vmem:[%s21553_s18 + $0x30b0] sm:$0xff] }
 0x6b0   : > { %12450 = vmatprep.subr.bf16.mxu0 %v18802_v53  ;;  %12821 = vmatprep.subr.bf16.mxu1 %v18804_v54  ;;  %v18867_v53 = vcombine.low %v1877_v33, %v1885_v34  ;;  %v18882_v54 = vcombine.high %v1892_v47, %v1900_v48  ;;  %v18884_v57 = vcombine.high %v1893_v49, %v1901_v50  ;;  %v1964_v33 = vld [vmem:[%s21553_s18 + $0x30f0] sm:$0xff] }
 0x6b1   : > { %v18929_v34 = vcombine.low %v1940_v11, %v1948_v15 }
 0x6b3   : > { %12451 = vmatpush1.bf16.msra.mxu0 %v18801_v62  ;;  %12822 = vmatpush1.bf16.msra.mxu1 %v18803_v63  ;;  %v1917_v62 = vld [vmem:[%s21553_s18 + $0x2f78] sm:$0xff]  ;;  %v18881_v63 = vcombine.low %v1892_v47, %v1900_v48 }
 0x6b4   : > { %12452 = vmatprep.subr.bf16.mxu0 %v18818_v0  ;;  %12823 = vmatprep.subr.bf16.mxu1 %v18820_v1  ;;  %v18883_v0 = vcombine.low %v1893_v49, %v1901_v50  ;;  %v18898_v1 = vcombine.high %v1908_v59, %v1916_v60  ;;  %v18900_v2 = vcombine.high %v1909_v61, %v1917_v62  ;;  %v21057_v47 = vld [vmem:[#allocation6 + $0x28] ss:$52 sps:$4 sm:$0xff]  }
 0x6b5   : > { %v18945_v49 = vcombine.low %v1956_v32, %v1964_v33  ;;  %v21058_v50 = vld [vmem:[#allocation6 + $0x94] ss:$52 sps:$4 sm:$0xff]  }
 0x6b7   : > { %12453 = vmatpush1.bf16.msra.mxu0 %v18817_v6  ;;  %12824 = vmatpush1.bf16.msra.mxu1 %v18819_v7  ;;  %v1933_v6 = vld [vmem:[%s21553_s18 + $0x2ff8] sm:$0xff]  ;;  %v18897_v7 = vcombine.low %v1908_v59, %v1916_v60  ;;  %v20152_v59 = vld [vmem:[#allocation8] ss:$16 sps:$4 sm:$0xff]  }
 0x6b8   : > { %12454 = vmatprep.subr.bf16.mxu0 %v18834_v8  ;;  %12825 = vmatprep.subr.bf16.mxu1 %v18836_v9  ;;  %v18899_v8 = vcombine.low %v1909_v61, %v1917_v62  ;;  %v18914_v9 = vcombine.high %v1924_v3, %v1932_v4  ;;  %v18916_v10 = vcombine.high %v1925_v5, %v1933_v6  ;;  %v20155_v60 = vld [vmem:[#allocation8 + $0x8] ss:$16 sps:$4 sm:$0xff]   ;;  %v20160_v61 = vld [vmem:[#allocation8 + $0x24] ss:$16 sps:$4 sm:$0xff]   ;;  %v20163_v62 = vld [vmem:[#allocation8 + $0x2c] ss:$16 sps:$4 sm:$0xff]  }
 0x6bb   : > { %12455 = vmatpush1.bf16.msra.mxu0 %v18833_v22  ;;  %12826 = vmatpush1.bf16.msra.mxu1 %v18835_v26  ;;  %v1949_v22 = vld [vmem:[%s21553_s18 + $0x3078] sm:$0xff]  ;;  %v18913_v26 = vcombine.low %v1924_v3, %v1932_v4  ;;  %v20164_v4 = vld [vmem:[#allocation8 + $0x40] ss:$16 sps:$4 sm:$0xff]  }
 0x6bc   : > { %12456 = vmatprep.subr.bf16.mxu0 %v18850_v28  ;;  %12827 = vmatprep.subr.bf16.mxu1 %v18852_v29  ;;  %v18915_v28 = vcombine.low %v1925_v5, %v1933_v6  ;;  %v18930_v29 = vcombine.high %v1940_v11, %v1948_v15  ;;  %v18932_v30 = vcombine.high %v1941_v16, %v1949_v22  ;;  %v20169_v3 = vld [vmem:[#allocation8 + $0x4c] ss:$16 sps:$4 sm:$0xff]   ;;  %v20167_v5 = vld [vmem:[#allocation8 + $0x48] ss:$16 sps:$4 sm:$0xff]   ;;  %v20172_v6 = vld [vmem:[#allocation8 + $0x64] ss:$16 sps:$4 sm:$0xff]  }
 0x6bd   : > { %v20181_v11 = vld [vmem:[#allocation8 + $0x8c] ss:$16 sps:$4 sm:$0xff]   ;;  %v20176_v15 = vld [vmem:[#allocation8 + $0x80] ss:$16 sps:$4 sm:$0xff]  }
 0x6bf   : > { %12457 = vmatpush1.bf16.msra.mxu0 %v18849_v38  ;;  %12828 = vmatpush1.bf16.msra.mxu1 %v18851_v43  ;;  %v1957_v38 = vld [vmem:[%s21553_s18 + $0x30b8] sm:$0xff] }
 0x6c0   : > { %12458 = vmatprep.subr.bf16.mxu0 %v18866_v44  ;;  %12829 = vmatprep.subr.bf16.mxu1 %v18868_v45  ;;  %v1965_v43 = vld [vmem:[%s21553_s18 + $0x30f8] sm:$0xff]  ;;  %v18931_v44 = vcombine.low %v1941_v16, %v1949_v22  ;;  %v18946_v45 = vcombine.high %v1956_v32, %v1964_v33  ;;  %v20184_v22 = vld [vmem:[#allocation8 + $0xa4] ss:$16 sps:$4 sm:$0xff]  }
 0x6c1   : > { %v18948_v48 = vcombine.high %v1957_v38, %v1965_v43  ;;  %v20179_v16 = vld [vmem:[#allocation8 + $0x88] ss:$16 sps:$4 sm:$0xff]   ;;  %v20193_v32 = vld [vmem:[#allocation8 + $0xcc] ss:$16 sps:$4 sm:$0xff]  }
 0x6c2   : > { %v20191_v33 = vld [vmem:[#allocation8 + $0xc8] ss:$16 sps:$4 sm:$0xff]  }
 0x6c3   : > { %12459 = vmatpush1.bf16.msra.mxu0 %v18865_v52  ;;  %12830 = vmatpush1.bf16.msra.mxu1 %v18867_v53  ;;  %v18947_v52 = vcombine.low %v1957_v38, %v1965_v43  ;;  %v20154_v53 = vld [vmem:[#allocation8 + $0x4] ss:$16 sps:$4 sm:$0xff]   ;;  %v20199_v38 = vld [vmem:[#allocation8 + $0xec] ss:$16 sps:$4 sm:$0xff]   ;;  %v20194_v43 = vld [vmem:[#allocation8 + $0xe0] ss:$16 sps:$4 sm:$0xff]  }
 0x6c4   : > { %12460 = vmatprep.subr.bf16.mxu0 %v18882_v54  ;;  %12831 = vmatprep.subr.bf16.mxu1 %v18884_v57  ;;  %v20157_v54 = vld [vmem:[#allocation8 + $0xc] ss:$16 sps:$4 sm:$0xff]   ;;  %v21059_v57 = vld [vmem:[#allocation6 + $0x90] ss:$52 sps:$4 sm:$0xff]  }
 0x6c7   : > { %12461 = vmatpush1.bf16.msra.mxu0 %v18881_v63  ;;  %12832 = vmatpush1.bf16.msra.mxu1 %v18883_v0  ;;  %v21060_v63 = vld [vmem:[#allocation6 + $0x30] ss:$52 sps:$4 sm:$0xff]  }
 0x6c8   : > { %12462 = vmatprep.subr.bf16.mxu0 %v18898_v1  ;;  %12833 = vmatprep.subr.bf16.mxu1 %v18900_v2  ;;  %v20158_v0 = vld [vmem:[#allocation8 + $0x20] ss:$16 sps:$4 sm:$0xff]   ;;  %v20161_v1 = vld [vmem:[#allocation8 + $0x28] ss:$16 sps:$4 sm:$0xff]   ;;  %v20166_v2 = vld [vmem:[#allocation8 + $0x44] ss:$16 sps:$4 sm:$0xff]  }
 0x6cb   : > { %12463 = vmatpush1.bf16.msra.mxu0 %v18897_v7  ;;  %12834 = vmatpush1.bf16.msra.mxu1 %v18899_v8  ;;  %v21061_v7 = vld [vmem:[#allocation6 + $0x98] ss:$52 sps:$4 sm:$0xff]  }
 0x6cc   : > { %12464 = vmatprep.subr.bf16.mxu0 %v18914_v9  ;;  %12835 = vmatprep.subr.bf16.mxu1 %v18916_v10  ;;  %v20175_v8 = vld [vmem:[#allocation8 + $0x6c] ss:$16 sps:$4 sm:$0xff]   ;;  %v20170_v9 = vld [vmem:[#allocation8 + $0x60] ss:$16 sps:$4 sm:$0xff]   ;;  %v20173_v10 = vld [vmem:[#allocation8 + $0x68] ss:$16 sps:$4 sm:$0xff]  }
 0x6cf   : > { %12465 = vmatpush1.bf16.msra.mxu0 %v18913_v26  ;;  %12836 = vmatpush1.bf16.msra.mxu1 %v18915_v28  ;;  %v20187_v26 = vld [vmem:[#allocation8 + $0xac] ss:$16 sps:$4 sm:$0xff]   ;;  %v20182_v28 = vld [vmem:[#allocation8 + $0xa0] ss:$16 sps:$4 sm:$0xff]  }
 0x6d0   : > { %12487 = vmatprep.subr.bf16.mxu0 %v18930_v29  ;;  %12858 = vmatprep.subr.bf16.mxu1 %v18932_v30  ;;  %v20185_v29 = vld [vmem:[#allocation8 + $0xa8] ss:$16 sps:$4 sm:$0xff]   ;;  %v20190_v30 = vld [vmem:[#allocation8 + $0xc4] ss:$16 sps:$4 sm:$0xff]  }
 0x6d2   : > { %12467 = vmatmul.mubr.bf16.vlgmr.msra.gmra.mrb[24].mxu0 %v21057_v47  ;;  %12838 = vmatmul.mubr.bf16.vlgmr.msra.gmra.mrb[24].mxu1 %v21057_v47  ;;  %v20205_v47 = vld [vmem:[#allocation8 + $0x10c] ss:$16 sps:$4 sm:$0xff]  }
 0x6d3   : > { %12488 = vmatpush1.bf16.msra.mxu0 %v18929_v34  ;;  %12859 = vmatpush1.bf16.msra.mxu1 %v18931_v44  ;;  %v20196_v34 = vld [vmem:[#allocation8 + $0xe4] ss:$16 sps:$4 sm:$0xff]   ;;  %v20197_v44 = vld [vmem:[#allocation8 + $0xe8] ss:$16 sps:$4 sm:$0xff]  }
 0x6d4   : > { %12476 = vmatprep.mubr.bf16.mxu0 %v21058_v50  ;;  %12847 = vmatprep.mubr.bf16.mxu1 %v21058_v50  ;;  %v20208_v50 = vld [vmem:[#allocation8 + $0x124] ss:$16 sps:$4 sm:$0xff]  }
 0x6d5   : > { %12489 = vmatprep.subr.bf16.mxu0 %v18946_v45  ;;  %12860 = vmatprep.subr.bf16.mxu1 %v18948_v48  ;;  %v20202_v45 = vld [vmem:[#allocation8 + $0x104] ss:$16 sps:$4 sm:$0xff]   ;;  %v20200_v48 = vld [vmem:[#allocation8 + $0x100] ss:$16 sps:$4 sm:$0xff]  }
 0x6d7   : > { %12490 = vmatpush1.bf16.msra.mxu0 %v18945_v49  ;;  %12861 = vmatpush1.bf16.msra.mxu1 %v18947_v52  ;;  %v20203_v49 = vld [vmem:[#allocation8 + $0x108] ss:$16 sps:$4 sm:$0xff]   ;;  %v20211_v52 = vld [vmem:[#allocation8 + $0x12c] ss:$16 sps:$4 sm:$0xff]  }
 0x6d8   : > { %16165 = vmatprep.subr.bf16.mxu0 %v20154_v53  ;;  %16589 = vmatprep.subr.bf16.mxu1 %v20157_v54  ;;  %v20206_v53 = vld [vmem:[#allocation8 + $0x120] ss:$16 sps:$4 sm:$0xff]   ;;  %v20209_v54 = vld [vmem:[#allocation8 + $0x128] ss:$16 sps:$4 sm:$0xff]  }
 0x6da   : > { %12477 = vmatmul.mubr.bf16.gmra.mrb[28].mxu0 %v21059_v57  ;;  %12848 = vmatmul.mubr.bf16.gmra.mrb[28].mxu1 %v21059_v57  ;;  %v20214_v57 = vld [vmem:[#allocation8 + $0x144] ss:$16 sps:$4 sm:$0xff]  }
 0x6db   : > { %12519 = vmatprep.mubr.bf16.mxu0 %v21291_v46  ;;  %12890 = vmatprep.mubr.bf16.mxu1 %v21291_v46 }
 0x6e2   : > { %18961 = vmatmul.mubr.msk.bf16.vlgmr.msra.gmra.mrb[24].mxu0 %vm9936_vm0, %v21060_v63  ;;  %18963 = vmatmul.mubr.msk.bf16.vlgmr.msra.gmra.mrb[24].mxu1 %vm9936_vm0, %v21060_v63  ;;  %v20223_v63 = vld [vmem:[#allocation8 + $0x16c] ss:$16 sps:$4 sm:$0xff]  }
 0x6e3   : > { %16166 = vmatpush1.bf16.msra.mxu0 %v20152_v59  ;;  %16590 = vmatpush1.bf16.msra.mxu1 %v20155_v60  ;;  %v20217_v59 = vld [vmem:[#allocation8 + $0x14c] ss:$16 sps:$4 sm:$0xff]   ;;  %v20212_v60 = vld [vmem:[#allocation8 + $0x140] ss:$16 sps:$4 sm:$0xff]  }
 0x6e4   : > { %16167 = vmatprep.subr.bf16.mxu0 %v20160_v61  ;;  %16591 = vmatprep.subr.bf16.mxu1 %v20163_v62  ;;  %v20215_v61 = vld [vmem:[#allocation8 + $0x148] ss:$16 sps:$4 sm:$0xff]   ;;  %v20220_v62 = vld [vmem:[#allocation8 + $0x164] ss:$16 sps:$4 sm:$0xff]  }
 0x6e5   : > { %12529 = vmatprep.mubr.bf16.mxu0 %v21291_v46  ;;  %12900 = vmatprep.mubr.bf16.mxu1 %v21291_v46  ;;  %v20178_v46 = vld [vmem:[#allocation8 + $0x84] ss:$16 sps:$4 sm:$0xff]  }
 0x6e7   : > { %16168 = vmatpush1.bf16.msra.mxu0 %v20158_v0  ;;  %16592 = vmatpush1.bf16.msra.mxu1 %v20161_v1  ;;  %v20218_v0 = vld [vmem:[#allocation8 + $0x160] ss:$16 sps:$4 sm:$0xff]   ;;  %v20221_v1 = vld [vmem:[#allocation8 + $0x168] ss:$16 sps:$4 sm:$0xff]  }
 0x6e8   : > { %16169 = vmatprep.subr.bf16.mxu0 %v20166_v2  ;;  %16593 = vmatprep.subr.bf16.mxu1 %v20169_v3  ;;  %v20226_v2 = vld [vmem:[#allocation8 + $0x184] ss:$16 sps:$4 sm:$0xff]   ;;  %v20229_v3 = vld [vmem:[#allocation8 + $0x18c] ss:$16 sps:$4 sm:$0xff]  }
 0x6ea   : > { %18962 = vmatmul.mubr.msk.bf16.gmra.mrb[28].mxu0 %vm9936_vm0, %v21061_v7  ;;  %18964 = vmatmul.mubr.msk.bf16.gmra.mrb[28].mxu1 %vm9936_vm0, %v21061_v7  ;;  %v20235_v7 = vld [vmem:[#allocation8 + $0x1ac] ss:$16 sps:$4 sm:$0xff]  }
 0x6eb   : > { %16170 = vmatpush1.bf16.msra.mxu0 %v20164_v4  ;;  %16594 = vmatpush1.bf16.msra.mxu1 %v20167_v5  ;;  %v20224_v4 = vld [vmem:[#allocation8 + $0x180] ss:$16 sps:$4 sm:$0xff]   ;;  %v20227_v5 = vld [vmem:[#allocation8 + $0x188] ss:$16 sps:$4 sm:$0xff]  }
 0x6ec   : > { %16197 = vmatprep.mubr.bf16.mxu0 %v22222_v19  ;;  %16621 = vmatprep.mubr.bf16.mxu1 %v22222_v19  ;;  %v20188_v19 = vld [vmem:[#allocation8 + $0xc0] ss:$16 sps:$4 sm:$0xff]  }
 0x6ed   : > { %16171 = vmatprep.subr.bf16.mxu0 %v20172_v6  ;;  %16595 = vmatprep.subr.bf16.mxu1 %v20175_v8  ;;  %v20232_v6 = vld [vmem:[#allocation8 + $0x1a4] ss:$16 sps:$4 sm:$0xff]   ;;  %v20230_v8 = vld [vmem:[#allocation8 + $0x1a0] ss:$16 sps:$4 sm:$0xff]  }
 0x6ef   : > { %16172 = vmatpush1.bf16.msra.mxu0 %v20170_v9  ;;  %16596 = vmatpush1.bf16.msra.mxu1 %v20173_v10  ;;  %v20233_v9 = vld [vmem:[#allocation8 + $0x1a8] ss:$16 sps:$4 sm:$0xff]   ;;  %v20238_v10 = vld [vmem:[#allocation8 + $0x1c4] ss:$16 sps:$4 sm:$0xff]  }
 0x6f0   : > { %16173 = vmatprep.subr.bf16.mxu0 %v20178_v46  ;;  %16597 = vmatprep.subr.bf16.mxu1 %v20181_v11  ;;  %v20241_v46 = vld [vmem:[#allocation8 + $0x1cc] ss:$16 sps:$4 sm:$0xff]   ;;  %v20236_v11 = vld [vmem:[#allocation8 + $0x1c0] ss:$16 sps:$4 sm:$0xff]  }
 0x6f3   : > { %16174 = vmatpush1.bf16.msra.mxu0 %v20176_v15  ;;  %16598 = vmatpush1.bf16.msra.mxu1 %v20179_v16  ;;  %v20239_v15 = vld [vmem:[#allocation8 + $0x1c8] ss:$16 sps:$4 sm:$0xff]   ;;  %v20244_v16 = vld [vmem:[#allocation8 + $0x1e4] ss:$16 sps:$4 sm:$0xff]  }
 0x6f4   : > { %16175 = vmatprep.subr.bf16.mxu0 %v20184_v22  ;;  %16599 = vmatprep.subr.bf16.mxu1 %v20187_v26  ;;  %v20247_v22 = vld [vmem:[#allocation8 + $0x1ec] ss:$16 sps:$4 sm:$0xff]   ;;  %v20242_v26 = vld [vmem:[#allocation8 + $0x1e0] ss:$16 sps:$4 sm:$0xff]  }
 0x6f7   : > { %16176 = vmatpush1.bf16.msra.mxu0 %v20182_v28  ;;  %16600 = vmatpush1.bf16.msra.mxu1 %v20185_v29  ;;  %v20245_v28 = vld [vmem:[#allocation8 + $0x1e8] ss:$16 sps:$4 sm:$0xff]   ;;  %v20250_v29 = vld [vmem:[#allocation8 + $0x204] ss:$16 sps:$4 sm:$0xff]  }
 0x6f8   : > { %16177 = vmatprep.subr.bf16.mxu0 %v20190_v30  ;;  %16601 = vmatprep.subr.bf16.mxu1 %v20193_v32  ;;  %v20253_v30 = vld [vmem:[#allocation8 + $0x20c] ss:$16 sps:$4 sm:$0xff]   ;;  %v20248_v32 = vld [vmem:[#allocation8 + $0x200] ss:$16 sps:$4 sm:$0xff]  }
 0x6fb   : > { %16178 = vmatpush1.bf16.msra.mxu0 %v20188_v19  ;;  %16602 = vmatpush1.bf16.msra.mxu1 %v20191_v33  ;;  %v20251_v19 = vld [vmem:[#allocation8 + $0x208] ss:$16 sps:$4 sm:$0xff]   ;;  %v20256_v33 = vld [vmem:[#allocation8 + $0x224] ss:$16 sps:$4 sm:$0xff]  }
 0x6fc   : > { %16179 = vmatprep.subr.bf16.mxu0 %v20196_v34  ;;  %16603 = vmatprep.subr.bf16.mxu1 %v20199_v38  ;;  %v20259_v34 = vld [vmem:[#allocation8 + $0x22c] ss:$16 sps:$4 sm:$0xff]   ;;  %v20254_v38 = vld [vmem:[#allocation8 + $0x220] ss:$16 sps:$4 sm:$0xff]  }
 0x6ff   : > { %16180 = vmatpush1.bf16.msra.mxu0 %v20194_v43  ;;  %16604 = vmatpush1.bf16.msra.mxu1 %v20197_v44  ;;  %v20257_v43 = vld [vmem:[#allocation8 + $0x228] ss:$16 sps:$4 sm:$0xff]   ;;  %v20262_v44 = vld [vmem:[#allocation8 + $0x244] ss:$16 sps:$4 sm:$0xff]  }
 0x700   : > { %16181 = vmatprep.subr.bf16.mxu0 %v20202_v45  ;;  %16605 = vmatprep.subr.bf16.mxu1 %v20205_v47  ;;  %v20265_v45 = vld [vmem:[#allocation8 + $0x24c] ss:$16 sps:$4 sm:$0xff]   ;;  %v20260_v47 = vld [vmem:[#allocation8 + $0x240] ss:$16 sps:$4 sm:$0xff]  }
 0x703   : > { %16182 = vmatpush1.bf16.msra.mxu0 %v20200_v48  ;;  %16606 = vmatpush1.bf16.msra.mxu1 %v20203_v49  ;;  %v20263_v48 = vld [vmem:[#allocation8 + $0x248] ss:$16 sps:$4 sm:$0xff]   ;;  %v20268_v49 = vld [vmem:[#allocation8 + $0x264] ss:$16 sps:$4 sm:$0xff]  }
 0x704   : > { %16183 = vmatprep.subr.bf16.mxu0 %v20208_v50  ;;  %16607 = vmatprep.subr.bf16.mxu1 %v20211_v52  ;;  %v20269_v50 = vld [vmem:[#allocation8 + $0x268] ss:$16 sps:$4 sm:$0xff]   ;;  %v20274_v52 = vld [vmem:[#allocation8 + $0x284] ss:$16 sps:$4 sm:$0xff]  }
 0x707   : > { %16184 = vmatpush1.bf16.msra.mxu0 %v20206_v53  ;;  %16608 = vmatpush1.bf16.msra.mxu1 %v20209_v54  ;;  %v20277_v53 = vld [vmem:[#allocation8 + $0x28c] ss:$16 sps:$4 sm:$0xff]   ;;  %v20272_v54 = vld [vmem:[#allocation8 + $0x280] ss:$16 sps:$4 sm:$0xff]  }
 0x708   : > { %16185 = vmatprep.subr.bf16.mxu0 %v20214_v57  ;;  %16609 = vmatprep.subr.bf16.mxu1 %v20217_v59  ;;  %v20275_v57 = vld [vmem:[#allocation8 + $0x288] ss:$16 sps:$4 sm:$0xff]   ;;  %v20280_v59 = vld [vmem:[#allocation8 + $0x2a4] ss:$16 sps:$4 sm:$0xff]  }
 0x70b   : > { %16186 = vmatpush1.bf16.msra.mxu0 %v20212_v60  ;;  %16610 = vmatpush1.bf16.msra.mxu1 %v20215_v61  ;;  %v20278_v60 = vld [vmem:[#allocation8 + $0x2a0] ss:$16 sps:$4 sm:$0xff]   ;;  %v20286_v61 = vld [vmem:[#allocation8 + $0x2c4] ss:$16 sps:$4 sm:$0xff]  }
 0x70c   : > { %16187 = vmatprep.subr.bf16.mxu0 %v20220_v62  ;;  %16611 = vmatprep.subr.bf16.mxu1 %v20223_v63  ;;  %v20289_v62 = vld [vmem:[#allocation8 + $0x2cc] ss:$16 sps:$4 sm:$0xff]   ;;  %v20284_v63 = vld [vmem:[#allocation8 + $0x2c0] ss:$16 sps:$4 sm:$0xff]  }
 0x70f   : > { %16188 = vmatpush1.bf16.msra.mxu0 %v20218_v0  ;;  %16612 = vmatpush1.bf16.msra.mxu1 %v20221_v1  ;;  %v20287_v0 = vld [vmem:[#allocation8 + $0x2c8] ss:$16 sps:$4 sm:$0xff]   ;;  %v20292_v1 = vld [vmem:[#allocation8 + $0x2e4] ss:$16 sps:$4 sm:$0xff]  }
 0x710   : > { %16189 = vmatprep.subr.bf16.mxu0 %v20226_v2  ;;  %16613 = vmatprep.subr.bf16.mxu1 %v20229_v3  ;;  %v20295_v2 = vld [vmem:[#allocation8 + $0x2ec] ss:$16 sps:$4 sm:$0xff]   ;;  %v20290_v3 = vld [vmem:[#allocation8 + $0x2e0] ss:$16 sps:$4 sm:$0xff]  }
 0x713   : > { %16190 = vmatpush1.bf16.msra.mxu0 %v20224_v4  ;;  %16614 = vmatpush1.bf16.msra.mxu1 %v20227_v5  ;;  %v20293_v4 = vld [vmem:[#allocation8 + $0x2e8] ss:$16 sps:$4 sm:$0xff]   ;;  %v20298_v5 = vld [vmem:[#allocation8 + $0x304] ss:$16 sps:$4 sm:$0xff]  }
 0x714   : > { %16191 = vmatprep.subr.bf16.mxu0 %v20232_v6  ;;  %16615 = vmatprep.subr.bf16.mxu1 %v20235_v7  ;;  %v20301_v6 = vld [vmem:[#allocation8 + $0x30c] ss:$16 sps:$4 sm:$0xff]   ;;  %v20296_v7 = vld [vmem:[#allocation8 + $0x300] ss:$16 sps:$4 sm:$0xff]  }
 0x717   : > { %16192 = vmatpush1.bf16.msra.mxu0 %v20230_v8  ;;  %16616 = vmatpush1.bf16.msra.mxu1 %v20233_v9  ;;  %v20299_v8 = vld [vmem:[#allocation8 + $0x308] ss:$16 sps:$4 sm:$0xff]   ;;  %v20304_v9 = vld [vmem:[#allocation8 + $0x324] ss:$16 sps:$4 sm:$0xff]  }
 0x718   : > { %16193 = vmatprep.subr.bf16.mxu0 %v20238_v10  ;;  %16617 = vmatprep.subr.bf16.mxu1 %v20241_v46  ;;  %v20307_v10 = vld [vmem:[#allocation8 + $0x32c] ss:$16 sps:$4 sm:$0xff]   ;;  %v20302_v46 = vld [vmem:[#allocation8 + $0x320] ss:$16 sps:$4 sm:$0xff]  }
 0x71b   : > { %16194 = vmatpush1.bf16.msra.mxu0 %v20236_v11  ;;  %16618 = vmatpush1.bf16.msra.mxu1 %v20239_v15  ;;  %v20305_v11 = vld [vmem:[#allocation8 + $0x328] ss:$16 sps:$4 sm:$0xff]   ;;  %v20310_v15 = vld [vmem:[#allocation8 + $0x344] ss:$16 sps:$4 sm:$0xff]  }
 0x71c   : > { %16195 = vmatprep.subr.bf16.mxu0 %v20244_v16  ;;  %16619 = vmatprep.subr.bf16.mxu1 %v20247_v22  ;;  %v20313_v16 = vld [vmem:[#allocation8 + $0x34c] ss:$16 sps:$4 sm:$0xff]   ;;  %v20308_v22 = vld [vmem:[#allocation8 + $0x340] ss:$16 sps:$4 sm:$0xff]  }
 0x71f   : > { %16196 = vmatpush1.bf16.msra.mxu0 %v20242_v26  ;;  %16620 = vmatpush1.bf16.msra.mxu1 %v20245_v28  ;;  %v20311_v26 = vld [vmem:[#allocation8 + $0x348] ss:$16 sps:$4 sm:$0xff]   ;;  %v20316_v28 = vld [vmem:[#allocation8 + $0x364] ss:$16 sps:$4 sm:$0xff]  }
 0x720   : > { %16218 = vmatprep.subr.bf16.mxu0 %v20250_v29  ;;  %16642 = vmatprep.subr.bf16.mxu1 %v20253_v30  ;;  %v20319_v29 = vld [vmem:[#allocation8 + $0x36c] ss:$16 sps:$4 sm:$0xff]   ;;  %v20314_v30 = vld [vmem:[#allocation8 + $0x360] ss:$16 sps:$4 sm:$0xff]  }
 0x722   : > { %16198 = vmatmul.mubr.bf16.vlgmr.msra.gmra.mrb[32].mxu0 %v22214_v14  ;;  %16622 = vmatmul.mubr.bf16.vlgmr.msra.gmra.mrb[32].mxu1 %v22214_v14  ;;  %v20271_v14 = vld [vmem:[#allocation8 + $0x26c] ss:$16 sps:$4 sm:$0xff]  }
 0x723   : > { %16207 = vmatprep.mubr.bf16.mxu0 %v22253_v56  ;;  %16219 = vmatpush1.bf16.msra.mxu0 %v20248_v32  ;;  %v20317_v32 = vld [vmem:[#allocation8 + $0x368] ss:$16 sps:$4 sm:$0xff]  }
 0x724   : > { %16631 = vmatprep.mubr.bf16.mxu1 %v22253_v56  ;;  %16643 = vmatpush1.bf16.msra.mxu1 %v20251_v19  ;;  %v20266_v56 = vld [vmem:[#allocation8 + $0x260] ss:$16 sps:$4 sm:$0xff]   ;;  %v20322_v19 = vld [vmem:[#allocation8 + $0x384] ss:$16 sps:$4 sm:$0xff]  }
 0x725   : > { %16220 = vmatprep.subr.bf16.mxu0 %v20256_v33  ;;  %16644 = vmatprep.subr.bf16.mxu1 %v20259_v34  ;;  %v20325_v33 = vld [vmem:[#allocation8 + $0x38c] ss:$16 sps:$4 sm:$0xff]   ;;  %v20320_v34 = vld [vmem:[#allocation8 + $0x380] ss:$16 sps:$4 sm:$0xff]  }
 0x727   : > { %16221 = vmatpush1.bf16.msra.mxu0 %v20254_v38  ;;  %v20323_v38 = vld [vmem:[#allocation8 + $0x388] ss:$16 sps:$4 sm:$0xff]  }
 0x728   : > { %16645 = vmatpush1.bf16.msra.mxu1 %v20257_v43  ;;  %16222 = vmatprep.subr.bf16.mxu0 %v20262_v44  ;;  %v20328_v43 = vld [vmem:[#allocation8 + $0x3a4] ss:$16 sps:$4 sm:$0xff]   ;;  %v20331_v44 = vld [vmem:[#allocation8 + $0x3ac] ss:$16 sps:$4 sm:$0xff]  }
 0x729   : > { %16646 = vmatprep.subr.bf16.mxu1 %v20265_v45  ;;  %v20326_v45 = vld [vmem:[#allocation8 + $0x3a0] ss:$16 sps:$4 sm:$0xff]  }
 0x72a   : > { %16208 = vmatmul.mubr.bf16.gmra.mrb[36].mxu0 %v22245_v51  ;;  %16632 = vmatmul.mubr.bf16.gmra.mrb[36].mxu1 %v22245_v51  ;;  %v20283_v51 = vld [vmem:[#allocation8 + $0x2ac] ss:$16 sps:$4 sm:$0xff]  }
 0x72b   : > { %16250 = vmatprep.mubr.bf16.mxu0 %v22226_v21  ;;  %16223 = vmatpush1.bf16.msra.mxu0 %v20260_v47  ;;  %v20329_v47 = vld [vmem:[#allocation8 + $0x3a8] ss:$16 sps:$4 sm:$0xff]  }
 0x72c   : > { %16674 = vmatprep.mubr.bf16.mxu1 %v22226_v21  ;;  %16647 = vmatpush1.bf16.msra.mxu1 %v20263_v48  ;;  %v20281_v21 = vld [vmem:[#allocation8 + $0x2a8] ss:$16 sps:$4 sm:$0xff]   ;;  %v20334_v48 = vld [vmem:[#allocation8 + $0x3c4] ss:$16 sps:$4 sm:$0xff]  }
 0x72d   : > { %16224 = vmatprep.subr.bf16.mxu0 %v20268_v49  ;;  %16648 = vmatprep.subr.bf16.mxu1 %v20271_v14  ;;  %v20337_v49 = vld [vmem:[#allocation8 + $0x3cc] ss:$16 sps:$4 sm:$0xff]   ;;  %v20332_v14 = vld [vmem:[#allocation8 + $0x3c0] ss:$16 sps:$4 sm:$0xff]  }
 0x72f   : > { %16225 = vmatpush1.bf16.msra.mxu0 %v20266_v56  ;;  %v20335_v56 = vld [vmem:[#allocation8 + $0x3c8] ss:$16 sps:$4 sm:$0xff]  }
 0x730   : > { %16649 = vmatpush1.bf16.msra.mxu1 %v20269_v50  ;;  %16226 = vmatprep.subr.bf16.mxu0 %v20274_v52  ;;  %v20340_v50 = vld [vmem:[#allocation8 + $0x3e4] ss:$16 sps:$4 sm:$0xff]   ;;  %v20343_v52 = vld [vmem:[#allocation8 + $0x3ec] ss:$16 sps:$4 sm:$0xff]  }
 0x731   : > { %16650 = vmatprep.subr.bf16.mxu1 %v20277_v53  ;;  %v20338_v53 = vld [vmem:[#allocation8 + $0x3e0] ss:$16 sps:$4 sm:$0xff]  }
 0x733   : > { %16227 = vmatpush1.bf16.msra.mxu0 %v20272_v54  ;;  %v20341_v54 = vld [vmem:[#allocation8 + $0x3e8] ss:$16 sps:$4 sm:$0xff]  }
 0x734   : > { %16651 = vmatpush1.bf16.msra.mxu1 %v20275_v57  ;;  %16228 = vmatprep.subr.bf16.mxu0 %v20280_v59  ;;  %v20346_v57 = vld [vmem:[#allocation8 + $0x404] ss:$16 sps:$4 sm:$0xff]   ;;  %v20349_v59 = vld [vmem:[#allocation8 + $0x40c] ss:$16 sps:$4 sm:$0xff]  }
 0x735   : > { %16652 = vmatprep.subr.bf16.mxu1 %v20283_v51  ;;  %v20344_v51 = vld [vmem:[#allocation8 + $0x400] ss:$16 sps:$4 sm:$0xff]  }
 0x737   : > { %16229 = vmatpush1.bf16.msra.mxu0 %v20278_v60  ;;  %v20347_v60 = vld [vmem:[#allocation8 + $0x408] ss:$16 sps:$4 sm:$0xff]  }
 0x738   : > { %16653 = vmatpush1.bf16.msra.mxu1 %v20281_v21  ;;  %16230 = vmatprep.subr.bf16.mxu0 %v20286_v61  ;;  %v20352_v21 = vld [vmem:[#allocation8 + $0x424] ss:$16 sps:$4 sm:$0xff]   ;;  %v20355_v61 = vld [vmem:[#allocation8 + $0x42c] ss:$16 sps:$4 sm:$0xff]  }
 0x739   : > { %16654 = vmatprep.subr.bf16.mxu1 %v20289_v62  ;;  %v20350_v62 = vld [vmem:[#allocation8 + $0x420] ss:$16 sps:$4 sm:$0xff]  }
 0x73b   : > { %16231 = vmatpush1.bf16.msra.mxu0 %v20284_v63  ;;  %v20353_v63 = vld [vmem:[#allocation8 + $0x428] ss:$16 sps:$4 sm:$0xff]  }
 0x73c   : > { %16655 = vmatpush1.bf16.msra.mxu1 %v20287_v0  ;;  %16232 = vmatprep.subr.bf16.mxu0 %v20292_v1  ;;  %v20358_v0 = vld [vmem:[#allocation8 + $0x444] ss:$16 sps:$4 sm:$0xff]   ;;  %v20361_v1 = vld [vmem:[#allocation8 + $0x44c] ss:$16 sps:$4 sm:$0xff]  }
 0x73d   : > { %16656 = vmatprep.subr.bf16.mxu1 %v20295_v2  ;;  %v20356_v2 = vld [vmem:[#allocation8 + $0x440] ss:$16 sps:$4 sm:$0xff]  }
 0x73f   : > { %16233 = vmatpush1.bf16.msra.mxu0 %v20290_v3  ;;  %v20359_v3 = vld [vmem:[#allocation8 + $0x448] ss:$16 sps:$4 sm:$0xff]  }
 0x740   : > { %16657 = vmatpush1.bf16.msra.mxu1 %v20293_v4  ;;  %16234 = vmatprep.subr.bf16.mxu0 %v20298_v5  ;;  %v20364_v4 = vld [vmem:[#allocation8 + $0x464] ss:$16 sps:$4 sm:$0xff]   ;;  %v20365_v5 = vld [vmem:[#allocation8 + $0x468] ss:$16 sps:$4 sm:$0xff]  }
 0x741   : > { %16658 = vmatprep.subr.bf16.mxu1 %v20301_v6  ;;  %v20370_v6 = vld [vmem:[#allocation8 + $0x484] ss:$16 sps:$4 sm:$0xff]  }
 0x743   : > { %16235 = vmatpush1.bf16.msra.mxu0 %v20296_v7  ;;  %v20373_v7 = vld [vmem:[#allocation8 + $0x48c] ss:$16 sps:$4 sm:$0xff]  }
 0x744   : > { %16659 = vmatpush1.bf16.msra.mxu1 %v20299_v8  ;;  %16236 = vmatprep.subr.bf16.mxu0 %v20304_v9  ;;  %v20368_v8 = vld [vmem:[#allocation8 + $0x480] ss:$16 sps:$4 sm:$0xff]   ;;  %v20371_v9 = vld [vmem:[#allocation8 + $0x488] ss:$16 sps:$4 sm:$0xff]  }
 0x745   : > { %16660 = vmatprep.subr.bf16.mxu1 %v20307_v10  ;;  %v20376_v10 = vld [vmem:[#allocation8 + $0x4a4] ss:$16 sps:$4 sm:$0xff]  }
 0x747   : > { %16237 = vmatpush1.bf16.msra.mxu0 %v20302_v46  ;;  %v20374_v46 = vld [vmem:[#allocation8 + $0x4a0] ss:$16 sps:$4 sm:$0xff]  }
 0x748   : > { %16661 = vmatpush1.bf16.msra.mxu1 %v20305_v11  ;;  %16238 = vmatprep.subr.bf16.mxu0 %v20310_v15  ;;  %v20382_v11 = vld [vmem:[#allocation8 + $0x4c4] ss:$16 sps:$4 sm:$0xff]   ;;  %v20385_v15 = vld [vmem:[#allocation8 + $0x4cc] ss:$16 sps:$4 sm:$0xff]  }
 0x749   : > { %16662 = vmatprep.subr.bf16.mxu1 %v20313_v16  ;;  %v20380_v16 = vld [vmem:[#allocation8 + $0x4c0] ss:$16 sps:$4 sm:$0xff]  }
 0x74b   : > { %16239 = vmatpush1.bf16.msra.mxu0 %v20308_v22  ;;  %v20383_v22 = vld [vmem:[#allocation8 + $0x4c8] ss:$16 sps:$4 sm:$0xff]  }
 0x74c   : > { %16663 = vmatpush1.bf16.msra.mxu1 %v20311_v26  ;;  %16240 = vmatprep.subr.bf16.mxu0 %v20316_v28  ;;  %v20388_v26 = vld [vmem:[#allocation8 + $0x4e4] ss:$16 sps:$4 sm:$0xff]   ;;  %v20391_v28 = vld [vmem:[#allocation8 + $0x4ec] ss:$16 sps:$4 sm:$0xff]  }
 0x74d   : > { %16664 = vmatprep.subr.bf16.mxu1 %v20319_v29  ;;  %v20386_v29 = vld [vmem:[#allocation8 + $0x4e0] ss:$16 sps:$4 sm:$0xff]  }
 0x74f   : > { %16241 = vmatpush1.bf16.msra.mxu0 %v20314_v30  ;;  %v20389_v30 = vld [vmem:[#allocation8 + $0x4e8] ss:$16 sps:$4 sm:$0xff]  }
 0x750   : > { %16665 = vmatpush1.bf16.msra.mxu1 %v20317_v32  ;;  %16242 = vmatprep.subr.bf16.mxu0 %v20322_v19  ;;  %v20394_v32 = vld [vmem:[#allocation8 + $0x504] ss:$16 sps:$4 sm:$0xff]   ;;  %v20397_v19 = vld [vmem:[#allocation8 + $0x50c] ss:$16 sps:$4 sm:$0xff]  }
 0x751   : > { %16666 = vmatprep.subr.bf16.mxu1 %v20325_v33  ;;  %v20392_v33 = vld [vmem:[#allocation8 + $0x500] ss:$16 sps:$4 sm:$0xff]  }
 0x753   : > { %16243 = vmatpush1.bf16.msra.mxu0 %v20320_v34  ;;  %v20395_v34 = vld [vmem:[#allocation8 + $0x508] ss:$16 sps:$4 sm:$0xff]  }
 0x754   : > { %16667 = vmatpush1.bf16.msra.mxu1 %v20323_v38  ;;  %16244 = vmatprep.subr.bf16.mxu0 %v20328_v43  ;;  %v20400_v38 = vld [vmem:[#allocation8 + $0x524] ss:$16 sps:$4 sm:$0xff]   ;;  %v20403_v43 = vld [vmem:[#allocation8 + $0x52c] ss:$16 sps:$4 sm:$0xff]  }
 0x755   : > { %16668 = vmatprep.subr.bf16.mxu1 %v20331_v44  ;;  %v20398_v44 = vld [vmem:[#allocation8 + $0x520] ss:$16 sps:$4 sm:$0xff]  }
 0x757   : > { %16245 = vmatpush1.bf16.msra.mxu0 %v20326_v45  ;;  %v20401_v45 = vld [vmem:[#allocation8 + $0x528] ss:$16 sps:$4 sm:$0xff]  }
 0x758   : > { %16669 = vmatpush1.bf16.msra.mxu1 %v20329_v47  ;;  %16246 = vmatprep.subr.bf16.mxu0 %v20334_v48  ;;  %v20406_v47 = vld [vmem:[#allocation8 + $0x544] ss:$16 sps:$4 sm:$0xff]   ;;  %v20409_v48 = vld [vmem:[#allocation8 + $0x54c] ss:$16 sps:$4 sm:$0xff]  }
 0x759   : > { %16670 = vmatprep.subr.bf16.mxu1 %v20337_v49  ;;  %v20404_v49 = vld [vmem:[#allocation8 + $0x540] ss:$16 sps:$4 sm:$0xff]  }
 0x75b   : > { %16247 = vmatpush1.bf16.msra.mxu0 %v20332_v14  ;;  %v20407_v14 = vld [vmem:[#allocation8 + $0x548] ss:$16 sps:$4 sm:$0xff]  }
 0x75c   : > { %16671 = vmatpush1.bf16.msra.mxu1 %v20335_v56  ;;  %16248 = vmatprep.subr.bf16.mxu0 %v20340_v50  ;;  %v20412_v56 = vld [vmem:[#allocation8 + $0x564] ss:$16 sps:$4 sm:$0xff]   ;;  %v20415_v50 = vld [vmem:[#allocation8 + $0x56c] ss:$16 sps:$4 sm:$0xff]  }
 0x75d   : > { %16672 = vmatprep.subr.bf16.mxu1 %v20343_v52  ;;  %v20410_v52 = vld [vmem:[#allocation8 + $0x560] ss:$16 sps:$4 sm:$0xff]  }
 0x75f   : > { %16249 = vmatpush1.bf16.msra.mxu0 %v20338_v53  ;;  %v20413_v53 = vld [vmem:[#allocation8 + $0x568] ss:$16 sps:$4 sm:$0xff]  }
 0x760   : > { %16673 = vmatpush1.bf16.msra.mxu1 %v20341_v54  ;;  %16271 = vmatprep.subr.bf16.mxu0 %v20346_v57  ;;  %v20418_v54 = vld [vmem:[#allocation8 + $0x584] ss:$16 sps:$4 sm:$0xff]   ;;  %v20421_v57 = vld [vmem:[#allocation8 + $0x58c] ss:$16 sps:$4 sm:$0xff]  }
 0x761   : > { %16695 = vmatprep.subr.bf16.mxu1 %v20349_v59  ;;  %v20416_v59 = vld [vmem:[#allocation8 + $0x580] ss:$16 sps:$4 sm:$0xff]  }
 0x762   : > { %16251 = vmatmul.mubr.bf16.vlgmr.msra.gmra.mrb[32].mxu0 %v22219_v18 }
 0x763   : > { %16675 = vmatmul.mubr.bf16.vlgmr.msra.gmra.mrb[32].mxu1 %v22219_v18  ;;  %16260 = vmatprep.mubr.bf16.mxu0 %v22256_v58  ;;  %v20367_v18 = vld [vmem:[#allocation8 + $0x46c] ss:$16 sps:$4 sm:$0xff]  }
 0x764   : > { %16272 = vmatpush1.bf16.msra.mxu0 %v20344_v51  ;;  %16684 = vmatprep.mubr.bf16.mxu1 %v22256_v58  ;;  %v20362_v58 = vld [vmem:[#allocation8 + $0x460] ss:$16 sps:$4 sm:$0xff]   ;;  %v20419_v51 = vld [vmem:[#allocation8 + $0x588] ss:$16 sps:$4 sm:$0xff]  }
 0x765   : > { %16696 = vmatpush1.bf16.msra.mxu1 %v20347_v60  ;;  %16273 = vmatprep.subr.bf16.mxu0 %v20352_v21  ;;  %v20424_v60 = vld [vmem:[#allocation8 + $0x5a4] ss:$16 sps:$4 sm:$0xff]   ;;  %v20427_v21 = vld [vmem:[#allocation8 + $0x5ac] ss:$16 sps:$4 sm:$0xff]  }
 0x766   : > { %16697 = vmatprep.subr.bf16.mxu1 %v20355_v61  ;;  %v20422_v61 = vld [vmem:[#allocation8 + $0x5a0] ss:$16 sps:$4 sm:$0xff]  }
 0x768   : > { %16274 = vmatpush1.bf16.msra.mxu0 %v20350_v62  ;;  %v20425_v62 = vld [vmem:[#allocation8 + $0x5a8] ss:$16 sps:$4 sm:$0xff]  }
 0x769   : > { %16698 = vmatpush1.bf16.msra.mxu1 %v20353_v63  ;;  %16275 = vmatprep.subr.bf16.mxu0 %v20358_v0  ;;  %v20430_v63 = vld [vmem:[#allocation8 + $0x5c4] ss:$16 sps:$4 sm:$0xff]   ;;  %v20433_v0 = vld [vmem:[#allocation8 + $0x5cc] ss:$16 sps:$4 sm:$0xff]  }
 0x76a   : > { %16261 = vmatmul.mubr.bf16.gmra.mrb[36].mxu0 %v22250_v55  ;;  %16699 = vmatprep.subr.bf16.mxu1 %v20361_v1  ;;  %v20428_v1 = vld [vmem:[#allocation8 + $0x5c0] ss:$16 sps:$4 sm:$0xff]  }
 0x76b   : > { %16685 = vmatmul.mubr.bf16.gmra.mrb[36].mxu1 %v22250_v55  ;;  %16303 = vmatprep.mubr.bf16.mxu0 %v22668_v40  ;;  %v20379_v55 = vld [vmem:[#allocation8 + $0x4ac] ss:$16 sps:$4 sm:$0xff]  }
 0x76c   : > { %16276 = vmatpush1.bf16.msra.mxu0 %v20356_v2  ;;  %16727 = vmatprep.mubr.bf16.mxu1 %v22668_v40  ;;  %v20377_v40 = vld [vmem:[#allocation8 + $0x4a8] ss:$16 sps:$4 sm:$0xff]  }
 0x76d   : > { %16700 = vmatpush1.bf16.msra.mxu1 %v20359_v3  ;;  %16277 = vmatprep.subr.bf16.mxu0 %v20364_v4  ;;  %v20431_v2 = vld [vmem:[#allocation8 + $0x5c8] ss:$16 sps:$4 sm:$0xff]   ;;  %v20436_v3 = vld [vmem:[#allocation8 + $0x5e4] ss:$16 sps:$4 sm:$0xff]   ;;  %v20439_v4 = vld [vmem:[#allocation8 + $0x5ec] ss:$16 sps:$4 sm:$0xff]  }
 0x76e   : > { %16701 = vmatprep.subr.bf16.mxu1 %v20367_v18  ;;  %v20434_v18 = vld [vmem:[#allocation8 + $0x5e0] ss:$16 sps:$4 sm:$0xff]  }
 0x770   : > { %16278 = vmatpush1.bf16.msra.mxu0 %v20362_v58  ;;  %v20437_v58 = vld [vmem:[#allocation8 + $0x5e8] ss:$16 sps:$4 sm:$0xff]  }
 0x771   : > { %16702 = vmatpush1.bf16.msra.mxu1 %v20365_v5  ;;  %16279 = vmatprep.subr.bf16.mxu0 %v20370_v6  ;;  %v20442_v5 = vld [vmem:[#allocation8 + $0x604] ss:$16 sps:$4 sm:$0xff]   ;;  %v20445_v6 = vld [vmem:[#allocation8 + $0x60c] ss:$16 sps:$4 sm:$0xff]  }
 0x772   : > { %16703 = vmatprep.subr.bf16.mxu1 %v20373_v7  ;;  %v20440_v7 = vld [vmem:[#allocation8 + $0x600] ss:$16 sps:$4 sm:$0xff]  }
 0x774   : > { %16280 = vmatpush1.bf16.msra.mxu0 %v20368_v8  ;;  %v20443_v8 = vld [vmem:[#allocation8 + $0x608] ss:$16 sps:$4 sm:$0xff]  }
 0x775   : > { %16704 = vmatpush1.bf16.msra.mxu1 %v20371_v9  ;;  %16281 = vmatprep.subr.bf16.mxu0 %v20376_v10  ;;  %v20448_v9 = vld [vmem:[#allocation8 + $0x624] ss:$16 sps:$4 sm:$0xff]   ;;  %v20451_v10 = vld [vmem:[#allocation8 + $0x62c] ss:$16 sps:$4 sm:$0xff]  }
 0x776   : > { %16705 = vmatprep.subr.bf16.mxu1 %v20379_v55  ;;  %v20446_v55 = vld [vmem:[#allocation8 + $0x620] ss:$16 sps:$4 sm:$0xff]  }
 0x778   : > { %16282 = vmatpush1.bf16.msra.mxu0 %v20374_v46  ;;  %v20449_v46 = vld [vmem:[#allocation8 + $0x628] ss:$16 sps:$4 sm:$0xff]  }
 0x779   : > { %16706 = vmatpush1.bf16.msra.mxu1 %v20377_v40  ;;  %16283 = vmatprep.subr.bf16.mxu0 %v20382_v11  ;;  %v20454_v40 = vld [vmem:[#allocation8 + $0x644] ss:$16 sps:$4 sm:$0xff]   ;;  %v20457_v11 = vld [vmem:[#allocation8 + $0x64c] ss:$16 sps:$4 sm:$0xff]  }
 0x77a   : > { %16707 = vmatprep.subr.bf16.mxu1 %v20385_v15  ;;  %v20452_v15 = vld [vmem:[#allocation8 + $0x640] ss:$16 sps:$4 sm:$0xff]  }
 0x77c   : > { %16284 = vmatpush1.bf16.msra.mxu0 %v20380_v16  ;;  %v20455_v16 = vld [vmem:[#allocation8 + $0x648] ss:$16 sps:$4 sm:$0xff]  }
 0x77d   : > { %16708 = vmatpush1.bf16.msra.mxu1 %v20383_v22  ;;  %16285 = vmatprep.subr.bf16.mxu0 %v20388_v26  ;;  %v20460_v22 = vld [vmem:[#allocation8 + $0x664] ss:$16 sps:$4 sm:$0xff]   ;;  %v20461_v26 = vld [vmem:[#allocation8 + $0x668] ss:$16 sps:$4 sm:$0xff]  }
 0x77e   : > { %16709 = vmatprep.subr.bf16.mxu1 %v20391_v28  ;;  %v20466_v28 = vld [vmem:[#allocation8 + $0x684] ss:$16 sps:$4 sm:$0xff]  }
 0x780   : > { %16286 = vmatpush1.bf16.msra.mxu0 %v20386_v29  ;;  %v20469_v29 = vld [vmem:[#allocation8 + $0x68c] ss:$16 sps:$4 sm:$0xff]  }
 0x781   : > { %16710 = vmatpush1.bf16.msra.mxu1 %v20389_v30  ;;  %16287 = vmatprep.subr.bf16.mxu0 %v20394_v32  ;;  %v20464_v30 = vld [vmem:[#allocation8 + $0x680] ss:$16 sps:$4 sm:$0xff]   ;;  %v20467_v32 = vld [vmem:[#allocation8 + $0x688] ss:$16 sps:$4 sm:$0xff]  }
 0x782   : > { %16711 = vmatprep.subr.bf16.mxu1 %v20397_v19  ;;  %v20472_v19 = vld [vmem:[#allocation8 + $0x6a4] ss:$16 sps:$4 sm:$0xff]  }
 0x784   : > { %16288 = vmatpush1.bf16.msra.mxu0 %v20392_v33  ;;  %v20475_v33 = vld [vmem:[#allocation8 + $0x6ac] ss:$16 sps:$4 sm:$0xff]  }
 0x785   : > { %16712 = vmatpush1.bf16.msra.mxu1 %v20395_v34  ;;  %16289 = vmatprep.subr.bf16.mxu0 %v20400_v38  ;;  %v20473_v38 = vld [vmem:[#allocation8 + $0x6a8] ss:$16 sps:$4 sm:$0xff]  }
 0x786   : > { %16713 = vmatprep.subr.bf16.mxu1 %v20403_v43 }
 0x788   : > { %16290 = vmatpush1.bf16.msra.mxu0 %v20398_v44 }
 0x789   : > { %16714 = vmatpush1.bf16.msra.mxu1 %v20401_v45  ;;  %16291 = vmatprep.subr.bf16.mxu0 %v20406_v47  ;;  %v20481_v47 = vld [vmem:[#allocation8 + $0x6cc] ss:$16 sps:$4 sm:$0xff]  }
 0x78a   : > { %16715 = vmatprep.subr.bf16.mxu1 %v20409_v48 }
 0x78c   : > { %16292 = vmatpush1.bf16.msra.mxu0 %v20404_v49 }
 0x78d   : > { %16716 = vmatpush1.bf16.msra.mxu1 %v20407_v14  ;;  %16293 = vmatprep.subr.bf16.mxu0 %v20412_v56 }
 0x78e   : > { %16717 = vmatprep.subr.bf16.mxu1 %v20415_v50 }
 0x790   : > { %16294 = vmatpush1.bf16.msra.mxu0 %v20410_v52 }
 0x791   : > { %16718 = vmatpush1.bf16.msra.mxu1 %v20413_v53  ;;  %16295 = vmatprep.subr.bf16.mxu0 %v20418_v54 }
 0x792   : > { %16719 = vmatprep.subr.bf16.mxu1 %v20421_v57 }
 0x794   : > { %16296 = vmatpush1.bf16.msra.mxu0 %v20416_v59 }
 0x795   : > { %16720 = vmatpush1.bf16.msra.mxu1 %v20419_v51  ;;  %16297 = vmatprep.subr.bf16.mxu0 %v20424_v60 }
 0x796   : > { %16721 = vmatprep.subr.bf16.mxu1 %v20427_v21 }
 0x798   : > { %16298 = vmatpush1.bf16.msra.mxu0 %v20422_v61  ;;  %v20476_v61 = vld [vmem:[#allocation8 + $0x6c0] ss:$16 sps:$4 sm:$0xff]  }
 0x799   : > { %16722 = vmatpush1.bf16.msra.mxu1 %v20425_v62  ;;  %16299 = vmatprep.subr.bf16.mxu0 %v20430_v63 }
 0x79a   : > { %16723 = vmatprep.subr.bf16.mxu1 %v20433_v0  ;;  %v20479_v0 = vld [vmem:[#allocation8 + $0x6c8] ss:$16 sps:$4 sm:$0xff]  }
 0x79c   : > { %16300 = vmatpush1.bf16.msra.mxu0 %v20428_v1  ;;  %v20484_v1 = vld [vmem:[#allocation8 + $0x6e4] ss:$16 sps:$4 sm:$0xff]  }
 0x79d   : > { %16724 = vmatpush1.bf16.msra.mxu1 %v20431_v2  ;;  %16301 = vmatprep.subr.bf16.mxu0 %v20436_v3  ;;  %v20482_v3 = vld [vmem:[#allocation8 + $0x6e0] ss:$16 sps:$4 sm:$0xff]  }
 0x79e   : > { %16725 = vmatprep.subr.bf16.mxu1 %v20439_v4  ;;  %v20487_v4 = vld [vmem:[#allocation8 + $0x6ec] ss:$16 sps:$4 sm:$0xff]  }
 0x7a0   : > { %16302 = vmatpush1.bf16.msra.mxu0 %v20434_v18 }
 0x7a1   : > { %16726 = vmatpush1.bf16.msra.mxu1 %v20437_v58  ;;  %16324 = vmatprep.subr.bf16.mxu0 %v20442_v5  ;;  %v20485_v58 = vld [vmem:[#allocation8 + $0x6e8] ss:$16 sps:$4 sm:$0xff]   ;;  %v20490_v5 = vld [vmem:[#allocation8 + $0x704] ss:$16 sps:$4 sm:$0xff]  }
 0x7a2   : > { %16748 = vmatprep.subr.bf16.mxu1 %v20445_v6 }
 0x7a3   : > { %16304 = vmatmul.mubr.bf16.vlgmr.msra.gmra.mrb[32].mxu0 %v22660_v35 }
 0x7a4   : > { %16728 = vmatmul.mubr.bf16.vlgmr.msra.gmra.mrb[32].mxu1 %v22660_v35  ;;  %16313 = vmatprep.mubr.bf16.mxu0 %v22697_v20  ;;  %v20463_v35 = vld [vmem:[#allocation8 + $0x66c] ss:$16 sps:$4 sm:$0xff]  }
 0x7a5   : > { %16325 = vmatpush1.bf16.msra.mxu0 %v20440_v7  ;;  %16737 = vmatprep.mubr.bf16.mxu1 %v22697_v20  ;;  %v20458_v20 = vld [vmem:[#allocation8 + $0x660] ss:$16 sps:$4 sm:$0xff]  }
 0x7a6   : > { %16749 = vmatpush1.bf16.msra.mxu1 %v20443_v8  ;;  %16326 = vmatprep.subr.bf16.mxu0 %v20448_v9  ;;  %v20493_v9 = vld [vmem:[#allocation8 + $0x70c] ss:$16 sps:$4 sm:$0xff]  }
 0x7a7   : > { %16750 = vmatprep.subr.bf16.mxu1 %v20451_v10 }
 0x7a9   : > { %16327 = vmatpush1.bf16.msra.mxu0 %v20446_v55 }
 0x7aa   : > { %16751 = vmatpush1.bf16.msra.mxu1 %v20449_v46  ;;  %16328 = vmatprep.subr.bf16.mxu0 %v20454_v40 }
 0x7ab   : > { %16314 = vmatmul.mubr.bf16.gmra.mrb[36].mxu0 %v22689_v12  ;;  %16752 = vmatprep.subr.bf16.mxu1 %v20457_v11 }
 0x7ac   : > { %16738 = vmatmul.mubr.bf16.gmra.mrb[36].mxu1 %v22689_v12  ;;  %16356 = vmatprep.mubr.bf16.mxu0 %v22671_v42  ;;  %v20470_v12 = vld [vmem:[#allocation8 + $0x6a0] ss:$16 sps:$4 sm:$0xff]  }
 0x7ad   : > { %16329 = vmatpush1.bf16.msra.mxu0 %v20452_v15  ;;  %16780 = vmatprep.mubr.bf16.mxu1 %v22671_v42  ;;  %v20478_v42 = vld [vmem:[#allocation8 + $0x6c4] ss:$16 sps:$4 sm:$0xff]  }
 0x7ae   : > { %16753 = vmatpush1.bf16.msra.mxu1 %v20455_v16  ;;  %16330 = vmatprep.subr.bf16.mxu0 %v20460_v22 }
 0x7af   : > { %16754 = vmatprep.subr.bf16.mxu1 %v20463_v35 }
 0x7b1   : > { %16331 = vmatpush1.bf16.msra.mxu0 %v20458_v20 }
 0x7b2   : > { %16755 = vmatpush1.bf16.msra.mxu1 %v20461_v26  ;;  %16332 = vmatprep.subr.bf16.mxu0 %v20466_v28 }
 0x7b3   : > { %16756 = vmatprep.subr.bf16.mxu1 %v20469_v29 }
 0x7b5   : > { %v12521_v34 = vpop.f32.mrb[24].mxu0  ;;  %16333 = vmatpush1.bf16.msra.mxu0 %v20464_v30  ;;  %v12892_v44 = vpop.f32.mrb[24].mxu1  ;;  %v20488_v30 = vld [vmem:[#allocation8 + $0x700] ss:$16 sps:$4 sm:$0xff]  }
 0x7b6   : > { %v12923_v43 = vmul.f32 0.020408163, %v12521_v34  ;;  %v12523_v45 = vpop.f32.mrb[25].mxu0  ;;  %16757 = vmatpush1.bf16.msra.mxu1 %v20467_v32  ;;  %v12925_v48 = vmul.f32 0.020408163, %v12892_v44  ;;  %16334 = vmatprep.subr.bf16.mxu0 %v20472_v19  ;;  %v12894_v14 = vpop.f32.mrb[25].mxu1 }
 0x7b7   : > { %v12924_v49 = vmul.f32 0.020408163, %v12523_v45  ;;  %v12525_v56 = vpop.f32.mrb[26].mxu0  ;;  %16758 = vmatprep.subr.bf16.mxu1 %v20475_v33  ;;  %v12926_v50 = vmul.f32 0.020408163, %v12894_v14  ;;  %v12896_v53 = vpop.f32.mrb[26].mxu1 }
 0x7b8   : > { %12987 = vst [vmem:[%s22201_s10 + $0x60] sm:$0xff] %v12923_v43  ;;  %v12939_v52 = vmul.f32 0.020408163, %v12525_v56  ;;  %v12527_v54 = vpop.f32.mrb[27].mxu0  ;;  %12989 = vst [vmem:[%s22201_s10 + $0x70] sm:$0xff] %v12925_v48  ;;  %v12898_v51 = vpop.f32.mrb[27].mxu1 }
 0x7b9   : > { %12988 = vst [vmem:[%s22201_s10 + $0x68] sm:$0xff] %v12924_v49  ;;  %v12941_v57 = vmul.f32 0.020408163, %v12896_v53  ;;  %v12940_v59 = vmul.f32 0.020408163, %v12527_v54  ;;  %12990 = vst [vmem:[%s22201_s10 + $0x78] sm:$0xff] %v12926_v50  ;;  %16335 = vmatpush1.bf16.msra.mxu0 %v20470_v12 }
 0x7ba   : > { %13003 = vst [vmem:[%s22201_s10 + $0xe0] sm:$0xff] %v12939_v52  ;;  %v23341_v60 = vpack.c.bf16 %v12939_v52, %v12923_v43  ;;  %v12942_v21 = vmul.f32 0.020408163, %v12898_v51  ;;  %16759 = vmatpush1.bf16.msra.mxu1 %v20473_v38  ;;  %16336 = vmatprep.subr.bf16.mxu0 %v20478_v42  ;;  %v20491_v12 = vld [vmem:[#allocation8 + $0x708] ss:$16 sps:$4 sm:$0xff]  }
 0x7bb   : > { %13005 = vst [vmem:[%s22201_s10 + $0xf0] sm:$0xff] %v12941_v57  ;;  %v23344_v62 = vpack.c.bf16 %v12941_v57, %v12925_v48  ;;  %13004 = vst [vmem:[%s22201_s10 + $0xe8] sm:$0xff] %v12940_v59  ;;  %v23347_v63 = vpack.c.bf16 %v12940_v59, %v12924_v49  ;;  %16760 = vmatprep.subr.bf16.mxu1 %v20481_v47  ;;  %v20496_v33 = vld [vmem:[#allocation8 + $0x724] ss:$16 sps:$4 sm:$0xff]   ;;  %v20499_v38 = vld [vmem:[#allocation8 + $0x72c] ss:$16 sps:$4 sm:$0xff]  }
 0x7bc   : > { %13006 = vst [vmem:[%s22201_s10 + $0xf8] sm:$0xff] %v12942_v21  ;;  %v23350_v2 = vpack.c.bf16 %v12942_v21, %v12926_v50  ;;  %v20494_v42 = vld [vmem:[#allocation8 + $0x720] ss:$16 sps:$4 sm:$0xff]   ;;  %v20497_v43 = vld [vmem:[#allocation8 + $0x728] ss:$16 sps:$4 sm:$0xff]  }
 0x7bd   : > { %v12531_v18 = vpop.f32.mrb[28].mxu0  ;;  %16337 = vmatpush1.bf16.msra.mxu0 %v20476_v61  ;;  %v12902_v7 = vpop.f32.mrb[28].mxu1  ;;  %v20502_v44 = vld [vmem:[#allocation8 + $0x744] ss:$16 sps:$4 sm:$0xff]   ;;  %v20505_v45 = vld [vmem:[#allocation8 + $0x74c] ss:$16 sps:$4 sm:$0xff]  }
 0x7be   : > { %v12955_v6 = vmul.f32 0.020408163, %v12531_v18  ;;  %v12533_v8 = vpop.f32.mrb[29].mxu0  ;;  %16761 = vmatpush1.bf16.msra.mxu1 %v20479_v0  ;;  %v12957_v10 = vmul.f32 0.020408163, %v12902_v7  ;;  %16338 = vmatprep.subr.bf16.mxu0 %v20484_v1  ;;  %v12904_v46 = vpop.f32.mrb[29].mxu1 }
 0x7bf   : > { %v12956_v55 = vmul.f32 0.020408163, %v12533_v8  ;;  %v12535_v40 = vpop.f32.mrb[30].mxu0  ;;  %16762 = vmatprep.subr.bf16.mxu1 %v20487_v4  ;;  %v12958_v11 = vmul.f32 0.020408163, %v12904_v46  ;;  %v12906_v16 = vpop.f32.mrb[30].mxu1 }
 0x7c0   : > { %13019 = vst [vmem:[%s22201_s10 + $0x160] sm:$0xff] %v12955_v6  ;;  %v12971_v15 = vmul.f32 0.020408163, %v12535_v40  ;;  %v12537_v22 = vpop.f32.mrb[31].mxu0  ;;  %13021 = vst [vmem:[%s22201_s10 + $0x170] sm:$0xff] %v12957_v10  ;;  %v12908_v26 = vpop.f32.mrb[31].mxu1 }
 0x7c1   : > { %13020 = vst [vmem:[%s22201_s10 + $0x168] sm:$0xff] %v12956_v55  ;;  %v12973_v35 = vmul.f32 0.020408163, %v12906_v16  ;;  %v12972_v20 = vmul.f32 0.020408163, %v12537_v22  ;;  %13022 = vst [vmem:[%s22201_s10 + $0x178] sm:$0xff] %v12958_v11  ;;  %16339 = vmatpush1.bf16.msra.mxu0 %v20482_v3 }
 0x7c2   : > { %13035 = vst [vmem:[%s22201_s10 + $0x1e0] sm:$0xff] %v12971_v15  ;;  %v23357_v28 = vpack.c.bf16 %v12971_v15, %v12955_v6  ;;  %v12974_v29 = vmul.f32 0.020408163, %v12908_v26  ;;  %16763 = vmatpush1.bf16.msra.mxu1 %v20485_v58  ;;  %16340 = vmatprep.subr.bf16.mxu0 %v20490_v5  ;;  %v20500_v47 = vld [vmem:[#allocation8 + $0x740] ss:$16 sps:$4 sm:$0xff]  }
 0x7c3   : > { %13037 = vst [vmem:[%s22201_s10 + $0x1f0] sm:$0xff] %v12973_v35  ;;  %v23360_v32 = vpack.c.bf16 %v12973_v35, %v12957_v10  ;;  %13036 = vst [vmem:[%s22201_s10 + $0x1e8] sm:$0xff] %v12972_v20  ;;  %v23363_v19 = vpack.c.bf16 %v12972_v20, %v12956_v55  ;;  %16764 = vmatprep.subr.bf16.mxu1 %v20493_v9  ;;  %v20503_v48 = vld [vmem:[#allocation8 + $0x748] ss:$16 sps:$4 sm:$0xff]   ;;  %v20508_v49 = vld [vmem:[#allocation8 + $0x764] ss:$16 sps:$4 sm:$0xff]  }
 0x7c4   : > { %13038 = vst [vmem:[%s22201_s10 + $0x1f8] sm:$0xff] %v12974_v29  ;;  %v23366_v34 = vpack.c.bf16 %v12974_v29, %v12958_v11  ;;  %v20511_v14 = vld [vmem:[#allocation8 + $0x76c] ss:$16 sps:$4 sm:$0xff]   ;;  %v20506_v56 = vld [vmem:[#allocation8 + $0x760] ss:$16 sps:$4 sm:$0xff]  }
 0x7c5   : > { %16341 = vmatpush1.bf16.msra.mxu0 %v20488_v30  ;;  %v20509_v50 = vld [vmem:[#allocation8 + $0x768] ss:$16 sps:$4 sm:$0xff]   ;;  %v20514_v52 = vld [vmem:[#allocation8 + $0x784] ss:$16 sps:$4 sm:$0xff]   ;;  %v20517_v53 = vld [vmem:[#allocation8 + $0x78c] ss:$16 sps:$4 sm:$0xff]  }
 0x7c6   : > { %16765 = vmatpush1.bf16.msra.mxu1 %v20491_v12  ;;  %16342 = vmatprep.subr.bf16.mxu0 %v20496_v33  ;;  %v20512_v54 = vld [vmem:[#allocation8 + $0x780] ss:$16 sps:$4 sm:$0xff]   ;;  %v20515_v57 = vld [vmem:[#allocation8 + $0x788] ss:$16 sps:$4 sm:$0xff]   ;;  %v20520_v59 = vld [vmem:[#allocation8 + $0x7a4] ss:$16 sps:$4 sm:$0xff]  }
 0x7c7   : > { %16766 = vmatprep.subr.bf16.mxu1 %v20499_v38  ;;  %v20523_v51 = vld [vmem:[#allocation8 + $0x7ac] ss:$16 sps:$4 sm:$0xff]   ;;  %v20518_v21 = vld [vmem:[#allocation8 + $0x7a0] ss:$16 sps:$4 sm:$0xff]   ;;  %v20521_v61 = vld [vmem:[#allocation8 + $0x7a8] ss:$16 sps:$4 sm:$0xff]  }
 0x7c8   : > { %v20526_v0 = vld [vmem:[#allocation8 + $0x7c4] ss:$16 sps:$4 sm:$0xff]   ;;  %v20529_v1 = vld [vmem:[#allocation8 + $0x7cc] ss:$16 sps:$4 sm:$0xff]   ;;  %v20524_v3 = vld [vmem:[#allocation8 + $0x7c0] ss:$16 sps:$4 sm:$0xff]  }
 0x7c9   : > { %16343 = vmatpush1.bf16.msra.mxu0 %v20494_v42  ;;  %v20527_v4 = vld [vmem:[#allocation8 + $0x7c8] ss:$16 sps:$4 sm:$0xff]   ;;  %v20532_v18 = vld [vmem:[#allocation8 + $0x7e4] ss:$16 sps:$4 sm:$0xff]   ;;  %v20535_v58 = vld [vmem:[#allocation8 + $0x7ec] ss:$16 sps:$4 sm:$0xff]  }
 0x7ca   : > { %16767 = vmatpush1.bf16.msra.mxu1 %v20497_v43  ;;  %16344 = vmatprep.subr.bf16.mxu0 %v20502_v44  ;;  %v20530_v5 = vld [vmem:[#allocation8 + $0x7e0] ss:$16 sps:$4 sm:$0xff]   ;;  %v20533_v6 = vld [vmem:[#allocation8 + $0x7e8] ss:$16 sps:$4 sm:$0xff]   ;;  %v20538_v7 = vld [vmem:[#allocation8 + $0x804] ss:$16 sps:$4 sm:$0xff]  }
 0x7cb   : > { %16768 = vmatprep.subr.bf16.mxu1 %v20505_v45  ;;  %v20541_v8 = vld [vmem:[#allocation8 + $0x80c] ss:$16 sps:$4 sm:$0xff]   ;;  %v20536_v9 = vld [vmem:[#allocation8 + $0x800] ss:$16 sps:$4 sm:$0xff]   ;;  %v20539_v10 = vld [vmem:[#allocation8 + $0x808] ss:$16 sps:$4 sm:$0xff]  }
 0x7cc   : > { %v20544_v55 = vld [vmem:[#allocation8 + $0x824] ss:$16 sps:$4 sm:$0xff]   ;;  %v20547_v46 = vld [vmem:[#allocation8 + $0x82c] ss:$16 sps:$4 sm:$0xff]   ;;  %v20542_v40 = vld [vmem:[#allocation8 + $0x820] ss:$16 sps:$4 sm:$0xff]  }
 0x7cd   : > { %16345 = vmatpush1.bf16.msra.mxu0 %v20500_v47  ;;  %v20545_v11 = vld [vmem:[#allocation8 + $0x828] ss:$16 sps:$4 sm:$0xff]   ;;  %v20550_v15 = vld [vmem:[#allocation8 + $0x844] ss:$16 sps:$4 sm:$0xff]   ;;  %v20553_v16 = vld [vmem:[#allocation8 + $0x84c] ss:$16 sps:$4 sm:$0xff]  }
 0x7ce   : > { %16769 = vmatpush1.bf16.msra.mxu1 %v20503_v48  ;;  %16346 = vmatprep.subr.bf16.mxu0 %v20508_v49  ;;  %v20548_v22 = vld [vmem:[#allocation8 + $0x840] ss:$16 sps:$4 sm:$0xff]   ;;  %v20551_v35 = vld [vmem:[#allocation8 + $0x848] ss:$16 sps:$4 sm:$0xff]   ;;  %v20556_v20 = vld [vmem:[#allocation8 + $0x864] ss:$16 sps:$4 sm:$0xff]  }
 0x7cf   : > { %16770 = vmatprep.subr.bf16.mxu1 %v20511_v14  ;;  %v20557_v26 = vld [vmem:[#allocation8 + $0x868] ss:$16 sps:$4 sm:$0xff]   ;;  %v20562_v29 = vld [vmem:[#allocation8 + $0x884] ss:$16 sps:$4 sm:$0xff]   ;;  %v20565_v30 = vld [vmem:[#allocation8 + $0x88c] ss:$16 sps:$4 sm:$0xff]  }
 0x7d0   : > { %v20560_v12 = vld [vmem:[#allocation8 + $0x880] ss:$16 sps:$4 sm:$0xff]   ;;  %v20563_v33 = vld [vmem:[#allocation8 + $0x888] ss:$16 sps:$4 sm:$0xff]   ;;  %v20568_v38 = vld [vmem:[#allocation8 + $0x8a4] ss:$16 sps:$4 sm:$0xff]  }
 0x7d1   : > { %16347 = vmatpush1.bf16.msra.mxu0 %v20506_v56  ;;  %v20566_v42 = vld [vmem:[#allocation8 + $0x8a0] ss:$16 sps:$4 sm:$0xff]   ;;  %v20574_v43 = vld [vmem:[#allocation8 + $0x8c4] ss:$16 sps:$4 sm:$0xff]   ;;  %v20577_v44 = vld [vmem:[#allocation8 + $0x8cc] ss:$16 sps:$4 sm:$0xff]  }
 0x7d2   : > { %16771 = vmatpush1.bf16.msra.mxu1 %v20509_v50  ;;  %16348 = vmatprep.subr.bf16.mxu0 %v20514_v52  ;;  %v20572_v45 = vld [vmem:[#allocation8 + $0x8c0] ss:$16 sps:$4 sm:$0xff]   ;;  %v20575_v47 = vld [vmem:[#allocation8 + $0x8c8] ss:$16 sps:$4 sm:$0xff]   ;;  %v20580_v48 = vld [vmem:[#allocation8 + $0x8e4] ss:$16 sps:$4 sm:$0xff]  }
 0x7d3   : > { %16772 = vmatprep.subr.bf16.mxu1 %v20517_v53  ;;  %v20583_v49 = vld [vmem:[#allocation8 + $0x8ec] ss:$16 sps:$4 sm:$0xff]   ;;  %v20578_v14 = vld [vmem:[#allocation8 + $0x8e0] ss:$16 sps:$4 sm:$0xff]   ;;  %v20581_v56 = vld [vmem:[#allocation8 + $0x8e8] ss:$16 sps:$4 sm:$0xff]  }
 0x7d4   : > { %v20586_v50 = vld [vmem:[#allocation8 + $0x904] ss:$16 sps:$4 sm:$0xff]   ;;  %v20589_v52 = vld [vmem:[#allocation8 + $0x90c] ss:$16 sps:$4 sm:$0xff]   ;;  %v20584_v53 = vld [vmem:[#allocation8 + $0x900] ss:$16 sps:$4 sm:$0xff]  }
 0x7d5   : > { %16349 = vmatpush1.bf16.msra.mxu0 %v20512_v54  ;;  %v20587_v54 = vld [vmem:[#allocation8 + $0x908] ss:$16 sps:$4 sm:$0xff]  }
 0x7d6   : > { %16773 = vmatpush1.bf16.msra.mxu1 %v20515_v57  ;;  %16350 = vmatprep.subr.bf16.mxu0 %v20520_v59  ;;  %v20592_v57 = vld [vmem:[#allocation8 + $0x924] ss:$16 sps:$4 sm:$0xff]   ;;  %v20595_v59 = vld [vmem:[#allocation8 + $0x92c] ss:$16 sps:$4 sm:$0xff]  }
 0x7d7   : > { %16774 = vmatprep.subr.bf16.mxu1 %v20523_v51  ;;  %v20590_v51 = vld [vmem:[#allocation8 + $0x920] ss:$16 sps:$4 sm:$0xff]  }
 0x7d9   : > { %16351 = vmatpush1.bf16.msra.mxu0 %v20518_v21  ;;  %v20593_v21 = vld [vmem:[#allocation8 + $0x928] ss:$16 sps:$4 sm:$0xff]  }
 0x7da   : > { %16775 = vmatpush1.bf16.msra.mxu1 %v20521_v61  ;;  %16352 = vmatprep.subr.bf16.mxu0 %v20526_v0  ;;  %v20598_v61 = vld [vmem:[#allocation8 + $0x944] ss:$16 sps:$4 sm:$0xff]   ;;  %v20601_v0 = vld [vmem:[#allocation8 + $0x94c] ss:$16 sps:$4 sm:$0xff]  }
 0x7db   : > { %16776 = vmatprep.subr.bf16.mxu1 %v20529_v1  ;;  %v20596_v1 = vld [vmem:[#allocation8 + $0x940] ss:$16 sps:$4 sm:$0xff]  }
 0x7dd   : > { %16353 = vmatpush1.bf16.msra.mxu0 %v20524_v3  ;;  %v20599_v3 = vld [vmem:[#allocation8 + $0x948] ss:$16 sps:$4 sm:$0xff]  }
 0x7de   : > { %16777 = vmatpush1.bf16.msra.mxu1 %v20527_v4  ;;  %16354 = vmatprep.subr.bf16.mxu0 %v20532_v18  ;;  %v20604_v4 = vld [vmem:[#allocation8 + $0x964] ss:$16 sps:$4 sm:$0xff]   ;;  %v20607_v18 = vld [vmem:[#allocation8 + $0x96c] ss:$16 sps:$4 sm:$0xff]  }
 0x7df   : > { %16778 = vmatprep.subr.bf16.mxu1 %v20535_v58  ;;  %v20602_v58 = vld [vmem:[#allocation8 + $0x960] ss:$16 sps:$4 sm:$0xff]  }
 0x7e1   : > { %16355 = vmatpush1.bf16.msra.mxu0 %v20530_v5  ;;  %v20605_v5 = vld [vmem:[#allocation8 + $0x968] ss:$16 sps:$4 sm:$0xff]  }
 0x7e2   : > { %16779 = vmatpush1.bf16.msra.mxu1 %v20533_v6  ;;  %16377 = vmatprep.subr.bf16.mxu0 %v20538_v7  ;;  %v20610_v6 = vld [vmem:[#allocation8 + $0x984] ss:$16 sps:$4 sm:$0xff]   ;;  %v20613_v7 = vld [vmem:[#allocation8 + $0x98c] ss:$16 sps:$4 sm:$0xff]  }
 0x7e3   : > { %16801 = vmatprep.subr.bf16.mxu1 %v20541_v8  ;;  %v20608_v8 = vld [vmem:[#allocation8 + $0x980] ss:$16 sps:$4 sm:$0xff]  }
 0x7e4   : > { %16357 = vmatmul.mubr.bf16.vlgmr.msra.gmra.mrb[32].mxu0 %v22665_v39 }
 0x7e5   : > { %16781 = vmatmul.mubr.bf16.vlgmr.msra.gmra.mrb[32].mxu1 %v22665_v39  ;;  %16366 = vmatprep.mubr.bf16.mxu0 %v22700_v23  ;;  %v20559_v39 = vld [vmem:[#allocation8 + $0x86c] ss:$16 sps:$4 sm:$0xff]  }
 0x7e6   : > { %16378 = vmatpush1.bf16.msra.mxu0 %v20536_v9  ;;  %16790 = vmatprep.mubr.bf16.mxu1 %v22700_v23  ;;  %v20554_v23 = vld [vmem:[#allocation8 + $0x860] ss:$16 sps:$4 sm:$0xff]   ;;  %v20611_v9 = vld [vmem:[#allocation8 + $0x988] ss:$16 sps:$4 sm:$0xff]  }
 0x7e7   : > { %16802 = vmatpush1.bf16.msra.mxu1 %v20539_v10  ;;  %16379 = vmatprep.subr.bf16.mxu0 %v20544_v55  ;;  %v20616_v10 = vld [vmem:[#allocation8 + $0x9a4] ss:$16 sps:$4 sm:$0xff]   ;;  %v20619_v55 = vld [vmem:[#allocation8 + $0x9ac] ss:$16 sps:$4 sm:$0xff]  }
 0x7e8   : > { %16803 = vmatprep.subr.bf16.mxu1 %v20547_v46  ;;  %v20614_v46 = vld [vmem:[#allocation8 + $0x9a0] ss:$16 sps:$4 sm:$0xff]  }
 0x7ea   : > { %16380 = vmatpush1.bf16.msra.mxu0 %v20542_v40  ;;  %v20617_v40 = vld [vmem:[#allocation8 + $0x9a8] ss:$16 sps:$4 sm:$0xff]  }
 0x7eb   : > { %16804 = vmatpush1.bf16.msra.mxu1 %v20545_v11  ;;  %16381 = vmatprep.subr.bf16.mxu0 %v20550_v15  ;;  %v20622_v11 = vld [vmem:[#allocation8 + $0x9c4] ss:$16 sps:$4 sm:$0xff]   ;;  %v20625_v15 = vld [vmem:[#allocation8 + $0x9cc] ss:$16 sps:$4 sm:$0xff]  }
 0x7ec   : > { %16367 = vmatmul.mubr.bf16.gmra.mrb[36].mxu0 %v22694_v17  ;;  %16805 = vmatprep.subr.bf16.mxu1 %v20553_v16  ;;  %v20620_v16 = vld [vmem:[#allocation8 + $0x9c0] ss:$16 sps:$4 sm:$0xff]  }
 0x7ed   : > { %16791 = vmatmul.mubr.bf16.gmra.mrb[36].mxu1 %v22694_v17  ;;  %16409 = vmatprep.mubr.bf16.mxu0 %v23112_v37  ;;  %v20571_v17 = vld [vmem:[#allocation8 + $0x8ac] ss:$16 sps:$4 sm:$0xff]  }
 0x7ee   : > { %16382 = vmatpush1.bf16.msra.mxu0 %v20548_v22  ;;  %16833 = vmatprep.mubr.bf16.mxu1 %v23112_v37  ;;  %v20569_v37 = vld [vmem:[#allocation8 + $0x8a8] ss:$16 sps:$4 sm:$0xff]  }
 0x7ef   : > { %16806 = vmatpush1.bf16.msra.mxu1 %v20551_v35  ;;  %16383 = vmatprep.subr.bf16.mxu0 %v20556_v20  ;;  %v20623_v22 = vld [vmem:[#allocation8 + $0x9c8] ss:$16 sps:$4 sm:$0xff]   ;;  %v20628_v35 = vld [vmem:[#allocation8 + $0x9e4] ss:$16 sps:$4 sm:$0xff]   ;;  %v20631_v20 = vld [vmem:[#allocation8 + $0x9ec] ss:$16 sps:$4 sm:$0xff]  }
 0x7f0   : > { %16807 = vmatprep.subr.bf16.mxu1 %v20559_v39  ;;  %v20626_v39 = vld [vmem:[#allocation8 + $0x9e0] ss:$16 sps:$4 sm:$0xff]  }
 0x7f2   : > { %16384 = vmatpush1.bf16.msra.mxu0 %v20554_v23  ;;  %v20629_v23 = vld [vmem:[#allocation8 + $0x9e8] ss:$16 sps:$4 sm:$0xff]  }
 0x7f3   : > { %16808 = vmatpush1.bf16.msra.mxu1 %v20557_v26  ;;  %16385 = vmatprep.subr.bf16.mxu0 %v20562_v29  ;;  %v20634_v26 = vld [vmem:[#allocation8 + $0xa04] ss:$16 sps:$4 sm:$0xff]   ;;  %v20637_v29 = vld [vmem:[#allocation8 + $0xa0c] ss:$16 sps:$4 sm:$0xff]  }
 0x7f4   : > { %16809 = vmatprep.subr.bf16.mxu1 %v20565_v30  ;;  %v20632_v30 = vld [vmem:[#allocation8 + $0xa00] ss:$16 sps:$4 sm:$0xff]  }
 0x7f6   : > { %16386 = vmatpush1.bf16.msra.mxu0 %v20560_v12  ;;  %v20635_v12 = vld [vmem:[#allocation8 + $0xa08] ss:$16 sps:$4 sm:$0xff]  }
 0x7f7   : > { %16810 = vmatpush1.bf16.msra.mxu1 %v20563_v33  ;;  %16387 = vmatprep.subr.bf16.mxu0 %v20568_v38  ;;  %v20640_v33 = vld [vmem:[#allocation8 + $0xa24] ss:$16 sps:$4 sm:$0xff]   ;;  %v20643_v38 = vld [vmem:[#allocation8 + $0xa2c] ss:$16 sps:$4 sm:$0xff]  }
 0x7f8   : > { %16811 = vmatprep.subr.bf16.mxu1 %v20571_v17  ;;  %v20638_v17 = vld [vmem:[#allocation8 + $0xa20] ss:$16 sps:$4 sm:$0xff]  }
 0x7fa   : > { %16388 = vmatpush1.bf16.msra.mxu0 %v20566_v42  ;;  %v20641_v42 = vld [vmem:[#allocation8 + $0xa28] ss:$16 sps:$4 sm:$0xff]  }
 0x7fb   : > { %16812 = vmatpush1.bf16.msra.mxu1 %v20569_v37  ;;  %16389 = vmatprep.subr.bf16.mxu0 %v20574_v43  ;;  %v20646_v37 = vld [vmem:[#allocation8 + $0xa44] ss:$16 sps:$4 sm:$0xff]   ;;  %v20649_v43 = vld [vmem:[#allocation8 + $0xa4c] ss:$16 sps:$4 sm:$0xff]  }
 0x7fc   : > { %16813 = vmatprep.subr.bf16.mxu1 %v20577_v44  ;;  %v20644_v44 = vld [vmem:[#allocation8 + $0xa40] ss:$16 sps:$4 sm:$0xff]  }
 0x7fe   : > { %16390 = vmatpush1.bf16.msra.mxu0 %v20572_v45  ;;  %v20647_v45 = vld [vmem:[#allocation8 + $0xa48] ss:$16 sps:$4 sm:$0xff]  }
 0x7ff   : > { %16814 = vmatpush1.bf16.msra.mxu1 %v20575_v47  ;;  %16391 = vmatprep.subr.bf16.mxu0 %v20580_v48  ;;  %v20652_v47 = vld [vmem:[#allocation8 + $0xa64] ss:$16 sps:$4 sm:$0xff]   ;;  %v20653_v48 = vld [vmem:[#allocation8 + $0xa68] ss:$16 sps:$4 sm:$0xff]  }
 0x800   : > { %16815 = vmatprep.subr.bf16.mxu1 %v20583_v49  ;;  %v20658_v49 = vld [vmem:[#allocation8 + $0xa84] ss:$16 sps:$4 sm:$0xff]  }
 0x802   : > { %16392 = vmatpush1.bf16.msra.mxu0 %v20578_v14  ;;  %v20661_v14 = vld [vmem:[#allocation8 + $0xa8c] ss:$16 sps:$4 sm:$0xff]  }
 0x803   : > { %16816 = vmatpush1.bf16.msra.mxu1 %v20581_v56  ;;  %16393 = vmatprep.subr.bf16.mxu0 %v20586_v50  ;;  %v20656_v56 = vld [vmem:[#allocation8 + $0xa80] ss:$16 sps:$4 sm:$0xff]   ;;  %v20659_v50 = vld [vmem:[#allocation8 + $0xa88] ss:$16 sps:$4 sm:$0xff]  }
 0x804   : > { %16817 = vmatprep.subr.bf16.mxu1 %v20589_v52  ;;  %v20664_v52 = vld [vmem:[#allocation8 + $0xaa4] ss:$16 sps:$4 sm:$0xff]  }
 0x806   : > { %16394 = vmatpush1.bf16.msra.mxu0 %v20584_v53  ;;  %v20662_v53 = vld [vmem:[#allocation8 + $0xaa0] ss:$16 sps:$4 sm:$0xff]  }
 0x807   : > { %16818 = vmatpush1.bf16.msra.mxu1 %v20587_v54  ;;  %16395 = vmatprep.subr.bf16.mxu0 %v20592_v57  ;;  %v20670_v54 = vld [vmem:[#allocation8 + $0xac4] ss:$16 sps:$4 sm:$0xff]   ;;  %v20673_v57 = vld [vmem:[#allocation8 + $0xacc] ss:$16 sps:$4 sm:$0xff]  }
 0x808   : > { %16819 = vmatprep.subr.bf16.mxu1 %v20595_v59  ;;  %v20668_v59 = vld [vmem:[#allocation8 + $0xac0] ss:$16 sps:$4 sm:$0xff]  }
 0x80a   : > { %16396 = vmatpush1.bf16.msra.mxu0 %v20590_v51  ;;  %v20671_v51 = vld [vmem:[#allocation8 + $0xac8] ss:$16 sps:$4 sm:$0xff]  }
 0x80b   : > { %16820 = vmatpush1.bf16.msra.mxu1 %v20593_v21  ;;  %16397 = vmatprep.subr.bf16.mxu0 %v20598_v61  ;;  %v20676_v21 = vld [vmem:[#allocation8 + $0xae4] ss:$16 sps:$4 sm:$0xff]   ;;  %v20679_v61 = vld [vmem:[#allocation8 + $0xaec] ss:$16 sps:$4 sm:$0xff]  }
 0x80c   : > { %16821 = vmatprep.subr.bf16.mxu1 %v20601_v0  ;;  %v20674_v0 = vld [vmem:[#allocation8 + $0xae0] ss:$16 sps:$4 sm:$0xff]  }
 0x80e   : > { %16398 = vmatpush1.bf16.msra.mxu0 %v20596_v1  ;;  %v20677_v1 = vld [vmem:[#allocation8 + $0xae8] ss:$16 sps:$4 sm:$0xff]  }
 0x80f   : > { %16822 = vmatpush1.bf16.msra.mxu1 %v20599_v3  ;;  %16399 = vmatprep.subr.bf16.mxu0 %v20604_v4  ;;  %v20682_v3 = vld [vmem:[#allocation8 + $0xb04] ss:$16 sps:$4 sm:$0xff]   ;;  %v20685_v4 = vld [vmem:[#allocation8 + $0xb0c] ss:$16 sps:$4 sm:$0xff]  }
 0x810   : > { %16823 = vmatprep.subr.bf16.mxu1 %v20607_v18  ;;  %v20680_v18 = vld [vmem:[#allocation8 + $0xb00] ss:$16 sps:$4 sm:$0xff]  }
 0x812   : > { %16400 = vmatpush1.bf16.msra.mxu0 %v20602_v58  ;;  %v20683_v58 = vld [vmem:[#allocation8 + $0xb08] ss:$16 sps:$4 sm:$0xff]  }
 0x813   : > { %16824 = vmatpush1.bf16.msra.mxu1 %v20605_v5  ;;  %16401 = vmatprep.subr.bf16.mxu0 %v20610_v6  ;;  %v20688_v5 = vld [vmem:[#allocation8 + $0xb24] ss:$16 sps:$4 sm:$0xff]   ;;  %v20691_v6 = vld [vmem:[#allocation8 + $0xb2c] ss:$16 sps:$4 sm:$0xff]  }
 0x814   : > { %16825 = vmatprep.subr.bf16.mxu1 %v20613_v7  ;;  %v20686_v7 = vld [vmem:[#allocation8 + $0xb20] ss:$16 sps:$4 sm:$0xff]  }
 0x816   : > { %16402 = vmatpush1.bf16.msra.mxu0 %v20608_v8  ;;  %v20689_v8 = vld [vmem:[#allocation8 + $0xb28] ss:$16 sps:$4 sm:$0xff]  }
 0x817   : > { %16826 = vmatpush1.bf16.msra.mxu1 %v20611_v9  ;;  %16403 = vmatprep.subr.bf16.mxu0 %v20616_v10  ;;  %v20694_v9 = vld [vmem:[#allocation8 + $0xb44] ss:$16 sps:$4 sm:$0xff]   ;;  %v20697_v10 = vld [vmem:[#allocation8 + $0xb4c] ss:$16 sps:$4 sm:$0xff]  }
 0x818   : > { %16827 = vmatprep.subr.bf16.mxu1 %v20619_v55  ;;  %v20692_v55 = vld [vmem:[#allocation8 + $0xb40] ss:$16 sps:$4 sm:$0xff]  }
 0x81a   : > { %16404 = vmatpush1.bf16.msra.mxu0 %v20614_v46  ;;  %v20695_v46 = vld [vmem:[#allocation8 + $0xb48] ss:$16 sps:$4 sm:$0xff]  }
 0x81b   : > { %16828 = vmatpush1.bf16.msra.mxu1 %v20617_v40  ;;  %16405 = vmatprep.subr.bf16.mxu0 %v20622_v11  ;;  %v20700_v40 = vld [vmem:[#allocation8 + $0xb64] ss:$16 sps:$4 sm:$0xff]   ;;  %v20703_v11 = vld [vmem:[#allocation8 + $0xb6c] ss:$16 sps:$4 sm:$0xff]  }
 0x81c   : > { %16829 = vmatprep.subr.bf16.mxu1 %v20625_v15  ;;  %v20698_v15 = vld [vmem:[#allocation8 + $0xb60] ss:$16 sps:$4 sm:$0xff]  }
 0x81e   : > { %16406 = vmatpush1.bf16.msra.mxu0 %v20620_v16  ;;  %v20701_v16 = vld [vmem:[#allocation8 + $0xb68] ss:$16 sps:$4 sm:$0xff]  }
 0x81f   : > { %16830 = vmatpush1.bf16.msra.mxu1 %v20623_v22  ;;  %16407 = vmatprep.subr.bf16.mxu0 %v20628_v35  ;;  %v20706_v22 = vld [vmem:[#allocation8 + $0xb84] ss:$16 sps:$4 sm:$0xff]   ;;  %v20709_v35 = vld [vmem:[#allocation8 + $0xb8c] ss:$16 sps:$4 sm:$0xff]  }
 0x820   : > { %16831 = vmatprep.subr.bf16.mxu1 %v20631_v20  ;;  %v20704_v20 = vld [vmem:[#allocation8 + $0xb80] ss:$16 sps:$4 sm:$0xff]  }
 0x822   : > { %16408 = vmatpush1.bf16.msra.mxu0 %v20626_v39  ;;  %v20707_v39 = vld [vmem:[#allocation8 + $0xb88] ss:$16 sps:$4 sm:$0xff]  }
 0x823   : > { %16832 = vmatpush1.bf16.msra.mxu1 %v20629_v23  ;;  %16430 = vmatprep.subr.bf16.mxu0 %v20634_v26  ;;  %v20712_v23 = vld [vmem:[#allocation8 + $0xba4] ss:$16 sps:$4 sm:$0xff]   ;;  %v20715_v26 = vld [vmem:[#allocation8 + $0xbac] ss:$16 sps:$4 sm:$0xff]  }
 0x824   : > { %16854 = vmatprep.subr.bf16.mxu1 %v20637_v29  ;;  %v20710_v29 = vld [vmem:[#allocation8 + $0xba0] ss:$16 sps:$4 sm:$0xff]  }
 0x825   : > { %16410 = vmatmul.mubr.bf16.vlgmr.msra.gmra.mrb[32].mxu0 %v23104_v31 }
 0x826   : > { %16834 = vmatmul.mubr.bf16.vlgmr.msra.gmra.mrb[32].mxu1 %v23104_v31  ;;  %16419 = vmatprep.mubr.bf16.mxu0 %v23141_v25  ;;  %v20655_v31 = vld [vmem:[#allocation8 + $0xa6c] ss:$16 sps:$4 sm:$0xff]  }
 0x827   : > { %16431 = vmatpush1.bf16.msra.mxu0 %v20632_v30  ;;  %16843 = vmatprep.mubr.bf16.mxu1 %v23141_v25  ;;  %v20650_v25 = vld [vmem:[#allocation8 + $0xa60] ss:$16 sps:$4 sm:$0xff]   ;;  %v20713_v30 = vld [vmem:[#allocation8 + $0xba8] ss:$16 sps:$4 sm:$0xff]  }
 0x828   : > { %16855 = vmatpush1.bf16.msra.mxu1 %v20635_v12  ;;  %16432 = vmatprep.subr.bf16.mxu0 %v20640_v33  ;;  %v20718_v12 = vld [vmem:[#allocation8 + $0xbc4] ss:$16 sps:$4 sm:$0xff]   ;;  %v20721_v33 = vld [vmem:[#allocation8 + $0xbcc] ss:$16 sps:$4 sm:$0xff]  }
 0x829   : > { %16856 = vmatprep.subr.bf16.mxu1 %v20643_v38  ;;  %v20716_v38 = vld [vmem:[#allocation8 + $0xbc0] ss:$16 sps:$4 sm:$0xff]  }
 0x82b   : > { %16433 = vmatpush1.bf16.msra.mxu0 %v20638_v17  ;;  %v20719_v17 = vld [vmem:[#allocation8 + $0xbc8] ss:$16 sps:$4 sm:$0xff]  }
 0x82c   : > { %16857 = vmatpush1.bf16.msra.mxu1 %v20641_v42  ;;  %16434 = vmatprep.subr.bf16.mxu0 %v20646_v37  ;;  %v20724_v42 = vld [vmem:[#allocation8 + $0xbe4] ss:$16 sps:$4 sm:$0xff]   ;;  %v20727_v37 = vld [vmem:[#allocation8 + $0xbec] ss:$16 sps:$4 sm:$0xff]  }
 0x82d   : > { %16420 = vmatmul.mubr.bf16.gmra.mrb[36].mxu0 %v23133_v13  ;;  %16858 = vmatprep.subr.bf16.mxu1 %v20649_v43  ;;  %v20722_v43 = vld [vmem:[#allocation8 + $0xbe0] ss:$16 sps:$4 sm:$0xff]  }
 0x82e   : > { %16844 = vmatmul.mubr.bf16.gmra.mrb[36].mxu1 %v23133_v13  ;;  %16462 = vmatprep.mubr.bf16.mxu0 %v23115_v41  ;;  %v20667_v13 = vld [vmem:[#allocation8 + $0xaac] ss:$16 sps:$4 sm:$0xff]  }
 0x82f   : > { %16435 = vmatpush1.bf16.msra.mxu0 %v20644_v44  ;;  %16886 = vmatprep.mubr.bf16.mxu1 %v23115_v41  ;;  %v20665_v41 = vld [vmem:[#allocation8 + $0xaa8] ss:$16 sps:$4 sm:$0xff]  }
 0x830   : > { %16859 = vmatpush1.bf16.msra.mxu1 %v20647_v45  ;;  %16436 = vmatprep.subr.bf16.mxu0 %v20652_v47  ;;  %v20725_v44 = vld [vmem:[#allocation8 + $0xbe8] ss:$16 sps:$4 sm:$0xff]   ;;  %v20730_v45 = vld [vmem:[#allocation8 + $0xc04] ss:$16 sps:$4 sm:$0xff]   ;;  %v20733_v47 = vld [vmem:[#allocation8 + $0xc0c] ss:$16 sps:$4 sm:$0xff]  }
 0x831   : > { %16860 = vmatprep.subr.bf16.mxu1 %v20655_v31  ;;  %v20728_v31 = vld [vmem:[#allocation8 + $0xc00] ss:$16 sps:$4 sm:$0xff]  }
 0x833   : > { %16437 = vmatpush1.bf16.msra.mxu0 %v20650_v25  ;;  %v20731_v25 = vld [vmem:[#allocation8 + $0xc08] ss:$16 sps:$4 sm:$0xff]  }
 0x834   : > { %16861 = vmatpush1.bf16.msra.mxu1 %v20653_v48  ;;  %16438 = vmatprep.subr.bf16.mxu0 %v20658_v49  ;;  %v20736_v48 = vld [vmem:[#allocation8 + $0xc24] ss:$16 sps:$4 sm:$0xff]   ;;  %v20739_v49 = vld [vmem:[#allocation8 + $0xc2c] ss:$16 sps:$4 sm:$0xff]  }
 0x835   : > { %16862 = vmatprep.subr.bf16.mxu1 %v20661_v14  ;;  %v20734_v14 = vld [vmem:[#allocation8 + $0xc20] ss:$16 sps:$4 sm:$0xff]  }
 0x837   : > { %16439 = vmatpush1.bf16.msra.mxu0 %v20656_v56  ;;  %v20737_v56 = vld [vmem:[#allocation8 + $0xc28] ss:$16 sps:$4 sm:$0xff]  }
 0x838   : > { %16863 = vmatpush1.bf16.msra.mxu1 %v20659_v50  ;;  %16440 = vmatprep.subr.bf16.mxu0 %v20664_v52  ;;  %v20742_v50 = vld [vmem:[#allocation8 + $0xc44] ss:$16 sps:$4 sm:$0xff]   ;;  %v20745_v52 = vld [vmem:[#allocation8 + $0xc4c] ss:$16 sps:$4 sm:$0xff]  }
 0x839   : > { %16864 = vmatprep.subr.bf16.mxu1 %v20667_v13  ;;  %v20740_v13 = vld [vmem:[#allocation8 + $0xc40] ss:$16 sps:$4 sm:$0xff]  }
 0x83b   : > { %16441 = vmatpush1.bf16.msra.mxu0 %v20662_v53  ;;  %v20743_v53 = vld [vmem:[#allocation8 + $0xc48] ss:$16 sps:$4 sm:$0xff]  }
 0x83c   : > { %16865 = vmatpush1.bf16.msra.mxu1 %v20665_v41  ;;  %16442 = vmatprep.subr.bf16.mxu0 %v20670_v54  ;;  %v20748_v41 = vld [vmem:[#allocation8 + $0xc64] ss:$16 sps:$4 sm:$0xff]   ;;  %v20749_v54 = vld [vmem:[#allocation8 + $0xc68] ss:$16 sps:$4 sm:$0xff]  }
 0x83d   : > { %16866 = vmatprep.subr.bf16.mxu1 %v20673_v57  ;;  %v20754_v57 = vld [vmem:[#allocation8 + $0xc84] ss:$16 sps:$4 sm:$0xff]  }
 0x83f   : > { %16443 = vmatpush1.bf16.msra.mxu0 %v20668_v59  ;;  %v20757_v59 = vld [vmem:[#allocation8 + $0xc8c] ss:$16 sps:$4 sm:$0xff]  }
 0x840   : > { %16867 = vmatpush1.bf16.msra.mxu1 %v20671_v51  ;;  %16444 = vmatprep.subr.bf16.mxu0 %v20676_v21  ;;  %v20752_v51 = vld [vmem:[#allocation8 + $0xc80] ss:$16 sps:$4 sm:$0xff]   ;;  %v20755_v21 = vld [vmem:[#allocation8 + $0xc88] ss:$16 sps:$4 sm:$0xff]  }
 0x841   : > { %16868 = vmatprep.subr.bf16.mxu1 %v20679_v61  ;;  %v20760_v61 = vld [vmem:[#allocation8 + $0xca4] ss:$16 sps:$4 sm:$0xff]  }
 0x843   : > { %16445 = vmatpush1.bf16.msra.mxu0 %v20674_v0  ;;  %v20758_v0 = vld [vmem:[#allocation8 + $0xca0] ss:$16 sps:$4 sm:$0xff]  }
 0x844   : > { %16869 = vmatpush1.bf16.msra.mxu1 %v20677_v1  ;;  %16446 = vmatprep.subr.bf16.mxu0 %v20682_v3  ;;  %v20766_v1 = vld [vmem:[#allocation8 + $0xcc4] ss:$16 sps:$4 sm:$0xff]   ;;  %v20769_v3 = vld [vmem:[#allocation8 + $0xccc] ss:$16 sps:$4 sm:$0xff]  }
 0x845   : > { %16870 = vmatprep.subr.bf16.mxu1 %v20685_v4  ;;  %v20764_v4 = vld [vmem:[#allocation8 + $0xcc0] ss:$16 sps:$4 sm:$0xff]  }
 0x847   : > { %16447 = vmatpush1.bf16.msra.mxu0 %v20680_v18  ;;  %v20767_v18 = vld [vmem:[#allocation8 + $0xcc8] ss:$16 sps:$4 sm:$0xff]  }
 0x848   : > { %16871 = vmatpush1.bf16.msra.mxu1 %v20683_v58  ;;  %16448 = vmatprep.subr.bf16.mxu0 %v20688_v5  ;;  %v20772_v58 = vld [vmem:[#allocation8 + $0xce4] ss:$16 sps:$4 sm:$0xff]   ;;  %v20775_v5 = vld [vmem:[#allocation8 + $0xcec] ss:$16 sps:$4 sm:$0xff]  }
 0x849   : > { %16872 = vmatprep.subr.bf16.mxu1 %v20691_v6  ;;  %v20770_v6 = vld [vmem:[#allocation8 + $0xce0] ss:$16 sps:$4 sm:$0xff]  }
 0x84b   : > { %16449 = vmatpush1.bf16.msra.mxu0 %v20686_v7  ;;  %v20773_v7 = vld [vmem:[#allocation8 + $0xce8] ss:$16 sps:$4 sm:$0xff]  }
 0x84c   : > { %16873 = vmatpush1.bf16.msra.mxu1 %v20689_v8  ;;  %16450 = vmatprep.subr.bf16.mxu0 %v20694_v9  ;;  %v20778_v8 = vld [vmem:[#allocation8 + $0xd04] ss:$16 sps:$4 sm:$0xff]   ;;  %v20781_v9 = vld [vmem:[#allocation8 + $0xd0c] ss:$16 sps:$4 sm:$0xff]  }
 0x84d   : > { %16874 = vmatprep.subr.bf16.mxu1 %v20697_v10  ;;  %v20776_v10 = vld [vmem:[#allocation8 + $0xd00] ss:$16 sps:$4 sm:$0xff]  }
 0x84f   : > { %16451 = vmatpush1.bf16.msra.mxu0 %v20692_v55  ;;  %v20779_v55 = vld [vmem:[#allocation8 + $0xd08] ss:$16 sps:$4 sm:$0xff]  }
 0x850   : > { %16875 = vmatpush1.bf16.msra.mxu1 %v20695_v46  ;;  %16452 = vmatprep.subr.bf16.mxu0 %v20700_v40  ;;  %v20784_v46 = vld [vmem:[#allocation8 + $0xd24] ss:$16 sps:$4 sm:$0xff]   ;;  %v20787_v40 = vld [vmem:[#allocation8 + $0xd2c] ss:$16 sps:$4 sm:$0xff]  }
 0x851   : > { %16876 = vmatprep.subr.bf16.mxu1 %v20703_v11  ;;  %v20782_v11 = vld [vmem:[#allocation8 + $0xd20] ss:$16 sps:$4 sm:$0xff]  }
 0x853   : > { %16453 = vmatpush1.bf16.msra.mxu0 %v20698_v15  ;;  %v20785_v15 = vld [vmem:[#allocation8 + $0xd28] ss:$16 sps:$4 sm:$0xff]  }
 0x854   : > { %16877 = vmatpush1.bf16.msra.mxu1 %v20701_v16  ;;  %16454 = vmatprep.subr.bf16.mxu0 %v20706_v22  ;;  %v20790_v16 = vld [vmem:[#allocation8 + $0xd44] ss:$16 sps:$4 sm:$0xff]   ;;  %v20793_v22 = vld [vmem:[#allocation8 + $0xd4c] ss:$16 sps:$4 sm:$0xff]  }
 0x855   : > { %16878 = vmatprep.subr.bf16.mxu1 %v20709_v35  ;;  %v20788_v35 = vld [vmem:[#allocation8 + $0xd40] ss:$16 sps:$4 sm:$0xff]  }
 0x857   : > { %16455 = vmatpush1.bf16.msra.mxu0 %v20704_v20  ;;  %v20791_v20 = vld [vmem:[#allocation8 + $0xd48] ss:$16 sps:$4 sm:$0xff]  }
 0x858   : > { %16879 = vmatpush1.bf16.msra.mxu1 %v20707_v39  ;;  %16456 = vmatprep.subr.bf16.mxu0 %v20712_v23  ;;  %v20796_v39 = vld [vmem:[#allocation8 + $0xd64] ss:$16 sps:$4 sm:$0xff]   ;;  %v20799_v23 = vld [vmem:[#allocation8 + $0xd6c] ss:$16 sps:$4 sm:$0xff]  }
 0x859   : > { %16880 = vmatprep.subr.bf16.mxu1 %v20715_v26  ;;  %v20794_v26 = vld [vmem:[#allocation8 + $0xd60] ss:$16 sps:$4 sm:$0xff]  }
 0x85b   : > { %16457 = vmatpush1.bf16.msra.mxu0 %v20710_v29  ;;  %v20797_v29 = vld [vmem:[#allocation8 + $0xd68] ss:$16 sps:$4 sm:$0xff]  }
 0x85c   : > { %16881 = vmatpush1.bf16.msra.mxu1 %v20713_v30  ;;  %16458 = vmatprep.subr.bf16.mxu0 %v20718_v12  ;;  %v20802_v30 = vld [vmem:[#allocation8 + $0xd84] ss:$16 sps:$4 sm:$0xff]   ;;  %v20805_v12 = vld [vmem:[#allocation8 + $0xd8c] ss:$16 sps:$4 sm:$0xff]  }
 0x85d   : > { %16882 = vmatprep.subr.bf16.mxu1 %v20721_v33  ;;  %v20800_v33 = vld [vmem:[#allocation8 + $0xd80] ss:$16 sps:$4 sm:$0xff]  }
 0x85f   : > { %16459 = vmatpush1.bf16.msra.mxu0 %v20716_v38  ;;  %v20803_v38 = vld [vmem:[#allocation8 + $0xd88] ss:$16 sps:$4 sm:$0xff]  }
 0x860   : > { %16883 = vmatpush1.bf16.msra.mxu1 %v20719_v17  ;;  %16460 = vmatprep.subr.bf16.mxu0 %v20724_v42  ;;  %v20808_v17 = vld [vmem:[#allocation8 + $0xda4] ss:$16 sps:$4 sm:$0xff]   ;;  %v20811_v42 = vld [vmem:[#allocation8 + $0xdac] ss:$16 sps:$4 sm:$0xff]  }
 0x861   : > { %16884 = vmatprep.subr.bf16.mxu1 %v20727_v37  ;;  %v20806_v37 = vld [vmem:[#allocation8 + $0xda0] ss:$16 sps:$4 sm:$0xff]  }
 0x863   : > { %16461 = vmatpush1.bf16.msra.mxu0 %v20722_v43  ;;  %v20809_v43 = vld [vmem:[#allocation8 + $0xda8] ss:$16 sps:$4 sm:$0xff]  }
 0x864   : > { %16885 = vmatpush1.bf16.msra.mxu1 %v20725_v44  ;;  %16483 = vmatprep.subr.bf16.mxu0 %v20730_v45  ;;  %v20814_v44 = vld [vmem:[#allocation8 + $0xdc4] ss:$16 sps:$4 sm:$0xff]   ;;  %v20817_v45 = vld [vmem:[#allocation8 + $0xdcc] ss:$16 sps:$4 sm:$0xff]  }
 0x865   : > { %16907 = vmatprep.subr.bf16.mxu1 %v20733_v47  ;;  %v20812_v47 = vld [vmem:[#allocation8 + $0xdc0] ss:$16 sps:$4 sm:$0xff]  }
 0x866   : > { %16463 = vmatmul.mubr.bf16.vlgmr.msra.gmra.mrb[32].mxu0 %v23109_v36 }
 0x867   : > { %16887 = vmatmul.mubr.bf16.vlgmr.msra.gmra.mrb[32].mxu1 %v23109_v36  ;;  %16472 = vmatprep.mubr.bf16.mxu0 %v23144_v27  ;;  %v20751_v36 = vld [vmem:[#allocation8 + $0xc6c] ss:$16 sps:$4 sm:$0xff]  }
 0x868   : > { %16484 = vmatpush1.bf16.msra.mxu0 %v20728_v31  ;;  %16896 = vmatprep.mubr.bf16.mxu1 %v23144_v27  ;;  %v20746_v27 = vld [vmem:[#allocation8 + $0xc60] ss:$16 sps:$4 sm:$0xff]   ;;  %v20815_v31 = vld [vmem:[#allocation8 + $0xdc8] ss:$16 sps:$4 sm:$0xff]  }
 0x869   : > { %16908 = vmatpush1.bf16.msra.mxu1 %v20731_v25  ;;  %16485 = vmatprep.subr.bf16.mxu0 %v20736_v48  ;;  %v20820_v25 = vld [vmem:[#allocation8 + $0xde4] ss:$16 sps:$4 sm:$0xff]   ;;  %v20823_v48 = vld [vmem:[#allocation8 + $0xdec] ss:$16 sps:$4 sm:$0xff]  }
 0x86a   : > { %16909 = vmatprep.subr.bf16.mxu1 %v20739_v49  ;;  %v20818_v49 = vld [vmem:[#allocation8 + $0xde0] ss:$16 sps:$4 sm:$0xff]  }
 0x86c   : > { %16486 = vmatpush1.bf16.msra.mxu0 %v20734_v14  ;;  %v20821_v14 = vld [vmem:[#allocation8 + $0xde8] ss:$16 sps:$4 sm:$0xff]  }
 0x86d   : > { %16910 = vmatpush1.bf16.msra.mxu1 %v20737_v56  ;;  %16487 = vmatprep.subr.bf16.mxu0 %v20742_v50  ;;  %v20826_v56 = vld [vmem:[#allocation8 + $0xe04] ss:$16 sps:$4 sm:$0xff]   ;;  %v20829_v50 = vld [vmem:[#allocation8 + $0xe0c] ss:$16 sps:$4 sm:$0xff]  }
 0x86e   : > { %16473 = vmatmul.mubr.bf16.gmra.mrb[36].mxu0 %v23138_v24  ;;  %16911 = vmatprep.subr.bf16.mxu1 %v20745_v52  ;;  %v20824_v52 = vld [vmem:[#allocation8 + $0xe00] ss:$16 sps:$4 sm:$0xff]  }
 0x86f   : > { %16897 = vmatmul.mubr.bf16.gmra.mrb[36].mxu1 %v23138_v24  ;;  %16515 = vmatprep.mubr.bf16.mxu0 %v23347_v63  ;;  %v20763_v24 = vld [vmem:[#allocation8 + $0xcac] ss:$16 sps:$4 sm:$0xff]  }
 0x870   : > { %16488 = vmatpush1.bf16.msra.mxu0 %v20740_v13  ;;  %16939 = vmatprep.mubr.bf16.mxu1 %v23347_v63  ;;  %v20761_v63 = vld [vmem:[#allocation8 + $0xca8] ss:$16 sps:$4 sm:$0xff]  }
 0x871   : > { %16912 = vmatpush1.bf16.msra.mxu1 %v20743_v53  ;;  %16489 = vmatprep.subr.bf16.mxu0 %v20748_v41  ;;  %v20827_v13 = vld [vmem:[#allocation8 + $0xe08] ss:$16 sps:$4 sm:$0xff]   ;;  %v20832_v53 = vld [vmem:[#allocation8 + $0xe24] ss:$16 sps:$4 sm:$0xff]   ;;  %v20835_v41 = vld [vmem:[#allocation8 + $0xe2c] ss:$16 sps:$4 sm:$0xff]  }
 0x872   : > { %16913 = vmatprep.subr.bf16.mxu1 %v20751_v36  ;;  %v20830_v36 = vld [vmem:[#allocation8 + $0xe20] ss:$16 sps:$4 sm:$0xff]  }
 0x874   : > { %16490 = vmatpush1.bf16.msra.mxu0 %v20746_v27  ;;  %v20833_v27 = vld [vmem:[#allocation8 + $0xe28] ss:$16 sps:$4 sm:$0xff]  }
 0x875   : > { %16914 = vmatpush1.bf16.msra.mxu1 %v20749_v54  ;;  %16491 = vmatprep.subr.bf16.mxu0 %v20754_v57  ;;  %v20838_v54 = vld [vmem:[#allocation8 + $0xe44] ss:$16 sps:$4 sm:$0xff]   ;;  %v20841_v57 = vld [vmem:[#allocation8 + $0xe4c] ss:$16 sps:$4 sm:$0xff]  }
 0x876   : > { %16915 = vmatprep.subr.bf16.mxu1 %v20757_v59  ;;  %v20836_v59 = vld [vmem:[#allocation8 + $0xe40] ss:$16 sps:$4 sm:$0xff]  }
 0x878   : > { %16492 = vmatpush1.bf16.msra.mxu0 %v20752_v51  ;;  %v20839_v51 = vld [vmem:[#allocation8 + $0xe48] ss:$16 sps:$4 sm:$0xff]  }
 0x879   : > { %16916 = vmatpush1.bf16.msra.mxu1 %v20755_v21  ;;  %16493 = vmatprep.subr.bf16.mxu0 %v20760_v61  ;;  %v20844_v21 = vld [vmem:[#allocation8 + $0xe64] ss:$16 sps:$4 sm:$0xff]   ;;  %v20845_v61 = vld [vmem:[#allocation8 + $0xe68] ss:$16 sps:$4 sm:$0xff]  }
 0x87a   : > { %16917 = vmatprep.subr.bf16.mxu1 %v20763_v24  ;;  %v20850_v24 = vld [vmem:[#allocation8 + $0xe84] ss:$16 sps:$4 sm:$0xff]  }
 0x87c   : > { %16494 = vmatpush1.bf16.msra.mxu0 %v20758_v0  ;;  %v20853_v0 = vld [vmem:[#allocation8 + $0xe8c] ss:$16 sps:$4 sm:$0xff]  }
 0x87d   : > { %16918 = vmatpush1.bf16.msra.mxu1 %v20761_v63  ;;  %16495 = vmatprep.subr.bf16.mxu0 %v20766_v1  ;;  %v20848_v63 = vld [vmem:[#allocation8 + $0xe80] ss:$16 sps:$4 sm:$0xff]   ;;  %v20851_v1 = vld [vmem:[#allocation8 + $0xe88] ss:$16 sps:$4 sm:$0xff]  }
 0x87e   : > { %16919 = vmatprep.subr.bf16.mxu1 %v20769_v3  ;;  %v20856_v3 = vld [vmem:[#allocation8 + $0xea4] ss:$16 sps:$4 sm:$0xff]  }
 0x880   : > { %16496 = vmatpush1.bf16.msra.mxu0 %v20764_v4  ;;  %v20854_v4 = vld [vmem:[#allocation8 + $0xea0] ss:$16 sps:$4 sm:$0xff]  }
 0x881   : > { %16920 = vmatpush1.bf16.msra.mxu1 %v20767_v18  ;;  %16497 = vmatprep.subr.bf16.mxu0 %v20772_v58  ;;  %v20862_v18 = vld [vmem:[#allocation8 + $0xec4] ss:$16 sps:$4 sm:$0xff]   ;;  %v20865_v58 = vld [vmem:[#allocation8 + $0xecc] ss:$16 sps:$4 sm:$0xff]  }
 0x882   : > { %16921 = vmatprep.subr.bf16.mxu1 %v20775_v5  ;;  %v20860_v5 = vld [vmem:[#allocation8 + $0xec0] ss:$16 sps:$4 sm:$0xff]  }
 0x884   : > { %16498 = vmatpush1.bf16.msra.mxu0 %v20770_v6  ;;  %v20863_v6 = vld [vmem:[#allocation8 + $0xec8] ss:$16 sps:$4 sm:$0xff]  }
 0x885   : > { %16922 = vmatpush1.bf16.msra.mxu1 %v20773_v7  ;;  %16499 = vmatprep.subr.bf16.mxu0 %v20778_v8  ;;  %v20868_v7 = vld [vmem:[#allocation8 + $0xee4] ss:$16 sps:$4 sm:$0xff]   ;;  %v20871_v8 = vld [vmem:[#allocation8 + $0xeec] ss:$16 sps:$4 sm:$0xff]  }
 0x886   : > { %16923 = vmatprep.subr.bf16.mxu1 %v20781_v9  ;;  %v20866_v9 = vld [vmem:[#allocation8 + $0xee0] ss:$16 sps:$4 sm:$0xff]  }
 0x888   : > { %16500 = vmatpush1.bf16.msra.mxu0 %v20776_v10  ;;  %v20869_v10 = vld [vmem:[#allocation8 + $0xee8] ss:$16 sps:$4 sm:$0xff]  }
 0x889   : > { %16924 = vmatpush1.bf16.msra.mxu1 %v20779_v55  ;;  %16501 = vmatprep.subr.bf16.mxu0 %v20784_v46  ;;  %v20874_v55 = vld [vmem:[#allocation8 + $0xf04] ss:$16 sps:$4 sm:$0xff]   ;;  %v20877_v46 = vld [vmem:[#allocation8 + $0xf0c] ss:$16 sps:$4 sm:$0xff]  }
 0x88a   : > { %16925 = vmatprep.subr.bf16.mxu1 %v20787_v40  ;;  %v20872_v40 = vld [vmem:[#allocation8 + $0xf00] ss:$16 sps:$4 sm:$0xff]  }
 0x88c   : > { %16502 = vmatpush1.bf16.msra.mxu0 %v20782_v11  ;;  %v20875_v11 = vld [vmem:[#allocation8 + $0xf08] ss:$16 sps:$4 sm:$0xff]  }
 0x88d   : > { %16926 = vmatpush1.bf16.msra.mxu1 %v20785_v15  ;;  %16503 = vmatprep.subr.bf16.mxu0 %v20790_v16  ;;  %v20880_v15 = vld [vmem:[#allocation8 + $0xf24] ss:$16 sps:$4 sm:$0xff]   ;;  %v20883_v16 = vld [vmem:[#allocation8 + $0xf2c] ss:$16 sps:$4 sm:$0xff]  }
 0x88e   : > { %16927 = vmatprep.subr.bf16.mxu1 %v20793_v22  ;;  %v20878_v22 = vld [vmem:[#allocation8 + $0xf20] ss:$16 sps:$4 sm:$0xff]  }
 0x890   : > { %16504 = vmatpush1.bf16.msra.mxu0 %v20788_v35  ;;  %v20881_v35 = vld [vmem:[#allocation8 + $0xf28] ss:$16 sps:$4 sm:$0xff]  }
 0x891   : > { %16928 = vmatpush1.bf16.msra.mxu1 %v20791_v20  ;;  %16505 = vmatprep.subr.bf16.mxu0 %v20796_v39  ;;  %v20886_v20 = vld [vmem:[#allocation8 + $0xf44] ss:$16 sps:$4 sm:$0xff]   ;;  %v20889_v39 = vld [vmem:[#allocation8 + $0xf4c] ss:$16 sps:$4 sm:$0xff]  }
 0x892   : > { %16929 = vmatprep.subr.bf16.mxu1 %v20799_v23  ;;  %v20884_v23 = vld [vmem:[#allocation8 + $0xf40] ss:$16 sps:$4 sm:$0xff]  }
 0x894   : > { %16506 = vmatpush1.bf16.msra.mxu0 %v20794_v26  ;;  %v20887_v26 = vld [vmem:[#allocation8 + $0xf48] ss:$16 sps:$4 sm:$0xff]  }
 0x895   : > { %16930 = vmatpush1.bf16.msra.mxu1 %v20797_v29  ;;  %16507 = vmatprep.subr.bf16.mxu0 %v20802_v30  ;;  %v20892_v29 = vld [vmem:[#allocation8 + $0xf64] ss:$16 sps:$4 sm:$0xff]   ;;  %v20895_v30 = vld [vmem:[#allocation8 + $0xf6c] ss:$16 sps:$4 sm:$0xff]  }
 0x896   : > { %16931 = vmatprep.subr.bf16.mxu1 %v20805_v12  ;;  %v20890_v12 = vld [vmem:[#allocation8 + $0xf60] ss:$16 sps:$4 sm:$0xff]  }
 0x898   : > { %16508 = vmatpush1.bf16.msra.mxu0 %v20800_v33  ;;  %v20893_v33 = vld [vmem:[#allocation8 + $0xf68] ss:$16 sps:$4 sm:$0xff]  }
 0x899   : > { %16932 = vmatpush1.bf16.msra.mxu1 %v20803_v38  ;;  %16509 = vmatprep.subr.bf16.mxu0 %v20808_v17  ;;  %v20898_v38 = vld [vmem:[#allocation8 + $0xf84] ss:$16 sps:$4 sm:$0xff]   ;;  %v20901_v17 = vld [vmem:[#allocation8 + $0xf8c] ss:$16 sps:$4 sm:$0xff]  }
 0x89a   : > { %16933 = vmatprep.subr.bf16.mxu1 %v20811_v42  ;;  %v20896_v42 = vld [vmem:[#allocation8 + $0xf80] ss:$16 sps:$4 sm:$0xff]  }
 0x89c   : > { %16510 = vmatpush1.bf16.msra.mxu0 %v20806_v37  ;;  %v20899_v37 = vld [vmem:[#allocation8 + $0xf88] ss:$16 sps:$4 sm:$0xff]  }
 0x89d   : > { %16934 = vmatpush1.bf16.msra.mxu1 %v20809_v43  ;;  %16511 = vmatprep.subr.bf16.mxu0 %v20814_v44  ;;  %v20904_v43 = vld [vmem:[#allocation8 + $0xfa4] ss:$16 sps:$4 sm:$0xff]   ;;  %v20907_v44 = vld [vmem:[#allocation8 + $0xfac] ss:$16 sps:$4 sm:$0xff]  }
 0x89e   : > { %16935 = vmatprep.subr.bf16.mxu1 %v20817_v45  ;;  %v20902_v45 = vld [vmem:[#allocation8 + $0xfa0] ss:$16 sps:$4 sm:$0xff]  }
 0x8a0   : > { %16512 = vmatpush1.bf16.msra.mxu0 %v20812_v47  ;;  %v20905_v47 = vld [vmem:[#allocation8 + $0xfa8] ss:$16 sps:$4 sm:$0xff]  }
 0x8a1   : > { %16936 = vmatpush1.bf16.msra.mxu1 %v20815_v31  ;;  %16513 = vmatprep.subr.bf16.mxu0 %v20820_v25  ;;  %v20910_v31 = vld [vmem:[#allocation8 + $0xfc4] ss:$16 sps:$4 sm:$0xff]   ;;  %v20913_v25 = vld [vmem:[#allocation8 + $0xfcc] ss:$16 sps:$4 sm:$0xff]  }
 0x8a2   : > { %16937 = vmatprep.subr.bf16.mxu1 %v20823_v48  ;;  %v20908_v48 = vld [vmem:[#allocation8 + $0xfc0] ss:$16 sps:$4 sm:$0xff]  }
 0x8a4   : > { %16514 = vmatpush1.bf16.msra.mxu0 %v20818_v49  ;;  %v20911_v49 = vld [vmem:[#allocation8 + $0xfc8] ss:$16 sps:$4 sm:$0xff]  }
 0x8a5   : > { %16938 = vmatpush1.bf16.msra.mxu1 %v20821_v14  ;;  %16536 = vmatprep.subr.bf16.mxu0 %v20826_v56  ;;  %v20916_v14 = vld [vmem:[#allocation8 + $0xfe4] ss:$16 sps:$4 sm:$0xff]   ;;  %v20919_v56 = vld [vmem:[#allocation8 + $0xfec] ss:$16 sps:$4 sm:$0xff]  }
 0x8a6   : > { %16960 = vmatprep.subr.bf16.mxu1 %v20829_v50  ;;  %v20914_v50 = vld [vmem:[#allocation8 + $0xfe0] ss:$16 sps:$4 sm:$0xff]  }
 0x8a7   : > { %16516 = vmatmul.mubr.bf16.vlgmr.msra.gmra.mrb[32].mxu0 %v23341_v60 }
 0x8a8   : > { %16940 = vmatmul.mubr.bf16.vlgmr.msra.gmra.mrb[32].mxu1 %v23341_v60  ;;  %16525 = vmatprep.mubr.bf16.mxu0 %v23363_v19  ;;  %v20847_v60 = vld [vmem:[#allocation8 + $0xe6c] ss:$16 sps:$4 sm:$0xff]  }
 0x8a9   : > { %16537 = vmatpush1.bf16.msra.mxu0 %v20824_v52  ;;  %16949 = vmatprep.mubr.bf16.mxu1 %v23363_v19  ;;  %v20842_v19 = vld [vmem:[#allocation8 + $0xe60] ss:$16 sps:$4 sm:$0xff]   ;;  %v20917_v52 = vld [vmem:[#allocation8 + $0xfe8] ss:$16 sps:$4 sm:$0xff]  }
 0x8aa   : > { %16961 = vmatpush1.bf16.msra.mxu1 %v20827_v13  ;;  %16538 = vmatprep.subr.bf16.mxu0 %v20832_v53  ;;  %v13585_v13 = vlaneseq }
 0x8ab   : > { %16962 = vmatprep.subr.bf16.mxu1 %v20835_v41 }
 0x8ac   : > { %v23406_v53 = vshrl.u32 %v13585_v13, 7 }
 0x8ad   : > { %16539 = vmatpush1.bf16.msra.mxu0 %v20830_v36  ;;  %v13583_v36 = vld [vmem:[#allocation9] sm:$0xf] }
 0x8ae   : > { %16963 = vmatpush1.bf16.msra.mxu1 %v20833_v27  ;;  %16540 = vmatprep.subr.bf16.mxu0 %v20838_v54  ;;  %v13587_v41 = vsub.s32 0, %v23406_v53  ;;  %v13595_v27 = vsub.s32 2, %v23406_v53  ;;  %v13591_v54 = vsub.s32 1, %v23406_v53 }
 0x8af   : > { %16526 = vmatmul.mubr.bf16.gmra.mrb[36].mxu0 %v23357_v28  ;;  %16964 = vmatprep.subr.bf16.mxu1 %v20841_v57 }
 0x8b0   : > { %16950 = vmatmul.mubr.bf16.gmra.mrb[36].mxu1 %v23357_v28  ;;  %16568 = vmatprep.mubr.bf16.mxu0 %v23350_v2  ;;  %v20859_v28 = vld [vmem:[#allocation8 + $0xeac] ss:$16 sps:$4 sm:$0xff]   ;;  %v13588_v57 = vrot.slane %v13583_v36, %v13587_v41 }
 0x8b1   : > { %16541 = vmatpush1.bf16.msra.mxu0 %v20836_v59  ;;  %16992 = vmatprep.mubr.bf16.mxu1 %v23350_v2  ;;  %v20857_v2 = vld [vmem:[#allocation8 + $0xea8] ss:$16 sps:$4 sm:$0xff]  }
 0x8b2   : > { %16965 = vmatpush1.bf16.msra.mxu1 %v20839_v51  ;;  %16542 = vmatprep.subr.bf16.mxu0 %v20844_v21 }
 0x8b3   : > { %16966 = vmatprep.subr.bf16.mxu1 %v20847_v60 }
 0x8b5   : > { %16543 = vmatpush1.bf16.msra.mxu0 %v20842_v19 }
 0x8b6   : > { %16967 = vmatpush1.bf16.msra.mxu1 %v20845_v61  ;;  %16544 = vmatprep.subr.bf16.mxu0 %v20850_v24 }
 0x8b7   : > { %16968 = vmatprep.subr.bf16.mxu1 %v20853_v0 }
 0x8b9   : > { %16545 = vmatpush1.bf16.msra.mxu0 %v20848_v63 }
 0x8ba   : > { %16969 = vmatpush1.bf16.msra.mxu1 %v20851_v1  ;;  %16546 = vmatprep.subr.bf16.mxu0 %v20856_v3 }
 0x8bb   : > { %16970 = vmatprep.subr.bf16.mxu1 %v20859_v28 }
 0x8bd   : > { %16547 = vmatpush1.bf16.msra.mxu0 %v20854_v4 }
 0x8be   : > { %16971 = vmatpush1.bf16.msra.mxu1 %v20857_v2  ;;  %16548 = vmatprep.subr.bf16.mxu0 %v20862_v18 }
 0x8bf   : > { %16972 = vmatprep.subr.bf16.mxu1 %v20865_v58 }
 0x8c1   : > { %16549 = vmatpush1.bf16.msra.mxu0 %v20860_v5 }
 0x8c2   : > { %16973 = vmatpush1.bf16.msra.mxu1 %v20863_v6  ;;  %16550 = vmatprep.subr.bf16.mxu0 %v20868_v7 }
 0x8c3   : > { %16974 = vmatprep.subr.bf16.mxu1 %v20871_v8 }
 0x8c5   : > { %16551 = vmatpush1.bf16.msra.mxu0 %v20866_v9 }
 0x8c6   : > { %16975 = vmatpush1.bf16.msra.mxu1 %v20869_v10  ;;  %16552 = vmatprep.subr.bf16.mxu0 %v20874_v55 }
 0x8c7   : > { %16976 = vmatprep.subr.bf16.mxu1 %v20877_v46 }
 0x8c9   : > { %16553 = vmatpush1.bf16.msra.mxu0 %v20872_v40 }
 0x8ca   : > { %16977 = vmatpush1.bf16.msra.mxu1 %v20875_v11  ;;  %16554 = vmatprep.subr.bf16.mxu0 %v20880_v15 }
 0x8cb   : > { %16978 = vmatprep.subr.bf16.mxu1 %v20883_v16 }
 0x8cd   : > { %16555 = vmatpush1.bf16.msra.mxu0 %v20878_v22 }
 0x8ce   : > { %16979 = vmatpush1.bf16.msra.mxu1 %v20881_v35  ;;  %16556 = vmatprep.subr.bf16.mxu0 %v20886_v20 }
 0x8cf   : > { %16980 = vmatprep.subr.bf16.mxu1 %v20889_v39 }
 0x8d1   : > { %16557 = vmatpush1.bf16.msra.mxu0 %v20884_v23 }
 0x8d2   : > { %16981 = vmatpush1.bf16.msra.mxu1 %v20887_v26  ;;  %16558 = vmatprep.subr.bf16.mxu0 %v20892_v29 }
 0x8d3   : > { %16982 = vmatprep.subr.bf16.mxu1 %v20895_v30 }
 0x8d5   : > { %16559 = vmatpush1.bf16.msra.mxu0 %v20890_v12 }
 0x8d6   : > { %16983 = vmatpush1.bf16.msra.mxu1 %v20893_v33  ;;  %16560 = vmatprep.subr.bf16.mxu0 %v20898_v38 }
 0x8d7   : > { %16984 = vmatprep.subr.bf16.mxu1 %v20901_v17 }
 0x8d9   : > { %16561 = vmatpush1.bf16.msra.mxu0 %v20896_v42 }
 0x8da   : > { %16985 = vmatpush1.bf16.msra.mxu1 %v20899_v37  ;;  %16562 = vmatprep.subr.bf16.mxu0 %v20904_v43 }
 0x8db   : > { %16986 = vmatprep.subr.bf16.mxu1 %v20907_v44 }
 0x8dd   : > { %16563 = vmatpush1.bf16.msra.mxu0 %v20902_v45 }
 0x8de   : > { %16987 = vmatpush1.bf16.msra.mxu1 %v20905_v47  ;;  %16564 = vmatprep.subr.bf16.mxu0 %v20910_v31 }
 0x8df   : > { %16988 = vmatprep.subr.bf16.mxu1 %v20913_v25 }
 0x8e1   : > { %16565 = vmatpush1.bf16.msra.mxu0 %v20908_v48 }
 0x8e2   : > { %16989 = vmatpush1.bf16.msra.mxu1 %v20911_v49  ;;  %16566 = vmatprep.subr.bf16.mxu0 %v20916_v14 }
 0x8e3   : > { %16990 = vmatprep.subr.bf16.mxu1 %v20919_v56 }
 0x8e5   : > { %16567 = vmatpush1.bf16.msra.mxu0 %v20914_v50 }
 0x8e6   : > { %16991 = vmatpush1.bf16.msra.mxu1 %v20917_v52 }
 0x8e8   : > { %16569 = vmatmul.mubr.bf16.vlgmr.msra.gmra.mrb[32].mxu0 %v23344_v62 }
 0x8e9   : > { %16993 = vmatmul.mubr.bf16.vlgmr.msra.gmra.mrb[32].mxu1 %v23344_v62  ;;  %16578 = vmatprep.mubr.bf16.mxu0 %v23366_v34  ;;  %v13599_v62 = vsub.s32 3, %v23406_v53 }
 0x8ea   : > { %17002 = vmatprep.mubr.bf16.mxu1 %v23366_v34  ;;  %v23416_v34 = vrot.slane %v13583_v36, %v13595_v27 }
 0x8eb   : > { %v23424_v59 = vrot.slane %v13583_v36, %v13599_v62 }
 0x8f0   : > { %16579 = vmatmul.mubr.bf16.gmra.mrb[36].mxu0 %v23360_v32 }
 0x8f1   : > { %17003 = vmatmul.mubr.bf16.gmra.mrb[36].mxu1 %v23360_v32  ;;  %v23420_v32 = vrot.slane %v13583_v36, %v13591_v54 }
 0x9bb   : > { %v16570_v51 = vpop.f32.mrb[32].mxu0 }
 0x9bc   : > { %v19504_v21 = vadd.f32 %v16570_v51, %v13588_v57  ;;  %v16994_v60 = vpop.f32.mrb[32].mxu1  ;;  %v16572_v19 = vpop.f32.mrb[33].mxu0  ;;  %v17109_v51 = vld [vmem:[#allocation11] sm:$0xf] }
 0x9bd   : > { %v19512_v61 = vadd.f32 %v16994_v60, %v23416_v34  ;;  %v19505_v24 = vadd.f32 %v16572_v19, %v23420_v32  ;;  %v16996_v0 = vpop.f32.mrb[33].mxu1  ;;  %v16574_v63 = vpop.f32.mrb[34].mxu0 }
 0x9be   : > { %v19477_v1 = vmul.f32 -1.442695, %v19504_v21  ;;  %v19513_v3 = vadd.f32 %v16996_v0, %v23424_v59  ;;  %v19506_v28 = vadd.f32 %v16574_v63, %v13588_v57  ;;  %v16998_v4 = vpop.f32.mrb[34].mxu1  ;;  %v16576_v2 = vpop.f32.mrb[35].mxu0 }
 0x9bf   : > { %v19479_v18 = vmul.f32 -1.442695, %v19512_v61  ;;  %v19478_v58 = vmul.f32 -1.442695, %v19505_v24  ;;  %v19514_v5 = vadd.f32 %v16998_v4, %v23416_v34  ;;  %v19507_v6 = vadd.f32 %v16576_v2, %v23420_v32  ;;  %v17000_v7 = vpop.f32.mrb[35].mxu1 }
 0x9c0   : > { %20920 = vpow2.f32 %v19477_v1  ;;  %v19480_v8 = vmul.f32 -1.442695, %v19513_v3  ;;  %v19481_v9 = vmul.f32 -1.442695, %v19506_v28  ;;  %v19515_v10 = vadd.f32 %v17000_v7, %v23424_v59 }
 0x9c1   : > { %20922 = vpow2.f32 %v19479_v18  ;;  %v19483_v55 = vmul.f32 -1.442695, %v19514_v5  ;;  %v19482_v46 = vmul.f32 -1.442695, %v19507_v6  ;;  %v23439_v3 = vrot.slane %v17109_v51, %v13587_v41 }
 0x9c2   : > { %20924 = vpow2.f32 %v19478_v58  ;;  %v19484_v40 = vmul.f32 -1.442695, %v19515_v10 }
 0x9c3   : > { %20926 = vpow2.f32 %v19480_v8  ;;  %v16580_v11 = vpop.f32.mrb[36].mxu0 }
 0x9c4   : > { %20928 = vpow2.f32 %v19481_v9  ;;  %v19508_v15 = vadd.f32 %v16580_v11, %v13588_v57  ;;  %v17004_v16 = vpop.f32.mrb[36].mxu1  ;;  %v16582_v22 = vpop.f32.mrb[37].mxu0  ;;  %v17122_v9 = vrot.slane %v17109_v51, %v13595_v27 }
 0x9c5   : > { %20930 = vpow2.f32 %v19483_v55  ;;  %v19516_v35 = vadd.f32 %v17004_v16, %v23416_v34  ;;  %v19509_v20 = vadd.f32 %v16582_v22, %v23420_v32  ;;  %v17006_v39 = vpop.f32.mrb[37].mxu1  ;;  %v16584_v23 = vpop.f32.mrb[38].mxu0 }
 0x9c6   : > { %20932 = vpow2.f32 %v19482_v46  ;;  %v19485_v26 = vmul.f32 -1.442695, %v19508_v15  ;;  %v19517_v29 = vadd.f32 %v17006_v39, %v23424_v59  ;;  %v19510_v30 = vadd.f32 %v16584_v23, %v13588_v57  ;;  %v17008_v12 = vpop.f32.mrb[38].mxu1  ;;  %v16586_v33 = vpop.f32.mrb[39].mxu0 }
 0x9c7   : > { %20934 = vpow2.f32 %v19484_v40  ;;  %v19487_v38 = vmul.f32 -1.442695, %v19516_v35  ;;  %v19486_v17 = vmul.f32 -1.442695, %v19509_v20  ;;  %v17010_v42 = vpop.f32.mrb[39].mxu1  ;;  %v19518_v61 = vadd.f32 %v17008_v12, %v23416_v34 }
 0x9c8   : > { %20936 = vpow2.f32 %v19485_v26  ;;  %v19488_v37 = vmul.f32 -1.442695, %v19517_v29  ;;  %v19489_v43 = vmul.f32 -1.442695, %v19510_v30  ;;  %v19511_v63 = vadd.f32 %v16586_v33, %v23420_v32 }
 0x9c9   : > { %20938 = vpow2.f32 %v19487_v38  ;;  %v19519_v4 = vadd.f32 %v17010_v42, %v23424_v59  ;;  %v23444_v34 = vrot.slane %v17109_v51, %v13591_v54  ;;  %v19491_v32 = vmul.f32 -1.442695, %v19518_v61 }
 0x9ca   : > { %v20921_v44 = vpop.eup %20920  ;;  %20940 = vpow2.f32 %v19486_v17  ;;  %v19490_v7 = vmul.f32 -1.442695, %v19511_v63  ;;  %v17126_v54 = vrot.slane %v17109_v51, %v13599_v62 }
 0x9cb   : > { %v20923_v45 = vpop.eup %20922  ;;  %v17061_v47 = vadd.f32 1.0, %v20921_v44  ;;  %20942 = vpow2.f32 %v19488_v37  ;;  %v19492_v8 = vmul.f32 -1.442695, %v19519_v4 }
 0x9cc   : > { %v20925_v31 = vpop.eup %20924  ;;  %v17063_v25 = vadd.f32 1.0, %v20923_v45  ;;  %20944 = vpow2.f32 %v19489_v43 }
 0x9cd   : > { %v20927_v48 = vpop.eup %20926  ;;  %20946 = vrcp.f32 %v17061_v47  ;;  %v17062_v49 = vadd.f32 1.0, %v20925_v31 }
 0x9ce   : > { %v20929_v14 = vpop.eup %20928  ;;  %20948 = vrcp.f32 %v17063_v25  ;;  %v17064_v56 = vadd.f32 1.0, %v20927_v48 }
 0x9cf   : > { %v20931_v50 = vpop.eup %20930  ;;  %20950 = vrcp.f32 %v17062_v49  ;;  %v17065_v52 = vadd.f32 1.0, %v20929_v14 }
 0x9d0   : > { %v20933_v13 = vpop.eup %20932  ;;  %20952 = vrcp.f32 %v17064_v56  ;;  %v17067_v36 = vadd.f32 1.0, %v20931_v50 }
 0x9d1   : > { %v20935_v57 = vpop.eup %20934  ;;  %20954 = vrcp.f32 %v17065_v52  ;;  %v17066_v21 = vadd.f32 1.0, %v20933_v13 }
 0x9d2   : > { %v20937_v60 = vpop.eup %20936  ;;  %20956 = vrcp.f32 %v17067_v36  ;;  %v17068_v19 = vadd.f32 1.0, %v20935_v57 }
 0x9d3   : > { %v20939_v24 = vpop.eup %20938  ;;  %20958 = vrcp.f32 %v17066_v21  ;;  %v17069_v0 = vadd.f32 1.0, %v20937_v60 }
 0x9d4   : > { %v20941_v1 = vpop.eup %20940  ;;  %20960 = vrcp.f32 %v17068_v19  ;;  %v17071_v28 = vadd.f32 1.0, %v20939_v24 }
 0x9d5   : > { %v20943_v2 = vpop.eup %20942  ;;  %20962 = vrcp.f32 %v17069_v0  ;;  %v17070_v18 = vadd.f32 1.0, %v20941_v1 }
 0x9d6   : > { %v20945_v58 = vpop.eup %20944  ;;  %20964 = vrcp.f32 %v17071_v28  ;;  %v17072_v5 = vadd.f32 1.0, %v20943_v2 }
 0x9d7   : > { %v20947_v6 = vpop.eup %20946  ;;  %20966 = vrcp.f32 %v17070_v18  ;;  %v17073_v29 = vadd.f32 1.0, %v20945_v58 }
 0x9d8   : > { %v20949_v41 = vpop.eup %20948  ;;  %v17131_v59 = vmul.f32 %v20947_v6, %v23439_v3  ;;  %20968 = vrcp.f32 %v17072_v5 }
 0x9d9   : > { %v20951_v10 = vpop.eup %20950  ;;  %20970 = vpow2.f32 %v19491_v32  ;;  %v17133_v15 = vmul.f32 %v20949_v41, %v17122_v9 }
 0x9da   : > { %v20953_v55 = vpop.eup %20952  ;;  %v17132_v46 = vmul.f32 %v20951_v10, %v23444_v34  ;;  %20972 = vpow2.f32 %v19490_v7 }
 0x9db   : > { %v20955_v40 = vpop.eup %20954  ;;  %20974 = vpow2.f32 %v19492_v8  ;;  %v17134_v20 = vmul.f32 %v20953_v55, %v17126_v54 }
 0x9dc   : > { %v20957_v11 = vpop.eup %20956  ;;  %v17147_v16 = vadd.f32 %v17132_v46, %v17131_v59  ;;  %v17135_v22 = vmul.f32 %v20955_v40, %v23439_v3  ;;  %20976 = vrcp.f32 %v17073_v29 }
 0x9dd   : > { %v20959_v27 = vpop.eup %20958  ;;  %v17137_v30 = vmul.f32 %v20957_v11, %v17122_v9 }
 0x9de   : > { %v20961_v35 = vpop.eup %20960  ;;  %v17148_v39 = vadd.f32 %v17147_v16, %v17133_v15  ;;  %v17136_v23 = vmul.f32 %v20959_v27, %v23444_v34 }
 0x9df   : > { %v20963_v26 = vpop.eup %20962  ;;  %v17138_v17 = vmul.f32 %v20961_v35, %v17126_v54 }
 0x9e0   : > { %v20965_v53 = vpop.eup %20964  ;;  %v17149_v62 = vadd.f32 %v17148_v39, %v17134_v20  ;;  %v17152_v12 = vadd.f32 %v17136_v23, %v17135_v22  ;;  %v17139_v33 = vmul.f32 %v20963_v26, %v23439_v3 }
 0x9e1   : > { %v20967_v38 = vpop.eup %20966  ;;  %v17141_v47 = vmul.f32 %v20965_v53, %v17122_v9 }
 0x9e2   : > { %17150 = vadd.xlane.f32.xlu0 %v17149_v62  ;;  %v17153_v42 = vadd.f32 %v17152_v12, %v17137_v30  ;;  %v17140_v37 = vmul.f32 %v20967_v38, %v23444_v34  ;;  %v20969_v43 = vpop.eup %20968 }
 0x9e3   : > { %v20971_v44 = vpop.eup %20970  ;;  %v17142_v56 = vmul.f32 %v20969_v43, %v17126_v54 }
 0x9e4   : > { %v17154_v45 = vadd.f32 %v17153_v42, %v17138_v17  ;;  %v17157_v31 = vadd.f32 %v17140_v37, %v17139_v33  ;;  %v20973_v25 = vpop.eup %20972  ;;  %v17075_v48 = vadd.f32 1.0, %v20971_v44 }
 0x9e5   : > { %v20975_v49 = vpop.eup %20974  ;;  %v17074_v14 = vadd.f32 1.0, %v20973_v25 }
 0x9e6   : > { %17155 = vadd.xlane.f32.xlu0 %v17154_v45  ;;  %v17158_v50 = vadd.f32 %v17157_v31, %v17141_v47  ;;  %20978 = vrcp.f32 %v17075_v48  ;;  %v17076_v52 = vadd.f32 1.0, %v20975_v49  ;;  %v20977_v36 = vpop.eup %20976 }
 0x9e7   : > { %20980 = vrcp.f32 %v17074_v14  ;;  %v17143_v51 = vmul.f32 %v20977_v36, %v23439_v3 }
 0x9e8   : > { %v17159_v13 = vadd.f32 %v17158_v50, %v17142_v56  ;;  %20982 = vrcp.f32 %v17076_v52 }
 0x9ea   : > { %17160 = vadd.xlane.f32.xlu1 %v17159_v13 }
 0x9f0   : > { %v20979_v57 = vpop.eup %20978 }
 0x9f1   : > { %v20981_v21 = vpop.eup %20980  ;;  %v17145_v61 = vmul.f32 %v20979_v57, %v17122_v9 }
 0x9f2   : > { %v17144_v60 = vmul.f32 %v20981_v21, %v23444_v34  ;;  %v20983_v19 = vpop.eup %20982 }
 0x9f3   : > { %v17146_v0 = vmul.f32 %v20983_v19, %v17126_v54 }
 0x9f4   : > { %v17162_v24 = vadd.f32 %v17144_v60, %v17143_v51 }
 0x9f6   : > { %v17163_v63 = vadd.f32 %v17162_v24, %v17145_v61 }
 0x9f8   : > { %v17164_v1 = vadd.f32 %v17163_v63, %v17146_v0 }
 0x9fa   : > { %17165 = vadd.xlane.f32.xlu1 %v17164_v1 }
 0x9fb   : > { %21217 = shalt.err (!%p21214_p13)
}
 0x9fc   : > { %s21218_s22 = scalar_lea.hbm %s23462_s15, 8192  ;;  %s21222_s10 = scalar_lea.hbm %s23519_s6, 16384 }
 0x9fd   : > { %p21219_p9 = scmp.ne.s32.totalorder %s23462_s15, %s21218_s22  ;;  %p21223_p4 = scmp.lt.u32.totalorder %s23462_s15, %s23519_s6 }
 0x9fe   : > { %p21224_p8 = scmp.lt.u32.totalorder %s21222_s10, %s21218_s22  ;;  %p21226_p3 = scmp.lt.u32.totalorder %s21218_s22, %s23462_s15 }
 0x9ff   : > { %p21220_p0 = pnand %p21219_p9, %p21497_p10 }
 0xa00   : > { %p21225_p6 = por %p21224_p8, %p21223_p4 }
 0xa01   : > { %p21221_p11 = pneg %p21220_p0 }
 0xa02   : > { %p21227_p5 = por %p21226_p3, %p21225_p6 }
 0xa04   : > { %p21228_p7 = pnand %p21227_p5, %p21221_p11 }
 0xa06   : > { %21231 = shalt.err (!%p21228_p7)
}
 0xa07   : > { %s21293_s17 = smov 2048   ;;  %s21294_s12 = smov 128   ;;  %vm17173_vm1 = vcmask 7168  }
 0xa08   : > { %20036 = dma.vmem_to_hbm [thread:$0]  (%p21497_p10), %s23465_s19, 8192, %s23462_s15, %s17179_s25, %s21293_s17, %s21293_s17, %s21294_s12  }
 0xa09   : > { %s17353_s30 = sshll.u32 %s21359_s5, 2  ;;  %s17167_s13 = sld [smem:[#allocation2]] }
 0xa0a   : > { %p364_p12 = scmp.lt.s32.totalorder %s17353_s30, 7 }
 0xa0c   : > { %s23545_s30 = smov (!%p364_p12, %s17353_s30), 7 }
 0xa0d   : > { %s17354_s21 = sshll.u32 %s23545_s30, 3 }
 0xa0e   : > { %s367_s8 = scalar_lea.vmem %s23520_s7, %s17354_s21 }
 0xa0f   : > { %v17168_v3 = vstv %s17167_s13 }
 0xa6f   : > { %v17151_v28 = vpop.xlane.xlu0 %17150 }
 0xa70   : > { %v17169_v4 = vadd.f32 %v17168_v3, %v17151_v28 }
 0xa72   : > { %17174 = vst.msk [vmem:[%s367_s8] sm:$0xff] %vm17173_vm1, %v17169_v4 }
 0xa73   : > { %v17156_v2 = vpop.xlane.xlu0 %17155 }
 0xa74   : > { %v17170_v18 = vadd.f32 %v17168_v3, %v17156_v2 }
 0xa76   : > { %17175 = vst.msk [vmem:[%s367_s8 + $0x8] sm:$0xff] %vm17173_vm1, %v17170_v18 }
 0xa77   : > { %v17161_v58 = vpop.xlane.xlu1 %17160 }
 0xa78   : > { %v17171_v34 = vadd.f32 %v17168_v3, %v17161_v58 }
 0xa7a   : > { %17176 = vst.msk [vmem:[%s367_s8 + $0x10] sm:$0xff] %vm17173_vm1, %v17171_v34 }
 0xa87   : > { %v17166_v5 = vpop.xlane.xlu1 %17165 }
 0xa88   : > { %v17172_v32 = vadd.f32 %v17168_v3, %v17166_v5 }
 0xa8a   : > { %17177 = vst.msk [vmem:[%s367_s8 + $0x18] sm:$0xff] %vm17173_vm1, %v17172_v32 }
 0xa8b PF: > { %s17217_s5 = sand.u32 1, %s21266_s26   ;;  %p23538_p10 = scmp.ne.s32.totalorder %s23525_s9, 0 }
 0xa8c   : > { %p23539_p2 = scmp.ge.s32.totalorder %s21278_s29, 2  ;;  %s17218_s11 = scalar_lea.sflag [#allocation5], %s17217_s5 }
 0xa8e   : > { %p20056_p1 = pnand %p23539_p2, %p23538_p10 }
 0xa90   : > { %21261 = dma.done.wait (!%p20056_p1), %s17218_s11, 8192  }
 0xa91   : > { %21263 = vsyncadd (!%p20056_p1), %s17218_s11, 4294959104  ;;  %p24_p13 = scmp.ge.s32.totalorder %s21487_s23, 4   ;;  %s23540_s26 = smov %s21270_s27 }
 0xa92   : > { %s23541_s27 = smov %s21274_s28  ;;  %s23542_s28 = smov %s21503_s14 }
 0xa93   : > { %s23543_s29 = smov %s21487_s23  ;;  %26 = sbr.rel (!%p24_p13) target bundleno = 9 (0x9), region = 117 }
 0xa9a   :  { %17231 = vsyncpa [#allocation4], 1 }
 0xa9b   :  { %17233 = vsyncpa [#allocation4 + $0x1], 1 }
 0xa9c   :  { %17234 = vsyncpa [#allocation7], 1 }
 0xa9d   :  { %17235 = vsyncpa [#allocation10], 1 }
 0xa9e   :  { %17236 = vsyncpa [#allocation5], 1 }
 0xa9f   :  { %17238 = vsyncpa [#allocation5 + $0x1], 1 }

</bundles_post_ra>
